<compile_context>
chip_gen: v6e
topology: v6e:2x2x1
jax: 0.10.0
libtpu: 0.0.40
codegen_flags: <defaults>
</compile_context>

<pallas_src>
import numpy as np
import jax
import jax.numpy as jnp
from jax import lax
from jax.experimental import pallas as pl
from jax.experimental.pallas import tpu as pltpu

HID = 100                    # LSTM hidden size
TARGET = 3
L_IN = 128                   # hdr length (fixed: LSTM input_size = 126*64)
L1 = L_IN - 1                # 127 (conv1 output length)
L2 = L_IN - 2                # 126 (conv2 output length)
C1, C2 = 32, 64
FEAT = C2 * L2               # 8064  (PyTorch flattened LSTM input size)
LPAD = 128                   # per-channel lane-padded row length
FEATP = C2 * LPAD            # 8192  (lane-padded flattened length streamed from HBM)
GATE = 4 * HID               # 400   (PyTorch gate order i, f, g, o)
TKP = 2048                   # K tile over FEATP -> 4 grid steps, lane-aligned

# Streamed W_ih^T dominates HBM traffic -> bf16 stream, fed straight to the MXU.
WX_STREAM_DTYPE = jnp.bfloat16
# Packed flattened activation dtype (bf16 x bf16 is the native MXU path on all chips).
XP_DTYPE = jnp.bfloat16
UNROLL = 8                   # bounded unroll for the per-sample / per-timestep loops

assert FEATP % TKP == 0 and TKP % LPAD == 0 and C2 % (TKP // LPAD) == 0


def _round_up(x, m):
    return ((x + m - 1) // m) * m


def _padded_bytes(shape, dtype):
    """VMEM footprint of one buffer, padded to the (8,128) (f32) / (16,128) (bf16) tile."""
    itemsize = np.dtype(dtype).itemsize
    sub = 8 * (4 // itemsize)                      # f32 -> 8 sublanes, bf16 -> 16
    if len(shape) < 2:
        return _round_up(int(np.prod(shape, initial=1)), 128) * itemsize
    lead = int(np.prod(shape[:-2], initial=1))
    return lead * _round_up(shape[-2], sub) * _round_up(shape[-1], 128) * itemsize


def _vmem_limit_bytes(n):
    """Account for every resident buffer (incl. the N-scaling ones) + headroom."""
    n_k = FEATP // TKP
    b = 0
    # pipelined inputs (double-buffered)
    b += 2 * _padded_bytes((TKP, GATE), WX_STREAM_DTYPE)          # streamed W_ih^T tile
    b += 2 * _padded_bytes((n, L_IN), jnp.float32)                # hdr
    b += 2 * 3 * _padded_bytes((C1, 1), jnp.float32)              # conv1 taps + bias
    b += 2 * (2 * _padded_bytes((C2, C1), jnp.float32)
              + _padded_bytes((C2, 1), jnp.float32))               # conv2 taps + bias
    b += 2 * (_padded_bytes((HID, GATE), jnp.float32)
              + _padded_bytes((1, GATE), jnp.float32)
              + _padded_bytes((HID, HID), jnp.float32)
              + _padded_bytes((1, HID), jnp.float32)
              + _padded_bytes((HID, TARGET), jnp.float32)
              + _padded_bytes((1, TARGET), jnp.float32))
    # outputs (double-buffered)
    b += 2 * _padded_bytes((n, TARGET), jnp.float32)
    b += 2 * _padded_bytes((n, C2, LPAD), jnp.float32)
    # scratch (single copy each)
    b += _padded_bytes((n, C1, L1), jnp.float32)                  # conv1 activations
    b += _padded_bytes((n_k, n, TKP), XP_DTYPE)                   # packed x_flat
    b += _padded_bytes((n, GATE), jnp.float32)                    # gates accumulator
    b += _padded_bytes((n, HID), jnp.float32)                     # all hidden states
    return int(b + 8 * 1024 * 1024)                               # compiler headroom


# -----------------------------------------------------------------------------
# Fused kernel: Conv1d(1->32,2)+BN+ReLU + Conv1d(32->64,2)+BN+ReLU  (k == 0)
#               + tiled bf16 gates matmul (every k)
#               + LSTM recurrence + MLP head (k == last)
# -----------------------------------------------------------------------------
def fused_forward_kernel(
        hdr_ref, w10_ref, w11_ref, b1_ref, w20_ref, w21_ref, b2_ref,
        wxp_ref, wh_ref, bg_ref, wl1_ref, bl1_ref, wl2_ref, bl2_ref,
        pred_ref, feat_ref,
        y1_ref, xp_ref, gx_ref, hall_ref):
    k = pl.program_id(0)
    nb = feat_ref.shape[0]                    # batch == LSTM sequence length (static)

    # ---------------------------------------------------------------- k == 0
    @pl.when(k == 0)
    def _conv_and_init():
        gx_ref[...] = jnp.zeros_like(gx_ref)
        # zero the lane-padded feature output once; per-sample stores only touch the
        # first 126 lanes, so the 2 pad lanes stay exactly zero (needed so the packed
        # activations cannot feed NaN*0 into the gates matmul).
        feat_ref[...] = jnp.zeros_like(feat_ref)

        x = hdr_ref[...]                                  # (N, 128)
        xa = x[:, 0:L1][:, None, :]                       # tap l   (N, 1, 127)
        xb = x[:, 1:L_IN][:, None, :]                     # tap l+1 (N, 1, 127)
        w10 = w10_ref[...][None]                          # (1, 32, 1) -- hoisted broadcasts
        w11 = w11_ref[...][None]
        b1 = b1_ref[...][None]
        # conv1 (k=2, C_in=1) batched over the whole batch; BN folded; ReLU.
        y1_ref[...] = jnp.maximum(w10 * xa + w11 * xb + b1, 0.0)      # (N, 32, 127)

        w20 = w20_ref[...]                                # (64, 32)
        w21 = w21_ref[...]
        b2 = jnp.broadcast_to(b2_ref[...], (C2, L2))      # hoisted out of the sample loop

        def conv2_body(n, carry):
            y1n = y1_ref[n]                               # (32, 127)
            z = (jnp.dot(w20, y1n[:, 0:L2], preferred_element_type=jnp.float32)
                 + jnp.dot(w21, y1n[:, 1:L1], preferred_element_type=jnp.float32))
            feat_ref[n, :, 0:L2] = jnp.maximum(z + b2, 0.0)           # (64, 126)
            return carry

        # bounded unroll: keeps LLO visibility without code-size blow-up at larger N.
        lax.fori_loop(0, nb, conv2_body, 0, unroll=min(UNROLL, nb))

        # torch: hdr.view(batch, 64*126).  Each 126-wide channel row is packed at a
        # 128-lane-aligned offset of the flattened scratch; the copy is a full, unmasked
        # 128-lane store (pad lanes of feat are zero).  Static loop: channel count is 64.
        cpt = TKP // LPAD                                 # channels per K tile
        for c in range(C2):
            kt, off = divmod(c, cpt)
            xp_ref[kt, :, off * LPAD:(off + 1) * LPAD] = (
                feat_ref[:, c, :].astype(XP_DTYPE))

    # ------------------------------------------------------------- every step
    # Hot path: accumulate x_flat @ W_ih^T over the streamed, double-buffered bf16 tiles.
    # No upcast: bf16 x bf16 feeds the MXU natively with an f32 accumulator.
    gx_ref[...] += jnp.dot(xp_ref[k], wxp_ref[...],
                           preferred_element_type=jnp.float32)        # (N, 400)

    # --------------------------------------------------------------- k == last
    @pl.when(k == pl.num_programs(0) - 1)
    def _recurrence_and_head():
        wh = wh_ref[...]                                  # (100, 400) = W_hh^T
        bg = bg_ref[...]                                  # (1, 400)   = b_ih + b_hh

        # Per-step (1,100)@(100,400) dot; pinning W_hh in MXU weight registers
        # (matmul_push_rhs/acc_lhs/pop) only pays off once N is large.
        def cell(t, carry):
            h, c = carry
            g = gx_ref[pl.ds(t, 1), :] + bg + jnp.dot(
                h, wh, preferred_element_type=jnp.float32)            # (1, 400)
            i_g = jax.nn.sigmoid(g[:, 0:HID])             # PyTorch gate order i, f, g, o
            f_g = jax.nn.sigmoid(g[:, HID:2 * HID])
            g_g = jnp.tanh(g[:, 2 * HID:3 * HID])
            o_g = jax.nn.sigmoid(g[:, 3 * HID:4 * HID])
            c = f_g * c + i_g * g_g
            h = o_g * jnp.tanh(c)
            hall_ref[pl.ds(t, 1), :] = h                  # stash h_t for the batched head
            return (h, c)

        h0 = jnp.zeros((1, HID), jnp.float32)
        c0 = jnp.zeros((1, HID), jnp.float32)
        lax.fori_loop(0, nb, cell, (h0, c0), unroll=min(UNROLL, nb))

        # MLP head hoisted out of the recurrence: one (N,100)@(100,100) + ReLU and one
        # (N,100)@(100,3), written with a single store.  Dropouts are identity at eval.
        hseq = hall_ref[...]                              # (N, 100)
        z = jnp.maximum(
            jnp.dot(hseq, wl1_ref[...], preferred_element_type=jnp.float32)
            + bl1_ref[...], 0.0)
        pred_ref[...] = (jnp.dot(z, wl2_ref[...], preferred_element_type=jnp.float32)
                         + bl2_ref[...])


# -----------------------------------------------------------------------------
# Wrapper
# -----------------------------------------------------------------------------
def traffic_cnn_rnn_forward(hdr, pay, params):
    n = hdr.shape[0]
    n_k = FEATP // TKP

    pred, feat_padded = pl.pallas_call(
        fused_forward_kernel,
        out_shape=(jax.ShapeDtypeStruct((n, TARGET), jnp.float32),
                   jax.ShapeDtypeStruct((n, C2, LPAD), jnp.float32)),
        grid_spec=pltpu.PrefetchScalarGridSpec(
            num_scalar_prefetch=0,
            grid=(n_k,),
            in_specs=[
                pl.BlockSpec((n, L_IN), lambda k: (0, 0)),        # hdr
                pl.BlockSpec((C1, 1), lambda k: (0, 0)),          # conv1 tap0 (BN folded)
                pl.BlockSpec((C1, 1), lambda k: (0, 0)),          # conv1 tap1
                pl.BlockSpec((C1, 1), lambda k: (0, 0)),          # conv1 bias
                pl.BlockSpec((C2, C1), lambda k: (0, 0)),         # conv2 tap0 (BN folded)
                pl.BlockSpec((C2, C1), lambda k: (0, 0)),         # conv2 tap1
                pl.BlockSpec((C2, 1), lambda k: (0, 0)),          # conv2 bias
                pl.BlockSpec((TKP, GATE), lambda k: (k, 0)),      # bf16 W_ih^T tile
                pl.BlockSpec((HID, GATE), lambda k: (0, 0)),      # W_hh^T
                pl.BlockSpec((1, GATE), lambda k: (0, 0)),        # b_ih + b_hh
                pl.BlockSpec((HID, HID), lambda k: (0, 0)),       # Linear1 W^T
                pl.BlockSpec((1, HID), lambda k: (0, 0)),         # Linear1 b
                pl.BlockSpec((HID, TARGET), lambda k: (0, 0)),    # Linear2 W^T
                pl.BlockSpec((1, TARGET), lambda k: (0, 0)),      # Linear2 b
            ],
            out_specs=[
                pl.BlockSpec((n, TARGET), lambda k: (0, 0)),      # pred
                pl.BlockSpec((n, C2, LPAD), lambda k: (0, 0, 0)), # lane-dense conv feat
            ],
            scratch_shapes=[
                pltpu.VMEM((n, C1, L1), jnp.float32),             # conv1 activations
                pltpu.VMEM((n_k, n, TKP), XP_DTYPE),              # lane-padded x_flat
                pltpu.VMEM((n, GATE), jnp.float32),               # gates accumulator
                pltpu.VMEM((n, HID), jnp.float32),                # all LSTM hidden states
            ],
        ),
        compiler_params=pltpu.CompilerParams(
            dimension_semantics=("arbitrary",),                   # reduction axis
            vmem_limit_bytes=_vmem_limit_bytes(n),                # sized from all buffers
        ),
    )(hdr, params["w10"], params["w11"], params["b1"],
      params["w20"], params["w21"], params["b2"],
      params["wxp"], params["wh"], params["b_gate"],
      params["wl1"], params["bl1"], params["wl2"], params["bl2"])

    hdr_feat = feat_padded[:, :, :L2]         # drop the 2 zero pad lanes -> (N, 64, 126)
    pred = jnp.squeeze(pred)                  # matches torch pred.squeeze()
    return pred, hdr_feat, pay


# -----------------------------------------------------------------------------
# Deterministic synthetic parameters (shapes from the module __init__)
# -----------------------------------------------------------------------------
def init_params(key):
    ks = jax.random.split(key, 20)
    eps = 1e-5

    def rnd(k, shape, scale=0.05):
        return scale * jax.random.normal(k, shape, dtype=jnp.float32)

    # Conv1d(1, 32, 2) + BatchNorm1d(32) (eval) -> fold BN into the conv.
    w1 = rnd(ks[0], (C1, 1, 2))
    b1 = rnd(ks[1], (C1,))
    g1 = 1.0 + 0.1 * jax.random.normal(ks[2], (C1,), dtype=jnp.float32)
    beta1 = rnd(ks[3], (C1,))
    rm1 = rnd(ks[4], (C1,))
    rv1 = 1.0 + 0.1 * jax.random.uniform(ks[5], (C1,), dtype=jnp.float32)
    s1 = g1 / jnp.sqrt(rv1 + eps)
    w1f = w1 * s1[:, None, None]
    b1f = b1 * s1 + beta1 - rm1 * s1

    # Conv1d(32, 64, 2) + BatchNorm1d(64) (eval) -> fold BN into the conv.
    w2 = rnd(ks[6], (C2, C1, 2))
    b2 = rnd(ks[7], (C2,))
    g2 = 1.0 + 0.1 * jax.random.normal(ks[8], (C2,), dtype=jnp.float32)
    beta2 = rnd(ks[9], (C2,))
    rm2 = rnd(ks[10], (C2,))
    rv2 = 1.0 + 0.1 * jax.random.uniform(ks[11], (C2,), dtype=jnp.float32)
    s2 = g2 / jnp.sqrt(rv2 + eps)
    w2f = w2 * s2[:, None, None]
    b2f = b2 * s2 + beta2 - rm2 * s2

    # nn.LSTM(input_size=8064, hidden_size=100): W_ih (400, 8064), W_hh (400, 100).
    w_ih = rnd(ks[12], (GATE, FEAT), 0.01)
    w_hh = rnd(ks[13], (GATE, HID), 0.05)
    b_ih = rnd(ks[14], (GATE,))
    b_hh = rnd(ks[15], (GATE,))

    # TS_App2: Linear(100, 100), Linear(100, 3).
    wlin1 = rnd(ks[16], (HID, HID))
    blin1 = rnd(ks[17], (HID,))
    wlin2 = rnd(ks[18], (TARGET, HID))
    blin2 = rnd(ks[19], (TARGET,))

    wx_t = w_ih.T                                        # (8064, 400) = W_ih^T
    # Lane-padded W_ih^T: each 126-row channel block zero-padded to 128 rows so the
    # in-kernel flattened activation stays (8,128)-aligned; streamed in bf16.
    wxp = jnp.zeros((C2, LPAD, GATE), jnp.float32)
    wxp = wxp.at[:, :L2, :].set(wx_t.reshape(C2, L2, GATE))
    wxp = wxp.reshape(FEATP, GATE).astype(WX_STREAM_DTYPE)

    return dict(
        w10=w1f[:, 0, 0][:, None], w11=w1f[:, 0, 1][:, None], b1=b1f[:, None],
        w20=w2f[:, :, 0], w21=w2f[:, :, 1], b2=b2f[:, None],
        wxp=wxp, wx_t=wx_t,                              # wx_t only used by the reference
        wh=w_hh.T, b_gate=(b_ih + b_hh)[None, :],
        wl1=wlin1.T, bl1=blin1[None, :],
        wl2=wlin2.T, bl2=blin2[None, :],
    )


# -----------------------------------------------------------------------------
# Pure-JAX reference (same folded parameters, eval-mode semantics, f32 weights)
# -----------------------------------------------------------------------------
def reference_forward(hdr, pay, params):
    n = hdr.shape[0]
    xa, xb = hdr[:, :L1], hdr[:, 1:]
    y1 = jnp.maximum(params["w10"][None] * xa[:, None, :]
                     + params["w11"][None] * xb[:, None, :]
                     + params["b1"][None], 0.0)                       # (N, 32, 127)
    y1a, y1b = y1[:, :, :L2], y1[:, :, 1:]
    y2 = (jnp.einsum("oc,ncl->nol", params["w20"], y1a)
          + jnp.einsum("oc,ncl->nol", params["w21"], y1b)
          + params["b2"][None])
    feat = jnp.maximum(y2, 0.0)                                       # (N, 64, 126)
    gates_x = feat.reshape(n, FEAT) @ params["wx_t"] + params["b_gate"]

    def cell(carry, gx_row):
        h, c = carry
        g = gx_row + h @ params["wh"]
        i = jax.nn.sigmoid(g[:HID])
        f = jax.nn.sigmoid(g[HID:2 * HID])
        gg = jnp.tanh(g[2 * HID:3 * HID])
        o = jax.nn.sigmoid(g[3 * HID:])
        c = f * c + i * gg
        h = o * jnp.tanh(c)
        return (h, c), h

    (_, _), hs = jax.lax.scan(cell, (jnp.zeros(HID), jnp.zeros(HID)), gates_x)
    z = jnp.maximum(hs @ params["wl1"] + params["bl1"], 0.0)
    pred = z @ params["wl2"] + params["bl2"]
    return jnp.squeeze(pred), feat, pay


if __name__ == "__main__":
    key = jax.random.PRNGKey(0)
    kp, kh, kpay = jax.random.split(key, 3)
    params = init_params(kp)

    batch = 2
    hdr = jax.random.normal(kh, (batch, L_IN), dtype=jnp.float32)   # (2, 128)
    pay = jax.random.normal(kpay, (batch, 16), dtype=jnp.float32)   # passthrough

    fwd = jax.jit(traffic_cnn_rnn_forward)
    pred, hdr_feat, pay_out = fwd(hdr, pay, params)
    jax.block_until_ready((pred, hdr_feat, pay_out))

    assert pred.shape == (batch, TARGET)
    assert hdr_feat.shape == (batch, C2, L2)
    assert pay_out.shape == pay.shape

    # correctness gate against the full-precision pure-JAX reference
    pred_r, feat_r, _ = reference_forward(hdr, pay, params)
    feat_err = float(jnp.max(jnp.abs(hdr_feat - feat_r)))
    pred_err = float(jnp.max(jnp.abs(pred - pred_r)))
    assert feat_err < 1e-3, f"conv feature mismatch: {feat_err}"
    assert pred_err < 2e-2, f"pred mismatch: {pred_err}"   # bf16 weight stream tolerance

    print("KERNEL_OK")
</pallas_src>

<mosaic_0001>
module attributes {stable_mosaic.version = 11 : i64} {
  func.func @fused_forward_kernel(%arg0: i32, %arg1: memref<2x128xf32, #tpu.memory_space<vmem>>, %arg2: memref<32x1xf32, #tpu.memory_space<vmem>>, %arg3: memref<32x1xf32, #tpu.memory_space<vmem>>, %arg4: memref<32x1xf32, #tpu.memory_space<vmem>>, %arg5: memref<64x32xf32, #tpu.memory_space<vmem>>, %arg6: memref<64x32xf32, #tpu.memory_space<vmem>>, %arg7: memref<64x1xf32, #tpu.memory_space<vmem>>, %arg8: memref<2048x400xbf16, #tpu.memory_space<vmem>>, %arg9: memref<100x400xf32, #tpu.memory_space<vmem>>, %arg10: memref<1x400xf32, #tpu.memory_space<vmem>>, %arg11: memref<100x100xf32, #tpu.memory_space<vmem>>, %arg12: memref<1x100xf32, #tpu.memory_space<vmem>>, %arg13: memref<100x3xf32, #tpu.memory_space<vmem>>, %arg14: memref<1x3xf32, #tpu.memory_space<vmem>>, %arg15: memref<2x3xf32, #tpu.memory_space<vmem>>, %arg16: memref<2x64x128xf32, #tpu.memory_space<vmem>>, %arg17: memref<2x32x127xf32, #tpu.memory_space<vmem>>, %arg18: memref<4x2x2048xbf16, #tpu.memory_space<vmem>>, %arg19: memref<2x400xf32, #tpu.memory_space<vmem>>, %arg20: memref<2x100xf32, #tpu.memory_space<vmem>>) attributes {dimension_semantics = [#tpu.dimension_semantics<arbitrary>], iteration_bounds = array<i64: 4>, scalar_prefetch = 0 : i64, scratch_operands = 4 : i64, tpu.core_type = #tpu.core_type<tc>, window_params = [{pipeline_mode = #tpu.pipeline_mode<synchronous>, transform_indices = @transform_0, window_bounds = array<i64: 2, 128>}, {pipeline_mode = #tpu.pipeline_mode<synchronous>, transform_indices = @transform_1, window_bounds = array<i64: 32, 1>}, {pipeline_mode = #tpu.pipeline_mode<synchronous>, transform_indices = @transform_2, window_bounds = array<i64: 32, 1>}, {pipeline_mode = #tpu.pipeline_mode<synchronous>, transform_indices = @transform_3, window_bounds = array<i64: 32, 1>}, {pipeline_mode = #tpu.pipeline_mode<synchronous>, transform_indices = @transform_4, window_bounds = array<i64: 64, 32>}, {pipeline_mode = #tpu.pipeline_mode<synchronous>, transform_indices = @transform_5, window_bounds = array<i64: 64, 32>}, {pipeline_mode = #tpu.pipeline_mode<synchronous>, transform_indices = @transform_6, window_bounds = array<i64: 64, 1>}, {transform_indices = @transform_7, window_bounds = array<i64: 2048, 400>}, {pipeline_mode = #tpu.pipeline_mode<synchronous>, transform_indices = @transform_8, window_bounds = array<i64: 100, 400>}, {pipeline_mode = #tpu.pipeline_mode<synchronous>, transform_indices = @transform_9, window_bounds = array<i64: 1, 400>}, {pipeline_mode = #tpu.pipeline_mode<synchronous>, transform_indices = @transform_10, window_bounds = array<i64: 100, 100>}, {pipeline_mode = #tpu.pipeline_mode<synchronous>, transform_indices = @transform_11, window_bounds = array<i64: 1, 100>}, {pipeline_mode = #tpu.pipeline_mode<synchronous>, transform_indices = @transform_12, window_bounds = array<i64: 100, 3>}, {pipeline_mode = #tpu.pipeline_mode<synchronous>, transform_indices = @transform_13, window_bounds = array<i64: 1, 3>}, {pipeline_mode = #tpu.pipeline_mode<synchronous>, transform_indices = @transform_14, window_bounds = array<i64: 2, 3>}, {pipeline_mode = #tpu.pipeline_mode<synchronous>, transform_indices = @transform_15, window_bounds = array<i64: 2, 64, 128>}]} {
    %c0_i32 = arith.constant 0 : i32
    %0 = arith.cmpi eq, %arg0, %c0_i32 : i32
    %1 = arith.extui %0 : i1 to i32
    %c0_i32_0 = arith.constant 0 : i32
    %2 = arith.cmpi ne, %1, %c0_i32_0 : i32
    scf.if %2 {
      %cst_9 = arith.constant 0.000000e+00 : f32
      %14 = vector.broadcast %cst_9 : f32 to vector<2x400xf32>
      %c0_10 = arith.constant 0 : index
      %c0_11 = arith.constant 0 : index
      %15 = vector.load %arg19[%c0_10, %c0_11] : memref<2x400xf32, #tpu.memory_space<vmem>>, vector<2x400xf32>
      tpu.vector_store %arg19[%c0_10, %c0_11], %14 {strides = array<i32>} : memref<2x400xf32, #tpu.memory_space<vmem>>, vector<2x400xf32>,
      %cst_12 = arith.constant 0.000000e+00 : f32
      %16 = vector.broadcast %cst_12 : f32 to vector<2x64x128xf32>
      %c0_13 = arith.constant 0 : index
      %c0_14 = arith.constant 0 : index
      %c0_15 = arith.constant 0 : index
      %17 = vector.load %arg16[%c0_13, %c0_14, %c0_15] : memref<2x64x128xf32, #tpu.memory_space<vmem>>, vector<2x64x128xf32>
      tpu.vector_store %arg16[%c0_13, %c0_14, %c0_15], %16 {strides = array<i32>} : memref<2x64x128xf32, #tpu.memory_space<vmem>>, vector<2x64x128xf32>,
      %c0_16 = arith.constant 0 : index
      %c0_17 = arith.constant 0 : index
      %18 = vector.load %arg1[%c0_16, %c0_17] : memref<2x128xf32, #tpu.memory_space<vmem>>, vector<2x128xf32>
      %19 = vector.extract_strided_slice %18 {offsets = [0, 0], sizes = [2, 127], strides = [1, 1]} : vector<2x128xf32> to vector<2x127xf32>
      %20 = vector.shape_cast %19 : vector<2x127xf32> to vector<2x1x127xf32>
      %21 = vector.extract_strided_slice %18 {offsets = [0, 1], sizes = [2, 127], strides = [1, 1]} : vector<2x128xf32> to vector<2x127xf32>
      %22 = vector.shape_cast %21 : vector<2x127xf32> to vector<2x1x127xf32>
      %c0_18 = arith.constant 0 : index
      %c0_19 = arith.constant 0 : index
      %23 = vector.load %arg2[%c0_18, %c0_19] : memref<32x1xf32, #tpu.memory_space<vmem>>, vector<32x1xf32>
      %24 = vector.shape_cast %23 : vector<32x1xf32> to vector<1x32x1xf32>
      %c0_20 = arith.constant 0 : index
      %c0_21 = arith.constant 0 : index
      %25 = vector.load %arg3[%c0_20, %c0_21] : memref<32x1xf32, #tpu.memory_space<vmem>>, vector<32x1xf32>
      %26 = vector.shape_cast %25 : vector<32x1xf32> to vector<1x32x1xf32>
      %c0_22 = arith.constant 0 : index
      %c0_23 = arith.constant 0 : index
      %27 = vector.load %arg4[%c0_22, %c0_23] : memref<32x1xf32, #tpu.memory_space<vmem>>, vector<32x1xf32>
      %28 = vector.shape_cast %27 : vector<32x1xf32> to vector<1x32x1xf32>
      %29 = vector.broadcast %24 : vector<1x32x1xf32> to vector<2x32x127xf32>
      %30 = vector.broadcast %20 : vector<2x1x127xf32> to vector<2x32x127xf32>
      %31 = arith.mulf %29, %30 : vector<2x32x127xf32>
      %32 = vector.broadcast %26 : vector<1x32x1xf32> to vector<2x32x127xf32>
      %33 = vector.broadcast %22 : vector<2x1x127xf32> to vector<2x32x127xf32>
      %34 = arith.mulf %32, %33 : vector<2x32x127xf32>
      %35 = arith.addf %31, %34 : vector<2x32x127xf32>
      %36 = vector.broadcast %28 : vector<1x32x1xf32> to vector<2x32x127xf32>
      %37 = arith.addf %35, %36 : vector<2x32x127xf32>
      %cst_24 = arith.constant 0.000000e+00 : f32
      %38 = vector.broadcast %cst_24 : f32 to vector<2x32x127xf32>
      %39 = arith.maximumf %37, %38 : vector<2x32x127xf32>
      %c0_25 = arith.constant 0 : index
      %c0_26 = arith.constant 0 : index
      %c0_27 = arith.constant 0 : index
      %40 = vector.load %arg17[%c0_25, %c0_26, %c0_27] : memref<2x32x127xf32, #tpu.memory_space<vmem>>, vector<2x32x127xf32>
      tpu.vector_store %arg17[%c0_25, %c0_26, %c0_27], %39 {strides = array<i32>} : memref<2x32x127xf32, #tpu.memory_space<vmem>>, vector<2x32x127xf32>,
      %c0_28 = arith.constant 0 : index
      %c0_29 = arith.constant 0 : index
      %41 = vector.load %arg5[%c0_28, %c0_29] : memref<64x32xf32, #tpu.memory_space<vmem>>, vector<64x32xf32>
      %c0_30 = arith.constant 0 : index
      %c0_31 = arith.constant 0 : index
      %42 = vector.load %arg6[%c0_30, %c0_31] : memref<64x32xf32, #tpu.memory_space<vmem>>, vector<64x32xf32>
      %c0_32 = arith.constant 0 : index
      %c0_33 = arith.constant 0 : index
      %43 = vector.load %arg7[%c0_32, %c0_33] : memref<64x1xf32, #tpu.memory_space<vmem>>, vector<64x1xf32>
      %44 = vector.shape_cast %43 : vector<64x1xf32> to vector<64x1xf32>
      %45 = vector.broadcast %44 : vector<64x1xf32> to vector<64x126xf32>
      %c0_i32_34 = arith.constant 0 : i32
      %46 = arith.index_cast %c0_i32_34 : i32 to index
      %c0_35 = arith.constant 0 : index
      %c0_36 = arith.constant 0 : index
      %47 = vector.load %arg17[%46, %c0_35, %c0_36] : memref<2x32x127xf32, #tpu.memory_space<vmem>>, vector<1x32x127xf32>
      %48 = vector.shape_cast %47 : vector<1x32x127xf32> to vector<32x127xf32>
      %49 = vector.extract_strided_slice %48 {offsets = [0, 0], sizes = [32, 126], strides = [1, 1]} : vector<32x127xf32> to vector<32x126xf32>
      %cst_37 = arith.constant dense<0.000000e+00> : vector<64x126xf32>
      %50 = tpu.matmul %41, %49, %cst_37 {dimension_numbers = #tpu.dot_dimension_numbers<[1], [0], [0], [1], [0, 0, 1, 1], [], []>} : vector<64x32xf32>, vector<32x126xf32>, vector<64x126xf32> -> vector<64x126xf32>
      %51 = vector.extract_strided_slice %48 {offsets = [0, 1], sizes = [32, 126], strides = [1, 1]} : vector<32x127xf32> to vector<32x126xf32>
      %cst_38 = arith.constant dense<0.000000e+00> : vector<64x126xf32>
      %52 = tpu.matmul %42, %51, %cst_38 {dimension_numbers = #tpu.dot_dimension_numbers<[1], [0], [0], [1], [0, 0, 1, 1], [], []>} : vector<64x32xf32>, vector<32x126xf32>, vector<64x126xf32> -> vector<64x126xf32>
      %53 = arith.addf %50, %52 : vector<64x126xf32>
      %54 = arith.addf %53, %45 : vector<64x126xf32>
      %cst_39 = arith.constant 0.000000e+00 : f32
      %55 = vector.broadcast %cst_39 : f32 to vector<64x126xf32>
      %56 = arith.maximumf %54, %55 : vector<64x126xf32>
      %57 = arith.index_cast %c0_i32_34 : i32 to index
      %c0_40 = arith.constant 0 : index
      %c0_41 = arith.constant 0 : index
      %58 = vector.load %arg16[%57, %c0_40, %c0_41] : memref<2x64x128xf32, #tpu.memory_space<vmem>>, vector<1x64x126xf32>
      %59 = vector.shape_cast %58 : vector<1x64x126xf32> to vector<64x126xf32>
      %60 = vector.shape_cast %56 : vector<64x126xf32> to vector<1x64x126xf32>
      tpu.vector_store %arg16[%57, %c0_40, %c0_41], %60 {strides = array<i32>} : memref<2x64x128xf32, #tpu.memory_space<vmem>>, vector<1x64x126xf32>,
      %c1_i32 = arith.constant 1 : i32
      %61 = arith.index_cast %c1_i32 : i32 to index
      %c0_42 = arith.constant 0 : index
      %c0_43 = arith.constant 0 : index
      %62 = vector.load %arg17[%61, %c0_42, %c0_43] : memref<2x32x127xf32, #tpu.memory_space<vmem>>, vector<1x32x127xf32>
      %63 = vector.shape_cast %62 : vector<1x32x127xf32> to vector<32x127xf32>
      %64 = vector.extract_strided_slice %63 {offsets = [0, 0], sizes = [32, 126], strides = [1, 1]} : vector<32x127xf32> to vector<32x126xf32>
      %cst_44 = arith.constant dense<0.000000e+00> : vector<64x126xf32>
      %65 = tpu.matmul %41, %64, %cst_44 {dimension_numbers = #tpu.dot_dimension_numbers<[1], [0], [0], [1], [0, 0, 1, 1], [], []>} : vector<64x32xf32>, vector<32x126xf32>, vector<64x126xf32> -> vector<64x126xf32>
      %66 = vector.extract_strided_slice %63 {offsets = [0, 1], sizes = [32, 126], strides = [1, 1]} : vector<32x127xf32> to vector<32x126xf32>
      %cst_45 = arith.constant dense<0.000000e+00> : vector<64x126xf32>
      %67 = tpu.matmul %42, %66, %cst_45 {dimension_numbers = #tpu.dot_dimension_numbers<[1], [0], [0], [1], [0, 0, 1, 1], [], []>} : vector<64x32xf32>, vector<32x126xf32>, vector<64x126xf32> -> vector<64x126xf32>
      %68 = arith.addf %65, %67 : vector<64x126xf32>
      %69 = arith.addf %68, %45 : vector<64x126xf32>
      %cst_46 = arith.constant 0.000000e+00 : f32
      %70 = vector.broadcast %cst_46 : f32 to vector<64x126xf32>
      %71 = arith.maximumf %69, %70 : vector<64x126xf32>
      %72 = arith.index_cast %c1_i32 : i32 to index
      %c0_47 = arith.constant 0 : index
      %c0_48 = arith.constant 0 : index
      %73 = vector.load %arg16[%72, %c0_47, %c0_48] : memref<2x64x128xf32, #tpu.memory_space<vmem>>, vector<1x64x126xf32>
      %74 = vector.shape_cast %73 : vector<1x64x126xf32> to vector<64x126xf32>
      %75 = vector.shape_cast %71 : vector<64x126xf32> to vector<1x64x126xf32>
      tpu.vector_store %arg16[%72, %c0_47, %c0_48], %75 {strides = array<i32>} : memref<2x64x128xf32, #tpu.memory_space<vmem>>, vector<1x64x126xf32>,
      %c2_i32 = arith.constant 2 : i32
      %c0_49 = arith.constant 0 : index
      %c0_50 = arith.constant 0 : index
      %c0_51 = arith.constant 0 : index
      %76 = vector.load %arg16[%c0_49, %c0_50, %c0_51] : memref<2x64x128xf32, #tpu.memory_space<vmem>>, vector<2x1x128xf32>
      %77 = vector.shape_cast %76 : vector<2x1x128xf32> to vector<2x128xf32>
      %78 = arith.truncf %77 : vector<2x128xf32> to vector<2x128xbf16>
      %c0_52 = arith.constant 0 : index
      %c0_53 = arith.constant 0 : index
      %c0_54 = arith.constant 0 : index
      %79 = vector.load %arg18[%c0_52, %c0_53, %c0_54] : memref<4x2x2048xbf16, #tpu.memory_space<vmem>>, vector<1x2x128xbf16>
      %80 = vector.shape_cast %79 : vector<1x2x128xbf16> to vector<2x128xbf16>
      %81 = vector.shape_cast %78 : vector<2x128xbf16> to vector<1x2x128xbf16>
      tpu.vector_store %arg18[%c0_52, %c0_53, %c0_54], %81 {strides = array<i32>} : memref<4x2x2048xbf16, #tpu.memory_space<vmem>>, vector<1x2x128xbf16>,
      %c0_55 = arith.constant 0 : index
      %c1 = arith.constant 1 : index
      %c0_56 = arith.constant 0 : index
      %82 = vector.load %arg16[%c0_55, %c1, %c0_56] : memref<2x64x128xf32, #tpu.memory_space<vmem>>, vector<2x1x128xf32>
      %83 = vector.shape_cast %82 : vector<2x1x128xf32> to vector<2x128xf32>
      %84 = arith.truncf %83 : vector<2x128xf32> to vector<2x128xbf16>
      %c0_57 = arith.constant 0 : index
      %c0_58 = arith.constant 0 : index
      %c128 = arith.constant 128 : index
      %85 = vector.load %arg18[%c0_57, %c0_58, %c128] : memref<4x2x2048xbf16, #tpu.memory_space<vmem>>, vector<1x2x128xbf16>
      %86 = vector.shape_cast %85 : vector<1x2x128xbf16> to vector<2x128xbf16>
      %87 = vector.shape_cast %84 : vector<2x128xbf16> to vector<1x2x128xbf16>
      tpu.vector_store %arg18[%c0_57, %c0_58, %c128], %87 {strides = array<i32>} : memref<4x2x2048xbf16, #tpu.memory_space<vmem>>, vector<1x2x128xbf16>,
      %c0_59 = arith.constant 0 : index
      %c2 = arith.constant 2 : index
      %c0_60 = arith.constant 0 : index
      %88 = vector.load %arg16[%c0_59, %c2, %c0_60] : memref<2x64x128xf32, #tpu.memory_space<vmem>>, vector<2x1x128xf32>
      %89 = vector.shape_cast %88 : vector<2x1x128xf32> to vector<2x128xf32>
      %90 = arith.truncf %89 : vector<2x128xf32> to vector<2x128xbf16>
      %c0_61 = arith.constant 0 : index
      %c0_62 = arith.constant 0 : index
      %c256 = arith.constant 256 : index
      %91 = vector.load %arg18[%c0_61, %c0_62, %c256] : memref<4x2x2048xbf16, #tpu.memory_space<vmem>>, vector<1x2x128xbf16>
      %92 = vector.shape_cast %91 : vector<1x2x128xbf16> to vector<2x128xbf16>
      %93 = vector.shape_cast %90 : vector<2x128xbf16> to vector<1x2x128xbf16>
      tpu.vector_store %arg18[%c0_61, %c0_62, %c256], %93 {strides = array<i32>} : memref<4x2x2048xbf16, #tpu.memory_space<vmem>>, vector<1x2x128xbf16>,
      %c0_63 = arith.constant 0 : index
      %c3 = arith.constant 3 : index
      %c0_64 = arith.constant 0 : index
      %94 = vector.load %arg16[%c0_63, %c3, %c0_64] : memref<2x64x128xf32, #tpu.memory_space<vmem>>, vector<2x1x128xf32>
      %95 = vector.shape_cast %94 : vector<2x1x128xf32> to vector<2x128xf32>
      %96 = arith.truncf %95 : vector<2x128xf32> to vector<2x128xbf16>
      %c0_65 = arith.constant 0 : index
      %c0_66 = arith.constant 0 : index
      %c384 = arith.constant 384 : index
      %97 = vector.load %arg18[%c0_65, %c0_66, %c384] : memref<4x2x2048xbf16, #tpu.memory_space<vmem>>, vector<1x2x128xbf16>
      %98 = vector.shape_cast %97 : vector<1x2x128xbf16> to vector<2x128xbf16>
      %99 = vector.shape_cast %96 : vector<2x128xbf16> to vector<1x2x128xbf16>
      tpu.vector_store %arg18[%c0_65, %c0_66, %c384], %99 {strides = array<i32>} : memref<4x2x2048xbf16, #tpu.memory_space<vmem>>, vector<1x2x128xbf16>,
      %c0_67 = arith.constant 0 : index
      %c4 = arith.constant 4 : index
      %c0_68 = arith.constant 0 : index
      %100 = vector.load %arg16[%c0_67, %c4, %c0_68] : memref<2x64x128xf32, #tpu.memory_space<vmem>>, vector<2x1x128xf32>
      %101 = vector.shape_cast %100 : vector<2x1x128xf32> to vector<2x128xf32>
      %102 = arith.truncf %101 : vector<2x128xf32> to vector<2x128xbf16>
      %c0_69 = arith.constant 0 : index
      %c0_70 = arith.constant 0 : index
      %c512 = arith.constant 512 : index
      %103 = vector.load %arg18[%c0_69, %c0_70, %c512] : memref<4x2x2048xbf16, #tpu.memory_space<vmem>>, vector<1x2x128xbf16>
      %104 = vector.shape_cast %103 : vector<1x2x128xbf16> to vector<2x128xbf16>
      %105 = vector.shape_cast %102 : vector<2x128xbf16> to vector<1x2x128xbf16>
      tpu.vector_store %arg18[%c0_69, %c0_70, %c512], %105 {strides = array<i32>} : memref<4x2x2048xbf16, #tpu.memory_space<vmem>>, vector<1x2x128xbf16>,
      %c0_71 = arith.constant 0 : index
      %c5 = arith.constant 5 : index
      %c0_72 = arith.constant 0 : index
      %106 = vector.load %arg16[%c0_71, %c5, %c0_72] : memref<2x64x128xf32, #tpu.memory_space<vmem>>, vector<2x1x128xf32>
      %107 = vector.shape_cast %106 : vector<2x1x128xf32> to vector<2x128xf32>
      %108 = arith.truncf %107 : vector<2x128xf32> to vector<2x128xbf16>
      %c0_73 = arith.constant 0 : index
      %c0_74 = arith.constant 0 : index
      %c640 = arith.constant 640 : index
      %109 = vector.load %arg18[%c0_73, %c0_74, %c640] : memref<4x2x2048xbf16, #tpu.memory_space<vmem>>, vector<1x2x128xbf16>
      %110 = vector.shape_cast %109 : vector<1x2x128xbf16> to vector<2x128xbf16>
      %111 = vector.shape_cast %108 : vector<2x128xbf16> to vector<1x2x128xbf16>
      tpu.vector_store %arg18[%c0_73, %c0_74, %c640], %111 {strides = array<i32>} : memref<4x2x2048xbf16, #tpu.memory_space<vmem>>, vector<1x2x128xbf16>,
      %c0_75 = arith.constant 0 : index
      %c6 = arith.constant 6 : index
      %c0_76 = arith.constant 0 : index
      %112 = vector.load %arg16[%c0_75, %c6, %c0_76] : memref<2x64x128xf32, #tpu.memory_space<vmem>>, vector<2x1x128xf32>
      %113 = vector.shape_cast %112 : vector<2x1x128xf32> to vector<2x128xf32>
      %114 = arith.truncf %113 : vector<2x128xf32> to vector<2x128xbf16>
      %c0_77 = arith.constant 0 : index
      %c0_78 = arith.constant 0 : index
      %c768 = arith.constant 768 : index
      %115 = vector.load %arg18[%c0_77, %c0_78, %c768] : memref<4x2x2048xbf16, #tpu.memory_space<vmem>>, vector<1x2x128xbf16>
      %116 = vector.shape_cast %115 : vector<1x2x128xbf16> to vector<2x128xbf16>
      %117 = vector.shape_cast %114 : vector<2x128xbf16> to vector<1x2x128xbf16>
      tpu.vector_store %arg18[%c0_77, %c0_78, %c768], %117 {strides = array<i32>} : memref<4x2x2048xbf16, #tpu.memory_space<vmem>>, vector<1x2x128xbf16>,
      %c0_79 = arith.constant 0 : index
      %c7 = arith.constant 7 : index
      %c0_80 = arith.constant 0 : index
      %118 = vector.load %arg16[%c0_79, %c7, %c0_80] : memref<2x64x128xf32, #tpu.memory_space<vmem>>, vector<2x1x128xf32>
      %119 = vector.shape_cast %118 : vector<2x1x128xf32> to vector<2x128xf32>
      %120 = arith.truncf %119 : vector<2x128xf32> to vector<2x128xbf16>
      %c0_81 = arith.constant 0 : index
      %c0_82 = arith.constant 0 : index
      %c896 = arith.constant 896 : index
      %121 = vector.load %arg18[%c0_81, %c0_82, %c896] : memref<4x2x2048xbf16, #tpu.memory_space<vmem>>, vector<1x2x128xbf16>
      %122 = vector.shape_cast %121 : vector<1x2x128xbf16> to vector<2x128xbf16>
      %123 = vector.shape_cast %120 : vector<2x128xbf16> to vector<1x2x128xbf16>
      tpu.vector_store %arg18[%c0_81, %c0_82, %c896], %123 {strides = array<i32>} : memref<4x2x2048xbf16, #tpu.memory_space<vmem>>, vector<1x2x128xbf16>,
      %c0_83 = arith.constant 0 : index
      %c8 = arith.constant 8 : index
      %c0_84 = arith.constant 0 : index
      %124 = vector.load %arg16[%c0_83, %c8, %c0_84] : memref<2x64x128xf32, #tpu.memory_space<vmem>>, vector<2x1x128xf32>
      %125 = vector.shape_cast %124 : vector<2x1x128xf32> to vector<2x128xf32>
      %126 = arith.truncf %125 : vector<2x128xf32> to vector<2x128xbf16>
      %c0_85 = arith.constant 0 : index
      %c0_86 = arith.constant 0 : index
      %c1024 = arith.constant 1024 : index
      %127 = vector.load %arg18[%c0_85, %c0_86, %c1024] : memref<4x2x2048xbf16, #tpu.memory_space<vmem>>, vector<1x2x128xbf16>
      %128 = vector.shape_cast %127 : vector<1x2x128xbf16> to vector<2x128xbf16>
      %129 = vector.shape_cast %126 : vector<2x128xbf16> to vector<1x2x128xbf16>
      tpu.vector_store %arg18[%c0_85, %c0_86, %c1024], %129 {strides = array<i32>} : memref<4x2x2048xbf16, #tpu.memory_space<vmem>>, vector<1x2x128xbf16>,
      %c0_87 = arith.constant 0 : index
      %c9 = arith.constant 9 : index
      %c0_88 = arith.constant 0 : index
      %130 = vector.load %arg16[%c0_87, %c9, %c0_88] : memref<2x64x128xf32, #tpu.memory_space<vmem>>, vector<2x1x128xf32>
      %131 = vector.shape_cast %130 : vector<2x1x128xf32> to vector<2x128xf32>
      %132 = arith.truncf %131 : vector<2x128xf32> to vector<2x128xbf16>
      %c0_89 = arith.constant 0 : index
      %c0_90 = arith.constant 0 : index
      %c1152 = arith.constant 1152 : index
      %133 = vector.load %arg18[%c0_89, %c0_90, %c1152] : memref<4x2x2048xbf16, #tpu.memory_space<vmem>>, vector<1x2x128xbf16>
      %134 = vector.shape_cast %133 : vector<1x2x128xbf16> to vector<2x128xbf16>
      %135 = vector.shape_cast %132 : vector<2x128xbf16> to vector<1x2x128xbf16>
      tpu.vector_store %arg18[%c0_89, %c0_90, %c1152], %135 {strides = array<i32>} : memref<4x2x2048xbf16, #tpu.memory_space<vmem>>, vector<1x2x128xbf16>,
      %c0_91 = arith.constant 0 : index
      %c10 = arith.constant 10 : index
      %c0_92 = arith.constant 0 : index
      %136 = vector.load %arg16[%c0_91, %c10, %c0_92] : memref<2x64x128xf32, #tpu.memory_space<vmem>>, vector<2x1x128xf32>
      %137 = vector.shape_cast %136 : vector<2x1x128xf32> to vector<2x128xf32>
      %138 = arith.truncf %137 : vector<2x128xf32> to vector<2x128xbf16>
      %c0_93 = arith.constant 0 : index
      %c0_94 = arith.constant 0 : index
      %c1280 = arith.constant 1280 : index
      %139 = vector.load %arg18[%c0_93, %c0_94, %c1280] : memref<4x2x2048xbf16, #tpu.memory_space<vmem>>, vector<1x2x128xbf16>
      %140 = vector.shape_cast %139 : vector<1x2x128xbf16> to vector<2x128xbf16>
      %141 = vector.shape_cast %138 : vector<2x128xbf16> to vector<1x2x128xbf16>
      tpu.vector_store %arg18[%c0_93, %c0_94, %c1280], %141 {strides = array<i32>} : memref<4x2x2048xbf16, #tpu.memory_space<vmem>>, vector<1x2x128xbf16>,
      %c0_95 = arith.constant 0 : index
      %c11 = arith.constant 11 : index
      %c0_96 = arith.constant 0 : index
      %142 = vector.load %arg16[%c0_95, %c11, %c0_96] : memref<2x64x128xf32, #tpu.memory_space<vmem>>, vector<2x1x128xf32>
      %143 = vector.shape_cast %142 : vector<2x1x128xf32> to vector<2x128xf32>
      %144 = arith.truncf %143 : vector<2x128xf32> to vector<2x128xbf16>
      %c0_97 = arith.constant 0 : index
      %c0_98 = arith.constant 0 : index
      %c1408 = arith.constant 1408 : index
      %145 = vector.load %arg18[%c0_97, %c0_98, %c1408] : memref<4x2x2048xbf16, #tpu.memory_space<vmem>>, vector<1x2x128xbf16>
      %146 = vector.shape_cast %145 : vector<1x2x128xbf16> to vector<2x128xbf16>
      %147 = vector.shape_cast %144 : vector<2x128xbf16> to vector<1x2x128xbf16>
      tpu.vector_store %arg18[%c0_97, %c0_98, %c1408], %147 {strides = array<i32>} : memref<4x2x2048xbf16, #tpu.memory_space<vmem>>, vector<1x2x128xbf16>,
      %c0_99 = arith.constant 0 : index
      %c12 = arith.constant 12 : index
      %c0_100 = arith.constant 0 : index
      %148 = vector.load %arg16[%c0_99, %c12, %c0_100] : memref<2x64x128xf32, #tpu.memory_space<vmem>>, vector<2x1x128xf32>
      %149 = vector.shape_cast %148 : vector<2x1x128xf32> to vector<2x128xf32>
      %150 = arith.truncf %149 : vector<2x128xf32> to vector<2x128xbf16>
      %c0_101 = arith.constant 0 : index
      %c0_102 = arith.constant 0 : index
      %c1536 = arith.constant 1536 : index
      %151 = vector.load %arg18[%c0_101, %c0_102, %c1536] : memref<4x2x2048xbf16, #tpu.memory_space<vmem>>, vector<1x2x128xbf16>
      %152 = vector.shape_cast %151 : vector<1x2x128xbf16> to vector<2x128xbf16>
      %153 = vector.shape_cast %150 : vector<2x128xbf16> to vector<1x2x128xbf16>
      tpu.vector_store %arg18[%c0_101, %c0_102, %c1536], %153 {strides = array<i32>} : memref<4x2x2048xbf16, #tpu.memory_space<vmem>>, vector<1x2x128xbf16>,
      %c0_103 = arith.constant 0 : index
      %c13 = arith.constant 13 : index
      %c0_104 = arith.constant 0 : index
      %154 = vector.load %arg16[%c0_103, %c13, %c0_104] : memref<2x64x128xf32, #tpu.memory_space<vmem>>, vector<2x1x128xf32>
      %155 = vector.shape_cast %154 : vector<2x1x128xf32> to vector<2x128xf32>
      %156 = arith.truncf %155 : vector<2x128xf32> to vector<2x128xbf16>
      %c0_105 = arith.constant 0 : index
      %c0_106 = arith.constant 0 : index
      %c1664 = arith.constant 1664 : index
      %157 = vector.load %arg18[%c0_105, %c0_106, %c1664] : memref<4x2x2048xbf16, #tpu.memory_space<vmem>>, vector<1x2x128xbf16>
      %158 = vector.shape_cast %157 : vector<1x2x128xbf16> to vector<2x128xbf16>
      %159 = vector.shape_cast %156 : vector<2x128xbf16> to vector<1x2x128xbf16>
      tpu.vector_store %arg18[%c0_105, %c0_106, %c1664], %159 {strides = array<i32>} : memref<4x2x2048xbf16, #tpu.memory_space<vmem>>, vector<1x2x128xbf16>,
      %c0_107 = arith.constant 0 : index
      %c14 = arith.constant 14 : index
      %c0_108 = arith.constant 0 : index
      %160 = vector.load %arg16[%c0_107, %c14, %c0_108] : memref<2x64x128xf32, #tpu.memory_space<vmem>>, vector<2x1x128xf32>
      %161 = vector.shape_cast %160 : vector<2x1x128xf32> to vector<2x128xf32>
      %162 = arith.truncf %161 : vector<2x128xf32> to vector<2x128xbf16>
      %c0_109 = arith.constant 0 : index
      %c0_110 = arith.constant 0 : index
      %c1792 = arith.constant 1792 : index
      %163 = vector.load %arg18[%c0_109, %c0_110, %c1792] : memref<4x2x2048xbf16, #tpu.memory_space<vmem>>, vector<1x2x128xbf16>
      %164 = vector.shape_cast %163 : vector<1x2x128xbf16> to vector<2x128xbf16>
      %165 = vector.shape_cast %162 : vector<2x128xbf16> to vector<1x2x128xbf16>
      tpu.vector_store %arg18[%c0_109, %c0_110, %c1792], %165 {strides = array<i32>} : memref<4x2x2048xbf16, #tpu.memory_space<vmem>>, vector<1x2x128xbf16>,
      %c0_111 = arith.constant 0 : index
      %c15 = arith.constant 15 : index
      %c0_112 = arith.constant 0 : index
      %166 = vector.load %arg16[%c0_111, %c15, %c0_112] : memref<2x64x128xf32, #tpu.memory_space<vmem>>, vector<2x1x128xf32>
      %167 = vector.shape_cast %166 : vector<2x1x128xf32> to vector<2x128xf32>
      %168 = arith.truncf %167 : vector<2x128xf32> to vector<2x128xbf16>
      %c0_113 = arith.constant 0 : index
      %c0_114 = arith.constant 0 : index
      %c1920 = arith.constant 1920 : index
      %169 = vector.load %arg18[%c0_113, %c0_114, %c1920] : memref<4x2x2048xbf16, #tpu.memory_space<vmem>>, vector<1x2x128xbf16>
      %170 = vector.shape_cast %169 : vector<1x2x128xbf16> to vector<2x128xbf16>
      %171 = vector.shape_cast %168 : vector<2x128xbf16> to vector<1x2x128xbf16>
      tpu.vector_store %arg18[%c0_113, %c0_114, %c1920], %171 {strides = array<i32>} : memref<4x2x2048xbf16, #tpu.memory_space<vmem>>, vector<1x2x128xbf16>,
      %c0_115 = arith.constant 0 : index
      %c16 = arith.constant 16 : index
      %c0_116 = arith.constant 0 : index
      %172 = vector.load %arg16[%c0_115, %c16, %c0_116] : memref<2x64x128xf32, #tpu.memory_space<vmem>>, vector<2x1x128xf32>
      %173 = vector.shape_cast %172 : vector<2x1x128xf32> to vector<2x128xf32>
      %174 = arith.truncf %173 : vector<2x128xf32> to vector<2x128xbf16>
      %c1_117 = arith.constant 1 : index
      %c0_118 = arith.constant 0 : index
      %c0_119 = arith.constant 0 : index
      %175 = vector.load %arg18[%c1_117, %c0_118, %c0_119] : memref<4x2x2048xbf16, #tpu.memory_space<vmem>>, vector<1x2x128xbf16>
      %176 = vector.shape_cast %175 : vector<1x2x128xbf16> to vector<2x128xbf16>
      %177 = vector.shape_cast %174 : vector<2x128xbf16> to vector<1x2x128xbf16>
      tpu.vector_store %arg18[%c1_117, %c0_118, %c0_119], %177 {strides = array<i32>} : memref<4x2x2048xbf16, #tpu.memory_space<vmem>>, vector<1x2x128xbf16>,
      %c0_120 = arith.constant 0 : index
      %c17 = arith.constant 17 : index
      %c0_121 = arith.constant 0 : index
      %178 = vector.load %arg16[%c0_120, %c17, %c0_121] : memref<2x64x128xf32, #tpu.memory_space<vmem>>, vector<2x1x128xf32>
      %179 = vector.shape_cast %178 : vector<2x1x128xf32> to vector<2x128xf32>
      %180 = arith.truncf %179 : vector<2x128xf32> to vector<2x128xbf16>
      %c1_122 = arith.constant 1 : index
      %c0_123 = arith.constant 0 : index
      %c128_124 = arith.constant 128 : index
      %181 = vector.load %arg18[%c1_122, %c0_123, %c128_124] : memref<4x2x2048xbf16, #tpu.memory_space<vmem>>, vector<1x2x128xbf16>
      %182 = vector.shape_cast %181 : vector<1x2x128xbf16> to vector<2x128xbf16>
      %183 = vector.shape_cast %180 : vector<2x128xbf16> to vector<1x2x128xbf16>
      tpu.vector_store %arg18[%c1_122, %c0_123, %c128_124], %183 {strides = array<i32>} : memref<4x2x2048xbf16, #tpu.memory_space<vmem>>, vector<1x2x128xbf16>,
      %c0_125 = arith.constant 0 : index
      %c18 = arith.constant 18 : index
      %c0_126 = arith.constant 0 : index
      %184 = vector.load %arg16[%c0_125, %c18, %c0_126] : memref<2x64x128xf32, #tpu.memory_space<vmem>>, vector<2x1x128xf32>
      %185 = vector.shape_cast %184 : vector<2x1x128xf32> to vector<2x128xf32>
      %186 = arith.truncf %185 : vector<2x128xf32> to vector<2x128xbf16>
      %c1_127 = arith.constant 1 : index
      %c0_128 = arith.constant 0 : index
      %c256_129 = arith.constant 256 : index
      %187 = vector.load %arg18[%c1_127, %c0_128, %c256_129] : memref<4x2x2048xbf16, #tpu.memory_space<vmem>>, vector<1x2x128xbf16>
      %188 = vector.shape_cast %187 : vector<1x2x128xbf16> to vector<2x128xbf16>
      %189 = vector.shape_cast %186 : vector<2x128xbf16> to vector<1x2x128xbf16>
      tpu.vector_store %arg18[%c1_127, %c0_128, %c256_129], %189 {strides = array<i32>} : memref<4x2x2048xbf16, #tpu.memory_space<vmem>>, vector<1x2x128xbf16>,
      %c0_130 = arith.constant 0 : index
      %c19 = arith.constant 19 : index
      %c0_131 = arith.constant 0 : index
      %190 = vector.load %arg16[%c0_130, %c19, %c0_131] : memref<2x64x128xf32, #tpu.memory_space<vmem>>, vector<2x1x128xf32>
      %191 = vector.shape_cast %190 : vector<2x1x128xf32> to vector<2x128xf32>
      %192 = arith.truncf %191 : vector<2x128xf32> to vector<2x128xbf16>
      %c1_132 = arith.constant 1 : index
      %c0_133 = arith.constant 0 : index
      %c384_134 = arith.constant 384 : index
      %193 = vector.load %arg18[%c1_132, %c0_133, %c384_134] : memref<4x2x2048xbf16, #tpu.memory_space<vmem>>, vector<1x2x128xbf16>
      %194 = vector.shape_cast %193 : vector<1x2x128xbf16> to vector<2x128xbf16>
      %195 = vector.shape_cast %192 : vector<2x128xbf16> to vector<1x2x128xbf16>
      tpu.vector_store %arg18[%c1_132, %c0_133, %c384_134], %195 {strides = array<i32>} : memref<4x2x2048xbf16, #tpu.memory_space<vmem>>, vector<1x2x128xbf16>,
      %c0_135 = arith.constant 0 : index
      %c20 = arith.constant 20 : index
      %c0_136 = arith.constant 0 : index
      %196 = vector.load %arg16[%c0_135, %c20, %c0_136] : memref<2x64x128xf32, #tpu.memory_space<vmem>>, vector<2x1x128xf32>
      %197 = vector.shape_cast %196 : vector<2x1x128xf32> to vector<2x128xf32>
      %198 = arith.truncf %197 : vector<2x128xf32> to vector<2x128xbf16>
      %c1_137 = arith.constant 1 : index
      %c0_138 = arith.constant 0 : index
      %c512_139 = arith.constant 512 : index
      %199 = vector.load %arg18[%c1_137, %c0_138, %c512_139] : memref<4x2x2048xbf16, #tpu.memory_space<vmem>>, vector<1x2x128xbf16>
      %200 = vector.shape_cast %199 : vector<1x2x128xbf16> to vector<2x128xbf16>
      %201 = vector.shape_cast %198 : vector<2x128xbf16> to vector<1x2x128xbf16>
      tpu.vector_store %arg18[%c1_137, %c0_138, %c512_139], %201 {strides = array<i32>} : memref<4x2x2048xbf16, #tpu.memory_space<vmem>>, vector<1x2x128xbf16>,
      %c0_140 = arith.constant 0 : index
      %c21 = arith.constant 21 : index
      %c0_141 = arith.constant 0 : index
      %202 = vector.load %arg16[%c0_140, %c21, %c0_141] : memref<2x64x128xf32, #tpu.memory_space<vmem>>, vector<2x1x128xf32>
      %203 = vector.shape_cast %202 : vector<2x1x128xf32> to vector<2x128xf32>
      %204 = arith.truncf %203 : vector<2x128xf32> to vector<2x128xbf16>
      %c1_142 = arith.constant 1 : index
      %c0_143 = arith.constant 0 : index
      %c640_144 = arith.constant 640 : index
      %205 = vector.load %arg18[%c1_142, %c0_143, %c640_144] : memref<4x2x2048xbf16, #tpu.memory_space<vmem>>, vector<1x2x128xbf16>
      %206 = vector.shape_cast %205 : vector<1x2x128xbf16> to vector<2x128xbf16>
      %207 = vector.shape_cast %204 : vector<2x128xbf16> to vector<1x2x128xbf16>
      tpu.vector_store %arg18[%c1_142, %c0_143, %c640_144], %207 {strides = array<i32>} : memref<4x2x2048xbf16, #tpu.memory_space<vmem>>, vector<1x2x128xbf16>,
      %c0_145 = arith.constant 0 : index
      %c22 = arith.constant 22 : index
      %c0_146 = arith.constant 0 : index
      %208 = vector.load %arg16[%c0_145, %c22, %c0_146] : memref<2x64x128xf32, #tpu.memory_space<vmem>>, vector<2x1x128xf32>
      %209 = vector.shape_cast %208 : vector<2x1x128xf32> to vector<2x128xf32>
      %210 = arith.truncf %209 : vector<2x128xf32> to vector<2x128xbf16>
      %c1_147 = arith.constant 1 : index
      %c0_148 = arith.constant 0 : index
      %c768_149 = arith.constant 768 : index
      %211 = vector.load %arg18[%c1_147, %c0_148, %c768_149] : memref<4x2x2048xbf16, #tpu.memory_space<vmem>>, vector<1x2x128xbf16>
      %212 = vector.shape_cast %211 : vector<1x2x128xbf16> to vector<2x128xbf16>
      %213 = vector.shape_cast %210 : vector<2x128xbf16> to vector<1x2x128xbf16>
      tpu.vector_store %arg18[%c1_147, %c0_148, %c768_149], %213 {strides = array<i32>} : memref<4x2x2048xbf16, #tpu.memory_space<vmem>>, vector<1x2x128xbf16>,
      %c0_150 = arith.constant 0 : index
      %c23 = arith.constant 23 : index
      %c0_151 = arith.constant 0 : index
      %214 = vector.load %arg16[%c0_150, %c23, %c0_151] : memref<2x64x128xf32, #tpu.memory_space<vmem>>, vector<2x1x128xf32>
      %215 = vector.shape_cast %214 : vector<2x1x128xf32> to vector<2x128xf32>
      %216 = arith.truncf %215 : vector<2x128xf32> to vector<2x128xbf16>
      %c1_152 = arith.constant 1 : index
      %c0_153 = arith.constant 0 : index
      %c896_154 = arith.constant 896 : index
      %217 = vector.load %arg18[%c1_152, %c0_153, %c896_154] : memref<4x2x2048xbf16, #tpu.memory_space<vmem>>, vector<1x2x128xbf16>
      %218 = vector.shape_cast %217 : vector<1x2x128xbf16> to vector<2x128xbf16>
      %219 = vector.shape_cast %216 : vector<2x128xbf16> to vector<1x2x128xbf16>
      tpu.vector_store %arg18[%c1_152, %c0_153, %c896_154], %219 {strides = array<i32>} : memref<4x2x2048xbf16, #tpu.memory_space<vmem>>, vector<1x2x128xbf16>,
      %c0_155 = arith.constant 0 : index
      %c24 = arith.constant 24 : index
      %c0_156 = arith.constant 0 : index
      %220 = vector.load %arg16[%c0_155, %c24, %c0_156] : memref<2x64x128xf32, #tpu.memory_space<vmem>>, vector<2x1x128xf32>
      %221 = vector.shape_cast %220 : vector<2x1x128xf32> to vector<2x128xf32>
      %222 = arith.truncf %221 : vector<2x128xf32> to vector<2x128xbf16>
      %c1_157 = arith.constant 1 : index
      %c0_158 = arith.constant 0 : index
      %c1024_159 = arith.constant 1024 : index
      %223 = vector.load %arg18[%c1_157, %c0_158, %c1024_159] : memref<4x2x2048xbf16, #tpu.memory_space<vmem>>, vector<1x2x128xbf16>
      %224 = vector.shape_cast %223 : vector<1x2x128xbf16> to vector<2x128xbf16>
      %225 = vector.shape_cast %222 : vector<2x128xbf16> to vector<1x2x128xbf16>
      tpu.vector_store %arg18[%c1_157, %c0_158, %c1024_159], %225 {strides = array<i32>} : memref<4x2x2048xbf16, #tpu.memory_space<vmem>>, vector<1x2x128xbf16>,
      %c0_160 = arith.constant 0 : index
      %c25 = arith.constant 25 : index
      %c0_161 = arith.constant 0 : index
      %226 = vector.load %arg16[%c0_160, %c25, %c0_161] : memref<2x64x128xf32, #tpu.memory_space<vmem>>, vector<2x1x128xf32>
      %227 = vector.shape_cast %226 : vector<2x1x128xf32> to vector<2x128xf32>
      %228 = arith.truncf %227 : vector<2x128xf32> to vector<2x128xbf16>
      %c1_162 = arith.constant 1 : index
      %c0_163 = arith.constant 0 : index
      %c1152_164 = arith.constant 1152 : index
      %229 = vector.load %arg18[%c1_162, %c0_163, %c1152_164] : memref<4x2x2048xbf16, #tpu.memory_space<vmem>>, vector<1x2x128xbf16>
      %230 = vector.shape_cast %229 : vector<1x2x128xbf16> to vector<2x128xbf16>
      %231 = vector.shape_cast %228 : vector<2x128xbf16> to vector<1x2x128xbf16>
      tpu.vector_store %arg18[%c1_162, %c0_163, %c1152_164], %231 {strides = array<i32>} : memref<4x2x2048xbf16, #tpu.memory_space<vmem>>, vector<1x2x128xbf16>,
      %c0_165 = arith.constant 0 : index
      %c26 = arith.constant 26 : index
      %c0_166 = arith.constant 0 : index
      %232 = vector.load %arg16[%c0_165, %c26, %c0_166] : memref<2x64x128xf32, #tpu.memory_space<vmem>>, vector<2x1x128xf32>
      %233 = vector.shape_cast %232 : vector<2x1x128xf32> to vector<2x128xf32>
      %234 = arith.truncf %233 : vector<2x128xf32> to vector<2x128xbf16>
      %c1_167 = arith.constant 1 : index
      %c0_168 = arith.constant 0 : index
      %c1280_169 = arith.constant 1280 : index
      %235 = vector.load %arg18[%c1_167, %c0_168, %c1280_169] : memref<4x2x2048xbf16, #tpu.memory_space<vmem>>, vector<1x2x128xbf16>
      %236 = vector.shape_cast %235 : vector<1x2x128xbf16> to vector<2x128xbf16>
      %237 = vector.shape_cast %234 : vector<2x128xbf16> to vector<1x2x128xbf16>
      tpu.vector_store %arg18[%c1_167, %c0_168, %c1280_169], %237 {strides = array<i32>} : memref<4x2x2048xbf16, #tpu.memory_space<vmem>>, vector<1x2x128xbf16>,
      %c0_170 = arith.constant 0 : index
      %c27 = arith.constant 27 : index
      %c0_171 = arith.constant 0 : index
      %238 = vector.load %arg16[%c0_170, %c27, %c0_171] : memref<2x64x128xf32, #tpu.memory_space<vmem>>, vector<2x1x128xf32>
      %239 = vector.shape_cast %238 : vector<2x1x128xf32> to vector<2x128xf32>
      %240 = arith.truncf %239 : vector<2x128xf32> to vector<2x128xbf16>
      %c1_172 = arith.constant 1 : index
      %c0_173 = arith.constant 0 : index
      %c1408_174 = arith.constant 1408 : index
      %241 = vector.load %arg18[%c1_172, %c0_173, %c1408_174] : memref<4x2x2048xbf16, #tpu.memory_space<vmem>>, vector<1x2x128xbf16>
      %242 = vector.shape_cast %241 : vector<1x2x128xbf16> to vector<2x128xbf16>
      %243 = vector.shape_cast %240 : vector<2x128xbf16> to vector<1x2x128xbf16>
      tpu.vector_store %arg18[%c1_172, %c0_173, %c1408_174], %243 {strides = array<i32>} : memref<4x2x2048xbf16, #tpu.memory_space<vmem>>, vector<1x2x128xbf16>,
      %c0_175 = arith.constant 0 : index
      %c28 = arith.constant 28 : index
      %c0_176 = arith.constant 0 : index
      %244 = vector.load %arg16[%c0_175, %c28, %c0_176] : memref<2x64x128xf32, #tpu.memory_space<vmem>>, vector<2x1x128xf32>
      %245 = vector.shape_cast %244 : vector<2x1x128xf32> to vector<2x128xf32>
      %246 = arith.truncf %245 : vector<2x128xf32> to vector<2x128xbf16>
      %c1_177 = arith.constant 1 : index
      %c0_178 = arith.constant 0 : index
      %c1536_179 = arith.constant 1536 : index
      %247 = vector.load %arg18[%c1_177, %c0_178, %c1536_179] : memref<4x2x2048xbf16, #tpu.memory_space<vmem>>, vector<1x2x128xbf16>
      %248 = vector.shape_cast %247 : vector<1x2x128xbf16> to vector<2x128xbf16>
      %249 = vector.shape_cast %246 : vector<2x128xbf16> to vector<1x2x128xbf16>
      tpu.vector_store %arg18[%c1_177, %c0_178, %c1536_179], %249 {strides = array<i32>} : memref<4x2x2048xbf16, #tpu.memory_space<vmem>>, vector<1x2x128xbf16>,
      %c0_180 = arith.constant 0 : index
      %c29 = arith.constant 29 : index
      %c0_181 = arith.constant 0 : index
      %250 = vector.load %arg16[%c0_180, %c29, %c0_181] : memref<2x64x128xf32, #tpu.memory_space<vmem>>, vector<2x1x128xf32>
      %251 = vector.shape_cast %250 : vector<2x1x128xf32> to vector<2x128xf32>
      %252 = arith.truncf %251 : vector<2x128xf32> to vector<2x128xbf16>
      %c1_182 = arith.constant 1 : index
      %c0_183 = arith.constant 0 : index
      %c1664_184 = arith.constant 1664 : index
      %253 = vector.load %arg18[%c1_182, %c0_183, %c1664_184] : memref<4x2x2048xbf16, #tpu.memory_space<vmem>>, vector<1x2x128xbf16>
      %254 = vector.shape_cast %253 : vector<1x2x128xbf16> to vector<2x128xbf16>
      %255 = vector.shape_cast %252 : vector<2x128xbf16> to vector<1x2x128xbf16>
      tpu.vector_store %arg18[%c1_182, %c0_183, %c1664_184], %255 {strides = array<i32>} : memref<4x2x2048xbf16, #tpu.memory_space<vmem>>, vector<1x2x128xbf16>,
      %c0_185 = arith.constant 0 : index
      %c30 = arith.constant 30 : index
      %c0_186 = arith.constant 0 : index
      %256 = vector.load %arg16[%c0_185, %c30, %c0_186] : memref<2x64x128xf32, #tpu.memory_space<vmem>>, vector<2x1x128xf32>
      %257 = vector.shape_cast %256 : vector<2x1x128xf32> to vector<2x128xf32>
      %258 = arith.truncf %257 : vector<2x128xf32> to vector<2x128xbf16>
      %c1_187 = arith.constant 1 : index
      %c0_188 = arith.constant 0 : index
      %c1792_189 = arith.constant 1792 : index
      %259 = vector.load %arg18[%c1_187, %c0_188, %c1792_189] : memref<4x2x2048xbf16, #tpu.memory_space<vmem>>, vector<1x2x128xbf16>
      %260 = vector.shape_cast %259 : vector<1x2x128xbf16> to vector<2x128xbf16>
      %261 = vector.shape_cast %258 : vector<2x128xbf16> to vector<1x2x128xbf16>
      tpu.vector_store %arg18[%c1_187, %c0_188, %c1792_189], %261 {strides = array<i32>} : memref<4x2x2048xbf16, #tpu.memory_space<vmem>>, vector<1x2x128xbf16>,
      %c0_190 = arith.constant 0 : index
      %c31 = arith.constant 31 : index
      %c0_191 = arith.constant 0 : index
      %262 = vector.load %arg16[%c0_190, %c31, %c0_191] : memref<2x64x128xf32, #tpu.memory_space<vmem>>, vector<2x1x128xf32>
      %263 = vector.shape_cast %262 : vector<2x1x128xf32> to vector<2x128xf32>
      %264 = arith.truncf %263 : vector<2x128xf32> to vector<2x128xbf16>
      %c1_192 = arith.constant 1 : index
      %c0_193 = arith.constant 0 : index
      %c1920_194 = arith.constant 1920 : index
      %265 = vector.load %arg18[%c1_192, %c0_193, %c1920_194] : memref<4x2x2048xbf16, #tpu.memory_space<vmem>>, vector<1x2x128xbf16>
      %266 = vector.shape_cast %265 : vector<1x2x128xbf16> to vector<2x128xbf16>
      %267 = vector.shape_cast %264 : vector<2x128xbf16> to vector<1x2x128xbf16>
      tpu.vector_store %arg18[%c1_192, %c0_193, %c1920_194], %267 {strides = array<i32>} : memref<4x2x2048xbf16, #tpu.memory_space<vmem>>, vector<1x2x128xbf16>,
      %c0_195 = arith.constant 0 : index
      %c32 = arith.constant 32 : index
      %c0_196 = arith.constant 0 : index
      %268 = vector.load %arg16[%c0_195, %c32, %c0_196] : memref<2x64x128xf32, #tpu.memory_space<vmem>>, vector<2x1x128xf32>
      %269 = vector.shape_cast %268 : vector<2x1x128xf32> to vector<2x128xf32>
      %270 = arith.truncf %269 : vector<2x128xf32> to vector<2x128xbf16>
      %c2_197 = arith.constant 2 : index
      %c0_198 = arith.constant 0 : index
      %c0_199 = arith.constant 0 : index
      %271 = vector.load %arg18[%c2_197, %c0_198, %c0_199] : memref<4x2x2048xbf16, #tpu.memory_space<vmem>>, vector<1x2x128xbf16>
      %272 = vector.shape_cast %271 : vector<1x2x128xbf16> to vector<2x128xbf16>
      %273 = vector.shape_cast %270 : vector<2x128xbf16> to vector<1x2x128xbf16>
      tpu.vector_store %arg18[%c2_197, %c0_198, %c0_199], %273 {strides = array<i32>} : memref<4x2x2048xbf16, #tpu.memory_space<vmem>>, vector<1x2x128xbf16>,
      %c0_200 = arith.constant 0 : index
      %c33 = arith.constant 33 : index
      %c0_201 = arith.constant 0 : index
      %274 = vector.load %arg16[%c0_200, %c33, %c0_201] : memref<2x64x128xf32, #tpu.memory_space<vmem>>, vector<2x1x128xf32>
      %275 = vector.shape_cast %274 : vector<2x1x128xf32> to vector<2x128xf32>
      %276 = arith.truncf %275 : vector<2x128xf32> to vector<2x128xbf16>
      %c2_202 = arith.constant 2 : index
      %c0_203 = arith.constant 0 : index
      %c128_204 = arith.constant 128 : index
      %277 = vector.load %arg18[%c2_202, %c0_203, %c128_204] : memref<4x2x2048xbf16, #tpu.memory_space<vmem>>, vector<1x2x128xbf16>
      %278 = vector.shape_cast %277 : vector<1x2x128xbf16> to vector<2x128xbf16>
      %279 = vector.shape_cast %276 : vector<2x128xbf16> to vector<1x2x128xbf16>
      tpu.vector_store %arg18[%c2_202, %c0_203, %c128_204], %279 {strides = array<i32>} : memref<4x2x2048xbf16, #tpu.memory_space<vmem>>, vector<1x2x128xbf16>,
      %c0_205 = arith.constant 0 : index
      %c34 = arith.constant 34 : index
      %c0_206 = arith.constant 0 : index
      %280 = vector.load %arg16[%c0_205, %c34, %c0_206] : memref<2x64x128xf32, #tpu.memory_space<vmem>>, vector<2x1x128xf32>
      %281 = vector.shape_cast %280 : vector<2x1x128xf32> to vector<2x128xf32>
      %282 = arith.truncf %281 : vector<2x128xf32> to vector<2x128xbf16>
      %c2_207 = arith.constant 2 : index
      %c0_208 = arith.constant 0 : index
      %c256_209 = arith.constant 256 : index
      %283 = vector.load %arg18[%c2_207, %c0_208, %c256_209] : memref<4x2x2048xbf16, #tpu.memory_space<vmem>>, vector<1x2x128xbf16>
      %284 = vector.shape_cast %283 : vector<1x2x128xbf16> to vector<2x128xbf16>
      %285 = vector.shape_cast %282 : vector<2x128xbf16> to vector<1x2x128xbf16>
      tpu.vector_store %arg18[%c2_207, %c0_208, %c256_209], %285 {strides = array<i32>} : memref<4x2x2048xbf16, #tpu.memory_space<vmem>>, vector<1x2x128xbf16>,
      %c0_210 = arith.constant 0 : index
      %c35 = arith.constant 35 : index
      %c0_211 = arith.constant 0 : index
      %286 = vector.load %arg16[%c0_210, %c35, %c0_211] : memref<2x64x128xf32, #tpu.memory_space<vmem>>, vector<2x1x128xf32>
      %287 = vector.shape_cast %286 : vector<2x1x128xf32> to vector<2x128xf32>
      %288 = arith.truncf %287 : vector<2x128xf32> to vector<2x128xbf16>
      %c2_212 = arith.constant 2 : index
      %c0_213 = arith.constant 0 : index
      %c384_214 = arith.constant 384 : index
      %289 = vector.load %arg18[%c2_212, %c0_213, %c384_214] : memref<4x2x2048xbf16, #tpu.memory_space<vmem>>, vector<1x2x128xbf16>
      %290 = vector.shape_cast %289 : vector<1x2x128xbf16> to vector<2x128xbf16>
      %291 = vector.shape_cast %288 : vector<2x128xbf16> to vector<1x2x128xbf16>
      tpu.vector_store %arg18[%c2_212, %c0_213, %c384_214], %291 {strides = array<i32>} : memref<4x2x2048xbf16, #tpu.memory_space<vmem>>, vector<1x2x128xbf16>,
      %c0_215 = arith.constant 0 : index
      %c36 = arith.constant 36 : index
      %c0_216 = arith.constant 0 : index
      %292 = vector.load %arg16[%c0_215, %c36, %c0_216] : memref<2x64x128xf32, #tpu.memory_space<vmem>>, vector<2x1x128xf32>
      %293 = vector.shape_cast %292 : vector<2x1x128xf32> to vector<2x128xf32>
      %294 = arith.truncf %293 : vector<2x128xf32> to vector<2x128xbf16>
      %c2_217 = arith.constant 2 : index
      %c0_218 = arith.constant 0 : index
      %c512_219 = arith.constant 512 : index
      %295 = vector.load %arg18[%c2_217, %c0_218, %c512_219] : memref<4x2x2048xbf16, #tpu.memory_space<vmem>>, vector<1x2x128xbf16>
      %296 = vector.shape_cast %295 : vector<1x2x128xbf16> to vector<2x128xbf16>
      %297 = vector.shape_cast %294 : vector<2x128xbf16> to vector<1x2x128xbf16>
      tpu.vector_store %arg18[%c2_217, %c0_218, %c512_219], %297 {strides = array<i32>} : memref<4x2x2048xbf16, #tpu.memory_space<vmem>>, vector<1x2x128xbf16>,
      %c0_220 = arith.constant 0 : index
      %c37 = arith.constant 37 : index
      %c0_221 = arith.constant 0 : index
      %298 = vector.load %arg16[%c0_220, %c37, %c0_221] : memref<2x64x128xf32, #tpu.memory_space<vmem>>, vector<2x1x128xf32>
      %299 = vector.shape_cast %298 : vector<2x1x128xf32> to vector<2x128xf32>
      %300 = arith.truncf %299 : vector<2x128xf32> to vector<2x128xbf16>
      %c2_222 = arith.constant 2 : index
      %c0_223 = arith.constant 0 : index
      %c640_224 = arith.constant 640 : index
      %301 = vector.load %arg18[%c2_222, %c0_223, %c640_224] : memref<4x2x2048xbf16, #tpu.memory_space<vmem>>, vector<1x2x128xbf16>
      %302 = vector.shape_cast %301 : vector<1x2x128xbf16> to vector<2x128xbf16>
      %303 = vector.shape_cast %300 : vector<2x128xbf16> to vector<1x2x128xbf16>
      tpu.vector_store %arg18[%c2_222, %c0_223, %c640_224], %303 {strides = array<i32>} : memref<4x2x2048xbf16, #tpu.memory_space<vmem>>, vector<1x2x128xbf16>,
      %c0_225 = arith.constant 0 : index
      %c38 = arith.constant 38 : index
      %c0_226 = arith.constant 0 : index
      %304 = vector.load %arg16[%c0_225, %c38, %c0_226] : memref<2x64x128xf32, #tpu.memory_space<vmem>>, vector<2x1x128xf32>
      %305 = vector.shape_cast %304 : vector<2x1x128xf32> to vector<2x128xf32>
      %306 = arith.truncf %305 : vector<2x128xf32> to vector<2x128xbf16>
      %c2_227 = arith.constant 2 : index
      %c0_228 = arith.constant 0 : index
      %c768_229 = arith.constant 768 : index
      %307 = vector.load %arg18[%c2_227, %c0_228, %c768_229] : memref<4x2x2048xbf16, #tpu.memory_space<vmem>>, vector<1x2x128xbf16>
      %308 = vector.shape_cast %307 : vector<1x2x128xbf16> to vector<2x128xbf16>
      %309 = vector.shape_cast %306 : vector<2x128xbf16> to vector<1x2x128xbf16>
      tpu.vector_store %arg18[%c2_227, %c0_228, %c768_229], %309 {strides = array<i32>} : memref<4x2x2048xbf16, #tpu.memory_space<vmem>>, vector<1x2x128xbf16>,
      %c0_230 = arith.constant 0 : index
      %c39 = arith.constant 39 : index
      %c0_231 = arith.constant 0 : index
      %310 = vector.load %arg16[%c0_230, %c39, %c0_231] : memref<2x64x128xf32, #tpu.memory_space<vmem>>, vector<2x1x128xf32>
      %311 = vector.shape_cast %310 : vector<2x1x128xf32> to vector<2x128xf32>
      %312 = arith.truncf %311 : vector<2x128xf32> to vector<2x128xbf16>
      %c2_232 = arith.constant 2 : index
      %c0_233 = arith.constant 0 : index
      %c896_234 = arith.constant 896 : index
      %313 = vector.load %arg18[%c2_232, %c0_233, %c896_234] : memref<4x2x2048xbf16, #tpu.memory_space<vmem>>, vector<1x2x128xbf16>
      %314 = vector.shape_cast %313 : vector<1x2x128xbf16> to vector<2x128xbf16>
      %315 = vector.shape_cast %312 : vector<2x128xbf16> to vector<1x2x128xbf16>
      tpu.vector_store %arg18[%c2_232, %c0_233, %c896_234], %315 {strides = array<i32>} : memref<4x2x2048xbf16, #tpu.memory_space<vmem>>, vector<1x2x128xbf16>,
      %c0_235 = arith.constant 0 : index
      %c40 = arith.constant 40 : index
      %c0_236 = arith.constant 0 : index
      %316 = vector.load %arg16[%c0_235, %c40, %c0_236] : memref<2x64x128xf32, #tpu.memory_space<vmem>>, vector<2x1x128xf32>
      %317 = vector.shape_cast %316 : vector<2x1x128xf32> to vector<2x128xf32>
      %318 = arith.truncf %317 : vector<2x128xf32> to vector<2x128xbf16>
      %c2_237 = arith.constant 2 : index
      %c0_238 = arith.constant 0 : index
      %c1024_239 = arith.constant 1024 : index
      %319 = vector.load %arg18[%c2_237, %c0_238, %c1024_239] : memref<4x2x2048xbf16, #tpu.memory_space<vmem>>, vector<1x2x128xbf16>
      %320 = vector.shape_cast %319 : vector<1x2x128xbf16> to vector<2x128xbf16>
      %321 = vector.shape_cast %318 : vector<2x128xbf16> to vector<1x2x128xbf16>
      tpu.vector_store %arg18[%c2_237, %c0_238, %c1024_239], %321 {strides = array<i32>} : memref<4x2x2048xbf16, #tpu.memory_space<vmem>>, vector<1x2x128xbf16>,
      %c0_240 = arith.constant 0 : index
      %c41 = arith.constant 41 : index
      %c0_241 = arith.constant 0 : index
      %322 = vector.load %arg16[%c0_240, %c41, %c0_241] : memref<2x64x128xf32, #tpu.memory_space<vmem>>, vector<2x1x128xf32>
      %323 = vector.shape_cast %322 : vector<2x1x128xf32> to vector<2x128xf32>
      %324 = arith.truncf %323 : vector<2x128xf32> to vector<2x128xbf16>
      %c2_242 = arith.constant 2 : index
      %c0_243 = arith.constant 0 : index
      %c1152_244 = arith.constant 1152 : index
      %325 = vector.load %arg18[%c2_242, %c0_243, %c1152_244] : memref<4x2x2048xbf16, #tpu.memory_space<vmem>>, vector<1x2x128xbf16>
      %326 = vector.shape_cast %325 : vector<1x2x128xbf16> to vector<2x128xbf16>
      %327 = vector.shape_cast %324 : vector<2x128xbf16> to vector<1x2x128xbf16>
      tpu.vector_store %arg18[%c2_242, %c0_243, %c1152_244], %327 {strides = array<i32>} : memref<4x2x2048xbf16, #tpu.memory_space<vmem>>, vector<1x2x128xbf16>,
      %c0_245 = arith.constant 0 : index
      %c42 = arith.constant 42 : index
      %c0_246 = arith.constant 0 : index
      %328 = vector.load %arg16[%c0_245, %c42, %c0_246] : memref<2x64x128xf32, #tpu.memory_space<vmem>>, vector<2x1x128xf32>
      %329 = vector.shape_cast %328 : vector<2x1x128xf32> to vector<2x128xf32>
      %330 = arith.truncf %329 : vector<2x128xf32> to vector<2x128xbf16>
      %c2_247 = arith.constant 2 : index
      %c0_248 = arith.constant 0 : index
      %c1280_249 = arith.constant 1280 : index
      %331 = vector.load %arg18[%c2_247, %c0_248, %c1280_249] : memref<4x2x2048xbf16, #tpu.memory_space<vmem>>, vector<1x2x128xbf16>
      %332 = vector.shape_cast %331 : vector<1x2x128xbf16> to vector<2x128xbf16>
      %333 = vector.shape_cast %330 : vector<2x128xbf16> to vector<1x2x128xbf16>
      tpu.vector_store %arg18[%c2_247, %c0_248, %c1280_249], %333 {strides = array<i32>} : memref<4x2x2048xbf16, #tpu.memory_space<vmem>>, vector<1x2x128xbf16>,
      %c0_250 = arith.constant 0 : index
      %c43 = arith.constant 43 : index
      %c0_251 = arith.constant 0 : index
      %334 = vector.load %arg16[%c0_250, %c43, %c0_251] : memref<2x64x128xf32, #tpu.memory_space<vmem>>, vector<2x1x128xf32>
      %335 = vector.shape_cast %334 : vector<2x1x128xf32> to vector<2x128xf32>
      %336 = arith.truncf %335 : vector<2x128xf32> to vector<2x128xbf16>
      %c2_252 = arith.constant 2 : index
      %c0_253 = arith.constant 0 : index
      %c1408_254 = arith.constant 1408 : index
      %337 = vector.load %arg18[%c2_252, %c0_253, %c1408_254] : memref<4x2x2048xbf16, #tpu.memory_space<vmem>>, vector<1x2x128xbf16>
      %338 = vector.shape_cast %337 : vector<1x2x128xbf16> to vector<2x128xbf16>
      %339 = vector.shape_cast %336 : vector<2x128xbf16> to vector<1x2x128xbf16>
      tpu.vector_store %arg18[%c2_252, %c0_253, %c1408_254], %339 {strides = array<i32>} : memref<4x2x2048xbf16, #tpu.memory_space<vmem>>, vector<1x2x128xbf16>,
      %c0_255 = arith.constant 0 : index
      %c44 = arith.constant 44 : index
      %c0_256 = arith.constant 0 : index
      %340 = vector.load %arg16[%c0_255, %c44, %c0_256] : memref<2x64x128xf32, #tpu.memory_space<vmem>>, vector<2x1x128xf32>
      %341 = vector.shape_cast %340 : vector<2x1x128xf32> to vector<2x128xf32>
      %342 = arith.truncf %341 : vector<2x128xf32> to vector<2x128xbf16>
      %c2_257 = arith.constant 2 : index
      %c0_258 = arith.constant 0 : index
      %c1536_259 = arith.constant 1536 : index
      %343 = vector.load %arg18[%c2_257, %c0_258, %c1536_259] : memref<4x2x2048xbf16, #tpu.memory_space<vmem>>, vector<1x2x128xbf16>
      %344 = vector.shape_cast %343 : vector<1x2x128xbf16> to vector<2x128xbf16>
      %345 = vector.shape_cast %342 : vector<2x128xbf16> to vector<1x2x128xbf16>
      tpu.vector_store %arg18[%c2_257, %c0_258, %c1536_259], %345 {strides = array<i32>} : memref<4x2x2048xbf16, #tpu.memory_space<vmem>>, vector<1x2x128xbf16>,
      %c0_260 = arith.constant 0 : index
      %c45 = arith.constant 45 : index
      %c0_261 = arith.constant 0 : index
      %346 = vector.load %arg16[%c0_260, %c45, %c0_261] : memref<2x64x128xf32, #tpu.memory_space<vmem>>, vector<2x1x128xf32>
      %347 = vector.shape_cast %346 : vector<2x1x128xf32> to vector<2x128xf32>
      %348 = arith.truncf %347 : vector<2x128xf32> to vector<2x128xbf16>
      %c2_262 = arith.constant 2 : index
      %c0_263 = arith.constant 0 : index
      %c1664_264 = arith.constant 1664 : index
      %349 = vector.load %arg18[%c2_262, %c0_263, %c1664_264] : memref<4x2x2048xbf16, #tpu.memory_space<vmem>>, vector<1x2x128xbf16>
      %350 = vector.shape_cast %349 : vector<1x2x128xbf16> to vector<2x128xbf16>
      %351 = vector.shape_cast %348 : vector<2x128xbf16> to vector<1x2x128xbf16>
      tpu.vector_store %arg18[%c2_262, %c0_263, %c1664_264], %351 {strides = array<i32>} : memref<4x2x2048xbf16, #tpu.memory_space<vmem>>, vector<1x2x128xbf16>,
      %c0_265 = arith.constant 0 : index
      %c46 = arith.constant 46 : index
      %c0_266 = arith.constant 0 : index
      %352 = vector.load %arg16[%c0_265, %c46, %c0_266] : memref<2x64x128xf32, #tpu.memory_space<vmem>>, vector<2x1x128xf32>
      %353 = vector.shape_cast %352 : vector<2x1x128xf32> to vector<2x128xf32>
      %354 = arith.truncf %353 : vector<2x128xf32> to vector<2x128xbf16>
      %c2_267 = arith.constant 2 : index
      %c0_268 = arith.constant 0 : index
      %c1792_269 = arith.constant 1792 : index
      %355 = vector.load %arg18[%c2_267, %c0_268, %c1792_269] : memref<4x2x2048xbf16, #tpu.memory_space<vmem>>, vector<1x2x128xbf16>
      %356 = vector.shape_cast %355 : vector<1x2x128xbf16> to vector<2x128xbf16>
      %357 = vector.shape_cast %354 : vector<2x128xbf16> to vector<1x2x128xbf16>
      tpu.vector_store %arg18[%c2_267, %c0_268, %c1792_269], %357 {strides = array<i32>} : memref<4x2x2048xbf16, #tpu.memory_space<vmem>>, vector<1x2x128xbf16>,
      %c0_270 = arith.constant 0 : index
      %c47 = arith.constant 47 : index
      %c0_271 = arith.constant 0 : index
      %358 = vector.load %arg16[%c0_270, %c47, %c0_271] : memref<2x64x128xf32, #tpu.memory_space<vmem>>, vector<2x1x128xf32>
      %359 = vector.shape_cast %358 : vector<2x1x128xf32> to vector<2x128xf32>
      %360 = arith.truncf %359 : vector<2x128xf32> to vector<2x128xbf16>
      %c2_272 = arith.constant 2 : index
      %c0_273 = arith.constant 0 : index
      %c1920_274 = arith.constant 1920 : index
      %361 = vector.load %arg18[%c2_272, %c0_273, %c1920_274] : memref<4x2x2048xbf16, #tpu.memory_space<vmem>>, vector<1x2x128xbf16>
      %362 = vector.shape_cast %361 : vector<1x2x128xbf16> to vector<2x128xbf16>
      %363 = vector.shape_cast %360 : vector<2x128xbf16> to vector<1x2x128xbf16>
      tpu.vector_store %arg18[%c2_272, %c0_273, %c1920_274], %363 {strides = array<i32>} : memref<4x2x2048xbf16, #tpu.memory_space<vmem>>, vector<1x2x128xbf16>,
      %c0_275 = arith.constant 0 : index
      %c48 = arith.constant 48 : index
      %c0_276 = arith.constant 0 : index
      %364 = vector.load %arg16[%c0_275, %c48, %c0_276] : memref<2x64x128xf32, #tpu.memory_space<vmem>>, vector<2x1x128xf32>
      %365 = vector.shape_cast %364 : vector<2x1x128xf32> to vector<2x128xf32>
      %366 = arith.truncf %365 : vector<2x128xf32> to vector<2x128xbf16>
      %c3_277 = arith.constant 3 : index
      %c0_278 = arith.constant 0 : index
      %c0_279 = arith.constant 0 : index
      %367 = vector.load %arg18[%c3_277, %c0_278, %c0_279] : memref<4x2x2048xbf16, #tpu.memory_space<vmem>>, vector<1x2x128xbf16>
      %368 = vector.shape_cast %367 : vector<1x2x128xbf16> to vector<2x128xbf16>
      %369 = vector.shape_cast %366 : vector<2x128xbf16> to vector<1x2x128xbf16>
      tpu.vector_store %arg18[%c3_277, %c0_278, %c0_279], %369 {strides = array<i32>} : memref<4x2x2048xbf16, #tpu.memory_space<vmem>>, vector<1x2x128xbf16>,
      %c0_280 = arith.constant 0 : index
      %c49 = arith.constant 49 : index
      %c0_281 = arith.constant 0 : index
      %370 = vector.load %arg16[%c0_280, %c49, %c0_281] : memref<2x64x128xf32, #tpu.memory_space<vmem>>, vector<2x1x128xf32>
      %371 = vector.shape_cast %370 : vector<2x1x128xf32> to vector<2x128xf32>
      %372 = arith.truncf %371 : vector<2x128xf32> to vector<2x128xbf16>
      %c3_282 = arith.constant 3 : index
      %c0_283 = arith.constant 0 : index
      %c128_284 = arith.constant 128 : index
      %373 = vector.load %arg18[%c3_282, %c0_283, %c128_284] : memref<4x2x2048xbf16, #tpu.memory_space<vmem>>, vector<1x2x128xbf16>
      %374 = vector.shape_cast %373 : vector<1x2x128xbf16> to vector<2x128xbf16>
      %375 = vector.shape_cast %372 : vector<2x128xbf16> to vector<1x2x128xbf16>
      tpu.vector_store %arg18[%c3_282, %c0_283, %c128_284], %375 {strides = array<i32>} : memref<4x2x2048xbf16, #tpu.memory_space<vmem>>, vector<1x2x128xbf16>,
      %c0_285 = arith.constant 0 : index
      %c50 = arith.constant 50 : index
      %c0_286 = arith.constant 0 : index
      %376 = vector.load %arg16[%c0_285, %c50, %c0_286] : memref<2x64x128xf32, #tpu.memory_space<vmem>>, vector<2x1x128xf32>
      %377 = vector.shape_cast %376 : vector<2x1x128xf32> to vector<2x128xf32>
      %378 = arith.truncf %377 : vector<2x128xf32> to vector<2x128xbf16>
      %c3_287 = arith.constant 3 : index
      %c0_288 = arith.constant 0 : index
      %c256_289 = arith.constant 256 : index
      %379 = vector.load %arg18[%c3_287, %c0_288, %c256_289] : memref<4x2x2048xbf16, #tpu.memory_space<vmem>>, vector<1x2x128xbf16>
      %380 = vector.shape_cast %379 : vector<1x2x128xbf16> to vector<2x128xbf16>
      %381 = vector.shape_cast %378 : vector<2x128xbf16> to vector<1x2x128xbf16>
      tpu.vector_store %arg18[%c3_287, %c0_288, %c256_289], %381 {strides = array<i32>} : memref<4x2x2048xbf16, #tpu.memory_space<vmem>>, vector<1x2x128xbf16>,
      %c0_290 = arith.constant 0 : index
      %c51 = arith.constant 51 : index
      %c0_291 = arith.constant 0 : index
      %382 = vector.load %arg16[%c0_290, %c51, %c0_291] : memref<2x64x128xf32, #tpu.memory_space<vmem>>, vector<2x1x128xf32>
      %383 = vector.shape_cast %382 : vector<2x1x128xf32> to vector<2x128xf32>
      %384 = arith.truncf %383 : vector<2x128xf32> to vector<2x128xbf16>
      %c3_292 = arith.constant 3 : index
      %c0_293 = arith.constant 0 : index
      %c384_294 = arith.constant 384 : index
      %385 = vector.load %arg18[%c3_292, %c0_293, %c384_294] : memref<4x2x2048xbf16, #tpu.memory_space<vmem>>, vector<1x2x128xbf16>
      %386 = vector.shape_cast %385 : vector<1x2x128xbf16> to vector<2x128xbf16>
      %387 = vector.shape_cast %384 : vector<2x128xbf16> to vector<1x2x128xbf16>
      tpu.vector_store %arg18[%c3_292, %c0_293, %c384_294], %387 {strides = array<i32>} : memref<4x2x2048xbf16, #tpu.memory_space<vmem>>, vector<1x2x128xbf16>,
      %c0_295 = arith.constant 0 : index
      %c52 = arith.constant 52 : index
      %c0_296 = arith.constant 0 : index
      %388 = vector.load %arg16[%c0_295, %c52, %c0_296] : memref<2x64x128xf32, #tpu.memory_space<vmem>>, vector<2x1x128xf32>
      %389 = vector.shape_cast %388 : vector<2x1x128xf32> to vector<2x128xf32>
      %390 = arith.truncf %389 : vector<2x128xf32> to vector<2x128xbf16>
      %c3_297 = arith.constant 3 : index
      %c0_298 = arith.constant 0 : index
      %c512_299 = arith.constant 512 : index
      %391 = vector.load %arg18[%c3_297, %c0_298, %c512_299] : memref<4x2x2048xbf16, #tpu.memory_space<vmem>>, vector<1x2x128xbf16>
      %392 = vector.shape_cast %391 : vector<1x2x128xbf16> to vector<2x128xbf16>
      %393 = vector.shape_cast %390 : vector<2x128xbf16> to vector<1x2x128xbf16>
      tpu.vector_store %arg18[%c3_297, %c0_298, %c512_299], %393 {strides = array<i32>} : memref<4x2x2048xbf16, #tpu.memory_space<vmem>>, vector<1x2x128xbf16>,
      %c0_300 = arith.constant 0 : index
      %c53 = arith.constant 53 : index
      %c0_301 = arith.constant 0 : index
      %394 = vector.load %arg16[%c0_300, %c53, %c0_301] : memref<2x64x128xf32, #tpu.memory_space<vmem>>, vector<2x1x128xf32>
      %395 = vector.shape_cast %394 : vector<2x1x128xf32> to vector<2x128xf32>
      %396 = arith.truncf %395 : vector<2x128xf32> to vector<2x128xbf16>
      %c3_302 = arith.constant 3 : index
      %c0_303 = arith.constant 0 : index
      %c640_304 = arith.constant 640 : index
      %397 = vector.load %arg18[%c3_302, %c0_303, %c640_304] : memref<4x2x2048xbf16, #tpu.memory_space<vmem>>, vector<1x2x128xbf16>
      %398 = vector.shape_cast %397 : vector<1x2x128xbf16> to vector<2x128xbf16>
      %399 = vector.shape_cast %396 : vector<2x128xbf16> to vector<1x2x128xbf16>
      tpu.vector_store %arg18[%c3_302, %c0_303, %c640_304], %399 {strides = array<i32>} : memref<4x2x2048xbf16, #tpu.memory_space<vmem>>, vector<1x2x128xbf16>,
      %c0_305 = arith.constant 0 : index
      %c54 = arith.constant 54 : index
      %c0_306 = arith.constant 0 : index
      %400 = vector.load %arg16[%c0_305, %c54, %c0_306] : memref<2x64x128xf32, #tpu.memory_space<vmem>>, vector<2x1x128xf32>
      %401 = vector.shape_cast %400 : vector<2x1x128xf32> to vector<2x128xf32>
      %402 = arith.truncf %401 : vector<2x128xf32> to vector<2x128xbf16>
      %c3_307 = arith.constant 3 : index
      %c0_308 = arith.constant 0 : index
      %c768_309 = arith.constant 768 : index
      %403 = vector.load %arg18[%c3_307, %c0_308, %c768_309] : memref<4x2x2048xbf16, #tpu.memory_space<vmem>>, vector<1x2x128xbf16>
      %404 = vector.shape_cast %403 : vector<1x2x128xbf16> to vector<2x128xbf16>
      %405 = vector.shape_cast %402 : vector<2x128xbf16> to vector<1x2x128xbf16>
      tpu.vector_store %arg18[%c3_307, %c0_308, %c768_309], %405 {strides = array<i32>} : memref<4x2x2048xbf16, #tpu.memory_space<vmem>>, vector<1x2x128xbf16>,
      %c0_310 = arith.constant 0 : index
      %c55 = arith.constant 55 : index
      %c0_311 = arith.constant 0 : index
      %406 = vector.load %arg16[%c0_310, %c55, %c0_311] : memref<2x64x128xf32, #tpu.memory_space<vmem>>, vector<2x1x128xf32>
      %407 = vector.shape_cast %406 : vector<2x1x128xf32> to vector<2x128xf32>
      %408 = arith.truncf %407 : vector<2x128xf32> to vector<2x128xbf16>
      %c3_312 = arith.constant 3 : index
      %c0_313 = arith.constant 0 : index
      %c896_314 = arith.constant 896 : index
      %409 = vector.load %arg18[%c3_312, %c0_313, %c896_314] : memref<4x2x2048xbf16, #tpu.memory_space<vmem>>, vector<1x2x128xbf16>
      %410 = vector.shape_cast %409 : vector<1x2x128xbf16> to vector<2x128xbf16>
      %411 = vector.shape_cast %408 : vector<2x128xbf16> to vector<1x2x128xbf16>
      tpu.vector_store %arg18[%c3_312, %c0_313, %c896_314], %411 {strides = array<i32>} : memref<4x2x2048xbf16, #tpu.memory_space<vmem>>, vector<1x2x128xbf16>,
      %c0_315 = arith.constant 0 : index
      %c56 = arith.constant 56 : index
      %c0_316 = arith.constant 0 : index
      %412 = vector.load %arg16[%c0_315, %c56, %c0_316] : memref<2x64x128xf32, #tpu.memory_space<vmem>>, vector<2x1x128xf32>
      %413 = vector.shape_cast %412 : vector<2x1x128xf32> to vector<2x128xf32>
      %414 = arith.truncf %413 : vector<2x128xf32> to vector<2x128xbf16>
      %c3_317 = arith.constant 3 : index
      %c0_318 = arith.constant 0 : index
      %c1024_319 = arith.constant 1024 : index
      %415 = vector.load %arg18[%c3_317, %c0_318, %c1024_319] : memref<4x2x2048xbf16, #tpu.memory_space<vmem>>, vector<1x2x128xbf16>
      %416 = vector.shape_cast %415 : vector<1x2x128xbf16> to vector<2x128xbf16>
      %417 = vector.shape_cast %414 : vector<2x128xbf16> to vector<1x2x128xbf16>
      tpu.vector_store %arg18[%c3_317, %c0_318, %c1024_319], %417 {strides = array<i32>} : memref<4x2x2048xbf16, #tpu.memory_space<vmem>>, vector<1x2x128xbf16>,
      %c0_320 = arith.constant 0 : index
      %c57 = arith.constant 57 : index
      %c0_321 = arith.constant 0 : index
      %418 = vector.load %arg16[%c0_320, %c57, %c0_321] : memref<2x64x128xf32, #tpu.memory_space<vmem>>, vector<2x1x128xf32>
      %419 = vector.shape_cast %418 : vector<2x1x128xf32> to vector<2x128xf32>
      %420 = arith.truncf %419 : vector<2x128xf32> to vector<2x128xbf16>
      %c3_322 = arith.constant 3 : index
      %c0_323 = arith.constant 0 : index
      %c1152_324 = arith.constant 1152 : index
      %421 = vector.load %arg18[%c3_322, %c0_323, %c1152_324] : memref<4x2x2048xbf16, #tpu.memory_space<vmem>>, vector<1x2x128xbf16>
      %422 = vector.shape_cast %421 : vector<1x2x128xbf16> to vector<2x128xbf16>
      %423 = vector.shape_cast %420 : vector<2x128xbf16> to vector<1x2x128xbf16>
      tpu.vector_store %arg18[%c3_322, %c0_323, %c1152_324], %423 {strides = array<i32>} : memref<4x2x2048xbf16, #tpu.memory_space<vmem>>, vector<1x2x128xbf16>,
      %c0_325 = arith.constant 0 : index
      %c58 = arith.constant 58 : index
      %c0_326 = arith.constant 0 : index
      %424 = vector.load %arg16[%c0_325, %c58, %c0_326] : memref<2x64x128xf32, #tpu.memory_space<vmem>>, vector<2x1x128xf32>
      %425 = vector.shape_cast %424 : vector<2x1x128xf32> to vector<2x128xf32>
      %426 = arith.truncf %425 : vector<2x128xf32> to vector<2x128xbf16>
      %c3_327 = arith.constant 3 : index
      %c0_328 = arith.constant 0 : index
      %c1280_329 = arith.constant 1280 : index
      %427 = vector.load %arg18[%c3_327, %c0_328, %c1280_329] : memref<4x2x2048xbf16, #tpu.memory_space<vmem>>, vector<1x2x128xbf16>
      %428 = vector.shape_cast %427 : vector<1x2x128xbf16> to vector<2x128xbf16>
      %429 = vector.shape_cast %426 : vector<2x128xbf16> to vector<1x2x128xbf16>
      tpu.vector_store %arg18[%c3_327, %c0_328, %c1280_329], %429 {strides = array<i32>} : memref<4x2x2048xbf16, #tpu.memory_space<vmem>>, vector<1x2x128xbf16>,
      %c0_330 = arith.constant 0 : index
      %c59 = arith.constant 59 : index
      %c0_331 = arith.constant 0 : index
      %430 = vector.load %arg16[%c0_330, %c59, %c0_331] : memref<2x64x128xf32, #tpu.memory_space<vmem>>, vector<2x1x128xf32>
      %431 = vector.shape_cast %430 : vector<2x1x128xf32> to vector<2x128xf32>
      %432 = arith.truncf %431 : vector<2x128xf32> to vector<2x128xbf16>
      %c3_332 = arith.constant 3 : index
      %c0_333 = arith.constant 0 : index
      %c1408_334 = arith.constant 1408 : index
      %433 = vector.load %arg18[%c3_332, %c0_333, %c1408_334] : memref<4x2x2048xbf16, #tpu.memory_space<vmem>>, vector<1x2x128xbf16>
      %434 = vector.shape_cast %433 : vector<1x2x128xbf16> to vector<2x128xbf16>
      %435 = vector.shape_cast %432 : vector<2x128xbf16> to vector<1x2x128xbf16>
      tpu.vector_store %arg18[%c3_332, %c0_333, %c1408_334], %435 {strides = array<i32>} : memref<4x2x2048xbf16, #tpu.memory_space<vmem>>, vector<1x2x128xbf16>,
      %c0_335 = arith.constant 0 : index
      %c60 = arith.constant 60 : index
      %c0_336 = arith.constant 0 : index
      %436 = vector.load %arg16[%c0_335, %c60, %c0_336] : memref<2x64x128xf32, #tpu.memory_space<vmem>>, vector<2x1x128xf32>
      %437 = vector.shape_cast %436 : vector<2x1x128xf32> to vector<2x128xf32>
      %438 = arith.truncf %437 : vector<2x128xf32> to vector<2x128xbf16>
      %c3_337 = arith.constant 3 : index
      %c0_338 = arith.constant 0 : index
      %c1536_339 = arith.constant 1536 : index
      %439 = vector.load %arg18[%c3_337, %c0_338, %c1536_339] : memref<4x2x2048xbf16, #tpu.memory_space<vmem>>, vector<1x2x128xbf16>
      %440 = vector.shape_cast %439 : vector<1x2x128xbf16> to vector<2x128xbf16>
      %441 = vector.shape_cast %438 : vector<2x128xbf16> to vector<1x2x128xbf16>
      tpu.vector_store %arg18[%c3_337, %c0_338, %c1536_339], %441 {strides = array<i32>} : memref<4x2x2048xbf16, #tpu.memory_space<vmem>>, vector<1x2x128xbf16>,
      %c0_340 = arith.constant 0 : index
      %c61 = arith.constant 61 : index
      %c0_341 = arith.constant 0 : index
      %442 = vector.load %arg16[%c0_340, %c61, %c0_341] : memref<2x64x128xf32, #tpu.memory_space<vmem>>, vector<2x1x128xf32>
      %443 = vector.shape_cast %442 : vector<2x1x128xf32> to vector<2x128xf32>
      %444 = arith.truncf %443 : vector<2x128xf32> to vector<2x128xbf16>
      %c3_342 = arith.constant 3 : index
      %c0_343 = arith.constant 0 : index
      %c1664_344 = arith.constant 1664 : index
      %445 = vector.load %arg18[%c3_342, %c0_343, %c1664_344] : memref<4x2x2048xbf16, #tpu.memory_space<vmem>>, vector<1x2x128xbf16>
      %446 = vector.shape_cast %445 : vector<1x2x128xbf16> to vector<2x128xbf16>
      %447 = vector.shape_cast %444 : vector<2x128xbf16> to vector<1x2x128xbf16>
      tpu.vector_store %arg18[%c3_342, %c0_343, %c1664_344], %447 {strides = array<i32>} : memref<4x2x2048xbf16, #tpu.memory_space<vmem>>, vector<1x2x128xbf16>,
      %c0_345 = arith.constant 0 : index
      %c62 = arith.constant 62 : index
      %c0_346 = arith.constant 0 : index
      %448 = vector.load %arg16[%c0_345, %c62, %c0_346] : memref<2x64x128xf32, #tpu.memory_space<vmem>>, vector<2x1x128xf32>
      %449 = vector.shape_cast %448 : vector<2x1x128xf32> to vector<2x128xf32>
      %450 = arith.truncf %449 : vector<2x128xf32> to vector<2x128xbf16>
      %c3_347 = arith.constant 3 : index
      %c0_348 = arith.constant 0 : index
      %c1792_349 = arith.constant 1792 : index
      %451 = vector.load %arg18[%c3_347, %c0_348, %c1792_349] : memref<4x2x2048xbf16, #tpu.memory_space<vmem>>, vector<1x2x128xbf16>
      %452 = vector.shape_cast %451 : vector<1x2x128xbf16> to vector<2x128xbf16>
      %453 = vector.shape_cast %450 : vector<2x128xbf16> to vector<1x2x128xbf16>
      tpu.vector_store %arg18[%c3_347, %c0_348, %c1792_349], %453 {strides = array<i32>} : memref<4x2x2048xbf16, #tpu.memory_space<vmem>>, vector<1x2x128xbf16>,
      %c0_350 = arith.constant 0 : index
      %c63 = arith.constant 63 : index
      %c0_351 = arith.constant 0 : index
      %454 = vector.load %arg16[%c0_350, %c63, %c0_351] : memref<2x64x128xf32, #tpu.memory_space<vmem>>, vector<2x1x128xf32>
      %455 = vector.shape_cast %454 : vector<2x1x128xf32> to vector<2x128xf32>
      %456 = arith.truncf %455 : vector<2x128xf32> to vector<2x128xbf16>
      %c3_352 = arith.constant 3 : index
      %c0_353 = arith.constant 0 : index
      %c1920_354 = arith.constant 1920 : index
      %457 = vector.load %arg18[%c3_352, %c0_353, %c1920_354] : memref<4x2x2048xbf16, #tpu.memory_space<vmem>>, vector<1x2x128xbf16>
      %458 = vector.shape_cast %457 : vector<1x2x128xbf16> to vector<2x128xbf16>
      %459 = vector.shape_cast %456 : vector<2x128xbf16> to vector<1x2x128xbf16>
      tpu.vector_store %arg18[%c3_352, %c0_353, %c1920_354], %459 {strides = array<i32>} : memref<4x2x2048xbf16, #tpu.memory_space<vmem>>, vector<1x2x128xbf16>,
    } else {
    }
    %c0 = arith.constant 0 : index
    %c0_1 = arith.constant 0 : index
    %3 = vector.load %arg19[%c0, %c0_1] : memref<2x400xf32, #tpu.memory_space<vmem>>, vector<2x400xf32>
    %4 = arith.index_cast %arg0 : i32 to index
    %c0_2 = arith.constant 0 : index
    %c0_3 = arith.constant 0 : index
    %5 = vector.load %arg18[%4, %c0_2, %c0_3] : memref<4x2x2048xbf16, #tpu.memory_space<vmem>>, vector<1x2x2048xbf16>
    %6 = vector.shape_cast %5 : vector<1x2x2048xbf16> to vector<2x2048xbf16>
    %c0_4 = arith.constant 0 : index
    %c0_5 = arith.constant 0 : index
    %7 = vector.load %arg8[%c0_4, %c0_5] : memref<2048x400xbf16, #tpu.memory_space<vmem>>, vector<2048x400xbf16>
    %cst = arith.constant dense<0.000000e+00> : vector<2x400xf32>
    %8 = tpu.matmul %6, %7, %cst {dimension_numbers = #tpu.dot_dimension_numbers<[1], [0], [0], [1], [0, 0, 1, 1], [], []>} : vector<2x2048xbf16>, vector<2048x400xbf16>, vector<2x400xf32> -> vector<2x400xf32>
    %9 = arith.addf %3, %8 : vector<2x400xf32>
    %c0_6 = arith.constant 0 : index
    %c0_7 = arith.constant 0 : index
    %10 = vector.load %arg19[%c0_6, %c0_7] : memref<2x400xf32, #tpu.memory_space<vmem>>, vector<2x400xf32>
    tpu.vector_store %arg19[%c0_6, %c0_7], %9 {strides = array<i32>} : memref<2x400xf32, #tpu.memory_space<vmem>>, vector<2x400xf32>,
    %c3_i32 = arith.constant 3 : i32
    %11 = arith.cmpi eq, %arg0, %c3_i32 : i32
    %12 = arith.extui %11 : i1 to i32
    %c0_i32_8 = arith.constant 0 : i32
    %13 = arith.cmpi ne, %12, %c0_i32_8 : i32
    scf.if %13 {
      %c0_9 = arith.constant 0 : index
      %c0_10 = arith.constant 0 : index
      %14 = vector.load %arg9[%c0_9, %c0_10] : memref<100x400xf32, #tpu.memory_space<vmem>>, vector<100x400xf32>
      %c0_11 = arith.constant 0 : index
      %c0_12 = arith.constant 0 : index
      %15 = vector.load %arg10[%c0_11, %c0_12] : memref<1x400xf32, #tpu.memory_space<vmem>>, vector<1x400xf32>
      %cst_13 = arith.constant 0.000000e+00 : f32
      %16 = vector.broadcast %cst_13 : f32 to vector<1x100xf32>
      %cst_14 = arith.constant 0.000000e+00 : f32
      %17 = vector.broadcast %cst_14 : f32 to vector<1x100xf32>
      %c0_i32_15 = arith.constant 0 : i32
      %18 = arith.index_cast %c0_i32_15 : i32 to index
      %c0_16 = arith.constant 0 : index
      %19 = vector.load %arg19[%18, %c0_16] : memref<2x400xf32, #tpu.memory_space<vmem>>, vector<1x400xf32>
      %20 = arith.addf %19, %15 : vector<1x400xf32>
      %cst_17 = arith.constant dense<0.000000e+00> : vector<1x400xf32>
      %21 = tpu.matmul %16, %14, %cst_17 {dimension_numbers = #tpu.dot_dimension_numbers<[1], [0], [0], [1], [0, 0, 1, 1], [], []>} : vector<1x100xf32>, vector<100x400xf32>, vector<1x400xf32> -> vector<1x400xf32>
      %22 = arith.addf %20, %21 : vector<1x400xf32>
      %23 = vector.extract_strided_slice %22 {offsets = [0, 0], sizes = [1, 100], strides = [1, 1]} : vector<1x400xf32> to vector<1x100xf32>
      %24 = arith.negf %23 : vector<1x100xf32>
      %25 = math.exp %24 : vector<1x100xf32>
      %cst_18 = arith.constant 1.000000e+00 : f32
      %26 = vector.broadcast %cst_18 : f32 to vector<1x100xf32>
      %27 = arith.addf %26, %25 : vector<1x100xf32>
      %28 = arith.divf %26, %27 : vector<1x100xf32>
      %29 = vector.extract_strided_slice %22 {offsets = [0, 100], sizes = [1, 100], strides = [1, 1]} : vector<1x400xf32> to vector<1x100xf32>
      %30 = arith.negf %29 : vector<1x100xf32>
      %31 = math.exp %30 : vector<1x100xf32>
      %cst_19 = arith.constant 1.000000e+00 : f32
      %32 = vector.broadcast %cst_19 : f32 to vector<1x100xf32>
      %33 = arith.addf %32, %31 : vector<1x100xf32>
      %34 = arith.divf %32, %33 : vector<1x100xf32>
      %35 = vector.extract_strided_slice %22 {offsets = [0, 200], sizes = [1, 100], strides = [1, 1]} : vector<1x400xf32> to vector<1x100xf32>
      %36 = math.tanh %35 : vector<1x100xf32>
      %37 = vector.extract_strided_slice %22 {offsets = [0, 300], sizes = [1, 100], strides = [1, 1]} : vector<1x400xf32> to vector<1x100xf32>
      %38 = arith.negf %37 : vector<1x100xf32>
      %39 = math.exp %38 : vector<1x100xf32>
      %cst_20 = arith.constant 1.000000e+00 : f32
      %40 = vector.broadcast %cst_20 : f32 to vector<1x100xf32>
      %41 = arith.addf %40, %39 : vector<1x100xf32>
      %42 = arith.divf %40, %41 : vector<1x100xf32>
      %43 = arith.mulf %34, %17 : vector<1x100xf32>
      %44 = arith.mulf %28, %36 : vector<1x100xf32>
      %45 = arith.addf %43, %44 : vector<1x100xf32>
      %46 = math.tanh %45 : vector<1x100xf32>
      %47 = arith.mulf %42, %46 : vector<1x100xf32>
      %48 = arith.index_cast %c0_i32_15 : i32 to index
      %c0_21 = arith.constant 0 : index
      %49 = vector.load %arg20[%48, %c0_21] : memref<2x100xf32, #tpu.memory_space<vmem>>, vector<1x100xf32>
      tpu.vector_store %arg20[%48, %c0_21], %47 {strides = array<i32>} : memref<2x100xf32, #tpu.memory_space<vmem>>, vector<1x100xf32>,
      %c1_i32 = arith.constant 1 : i32
      %50 = arith.index_cast %c1_i32 : i32 to index
      %c0_22 = arith.constant 0 : index
      %51 = vector.load %arg19[%50, %c0_22] : memref<2x400xf32, #tpu.memory_space<vmem>>, vector<1x400xf32>
      %52 = arith.addf %51, %15 : vector<1x400xf32>
      %cst_23 = arith.constant dense<0.000000e+00> : vector<1x400xf32>
      %53 = tpu.matmul %47, %14, %cst_23 {dimension_numbers = #tpu.dot_dimension_numbers<[1], [0], [0], [1], [0, 0, 1, 1], [], []>} : vector<1x100xf32>, vector<100x400xf32>, vector<1x400xf32> -> vector<1x400xf32>
      %54 = arith.addf %52, %53 : vector<1x400xf32>
      %55 = vector.extract_strided_slice %54 {offsets = [0, 0], sizes = [1, 100], strides = [1, 1]} : vector<1x400xf32> to vector<1x100xf32>
      %56 = arith.negf %55 : vector<1x100xf32>
      %57 = math.exp %56 : vector<1x100xf32>
      %cst_24 = arith.constant 1.000000e+00 : f32
      %58 = vector.broadcast %cst_24 : f32 to vector<1x100xf32>
      %59 = arith.addf %58, %57 : vector<1x100xf32>
      %60 = arith.divf %58, %59 : vector<1x100xf32>
      %61 = vector.extract_strided_slice %54 {offsets = [0, 100], sizes = [1, 100], strides = [1, 1]} : vector<1x400xf32> to vector<1x100xf32>
      %62 = arith.negf %61 : vector<1x100xf32>
      %63 = math.exp %62 : vector<1x100xf32>
      %cst_25 = arith.constant 1.000000e+00 : f32
      %64 = vector.broadcast %cst_25 : f32 to vector<1x100xf32>
      %65 = arith.addf %64, %63 : vector<1x100xf32>
      %66 = arith.divf %64, %65 : vector<1x100xf32>
      %67 = vector.extract_strided_slice %54 {offsets = [0, 200], sizes = [1, 100], strides = [1, 1]} : vector<1x400xf32> to vector<1x100xf32>
      %68 = math.tanh %67 : vector<1x100xf32>
      %69 = vector.extract_strided_slice %54 {offsets = [0, 300], sizes = [1, 100], strides = [1, 1]} : vector<1x400xf32> to vector<1x100xf32>
      %70 = arith.negf %69 : vector<1x100xf32>
      %71 = math.exp %70 : vector<1x100xf32>
      %cst_26 = arith.constant 1.000000e+00 : f32
      %72 = vector.broadcast %cst_26 : f32 to vector<1x100xf32>
      %73 = arith.addf %72, %71 : vector<1x100xf32>
      %74 = arith.divf %72, %73 : vector<1x100xf32>
      %75 = arith.mulf %66, %45 : vector<1x100xf32>
      %76 = arith.mulf %60, %68 : vector<1x100xf32>
      %77 = arith.addf %75, %76 : vector<1x100xf32>
      %78 = math.tanh %77 : vector<1x100xf32>
      %79 = arith.mulf %74, %78 : vector<1x100xf32>
      %80 = arith.index_cast %c1_i32 : i32 to index
      %c0_27 = arith.constant 0 : index
      %81 = vector.load %arg20[%80, %c0_27] : memref<2x100xf32, #tpu.memory_space<vmem>>, vector<1x100xf32>
      tpu.vector_store %arg20[%80, %c0_27], %79 {strides = array<i32>} : memref<2x100xf32, #tpu.memory_space<vmem>>, vector<1x100xf32>,
      %c2_i32 = arith.constant 2 : i32
      %c0_28 = arith.constant 0 : index
      %c0_29 = arith.constant 0 : index
      %82 = vector.load %arg20[%c0_28, %c0_29] : memref<2x100xf32, #tpu.memory_space<vmem>>, vector<2x100xf32>
      %c0_30 = arith.constant 0 : index
      %c0_31 = arith.constant 0 : index
      %83 = vector.load %arg11[%c0_30, %c0_31] : memref<100x100xf32, #tpu.memory_space<vmem>>, vector<100x100xf32>
      %cst_32 = arith.constant dense<0.000000e+00> : vector<2x100xf32>
      %84 = tpu.matmul %82, %83, %cst_32 {dimension_numbers = #tpu.dot_dimension_numbers<[1], [0], [0], [1], [0, 0, 1, 1], [], []>} : vector<2x100xf32>, vector<100x100xf32>, vector<2x100xf32> -> vector<2x100xf32>
      %c0_33 = arith.constant 0 : index
      %c0_34 = arith.constant 0 : index
      %85 = vector.load %arg12[%c0_33, %c0_34] : memref<1x100xf32, #tpu.memory_space<vmem>>, vector<1x100xf32>
      %86 = vector.broadcast %85 : vector<1x100xf32> to vector<2x100xf32>
      %87 = arith.addf %84, %86 : vector<2x100xf32>
      %cst_35 = arith.constant 0.000000e+00 : f32
      %88 = vector.broadcast %cst_35 : f32 to vector<2x100xf32>
      %89 = arith.maximumf %87, %88 : vector<2x100xf32>
      %c0_36 = arith.constant 0 : index
      %c0_37 = arith.constant 0 : index
      %90 = vector.load %arg13[%c0_36, %c0_37] : memref<100x3xf32, #tpu.memory_space<vmem>>, vector<100x3xf32>
      %cst_38 = arith.constant dense<0.000000e+00> : vector<2x3xf32>
      %91 = tpu.matmul %89, %90, %cst_38 {dimension_numbers = #tpu.dot_dimension_numbers<[1], [0], [0], [1], [0, 0, 1, 1], [], []>} : vector<2x100xf32>, vector<100x3xf32>, vector<2x3xf32> -> vector<2x3xf32>
      %c0_39 = arith.constant 0 : index
      %c0_40 = arith.constant 0 : index
      %92 = vector.load %arg14[%c0_39, %c0_40] : memref<1x3xf32, #tpu.memory_space<vmem>>, vector<1x3xf32>
      %93 = vector.broadcast %92 : vector<1x3xf32> to vector<2x3xf32>
      %94 = arith.addf %91, %93 : vector<2x3xf32>
      %c0_41 = arith.constant 0 : index
      %c0_42 = arith.constant 0 : index
      %95 = vector.load %arg15[%c0_41, %c0_42] : memref<2x3xf32, #tpu.memory_space<vmem>>, vector<2x3xf32>
      tpu.vector_store %arg15[%c0_41, %c0_42], %94 {strides = array<i32>} : memref<2x3xf32, #tpu.memory_space<vmem>>, vector<2x3xf32>,
    } else {
    }
    return
  }
  func.func @transform_0(%arg0: i32) -> (i32, i32) {
    %c0_i32 = arith.constant 0 : i32
    %c0_i32_0 = arith.constant 0 : i32
    %c0_i32_1 = arith.constant 0 : i32
    return %c0_i32, %c0_i32_0 : i32, i32
  }
  func.func @transform_1(%arg0: i32) -> (i32, i32) {
    %c0_i32 = arith.constant 0 : i32
    %c0_i32_0 = arith.constant 0 : i32
    %c0_i32_1 = arith.constant 0 : i32
    return %c0_i32, %c0_i32_0 : i32, i32
  }
  func.func @transform_2(%arg0: i32) -> (i32, i32) {
    %c0_i32 = arith.constant 0 : i32
    %c0_i32_0 = arith.constant 0 : i32
    %c0_i32_1 = arith.constant 0 : i32
    return %c0_i32, %c0_i32_0 : i32, i32
  }
  func.func @transform_3(%arg0: i32) -> (i32, i32) {
    %c0_i32 = arith.constant 0 : i32
    %c0_i32_0 = arith.constant 0 : i32
    %c0_i32_1 = arith.constant 0 : i32
    return %c0_i32, %c0_i32_0 : i32, i32
  }
  func.func @transform_4(%arg0: i32) -> (i32, i32) {
    %c0_i32 = arith.constant 0 : i32
    %c0_i32_0 = arith.constant 0 : i32
    %c0_i32_1 = arith.constant 0 : i32
    return %c0_i32, %c0_i32_0 : i32, i32
  }
  func.func @transform_5(%arg0: i32) -> (i32, i32) {
    %c0_i32 = arith.constant 0 : i32
    %c0_i32_0 = arith.constant 0 : i32
    %c0_i32_1 = arith.constant 0 : i32
    return %c0_i32, %c0_i32_0 : i32, i32
  }
  func.func @transform_6(%arg0: i32) -> (i32, i32) {
    %c0_i32 = arith.constant 0 : i32
    %c0_i32_0 = arith.constant 0 : i32
    %c0_i32_1 = arith.constant 0 : i32
    return %c0_i32, %c0_i32_0 : i32, i32
  }
  func.func @transform_7(%arg0: i32) -> (i32, i32) {
    %c0_i32 = arith.constant 0 : i32
    %c0_i32_0 = arith.constant 0 : i32
    return %arg0, %c0_i32 : i32, i32
  }
  func.func @transform_8(%arg0: i32) -> (i32, i32) {
    %c0_i32 = arith.constant 0 : i32
    %c0_i32_0 = arith.constant 0 : i32
    %c0_i32_1 = arith.constant 0 : i32
    return %c0_i32, %c0_i32_0 : i32, i32
  }
  func.func @transform_9(%arg0: i32) -> (i32, i32) {
    %c0_i32 = arith.constant 0 : i32
    %c0_i32_0 = arith.constant 0 : i32
    %c0_i32_1 = arith.constant 0 : i32
    return %c0_i32, %c0_i32_0 : i32, i32
  }
  func.func @transform_10(%arg0: i32) -> (i32, i32) {
    %c0_i32 = arith.constant 0 : i32
    %c0_i32_0 = arith.constant 0 : i32
    %c0_i32_1 = arith.constant 0 : i32
    return %c0_i32, %c0_i32_0 : i32, i32
  }
  func.func @transform_11(%arg0: i32) -> (i32, i32) {
    %c0_i32 = arith.constant 0 : i32
    %c0_i32_0 = arith.constant 0 : i32
    %c0_i32_1 = arith.constant 0 : i32
    return %c0_i32, %c0_i32_0 : i32, i32
  }
  func.func @transform_12(%arg0: i32) -> (i32, i32) {
    %c0_i32 = arith.constant 0 : i32
    %c0_i32_0 = arith.constant 0 : i32
    %c0_i32_1 = arith.constant 0 : i32
    return %c0_i32, %c0_i32_0 : i32, i32
  }
  func.func @transform_13(%arg0: i32) -> (i32, i32) {
    %c0_i32 = arith.constant 0 : i32
    %c0_i32_0 = arith.constant 0 : i32
    %c0_i32_1 = arith.constant 0 : i32
    return %c0_i32, %c0_i32_0 : i32, i32
  }
  func.func @transform_14(%arg0: i32) -> (i32, i32) {
    %c0_i32 = arith.constant 0 : i32
    %c0_i32_0 = arith.constant 0 : i32
    %c0_i32_1 = arith.constant 0 : i32
    return %c0_i32, %c0_i32_0 : i32, i32
  }
  func.func @transform_15(%arg0: i32) -> (i32, i32, i32) {
    %c0_i32 = arith.constant 0 : i32
    %c0_i32_0 = arith.constant 0 : i32
    %c0_i32_1 = arith.constant 0 : i32
    %c0_i32_2 = arith.constant 0 : i32
    return %c0_i32, %c0_i32_0, %c0_i32_1 : i32, i32, i32
  }
}

</mosaic_0001>

<bundles_post_ra>
// kernel: traffic_cnn_rnn_forward.1
= control target key start
LH: loop header
LB: loop body
LE: loop exit
PB: predicated region body
PF: predicated region fallthrough
CT: control target
= control target key end

     0   :  { %21 = vsyncpa [#allocation7], 0  ;;  %s15579_s0 = inlined_call_operand.vmem [shape: f32[2,128], index: 0, kind: input, shape index: {}]   ;;  %s15580_s1 = inlined_call_operand.vmem [shape: f32[32,1], index: 1, kind: input, shape index: {}]   ;;  %s15581_s2 = inlined_call_operand.vmem [shape: f32[32,1], index: 2, kind: input, shape index: {}]   ;;  %s15582_s3 = inlined_call_operand.vmem [shape: f32[32,1], index: 3, kind: input, shape index: {}]   ;;  %s15583_s4 = inlined_call_operand.vmem [shape: f32[64,32], index: 4, kind: input, shape index: {}]   ;;  %s15584_s5 = inlined_call_operand.vmem [shape: f32[64,32], index: 5, kind: input, shape index: {}]   ;;  %s15585_s6 = inlined_call_operand.vmem [shape: f32[64,1], index: 6, kind: input, shape index: {}]   ;;  %s15586_s7 = inlined_call_operand.vmem [shape: bf16[8192,400], index: 7, kind: input, shape index: {}]   ;;  %s15587_s8 = inlined_call_operand.vmem [shape: f32[100,400], index: 8, kind: input, shape index: {}]   ;;  %s15588_s9 = inlined_call_operand.vmem [shape: f32[1,400], index: 9, kind: input, shape index: {}]   ;;  %s15589_s10 = inlined_call_operand.vmem [shape: f32[100,100], index: 10, kind: input, shape index: {}]   ;;  %s15590_s11 = inlined_call_operand.vmem [shape: f32[1,100], index: 11, kind: input, shape index: {}]   ;;  %s15591_s12 = inlined_call_operand.vmem [shape: f32[100,3], index: 12, kind: input, shape index: {}]   ;;  %s15592_s13 = inlined_call_operand.vmem [shape: f32[1,3], index: 13, kind: input, shape index: {}]   ;;  %s15593_s14 = inlined_call_operand.hbm [shape: f32[2,3], index: 14, kind: output, shape index: {0}]   ;;  %s15594_s15 = inlined_call_operand.hbm [shape: f32[2,64,128], index: 15, kind: output, shape index: {1}]  }
   0x1   :  { %22 = vsyncpa [#allocation9], 0  ;;  %s13160_s18 = smov 0  }
   0x2 LB: > { %s13166_s19 = sadd.s32 4294967295, %s13061_s18   ;;  %p11309_p0 = scmp.ge.s32.totalorder %s13061_s18, 1  ;;  %s13061_s18 = sphi %s13160_s18, %s28_s18  }
   0x3   : > { %p434_p1 = scmp.lt.s32.totalorder %s13061_s18, 5 }
   0x5   : > { %p435_p2 = pnand %p11309_p0, %p434_p1 }
   0x6   : > { %s11310_s20 = sshll.u32 (!%p435_p2), %s13166_s19, 8  ;;  %p11313_p4 = scmp.ne.s32.totalorder (!%p435_p2), %s13166_s19, 0 }
   0x7   : > { %438 = sbr.rel (%p435_p2) target bundleno = 3244 (0xcac), region = 76  ;;  %p479_p3 = scmp.lt.s32.totalorder (!%p435_p2), %s11310_s20, 1023 }
   0xc   : > { %s15670_s20 = smov (!%p479_p3, %s11310_s20), 1023  ;;  %488 = sbr.rel (%p11313_p4) target bundleno = 879 (0x36f), region = 80 }
   0xd   : > { %s11951_s21 = sshll.u32 %s15670_s20, 4 }
   0xe   : > { %s13174_s24 = scalar_lea.vmem %s15586_s7, %s11951_s21 }
  0x11   : > { %v544_v0 = vld [vmem:[%s15581_s2 + $0x18] sm:$0xff]  ;;  %v542_v1 = vld [vmem:[%s15581_s2 + $0x8] sm:$0xff]  ;;  %v13063_v2 = vmov 0   ;;  %v543_v3 = vld [vmem:[%s15581_s2 + $0x10] sm:$0xff]  ;;  %v13064_v13 = vmov 1966171168   ;;  %v526_v15 = vlaneseq }
  0x12   : > { %12204 = vset.pattern.permute.xlu1 %v13063_v2  ;;  %12203 = vset.pattern.permute.xlu0 %v13063_v2  ;;  %v541_v4 = vld [vmem:[%s15581_s2] sm:$0xff]  ;;  %v540_v5 = vld [vmem:[%s15580_s1 + $0x18] sm:$0xff]  ;;  %v539_v6 = vld [vmem:[%s15580_s1 + $0x10] sm:$0xff]  ;;  %v524_v14 = vunpack.c.l.s4 %v13064_v13  ;;  %s13065_s27 = smov 127   ;;  %vm784_vm0 = vcmask 261120   ;;  %vm691_vm1 = vcmask 1039360  }
  0x13   : > { %604 = vperm.xlu0 %12203, %v544_v0   ;;  %594 = vperm.xlu1 %12204, %v542_v1   ;;  %v548_v7 = vld [vmem:[%s15582_s3 + $0x18] sm:$0xff]  ;;  %v538_v8 = vld [vmem:[%s15580_s1 + $0x8] sm:$0xff]  ;;  %v547_v9 = vld [vmem:[%s15582_s3 + $0x10] sm:$0xff]  ;;  %v13213_v17 = vshrl.u32 %v526_v15, 7  ;;  %vm489_vm2 = vcmask 1041408   ;;  %vm490_vm3 = vcmask 1043458  }
  0x14   : > { %v537_v10 = vld [vmem:[%s15580_s1] sm:$0xff]  ;;  %v546_v11 = vld [vmem:[%s15582_s3 + $0x8] sm:$0xff]  ;;  %v525_v16 = vunpack.c.0.s8 %v524_v14  ;;  %vm492_vm4 = vcmask 1045508   ;;  %vm494_vm5 = vcmask 130054   ;;  %vm491_vm6 = vmor %vm490_vm3, %vm489_vm2  ;;  %vm1059_vm9 = vcmask 1031168  }
  0x15   : > { %v545_v12 = vld [vmem:[%s15582_s3] sm:$0xff]  ;;  %v571_v21 = vsub.s32 0, %v13213_v17  ;;  %vm13323_vm7 = vmor %vm492_vm4, %vm491_vm6  ;;  %vm1389_vm10 = vcmask 1041409  }
  0x16   : > { %v13216_v18 = vsub.s32 %v525_v16, %v13213_v17  ;;  %v11314_v19 = vld.sshfl [vmem:[%s15579_s0] sm:$0x11 pattern:$0x75316420]  ;;  %vm495_vm8 = vmor %vm494_vm5, %vm13323_vm7 }
  0x17   : > { %599 = vperm.xlu0 %12203, %v543_v3   ;;  %589 = vperm.xlu1 %12204, %v541_v4   ;;  %v522_v23 = vcombine.high %v11314_v19, %v11314_v19  ;;  %v13234_v37 = vld [vmem:[%s15583_s4] sm:$0xff] }
  0x18   : > { %v529_v20 = vrot.slane %v11314_v19, %v13216_v18  ;;  %12056 = vmatprep.mubr.msk.f32.mxu1 %vm784_vm0, %v13234_v37  ;;  %v13245_v14 = vld [vmem:[%s15584_s5] sm:$0xff] }
  0x19   : > { %v536_v27 = vrot.slane %v522_v23, %v13216_v18  ;;  %12036 = vmatprep.mubr.msk.f32.mxu0 %vm784_vm0, %v13245_v14 }
  0x1a   : > { %v572_v22 = vrot.slane %v529_v20, %v571_v21 }
  0x1b   : > { %566 = vperm.xlu0 %12203, %v540_v5   ;;  %561 = vperm.xlu1 %12204, %v539_v6   ;;  %v576_v32 = vrot.slane %v536_v27, %v571_v21 }
  0x1f   : > { %672 = vperm.xlu1 %12204, %v548_v7   ;;  %556 = vperm.xlu0 %12203, %v538_v8  }
  0x23   : > { %667 = vperm.xlu1 %12204, %v547_v9   ;;  %551 = vperm.xlu0 %12203, %v537_v10  }
  0x27   : > { %662 = vperm.xlu1 %12204, %v546_v11  }
  0x2b   : > { %657 = vperm.xlu1 %12204, %v545_v12  }
  0x8e   : > { %v605_v24 = vpop.permute.xlu0 %604  ;;  %v595_v25 = vpop.permute.xlu1 %594 }
  0x8f   : > { %v610_v26 = vmul.f32 %v605_v24, %v572_v22  ;;  %v608_v33 = vmul.f32 %v595_v25, %v572_v22  ;;  %v614_v35 = vmul.f32 %v605_v24, %v576_v32  ;;  %v612_v38 = vmul.f32 %v595_v25, %v576_v32 }
  0x91   : > { %629 = vrot.lane.b32.xlu0 %v610_v26, %s13065_s27 }
  0x92   : > { %v600_v28 = vpop.permute.xlu0 %599  ;;  %v590_v29 = vpop.permute.xlu1 %589 }
  0x93   : > { %v609_v30 = vmul.f32 %v600_v28, %v572_v22  ;;  %v607_v31 = vmul.f32 %v590_v29, %v572_v22  ;;  %v613_v34 = vmul.f32 %v600_v28, %v576_v32  ;;  %v611_v36 = vmul.f32 %v590_v29, %v576_v32 }
  0x95   : > { %627 = vrot.lane.b32.xlu0 %v609_v30, %s13065_s27  ;;  %623 = vrot.lane.b32.xlu1 %v607_v31, %s13065_s27  ;;  %v701_v30 = vld [vmem:[%s15583_s4 + $0x8] sm:$0xff] }
  0x96   : > { %v562_v39 = vpop.permute.xlu1 %561  ;;  %v567_v41 = vpop.permute.xlu0 %566 }
  0x97   : > { %v582_v46 = vmul.f32 %v572_v22, %v567_v41  ;;  %v581_v50 = vmul.f32 %v572_v22, %v562_v39  ;;  %v585_v58 = vmul.f32 %v576_v32, %v562_v39  ;;  %v586_v4 = vmul.f32 %v576_v32, %v567_v41  ;;  %v717_v39 = vld [vmem:[%s15585_s6 + $0x8] sm:$0xff] }
  0x98   : > { %v705_v41 = vld [vmem:[%s15583_s4 + $0x28] sm:$0xff] }
  0x99   : > { %625 = vrot.lane.b32.xlu0 %v608_v33, %s13065_s27  ;;  %635 = vrot.lane.b32.xlu1 %v613_v34, %s13065_s27 }
  0x9a   : > { %v673_v40 = vpop.permute.xlu1 %672  ;;  %v557_v43 = vpop.permute.xlu0 %556 }
  0x9b   : > { %v580_v59 = vmul.f32 %v572_v22, %v557_v43  ;;  %v584_v16 = vmul.f32 %v576_v32, %v557_v43  ;;  %v706_v43 = vld [vmem:[%s15583_s4 + $0x30] sm:$0xff] }
  0x9d   : > { %637 = vrot.lane.b32.xlu0 %v614_v35, %s13065_s27  ;;  %631 = vrot.lane.b32.xlu1 %v611_v36, %s13065_s27  ;;  %v703_v36 = vld [vmem:[%s15583_s4 + $0x18] sm:$0xff] }
  0x9e   : > { %v668_v42 = vpop.permute.xlu1 %667  ;;  %v552_v45 = vpop.permute.xlu0 %551 }
  0x9f   : > { %v579_v51 = vmul.f32 %v572_v22, %v552_v45  ;;  %v583_v5 = vmul.f32 %v576_v32, %v552_v45  ;;  %v702_v32 = vld [vmem:[%s15583_s4 + $0x10] sm:$0xff]  ;;  %v707_v45 = vld [vmem:[%s15583_s4 + $0x38] sm:$0xff] }
  0xa1   : > { %633 = vrot.lane.b32.xlu0 %v612_v38, %s13065_s27  ;;  %v716_v38 = vld [vmem:[%s15585_s6] sm:$0xff] }
  0xa2   : > { %v663_v44 = vpop.permute.xlu1 %662 }
  0xa6   : > { %v658_v47 = vpop.permute.xlu1 %657 }
 0x103   : > { %v630_v48 = vpop.permute.xlu0 %629 }
 0x104   : > { %v650_v49 = vadd.f32 %v630_v48, %v582_v46  ;;  %v720_v46 = vld [vmem:[%s15585_s6 + $0x20] sm:$0xff]  ;;  %v722_v48 = vld [vmem:[%s15585_s6 + $0x30] sm:$0xff] }
 0x106   : > { %v678_v52 = vadd.f32 %v673_v40, %v650_v49  ;;  %v723_v49 = vld [vmem:[%s15585_s6 + $0x38] sm:$0xff] }
 0x107   : > { %v628_v53 = vpop.permute.xlu0 %627  ;;  %v624_v54 = vpop.permute.xlu1 %623 }
 0x108   : > { %v686_v55 = vmax.f32 %v678_v52, 0.0  ;;  %v649_v56 = vadd.f32 %v628_v53, %v581_v50  ;;  %v647_v57 = vadd.f32 %v624_v54, %v579_v51  ;;  %v13066_v50 = vmov 0.0  }
 0x109   : > { %498 = vst [vmem:[#allocation8 + $0x8] sm:$0xff] %v13066_v50  ;;  %497 = vst [vmem:[#allocation8] sm:$0xff] %v13066_v50 }
 0x10a   : > { %695 = vst.msk [vmem:[#allocation2 + $0x18] sm:$0xff] %vm691_vm1, %v686_v55  ;;  %v677_v60 = vadd.f32 %v668_v42, %v649_v56  ;;  %v675_v61 = vadd.f32 %v658_v47, %v647_v57  ;;  %499 = vst [vmem:[#allocation8 + $0x10] sm:$0xff] %v13066_v50  ;;  %v709_v55 = vld [vmem:[%s15584_s5 + $0x8] sm:$0xff]  ;;  %v710_v56 = vld [vmem:[%s15584_s5 + $0x10] sm:$0xff] }
 0x10b   : > { %v626_v62 = vpop.permute.xlu0 %625  ;;  %v636_v63 = vpop.permute.xlu1 %635  ;;  %500 = vst [vmem:[#allocation8 + $0x18] sm:$0xff] %v13066_v50  ;;  %501 = vst [vmem:[#allocation8 + $0x20] sm:$0xff] %v13066_v50 }
 0x10c   : > { %v685_v0 = vmax.f32 %v677_v60, 0.0  ;;  %v683_v1 = vmax.f32 %v675_v61, 0.0  ;;  %v648_v2 = vadd.f32 %v626_v62, %v580_v59  ;;  %v653_v3 = vadd.f32 %v636_v63, %v585_v58  ;;  %502 = vst [vmem:[#allocation8 + $0x28] sm:$0xff] %v13066_v50  ;;  %503 = vst [vmem:[#allocation8 + $0x30] sm:$0xff] %v13066_v50  ;;  %v711_v59 = vld [vmem:[%s15584_s5 + $0x18] sm:$0xff]  ;;  %v712_v60 = vld [vmem:[%s15584_s5 + $0x20] sm:$0xff] }
 0x10d   : > { %504 = vst [vmem:[#allocation8 + $0x38] sm:$0xff] %v13066_v50  ;;  %505 = vst [vmem:[#allocation8 + $0x40] sm:$0xff] %v13066_v50  ;;  %v713_v63 = vld [vmem:[%s15584_s5 + $0x28] sm:$0xff] }
 0x10e   : > { %694 = vst.msk [vmem:[#allocation2 + $0x10] sm:$0xff] %vm691_vm1, %v685_v0  ;;  %692 = vst.msk [vmem:[#allocation2] sm:$0xff] %vm691_vm1, %v683_v1  ;;  %v676_v6 = vadd.f32 %v663_v44, %v648_v2  ;;  %v681_v7 = vadd.f32 %v668_v42, %v653_v3  ;;  %v718_v42 = vld [vmem:[%s15585_s6 + $0x10] sm:$0xff]  ;;  %v715_v1 = vld [vmem:[%s15584_s5 + $0x38] sm:$0xff] }
 0x10f   : > { %v638_v8 = vpop.permute.xlu0 %637  ;;  %v632_v9 = vpop.permute.xlu1 %631  ;;  %506 = vst [vmem:[#allocation8 + $0x48] sm:$0xff] %v13066_v50  ;;  %507 = vst [vmem:[#allocation8 + $0x50] sm:$0xff] %v13066_v50  ;;  %v714_v0 = vld [vmem:[%s15584_s5 + $0x30] sm:$0xff] }
 0x110   : > { %v684_v10 = vmax.f32 %v676_v6, 0.0  ;;  %v689_v11 = vmax.f32 %v681_v7, 0.0  ;;  %v654_v12 = vadd.f32 %v638_v8, %v586_v4  ;;  %v651_v13 = vadd.f32 %v632_v9, %v583_v5  ;;  %508 = vst [vmem:[#allocation8 + $0x58] sm:$0xff] %v13066_v50  ;;  %509 = vst [vmem:[#allocation8 + $0x60] sm:$0xff] %v13066_v50 }
 0x111   : > { %v767_v15 = vld [vmem:[#allocation2 + $0x18] sm:$0xff]  ;;  %510 = vst [vmem:[#allocation8 + $0x68] sm:$0xff] %v13066_v50  ;;  %511 = vst [vmem:[#allocation8 + $0x70] sm:$0xff] %v13066_v50 }
 0x112   : > { %693 = vst.msk [vmem:[#allocation2 + $0x8] sm:$0xff] %vm691_vm1, %v684_v10  ;;  %698 = vst.msk [vmem:[#allocation2 + $0x30] sm:$0xff] %vm691_vm1, %v689_v11  ;;  %v682_v19 = vadd.f32 %v673_v40, %v654_v12  ;;  %v679_v20 = vadd.f32 %v658_v47, %v651_v13  ;;  %12048 = vmatprep.subr.mxu1 %v767_v15  ;;  %778 = vrot.lane.b32.xlu0 %v767_v15, %s13065_s27  ;;  %v704_v40 = vld [vmem:[%s15583_s4 + $0x20] sm:$0xff]  ;;  %v721_v47 = vld [vmem:[%s15585_s6 + $0x28] sm:$0xff] }
 0x113   : > { %12049 = vmatpush3.msra.mxu1 %v767_v15  ;;  %v634_v21 = vpop.permute.xlu0 %633  ;;  %512 = vst [vmem:[#allocation8 + $0x78] sm:$0xff] %v13066_v50  ;;  %496 = vst.msk [vmem:[#allocation4] sm:$0xff] %vm495_vm8, %v13066_v50 }
 0x114   : > { %v690_v22 = vmax.f32 %v682_v19, 0.0  ;;  %v687_v23 = vmax.f32 %v679_v20, 0.0  ;;  %v652_v24 = vadd.f32 %v634_v21, %v584_v16 }
 0x115   : > { %v766_v25 = vld [vmem:[#allocation2 + $0x10] sm:$0xff]  ;;  %v764_v29 = vld [vmem:[#allocation2] sm:$0xff] }
 0x116   : > { %699 = vst.msk [vmem:[#allocation2 + $0x38] sm:$0xff] %vm691_vm1, %v690_v22  ;;  %696 = vst.msk [vmem:[#allocation2 + $0x20] sm:$0xff] %vm691_vm1, %v687_v23  ;;  %v680_v26 = vadd.f32 %v663_v44, %v652_v24  ;;  %12050 = vmatprep.subr.mxu1 %v766_v25  ;;  %776 = vrot.lane.b32.xlu1 %v766_v25, %s13065_s27  ;;  %v719_v44 = vld [vmem:[%s15585_s6 + $0x18] sm:$0xff] }
 0x117   : > { %12051 = vmatpush3.msra.mxu1 %v766_v25 }
 0x118   : > { %v688_v27 = vmax.f32 %v680_v26, 0.0 }
 0x119   : > { %v765_v28 = vld [vmem:[#allocation2 + $0x8] sm:$0xff]  ;;  %v1071_v33 = vld [vmem:[#allocation2 + $0x30] sm:$0xff] }
 0x11a   : > { %697 = vst.msk [vmem:[#allocation2 + $0x28] sm:$0xff] %vm691_vm1, %v688_v27  ;;  %12052 = vmatprep.subr.mxu1 %v765_v28  ;;  %774 = vrot.lane.b32.xlu0 %v765_v28, %s13065_s27 }
 0x11b   : > { %772 = vrot.lane.b32.xlu1 %v764_v29, %s13065_s27  ;;  %12053 = vmatpush3.msra.mxu1 %v765_v28 }
 0x11c   : > { %12054 = vmatprep.subr.mxu1 %v764_v29 }
 0x11d   : > { %12055 = vmatpush3.msra.mxu1 %v764_v29  ;;  %v1072_v31 = vld [vmem:[#allocation2 + $0x38] sm:$0xff]  ;;  %v1069_v35 = vld [vmem:[#allocation2 + $0x20] sm:$0xff] }
 0x11e   : > { %1083 = vrot.lane.b32.xlu0 %v1072_v31, %s13065_s27  ;;  %12088 = vmatprep.subr.mxu1 %v1072_v31 }
 0x11f   : > { %1081 = vrot.lane.b32.xlu1 %v1071_v33, %s13065_s27  ;;  %12057 = vmatmul.mubr.msk.f32.vlgmr.msra.gmra.mxu1 %vm784_vm0, %v701_v30 }
 0x120   : > { %12089 = vmatpush3.msra.mxu1 %v1072_v31  ;;  %12059 = vmatprep.mubr.msk.f32.mxu1 %vm784_vm0, %v702_v32 }
 0x121   : > { %12090 = vmatprep.subr.mxu1 %v1071_v33  ;;  %v1070_v34 = vld [vmem:[#allocation2 + $0x28] sm:$0xff] }
 0x122   : > { %12091 = vmatpush3.msra.mxu1 %v1071_v33  ;;  %1079 = vrot.lane.b32.xlu0 %v1070_v34, %s13065_s27 }
 0x123   : > { %12092 = vmatprep.subr.mxu1 %v1070_v34  ;;  %1077 = vrot.lane.b32.xlu1 %v1069_v35, %s13065_s27 }
 0x124   : > { %12093 = vmatpush3.msra.mxu1 %v1070_v34 }
 0x125   : > { %12094 = vmatprep.subr.mxu1 %v1069_v35  ;;  %12060 = vmatmul.mubr.msk.f32.gmra.mxu1 %vm784_vm0, %v703_v36 }
 0x126   : > { %12095 = vmatpush3.msra.mxu1 %v1069_v35  ;;  %726 = vperm.xlu0 %12203, %v716_v38  }
 0x127   : > { %731 = vperm.xlu1 %12204, %v717_v39   ;;  %12062 = vmatprep.mubr.msk.f32.mxu1 %vm784_vm0, %v704_v40 }
 0x129   : > { %12063 = vmatmul.mubr.msk.f32.gmra.mxu1 %vm784_vm0, %v705_v41 }
 0x12a   : > { %736 = vperm.xlu0 %12203, %v718_v42   ;;  %12065 = vmatprep.mubr.msk.f32.mxu1 %vm784_vm0, %v706_v43 }
 0x12b   : > { %741 = vperm.xlu1 %12204, %v719_v44  }
 0x12d   : > { %12066 = vmatmul.mubr.msk.f32.gmra.mxu1 %vm784_vm0, %v707_v45 }
 0x12e   : > { %746 = vperm.xlu0 %12203, %v720_v46   ;;  %12096 = vmatprep.mubr.msk.f32.mxu1 %vm784_vm0, %v13234_v37 }
 0x12f   : > { %751 = vperm.xlu1 %12204, %v721_v47  }
 0x131   : > { %12097 = vmatmul.mubr.msk.f32.vlgmr.msra.gmra.mxu1 %vm784_vm0, %v701_v30 }
 0x132   : > { %756 = vperm.xlu0 %12203, %v722_v48   ;;  %12099 = vmatprep.mubr.msk.f32.mxu1 %vm784_vm0, %v702_v32 }
 0x133   : > { %761 = vperm.xlu1 %12204, %v723_v49  }
 0x135   : > { %12100 = vmatmul.mubr.msk.f32.gmra.mxu1 %vm784_vm0, %v703_v36 }
 0x136   : > { %12102 = vmatprep.mubr.msk.f32.mxu1 %vm784_vm0, %v704_v40 }
 0x139   : > { %12103 = vmatmul.mubr.msk.f32.gmra.mxu1 %vm784_vm0, %v705_v41  ;;  %v13067_v41 = vmov 1935823168  }
 0x13a   : > { %12105 = vmatprep.mubr.msk.f32.mxu1 %vm784_vm0, %v706_v43  ;;  %v1359_v42 = vunpack.c.l.s4 %v13067_v41 }
 0x13d   : > { %12106 = vmatmul.mubr.msk.f32.gmra.mxu1 %vm784_vm0, %v707_v45 }
 0x184   : > { %v779_v51 = vpop.permute.xlu0 %778 }
 0x185   : > { %12028 = vmatprep.subr.mxu0 %v779_v51 }
 0x186   : > { %12029 = vmatpush3.msra.mxu0 %v779_v51 }
 0x188   : > { %v777_v52 = vpop.permute.xlu1 %776 }
 0x189   : > { %12030 = vmatprep.subr.mxu0 %v777_v52 }
 0x18a   : > { %12031 = vmatpush3.msra.mxu0 %v777_v52  ;;  %v1360_v52 = vunpack.c.0.s8 %v1359_v42 }
 0x18c   : > { %v775_v53 = vpop.permute.xlu0 %774 }
 0x18d   : > { %v773_v54 = vpop.permute.xlu1 %772  ;;  %12032 = vmatprep.subr.mxu0 %v775_v53 }
 0x18e   : > { %12033 = vmatpush3.msra.mxu0 %v775_v53 }
 0x18f   : > { %12034 = vmatprep.subr.mxu0 %v773_v54 }
 0x190   : > { %12035 = vmatpush3.msra.mxu0 %v773_v54  ;;  %v1084_v57 = vpop.permute.xlu0 %1083 }
 0x191   : > { %v1082_v58 = vpop.permute.xlu1 %1081  ;;  %12037 = vmatmul.mubr.msk.f32.vlgmr.msra.gmra.mxu0 %vm784_vm0, %v709_v55  ;;  %12068 = vmatprep.subr.mxu0 %v1084_v57 }
 0x192   : > { %12069 = vmatpush3.msra.mxu0 %v1084_v57  ;;  %12039 = vmatprep.mubr.msk.f32.mxu0 %vm784_vm0, %v710_v56 }
 0x193   : > { %12070 = vmatprep.subr.mxu0 %v1082_v58 }
 0x194   : > { %12071 = vmatpush3.msra.mxu0 %v1082_v58  ;;  %v1080_v61 = vpop.permute.xlu0 %1079 }
 0x195   : > { %12040 = vmatmul.mubr.msk.f32.gmra.mxu0 %vm784_vm0, %v711_v59  ;;  %12072 = vmatprep.subr.mxu0 %v1080_v61  ;;  %v1078_v62 = vpop.permute.xlu1 %1077 }
 0x196   : > { %12073 = vmatpush3.msra.mxu0 %v1080_v61  ;;  %12042 = vmatprep.mubr.msk.f32.mxu0 %vm784_vm0, %v712_v60 }
 0x197   : > { %12074 = vmatprep.subr.mxu0 %v1078_v62 }
 0x198   : > { %12075 = vmatpush3.msra.mxu0 %v1078_v62 }
 0x199   : > { %12043 = vmatmul.mubr.msk.f32.gmra.mxu0 %vm784_vm0, %v713_v63 }
 0x19a   : > { %12045 = vmatprep.mubr.msk.f32.mxu0 %vm784_vm0, %v714_v0 }
 0x19d   : > { %12046 = vmatmul.mubr.msk.f32.gmra.mxu0 %vm784_vm0, %v715_v1 }
 0x19e   : > { %12076 = vmatprep.mubr.msk.f32.mxu0 %vm784_vm0, %v13245_v14 }
 0x1a1   : > { %12077 = vmatmul.mubr.msk.f32.vlgmr.msra.gmra.mxu0 %vm784_vm0, %v709_v55  ;;  %v13369_v7 = vpop.permute.xlu0 %726 }
 0x1a2   : > { %12079 = vmatprep.mubr.msk.f32.mxu0 %vm784_vm0, %v710_v56  ;;  %v13367_v4 = vpop.permute.xlu1 %731 }
 0x1a5   : > { %12080 = vmatmul.mubr.msk.f32.gmra.mxu0 %vm784_vm0, %v711_v59  ;;  %v13375_v21 = vpop.permute.xlu0 %736 }
 0x1a6   : > { %12082 = vmatprep.mubr.msk.f32.mxu0 %vm784_vm0, %v712_v60  ;;  %v13371_v10 = vpop.permute.xlu1 %741 }
 0x1a9   : > { %12083 = vmatmul.mubr.msk.f32.gmra.mxu0 %vm784_vm0, %v713_v63 }
 0x1aa   : > { %12085 = vmatprep.mubr.msk.f32.mxu0 %vm784_vm0, %v714_v0  ;;  %v13381_v30 = vpop.permute.xlu1 %751 }
 0x1ad   : > { %12086 = vmatmul.mubr.msk.f32.gmra.mxu0 %vm784_vm0, %v715_v1 }
 0x1df   : > { %v12058_v2 = vpop.f32.mrf.mxu1 }
 0x1e1   : > { %v1004_v3 = vpop.f32.mrf.mxu1 }
 0x1e5   : > { %v12061_v6 = vpop.f32.mrf.mxu1 }
 0x1e7   : > { %v1014_v14 = vpop.f32.mrf.mxu1 }
 0x1e9   : > { %v12064_v25 = vpop.f32.mrf.mxu1 }
 0x1eb   : > { %v1024_v47 = vpop.f32.mrf.mxu1 }
 0x1ed   : > { %v12067_v60 = vpop.f32.mrf.mxu1 }
 0x251   : > { %v12038_v5 = vpop.f32.mrf.mxu0 }
 0x252   : > { %v1010_v8 = vadd.f32 %v12058_v2, %v12038_v5  ;;  %v13392_v2 = vpop.permute.xlu0 %746 }
 0x253   : > { %v875_v9 = vpop.f32.mrf.mxu0 }
 0x254   : > { %v1044_v11 = vadd.f32 %v1010_v8, %v13367_v4  ;;  %v1005_v12 = vadd.f32 %v1004_v3, %v875_v9 }
 0x255   : > { %v12041_v13 = vpop.f32.mrf.mxu0 }
 0x256   : > { %v1052_v15 = vmax.f32 %v1044_v11, 0.0  ;;  %v1043_v16 = vadd.f32 %v1005_v12, %v13369_v7  ;;  %v1020_v19 = vadd.f32 %v12061_v6, %v12041_v13  ;;  %v13396_v6 = vsub.s32 %v1360_v52, %v13213_v17 }
 0x257   : > { %v885_v20 = vpop.f32.mrf.mxu0 }
 0x258   : > { %1061 = vst.msk [vmem:[#allocation8 + $0x8] sm:$0xff] %vm1059_vm9, %v1052_v15  ;;  %v1051_v22 = vmax.f32 %v1043_v16, 0.0  ;;  %v1046_v23 = vadd.f32 %v1020_v19, %v13371_v10  ;;  %v1015_v24 = vadd.f32 %v1014_v14, %v885_v20  ;;  %v13401_v14 = vpop.permute.xlu1 %761 }
 0x259   : > { %v12044_v26 = vpop.f32.mrf.mxu0  ;;  %15605 = vst [vmem:[#allocation12_spill] sm:$0xff] %v13401_v14 }
 0x25a   : > { %1060 = vst.msk [vmem:[#allocation8] sm:$0xff] %vm1059_vm9, %v1051_v22  ;;  %v1054_v27 = vmax.f32 %v1046_v23, 0.0  ;;  %v1045_v28 = vadd.f32 %v1015_v24, %v13375_v21  ;;  %v1030_v29 = vadd.f32 %v12064_v25, %v12044_v26 }
 0x25b   : > { %v895_v40 = vpop.f32.mrf.mxu0 }
 0x25c   : > { %1063 = vst.msk [vmem:[#allocation8 + $0x18] sm:$0xff] %vm1059_vm9, %v1054_v27  ;;  %v1053_v31 = vmax.f32 %v1045_v28, 0.0  ;;  %v1048_v32 = vadd.f32 %v1030_v29, %v13381_v30  ;;  %v1025_v54 = vadd.f32 %v1024_v47, %v895_v40 }
 0x25d   : > { %v12047_v51 = vpop.f32.mrf.mxu0 }
 0x25e   : > { %1062 = vst.msk [vmem:[#allocation8 + $0x10] sm:$0xff] %vm1059_vm9, %v1053_v31  ;;  %v1056_v33 = vmax.f32 %v1048_v32, 0.0  ;;  %v1040_v1 = vadd.f32 %v12067_v60, %v12047_v51  ;;  %v13399_v13 = vadd.f32 %v1025_v54, %v13392_v2 }
 0x25f   : > { %v1989_v34 = vld [vmem:[#allocation8 + $0x8] sm:$0x1]  ;;  %v2072_v35 = vld [vmem:[#allocation8 + $0x9] sm:$0x1]  ;;  %v2155_v36 = vld [vmem:[#allocation8 + $0xa] sm:$0x1]  ;;  %v905_v23 = vpop.f32.mrf.mxu0 }
 0x260   : > { %1065 = vst.msk [vmem:[#allocation8 + $0x28] sm:$0xff] %vm1059_vm9, %v1056_v33  ;;  %v2238_v38 = vld [vmem:[#allocation8 + $0xb] sm:$0x1]  ;;  %v2321_v39 = vld [vmem:[#allocation8 + $0xc] sm:$0x1]  ;;  %v1991_v44 = vpack.c.bf16 %v1989_v34, %v1989_v34  ;;  %v2074_v45 = vpack.c.bf16 %v2072_v35, %v2072_v35  ;;  %v2157_v46 = vpack.c.bf16 %v2155_v36, %v2155_v36  ;;  %v13410_v26 = vadd.f32 %v1040_v1, %v13401_v14  ;;  %v1034_v33 = vpop.f32.mrf.mxu1 }
 0x261   : > { %v2404_v43 = vld [vmem:[#allocation8 + $0xd] sm:$0x1]  ;;  %v2240_v48 = vpack.c.bf16 %v2238_v38, %v2238_v38  ;;  %v2323_v49 = vpack.c.bf16 %v2321_v39, %v2321_v39  ;;  %v2487_v50 = vld [vmem:[#allocation8 + $0xe] sm:$0x1]  ;;  %v2570_v53 = vld [vmem:[#allocation8 + $0xf] sm:$0x1]  ;;  %v13416_v38 = vadd.f32 %v1034_v33, %v905_v23 }
 0x262   : > { %v2406_v37 = vpack.c.bf16 %v2404_v43, %v2404_v43  ;;  %v2001_v55 = vrot.slane %v1991_v44, %v13216_v18  ;;  %v2084_v56 = vrot.slane %v2074_v45, %v13216_v18  ;;  %v2167_v57 = vrot.slane %v2157_v46, %v13216_v18  ;;  %v1324_v58 = vld [vmem:[#allocation8] sm:$0x1]  ;;  %v1408_v59 = vld [vmem:[#allocation8 + $0x1] sm:$0x1]  ;;  %v1491_v0 = vld [vmem:[#allocation8 + $0x2] sm:$0x1] }
 0x263   : > { %v2250_v61 = vrot.slane %v2240_v48, %v13216_v18  ;;  %v2333_v62 = vrot.slane %v2323_v49, %v13216_v18  ;;  %v2489_v63 = vpack.c.bf16 %v2487_v50, %v2487_v50  ;;  %v2572_v5 = vpack.c.bf16 %v2570_v53, %v2570_v53  ;;  %v1574_v11 = vld [vmem:[#allocation8 + $0x3] sm:$0x1]  ;;  %v1657_v12 = vld [vmem:[#allocation8 + $0x4] sm:$0x1]  ;;  %v1740_v22 = vld [vmem:[#allocation8 + $0x5] sm:$0x1] }
 0x264   : > { %v2416_v3 = vrot.slane %v2406_v37, %v13216_v18  ;;  %v1326_v8 = vpack.c.bf16 %v1324_v58, %v1324_v58  ;;  %v1410_v9 = vpack.c.bf16 %v1408_v59, %v1408_v59  ;;  %v2008_v15 = vrot.slane %v2001_v55, %v13216_v18  ;;  %v1823_v32 = vld [vmem:[#allocation8 + $0x6] sm:$0x1]  ;;  %v1906_v43 = vld [vmem:[#allocation8 + $0x7] sm:$0x1]  ;;  %v3567_v33 = vld [vmem:[#allocation8 + $0x1b] sm:$0x1] }
 0x265   : > { %v2091_v16 = vrot.slane %v2084_v56, %v13216_v18  ;;  %v2174_v19 = vrot.slane %v2167_v57, %v13216_v18  ;;  %v1493_v20 = vpack.c.bf16 %v1491_v0, %v1491_v0  ;;  %v2257_v17 = vrot.slane %v2250_v61, %v13216_v18 }
 0x266   : > { %v2340_v24 = vrot.slane %v2333_v62, %v13216_v18  ;;  %v2499_v25 = vrot.slane %v2489_v63, %v13216_v18  ;;  %v2423_v27 = vrot.slane %v2416_v3, %v13216_v18  ;;  %v2582_v28 = vrot.slane %v2572_v5, %v13216_v18 }
 0x267   : > { %v1576_v29 = vpack.c.bf16 %v1574_v11, %v1574_v11  ;;  %v1659_v31 = vpack.c.bf16 %v1657_v12, %v1657_v12  ;;  %v1336_v34 = vrot.slane %v1326_v8, %v13216_v18  ;;  %v1420_v35 = vrot.slane %v1410_v9, %v13216_v18 }
 0x268   : > { %v1742_v36 = vpack.c.bf16 %v1740_v22, %v1740_v22  ;;  %v2029_v39 = vrot.slane %v2008_v15, %v13396_v6  ;;  %v2112_v40 = vrot.slane %v2091_v16, %v13396_v6  ;;  %v2195_v41 = vrot.slane %v2174_v19, %v13396_v6 }
 0x269   : > { %v1503_v42 = vrot.slane %v1493_v20, %v13216_v18  ;;  %v2278_v44 = vrot.slane %v2257_v17, %v13396_v6  ;;  %v2361_v45 = vrot.slane %v2340_v24, %v13396_v6  ;;  %v2506_v46 = vrot.slane %v2499_v25, %v13216_v18  ;;  %v3318_v24 = vld [vmem:[#allocation8 + $0x18] sm:$0x1]  ;;  %v3401_v25 = vld [vmem:[#allocation8 + $0x19] sm:$0x1] }
 0x26a   : > { %v1825_v47 = vpack.c.bf16 %v1823_v32, %v1823_v32  ;;  %v2444_v48 = vrot.slane %v2423_v27, %v13396_v6  ;;  %v2589_v49 = vrot.slane %v2582_v28, %v13216_v18  ;;  %v1586_v37 = vrot.slane %v1576_v29, %v13216_v18  ;;  %v3484_v27 = vld [vmem:[#allocation8 + $0x1a] sm:$0x1] }
 0x26b   : > { %v1669_v50 = vrot.slane %v1659_v31, %v13216_v18  ;;  %v1343_v51 = vrot.slane %v1336_v34, %v13216_v18  ;;  %v1427_v52 = vrot.slane %v1420_v35, %v13216_v18  ;;  %v1752_v53 = vrot.slane %v1742_v36, %v13216_v18  ;;  %v3650_v34 = vld [vmem:[#allocation8 + $0x1c] sm:$0x1] }
 0x26c   : > { %v1908_v54 = vpack.c.bf16 %v1906_v43, %v1906_v43  ;;  %v2036_v55 = vrot.slane %v2029_v39, %v13396_v6  ;;  %v2119_v56 = vrot.slane %v2112_v40, %v13396_v6  ;;  %v2202_v57 = vrot.slane %v2195_v41, %v13396_v6  ;;  %v3733_v41 = vld [vmem:[#allocation8 + $0x1d] sm:$0x1] }
 0x26d   : > { %v1510_v58 = vrot.slane %v1503_v42, %v13216_v18  ;;  %v2285_v59 = vrot.slane %v2278_v44, %v13396_v6  ;;  %v2368_v60 = vrot.slane %v2361_v45, %v13396_v6  ;;  %v2527_v61 = vrot.slane %v2506_v46, %v13396_v6 }
 0x26e   : > { %v1835_v62 = vrot.slane %v1825_v47, %v13216_v18  ;;  %v2451_v63 = vrot.slane %v2444_v48, %v13396_v6  ;;  %v2610_v0 = vrot.slane %v2589_v49, %v13396_v6  ;;  %v1593_v1 = vrot.slane %v1586_v37, %v13216_v18 }
 0x26f   : > { %v1676_v3 = vrot.slane %v1669_v50, %v13216_v18  ;;  %v1364_v5 = vrot.slane %v1343_v51, %v13396_v6  ;;  %v1448_v8 = vrot.slane %v1427_v52, %v13396_v6  ;;  %v1759_v9 = vrot.slane %v1752_v53, %v13216_v18  ;;  %v3816_v53 = vld [vmem:[#allocation8 + $0x1e] sm:$0x1] }
 0x270   : > { %v1918_v11 = vrot.slane %v1908_v54, %v13216_v18  ;;  %v13448_v12 = vunpack.c.l.b16 %v2036_v55  ;;  %v13450_v15 = vunpack.c.l.b16 %v2119_v56  ;;  %v13452_v16 = vunpack.c.l.b16 %v2202_v57 }
 0x271   : > { %v1531_v19 = vrot.slane %v1510_v58, %v13396_v6  ;;  %v13455_v20 = vunpack.c.l.b16 %v2285_v59  ;;  %v13457_v22 = vunpack.c.l.b16 %v2368_v60  ;;  %v2534_v23 = vrot.slane %v2527_v61, %v13396_v6  ;;  %v3899_v58 = vld [vmem:[#allocation8 + $0x1f] sm:$0x1]  ;;  %v13484_v59 = vpop.f32.mrf.mxu0 }
 0x272   : > { %v1842_v17 = vrot.slane %v1835_v62, %v13216_v18  ;;  %v13461_v28 = vunpack.c.l.b16 %v2451_v63  ;;  %v2617_v29 = vrot.slane %v2610_v0, %v13396_v6  ;;  %v1614_v31 = vrot.slane %v1593_v1, %v13396_v6  ;;  %v2653_v0 = vld [vmem:[#allocation8 + $0x10] sm:$0x1]  ;;  %v2737_v1 = vld [vmem:[#allocation8 + $0x11] sm:$0x1] }
 0x273   : > { %v1697_v32 = vrot.slane %v1676_v3, %v13396_v6  ;;  %v1371_v35 = vrot.slane %v1364_v5, %v13396_v6  ;;  %v1455_v36 = vrot.slane %v1448_v8, %v13396_v6  ;;  %v1780_v39 = vrot.slane %v1759_v9, %v13396_v6 }
 0x274   : > { %v1925_v40 = vrot.slane %v1918_v11, %v13216_v18  ;;  %v1538_v42 = vrot.slane %v1531_v19, %v13396_v6  ;;  %v3320_v43 = vpack.c.bf16 %v3318_v24, %v3318_v24  ;;  %v3403_v44 = vpack.c.bf16 %v3401_v25, %v3401_v25  ;;  %v2820_v11 = vld [vmem:[#allocation8 + $0x12] sm:$0x1]  ;;  %v13494_v19 = vpop.f32.mrf.mxu1 }
 0x275   : > { %v3486_v45 = vpack.c.bf16 %v3484_v27, %v3484_v27  ;;  %v13471_v46 = vunpack.c.l.b16 %v2534_v23  ;;  %v1863_v47 = vrot.slane %v1842_v17, %v13396_v6  ;;  %v3569_v48 = vpack.c.bf16 %v3567_v33, %v3567_v33  ;;  %v2903_v33 = vld [vmem:[#allocation8 + $0x13] sm:$0x1] }
 0x276   : > { %v3652_v49 = vpack.c.bf16 %v3650_v34, %v3650_v34  ;;  %v13474_v37 = vunpack.c.l.b16 %v2617_v29  ;;  %v1621_v50 = vrot.slane %v1614_v31, %v13396_v6  ;;  %v1704_v51 = vrot.slane %v1697_v32, %v13396_v6  ;;  %v2986_v34 = vld [vmem:[#allocation8 + $0x14] sm:$0x1] }
 0x277   : > { %v3735_v52 = vpack.c.bf16 %v3733_v41, %v3733_v41  ;;  %v13478_v54 = vunpack.c.l.b16 %v1371_v35  ;;  %v13480_v55 = vunpack.c.l.b16 %v1455_v36  ;;  %v1787_v56 = vrot.slane %v1780_v39, %v13396_v6  ;;  %v13504_v35 = vpop.f32.mrf.mxu0 }
 0x278   : > { %v1946_v57 = vrot.slane %v1925_v40, %v13396_v6  ;;  %v13486_v60 = vunpack.c.l.b16 %v1538_v42  ;;  %v3330_v61 = vrot.slane %v3320_v43, %v13216_v18  ;;  %v3413_v62 = vrot.slane %v3403_v44, %v13216_v18  ;;  %v3069_v42 = vld [vmem:[#allocation8 + $0x15] sm:$0x1] }
 0x279   : > { %v3496_v63 = vrot.slane %v3486_v45, %v13216_v18  ;;  %v1870_v3 = vrot.slane %v1863_v47, %v13396_v6  ;;  %v3579_v5 = vrot.slane %v3569_v48, %v13216_v18  ;;  %v3662_v8 = vrot.slane %v3652_v49, %v13216_v18  ;;  %v13514_v48 = vpop.f32.mrf.mxu1 }
 0x27a   : > { %v3818_v9 = vpack.c.bf16 %v3816_v53, %v3816_v53  ;;  %v13496_v23 = vunpack.c.l.b16 %v1621_v50  ;;  %v13498_v17 = vunpack.c.l.b16 %v1704_v51  ;;  %v3745_v24 = vrot.slane %v3735_v52, %v13216_v18  ;;  %v3152_v53 = vld [vmem:[#allocation8 + $0x16] sm:$0x1] }
 0x27b   : > { %v3901_v25 = vpack.c.bf16 %v3899_v58, %v3899_v58  ;;  %v13501_v27 = vunpack.c.l.b16 %v1787_v56  ;;  %v1953_v29 = vrot.slane %v1946_v57, %v13396_v6  ;;  %v2655_v31 = vpack.c.bf16 %v2653_v0, %v2653_v0 }
 0x27c   : > { %v2739_v32 = vpack.c.bf16 %v2737_v1, %v2737_v1  ;;  %v3337_v36 = vrot.slane %v3330_v61, %v13216_v18  ;;  %v3420_v39 = vrot.slane %v3413_v62, %v13216_v18  ;;  %v3503_v40 = vrot.slane %v3496_v63, %v13216_v18  ;;  %v13522_v62 = vpop.f32.mrf.mxu0 }
 0x27d   : > { %v2822_v41 = vpack.c.bf16 %v2820_v11, %v2820_v11  ;;  %v13509_v43 = vunpack.c.l.b16 %v1870_v3  ;;  %v3586_v44 = vrot.slane %v3579_v5, %v13216_v18  ;;  %v3669_v45 = vrot.slane %v3662_v8, %v13216_v18  ;;  %v3235_v5 = vld [vmem:[#allocation8 + $0x17] sm:$0x1] }
 0x27e   : > { %v3828_v47 = vrot.slane %v3818_v9, %v13216_v18  ;;  %v3752_v49 = vrot.slane %v3745_v24, %v13216_v18  ;;  %v3911_v50 = vrot.slane %v3901_v25, %v13216_v18  ;;  %v2905_v51 = vpack.c.bf16 %v2903_v33, %v2903_v33  ;;  %v12101_v25 = vpop.f32.mrf.mxu1 }
 0x27f   : > { %v2988_v52 = vpack.c.bf16 %v2986_v34, %v2986_v34  ;;  %v13518_v56 = vunpack.c.l.b16 %v1953_v29  ;;  %v2665_v57 = vrot.slane %v2655_v31, %v13216_v18  ;;  %v2749_v58 = vrot.slane %v2739_v32, %v13216_v18 }
 0x280   : > { %v3071_v61 = vpack.c.bf16 %v3069_v42, %v3069_v42  ;;  %v3358_v63 = vrot.slane %v3337_v36, %v13396_v6  ;;  %v3441_v0 = vrot.slane %v3420_v39, %v13396_v6  ;;  %v3524_v1 = vrot.slane %v3503_v40, %v13396_v6 }
 0x281   : > { %v2832_v3 = vrot.slane %v2822_v41, %v13216_v18  ;;  %v3607_v8 = vrot.slane %v3586_v44, %v13396_v6  ;;  %v3690_v9 = vrot.slane %v3669_v45, %v13396_v6  ;;  %v3835_v11 = vrot.slane %v3828_v47, %v13216_v18  ;;  %v1165_v41 = vpop.f32.mrf.mxu0 }
 0x282   : > { %v3154_v24 = vpack.c.bf16 %v3152_v53, %v3152_v53  ;;  %v3773_v29 = vrot.slane %v3752_v49, %v13396_v6  ;;  %v3918_v31 = vrot.slane %v3911_v50, %v13216_v18  ;;  %v2915_v32 = vrot.slane %v2905_v51, %v13216_v18  ;;  %v1270_v53 = vpop.f32.mrf.mxu1 }
 0x283   : > { %v2998_v33 = vrot.slane %v2988_v52, %v13216_v18  ;;  %v2672_v34 = vrot.slane %v2665_v57, %v13216_v18  ;;  %v2756_v36 = vrot.slane %v2749_v58, %v13216_v18  ;;  %v3081_v39 = vrot.slane %v3071_v61, %v13216_v18 }
 0x284   : > { %v3237_v40 = vpack.c.bf16 %v3235_v5, %v3235_v5  ;;  %v3365_v42 = vrot.slane %v3358_v63, %v13396_v6  ;;  %v3448_v44 = vrot.slane %v3441_v0, %v13396_v6  ;;  %v3531_v45 = vrot.slane %v3524_v1, %v13396_v6 }
 0x285   : > { %v2839_v47 = vrot.slane %v2832_v3, %v13216_v18  ;;  %v3614_v49 = vrot.slane %v3607_v8, %v13396_v6  ;;  %v3697_v50 = vrot.slane %v3690_v9, %v13396_v6  ;;  %v13545_v51 = vrot.slane %v3835_v11, %v13396_v6  ;;  %v12084_v8 = vpop.f32.mrf.mxu0 }
 0x286   : > { %v3164_v52 = vrot.slane %v3154_v24, %v13216_v18  ;;  %v3780_v57 = vrot.slane %v3773_v29, %v13396_v6  ;;  %v13550_v58 = vrot.slane %v3918_v31, %v13396_v6  ;;  %v2922_v61 = vrot.slane %v2915_v32, %v13216_v18 }
 0x287   : > { %v3005_v63 = vrot.slane %v2998_v33, %v13216_v18  ;;  %v13555_v0 = vrot.slane %v2672_v34, %v13396_v6  ;;  %v13558_v1 = vrot.slane %v2756_v36, %v13396_v6  ;;  %v3088_v3 = vrot.slane %v3081_v39, %v13216_v18  ;;  %v12104_v36 = vpop.f32.mrf.mxu1 }
 0x288   : > { %v3247_v5 = vrot.slane %v3237_v40, %v13216_v18  ;;  %v13562_v9 = vunpack.c.l.b16 %v3365_v42  ;;  %v13564_v11 = vunpack.c.l.b16 %v3448_v44  ;;  %v13566_v24 = vunpack.c.l.b16 %v3531_v45  ;;  %v13588_v45 = vpop.permute.xlu0 %756 }
 0x289   : > { %v13569_v29 = vrot.slane %v2839_v47, %v13396_v6  ;;  %v13571_v31 = vunpack.c.l.b16 %v3614_v49  ;;  %v13573_v32 = vunpack.c.l.b16 %v3697_v50  ;;  %v3863_v33 = vrot.slane %v13545_v51, %v13396_v6  ;;  %15608 = vst [vmem:[#allocation15_spill] sm:$0xff] %v13588_v45 }
 0x28a   : > { %v3171_v34 = vrot.slane %v3164_v52, %v13216_v18  ;;  %v13578_v39 = vunpack.c.l.b16 %v3780_v57  ;;  %v3946_v40 = vrot.slane %v13550_v58, %v13396_v6  ;;  %v13583_v42 = vrot.slane %v2922_v61, %v13396_v6  ;;  %v1175_v52 = vpop.f32.mrf.mxu0 }
 0x28b   : > { %15606 = vst [vmem:[#allocation13_spill] sm:$0xff] %v13573_v32  ;;  %v13586_v44 = vrot.slane %v3005_v63, %v13396_v6  ;;  %v2700_v47 = vrot.slane %v13555_v0, %v13396_v6  ;;  %v2784_v49 = vrot.slane %v13558_v1, %v13396_v6  ;;  %v13595_v50 = vrot.slane %v3088_v3, %v13396_v6  ;;  %v4647_v1 = vld [vmem:[#allocation8 + $0x28] sm:$0x1]  ;;  %v4813_v32 = vld [vmem:[#allocation8 + $0x2a] sm:$0x1] }
 0x28c   : > { %15607 = vst [vmem:[#allocation14_spill] sm:$0xff] %v13578_v39  ;;  %v3254_v51 = vrot.slane %v3247_v5, %v13216_v18  ;;  %v2867_v57 = vrot.slane %v13569_v29, %v13396_v6  ;;  %v1055_v58 = vmax.f32 %v13399_v13, 0.0  ;;  %v1058_v61 = vmax.f32 %v13410_v26, 0.0  ;;  %v1280_v29 = vpop.f32.mrf.mxu1  ;;  %v4730_v39 = vld [vmem:[#allocation8 + $0x29] sm:$0x1] }
 0x28d   : > { %v1049_v63 = vadd.f32 %v13416_v38, %v13588_v45  ;;  %v13605_v0 = vrot.slane %v3171_v34, %v13396_v6  ;;  %v1266_v3 = vadd.f32 %v13494_v19, %v13484_v59  ;;  %v1261_v5 = vadd.f32 %v13514_v48, %v13504_v35 }
 0x28e   : > { %v1276_v14 = vadd.f32 %v12101_v25, %v13522_v62  ;;  %1064 = vst.msk [vmem:[#allocation8 + $0x20] sm:$0xff] %vm1059_vm9, %v1055_v58  ;;  %1067 = vst.msk [vmem:[#allocation8 + $0x38] sm:$0xff] %vm1059_vm9, %v1058_v61  ;;  %v1271_v26 = vadd.f32 %v1270_v53, %v1165_v41  ;;  %v1286_v38 = vadd.f32 %v12104_v36, %v12084_v8  ;;  %v4896_v62 = vld [vmem:[#allocation8 + $0x2b] sm:$0x1]  ;;  %v4979_v25 = vld [vmem:[#allocation8 + $0x2c] sm:$0x1] }
 0x28f   : > { %v1057_v13 = vmax.f32 %v1049_v63, 0.0  ;;  %v1281_v34 = vadd.f32 %v1280_v29, %v1175_v52  ;;  %v2950_v45 = vrot.slane %v13583_v42, %v13396_v6  ;;  %v1300_v59 = vadd.f32 %v1266_v3, %v13367_v4  ;;  %v5062_v36 = vld [vmem:[#allocation8 + $0x2d] sm:$0x1]  ;;  %v5228_v29 = vld [vmem:[#allocation8 + $0x2f] sm:$0x1] }
 0x290   : > { %v1299_v19 = vadd.f32 %v1261_v5, %v13369_v7  ;;  %v1302_v35 = vadd.f32 %v1276_v14, %v13371_v10  ;;  %v4649_v48 = vpack.c.bf16 %v4647_v1, %v4647_v1  ;;  %v1301_v58 = vadd.f32 %v1271_v26, %v13375_v21 }
 0x291   : > { %1066 = vst.msk [vmem:[#allocation8 + $0x30] sm:$0xff] %vm1059_vm9, %v1057_v13  ;;  %v1304_v41 = vadd.f32 %v1286_v38, %v13381_v30  ;;  %v1303_v53 = vadd.f32 %v1281_v34, %v13392_v2  ;;  %v4732_v8 = vpack.c.bf16 %v4730_v39, %v4730_v39  ;;  %v1308_v42 = vmax.f32 %v1300_v59, 0.0 }
 0x292   : > { %v1307_v52 = vmax.f32 %v1299_v19, 0.0  ;;  %v1310_v4 = vmax.f32 %v1302_v35, 0.0  ;;  %v4815_v61 = vpack.c.bf16 %v4813_v32, %v4813_v32  ;;  %v1309_v7 = vmax.f32 %v1301_v58, 0.0 }
 0x293   : > { %v1312_v63 = vmax.f32 %v1304_v41, 0.0  ;;  %v1311_v10 = vmax.f32 %v1303_v53, 0.0  ;;  %v13623_v14 = vunpack.c.l.b16 %v3863_v33  ;;  %v3275_v1 = vrot.slane %v3254_v51, %v13396_v6  ;;  %1317 = vst.msk [vmem:[#allocation8 + $0x48] sm:$0xff] %vm1059_vm9, %v1308_v42  ;;  %v5145_v33 = vld [vmem:[#allocation8 + $0x2e] sm:$0x1] }
 0x294   : > { %v4898_v3 = vpack.c.bf16 %v4896_v62, %v4896_v62  ;;  %v4981_v5 = vpack.c.bf16 %v4979_v25, %v4979_v25  ;;  %1316 = vst.msk [vmem:[#allocation8 + $0x40] sm:$0xff] %vm1059_vm9, %v1307_v52  ;;  %1319 = vst.msk [vmem:[#allocation8 + $0x58] sm:$0xff] %vm1059_vm9, %v1310_v4  ;;  %v13629_v21 = vunpack.c.l.b16 %v3946_v40  ;;  %v3033_v30 = vrot.slane %v13586_v44, %v13396_v6 }
 0x295   : > { %v3116_v2 = vrot.slane %v13595_v50, %v13396_v6  ;;  %v5064_v32 = vpack.c.bf16 %v5062_v36, %v5062_v36  ;;  %1318 = vst.msk [vmem:[#allocation8 + $0x50] sm:$0xff] %vm1059_vm9, %v1309_v7  ;;  %1321 = vst.msk [vmem:[#allocation8 + $0x68] sm:$0xff] %vm1059_vm9, %v1312_v63  ;;  %v13638_v39 = vunpack.c.l.b16 %v2700_v47  ;;  %v13640_v51 = vunpack.c.l.b16 %v2784_v49  ;;  %v3982_v34 = vld [vmem:[#allocation8 + $0x20] sm:$0x1]  ;;  %v4066_v59 = vld [vmem:[#allocation8 + $0x21] sm:$0x1] }
 0x296   : > { %1320 = vst.msk [vmem:[#allocation8 + $0x60] sm:$0xff] %vm1059_vm9, %v1311_v10  ;;  %v13642_v40 = vunpack.c.l.b16 %v2867_v57  ;;  %v3199_v44 = vrot.slane %v13605_v0, %v13396_v6  ;;  %v13646_v13 = vunpack.c.l.b16 %v2950_v45  ;;  %v4659_v50 = vrot.slane %v4649_v48, %v13216_v18  ;;  %v4149_v47 = vld [vmem:[#allocation8 + $0x22] sm:$0x1]  ;;  %v4232_v0 = vld [vmem:[#allocation8 + $0x23] sm:$0x1] }
 0x297   : > { %v4742_v26 = vrot.slane %v4732_v8, %v13216_v18  ;;  %v4825_v38 = vrot.slane %v4815_v61, %v13216_v18  ;;  %v3282_v49 = vrot.slane %v3275_v1, %v13396_v6  ;;  %v4908_v57 = vrot.slane %v4898_v3, %v13216_v18  ;;  %v4315_v36 = vld [vmem:[#allocation8 + $0x24] sm:$0x1]  ;;  %v4398_v42 = vld [vmem:[#allocation8 + $0x25] sm:$0x1]  ;;  %v4481_v63 = vld [vmem:[#allocation8 + $0x26] sm:$0x1] }
 0x298   : > { %v4991_v19 = vrot.slane %v4981_v5, %v13216_v18  ;;  %v5147_v35 = vpack.c.bf16 %v5145_v33, %v5145_v33  ;;  %v13654_v62 = vunpack.c.l.b16 %v3033_v30  ;;  %v13656_v45 = vunpack.c.l.b16 %v3116_v2 }
 0x299   : > { %v5074_v48 = vrot.slane %v5064_v32, %v13216_v18  ;;  %v5230_v25 = vpack.c.bf16 %v5228_v29, %v5228_v29  ;;  %v13659_v58 = vunpack.c.l.b16 %v3199_v44  ;;  %v3984_v41 = vpack.c.bf16 %v3982_v34, %v3982_v34  ;;  %v4564_v44 = vld [vmem:[#allocation8 + $0x27] sm:$0x1] }
 0x29a   : > { %v4068_v53 = vpack.c.bf16 %v4066_v59, %v4066_v59  ;;  %v4151_v8 = vpack.c.bf16 %v4149_v47, %v4149_v47  ;;  %v4666_v52 = vrot.slane %v4659_v50, %v13216_v18  ;;  %v4749_v4 = vrot.slane %v4742_v26, %v13216_v18 }
 0x29b   : > { %v4832_v61 = vrot.slane %v4825_v38, %v13216_v18  ;;  %v4234_v7 = vpack.c.bf16 %v4232_v0, %v4232_v0  ;;  %v13664_v10 = vunpack.c.l.b16 %v3282_v49  ;;  %v4915_v1 = vrot.slane %v4908_v57, %v13216_v18 }
 0x29c   : > { %v4998_v3 = vrot.slane %v4991_v19, %v13216_v18  ;;  %v5157_v5 = vrot.slane %v5147_v35, %v13216_v18  ;;  %v5081_v30 = vrot.slane %v5074_v48, %v13216_v18  ;;  %v5240_v2 = vrot.slane %v5230_v25, %v13216_v18 }
 0x29d   : > { %v4317_v32 = vpack.c.bf16 %v4315_v36, %v4315_v36  ;;  %v4400_v33 = vpack.c.bf16 %v4398_v42, %v4398_v42  ;;  %v3994_v29 = vrot.slane %v3984_v41, %v13216_v18  ;;  %v4078_v50 = vrot.slane %v4068_v53, %v13216_v18 }
 0x29e   : > { %v4161_v26 = vrot.slane %v4151_v8, %v13216_v18  ;;  %v4483_v38 = vpack.c.bf16 %v4481_v63, %v4481_v63  ;;  %v4687_v34 = vrot.slane %v4666_v52, %v13396_v6  ;;  %v4770_v59 = vrot.slane %v4749_v4, %v13396_v6 }
 0x29f   : > { %v4853_v47 = vrot.slane %v4832_v61, %v13396_v6  ;;  %v4244_v49 = vrot.slane %v4234_v7, %v13216_v18  ;;  %v4936_v57 = vrot.slane %v4915_v1, %v13396_v6  ;;  %v5019_v19 = vrot.slane %v4998_v3, %v13396_v6 }
 0x2a0   : > { %v5164_v35 = vrot.slane %v5157_v5, %v13216_v18  ;;  %v4566_v0 = vpack.c.bf16 %v4564_v44, %v4564_v44  ;;  %v5102_v48 = vrot.slane %v5081_v30, %v13396_v6  ;;  %v5247_v25 = vrot.slane %v5240_v2, %v13216_v18 }
 0x2a1   : > { %v4327_v41 = vrot.slane %v4317_v32, %v13216_v18  ;;  %v4410_v53 = vrot.slane %v4400_v33, %v13216_v18  ;;  %v4001_v8 = vrot.slane %v3994_v29, %v13216_v18  ;;  %v4085_v36 = vrot.slane %v4078_v50, %v13216_v18 }
 0x2a2   : > { %v4168_v42 = vrot.slane %v4161_v26, %v13216_v18  ;;  %v4493_v52 = vrot.slane %v4483_v38, %v13216_v18  ;;  %v4694_v4 = vrot.slane %v4687_v34, %v13396_v6  ;;  %v4777_v61 = vrot.slane %v4770_v59, %v13396_v6 }
 0x2a3   : > { %v4860_v7 = vrot.slane %v4853_v47, %v13396_v6  ;;  %v4251_v63 = vrot.slane %v4244_v49, %v13216_v18  ;;  %v4943_v1 = vrot.slane %v4936_v57, %v13396_v6  ;;  %v5026_v3 = vrot.slane %v5019_v19, %v13396_v6 }
 0x2a4   : > { %v5185_v5 = vrot.slane %v5164_v35, %v13396_v6  ;;  %v4576_v30 = vrot.slane %v4566_v0, %v13216_v18  ;;  %v5109_v2 = vrot.slane %v5102_v48, %v13396_v6  ;;  %v5268_v32 = vrot.slane %v5247_v25, %v13396_v6  ;;  %v5976_v48 = vld [vmem:[#allocation8 + $0x38] sm:$0x1]  ;;  %v6059_v25 = vld [vmem:[#allocation8 + $0x39] sm:$0x1] }
 0x2a5   : > { %v4334_v33 = vrot.slane %v4327_v41, %v13216_v18  ;;  %v4417_v44 = vrot.slane %v4410_v53, %v13216_v18  ;;  %v4022_v29 = vrot.slane %v4001_v8, %v13396_v6  ;;  %v4106_v50 = vrot.slane %v4085_v36, %v13396_v6  ;;  %v6142_v41 = vld [vmem:[#allocation8 + $0x3a] sm:$0x1] }
 0x2a6   : > { %v4189_v26 = vrot.slane %v4168_v42, %v13396_v6  ;;  %v4500_v38 = vrot.slane %v4493_v52, %v13216_v18  ;;  %v13705_v34 = vunpack.c.l.b16 %v4694_v4  ;;  %v13707_v59 = vunpack.c.l.b16 %v4777_v61  ;;  %v6225_v52 = vld [vmem:[#allocation8 + $0x3b] sm:$0x1]  ;;  %v6308_v4 = vld [vmem:[#allocation8 + $0x3c] sm:$0x1] }
 0x2a7   : > { %v13709_v47 = vunpack.c.l.b16 %v4860_v7  ;;  %v4272_v49 = vrot.slane %v4251_v63, %v13396_v6  ;;  %v13712_v57 = vunpack.c.l.b16 %v4943_v1  ;;  %v13714_v19 = vunpack.c.l.b16 %v5026_v3  ;;  %v6391_v3 = vld [vmem:[#allocation8 + $0x3d] sm:$0x1] }
 0x2a8   : > { %v5192_v35 = vrot.slane %v5185_v5, %v13396_v6  ;;  %v4583_v0 = vrot.slane %v4576_v30, %v13216_v18  ;;  %v13718_v53 = vunpack.c.l.b16 %v5109_v2  ;;  %v5275_v8 = vrot.slane %v5268_v32, %v13396_v6 }
 0x2a9   : > { %15609 = vst [vmem:[#allocation16_spill] sm:$0xff] %v13709_v47  ;;  %15610 = vst [vmem:[#allocation17_spill] sm:$0xff] %v13712_v57  ;;  %v4355_v36 = vrot.slane %v4334_v33, %v13396_v6  ;;  %v4438_v42 = vrot.slane %v4417_v44, %v13396_v6  ;;  %v4029_v61 = vrot.slane %v4022_v29, %v13396_v6 }
 0x2aa   : > { %15611 = vst [vmem:[#allocation18_spill] sm:$0xff] %v13714_v19  ;;  %15612 = vst [vmem:[#allocation19_spill] sm:$0xff] %v13718_v53  ;;  %v4113_v7 = vrot.slane %v4106_v50, %v13396_v6  ;;  %v4196_v63 = vrot.slane %v4189_v26, %v13396_v6  ;;  %v4521_v1 = vrot.slane %v4500_v38, %v13396_v6  ;;  %v13728_v53 = vunpack.c.l.b16 %v5192_v35  ;;  %v6474_v38 = vld [vmem:[#allocation8 + $0x3e] sm:$0x1] }
 0x2ab   : > { %v4279_v5 = vrot.slane %v4272_v49, %v13396_v6  ;;  %v5978_v30 = vpack.c.bf16 %v5976_v48, %v5976_v48  ;;  %v6061_v2 = vpack.c.bf16 %v6059_v25, %v6059_v25  ;;  %v6144_v32 = vpack.c.bf16 %v6142_v41, %v6142_v41  ;;  %v6557_v25 = vld [vmem:[#allocation8 + $0x3f] sm:$0x1] }
 0x2ac   : > { %v4604_v33 = vrot.slane %v4583_v0, %v13396_v6  ;;  %v6227_v44 = vpack.c.bf16 %v6225_v52, %v6225_v52  ;;  %v6310_v19 = vpack.c.bf16 %v6308_v4, %v6308_v4  ;;  %v13731_v57 = vunpack.c.l.b16 %v5275_v8  ;;  %v5395_v52 = vld [vmem:[#allocation8 + $0x31] sm:$0x1]  ;;  %v5478_v4 = vld [vmem:[#allocation8 + $0x32] sm:$0x1] }
 0x2ad   : > { %v4362_v29 = vrot.slane %v4355_v36, %v13396_v6  ;;  %v4445_v50 = vrot.slane %v4438_v42, %v13396_v6  ;;  %v6393_v26 = vpack.c.bf16 %v6391_v3, %v6391_v3  ;;  %v13735_v47 = vunpack.c.l.b16 %v4029_v61  ;;  %v5311_v42 = vld [vmem:[#allocation8 + $0x30] sm:$0x1] }
 0x2ae   : > { %15613 = vst [vmem:[#allocation20_spill] sm:$0xff] %v13731_v57  ;;  %v13737_v49 = vunpack.c.l.b16 %v4113_v7  ;;  %v13739_v48 = vunpack.c.l.b16 %v4196_v63  ;;  %v4528_v35 = vrot.slane %v4521_v1, %v13396_v6  ;;  %v13742_v0 = vunpack.c.l.b16 %v4279_v5  ;;  %v5561_v1 = vld [vmem:[#allocation8 + $0x33] sm:$0x1]  ;;  %v5644_v57 = vld [vmem:[#allocation8 + $0x34] sm:$0x1] }
 0x2af   : > { %15614 = vst [vmem:[#allocation21_spill] sm:$0xff] %v13735_v47  ;;  %v5988_v41 = vrot.slane %v5978_v30, %v13216_v18  ;;  %v6071_v8 = vrot.slane %v6061_v2, %v13216_v18  ;;  %v6154_v36 = vrot.slane %v6144_v32, %v13216_v18  ;;  %v4611_v61 = vrot.slane %v4604_v33, %v13396_v6  ;;  %v5727_v33 = vld [vmem:[#allocation8 + $0x35] sm:$0x1] }
 0x2b0   : > { %15615 = vst [vmem:[#allocation22_spill] sm:$0xff] %v13737_v49  ;;  %15616 = vst [vmem:[#allocation23_spill] sm:$0xff] %v13739_v48  ;;  %v6237_v7 = vrot.slane %v6227_v44, %v13216_v18  ;;  %v6320_v63 = vrot.slane %v6310_v19, %v13216_v18  ;;  %v6476_v3 = vpack.c.bf16 %v6474_v38, %v6474_v38  ;;  %v13750_v48 = vunpack.c.l.b16 %v4362_v29 }
 0x2b1   : > { %15617 = vst [vmem:[#allocation24_spill] sm:$0xff] %v13742_v0  ;;  %v13752_v5 = vunpack.c.l.b16 %v4445_v50  ;;  %v6403_v30 = vrot.slane %v6393_v26, %v13216_v18  ;;  %v6559_v2 = vpack.c.bf16 %v6557_v25, %v6557_v25  ;;  %v13755_v0 = vunpack.c.l.b16 %v4528_v35 }
 0x2b2   : > { %15618 = vst [vmem:[#allocation25_spill] sm:$0xff] %v13750_v48  ;;  %v5313_v32 = vpack.c.bf16 %v5311_v42, %v5311_v42  ;;  %v5397_v49 = vpack.c.bf16 %v5395_v52, %v5395_v52  ;;  %v5480_v47 = vpack.c.bf16 %v5478_v4, %v5478_v4  ;;  %v5995_v44 = vrot.slane %v5988_v41, %v13216_v18  ;;  %v5810_v48 = vld [vmem:[#allocation8 + $0x36] sm:$0x1]  ;;  %v5893_v4 = vld [vmem:[#allocation8 + $0x37] sm:$0x1] }
 0x2b3   : > { %v6078_v19 = vrot.slane %v6071_v8, %v13216_v18  ;;  %v6161_v38 = vrot.slane %v6154_v36, %v13216_v18  ;;  %v5563_v29 = vpack.c.bf16 %v5561_v1, %v5561_v1  ;;  %v13760_v50 = vunpack.c.l.b16 %v4611_v61 }
 0x2b4   : > { %v6244_v26 = vrot.slane %v6237_v7, %v13216_v18  ;;  %v6327_v35 = vrot.slane %v6320_v63, %v13216_v18  ;;  %v13765_v25 = vrot.slane %v6476_v3, %v13216_v18  ;;  %v6410_v42 = vrot.slane %v6403_v30, %v13216_v18 }
 0x2b5   : > { %15619 = vst [vmem:[#allocation26_spill] sm:$0xff] %v13760_v50  ;;  %v13769_v52 = vrot.slane %v6559_v2, %v13216_v18  ;;  %v5646_v41 = vpack.c.bf16 %v5644_v57, %v5644_v57  ;;  %v5729_v8 = vpack.c.bf16 %v5727_v33, %v5727_v33  ;;  %v13772_v36 = vrot.slane %v5313_v32, %v13216_v18  ;;  %v1990_v32 = vld [vmem:[#allocation8 + $0x48] sm:$0x1]  ;;  %v2073_v33 = vld [vmem:[#allocation8 + $0x49] sm:$0x1] }
 0x2b6   : > { %15620 = vst [vmem:[#allocation27_spill] sm:$0xff] %v13765_v25  ;;  %v13775_v61 = vrot.slane %v5397_v49, %v13216_v18  ;;  %v13778_v7 = vrot.slane %v5480_v47, %v13216_v18  ;;  %v5812_v63 = vpack.c.bf16 %v5810_v48, %v5810_v48  ;;  %v13781_v3 = vrot.slane %v5995_v44, %v13396_v6  ;;  %v2156_v44 = vld [vmem:[#allocation8 + $0x4a] sm:$0x1] }
 0x2b7   : > { %15621 = vst [vmem:[#allocation28_spill] sm:$0xff] %v13769_v52  ;;  %15622 = vst [vmem:[#allocation29_spill] sm:$0xff] %v13772_v36  ;;  %v13784_v1 = vrot.slane %v6078_v19, %v13396_v6  ;;  %v13787_v57 = vrot.slane %v6161_v38, %v13396_v6  ;;  %v13790_v30 = vrot.slane %v5563_v29, %v13216_v18 }
 0x2b8   : > { %15623 = vst [vmem:[#allocation30_spill] sm:$0xff] %v13775_v61  ;;  %15624 = vst [vmem:[#allocation31_spill] sm:$0xff] %v13778_v7  ;;  %v13793_v2 = vrot.slane %v6244_v26, %v13396_v6  ;;  %v13796_v49 = vrot.slane %v6327_v35, %v13396_v6  ;;  %v5895_v48 = vpack.c.bf16 %v5893_v4, %v5893_v4  ;;  %v2239_v35 = vld [vmem:[#allocation8 + $0x4b] sm:$0x1] }
 0x2b9   : > { %15625 = vst [vmem:[#allocation32_spill] sm:$0xff] %v13781_v3  ;;  %15626 = vst [vmem:[#allocation33_spill] sm:$0xff] %v13784_v1  ;;  %v13801_v19 = vrot.slane %v6410_v42, %v13396_v6  ;;  %v13806_v29 = vrot.slane %v5646_v41, %v13216_v18  ;;  %v13809_v26 = vrot.slane %v5729_v8, %v13216_v18  ;;  %v2488_v41 = vld [vmem:[#allocation8 + $0x4e] sm:$0x1]  ;;  %v2571_v3 = vld [vmem:[#allocation8 + $0x4f] sm:$0x1] }
 0x2ba   : > { %15627 = vst [vmem:[#allocation34_spill] sm:$0xff] %v13787_v57  ;;  %15628 = vst [vmem:[#allocation35_spill] sm:$0xff] %v13790_v30  ;;  %v13818_v38 = vrot.slane %v5812_v63, %v13216_v18  ;;  %v2075_v57 = vpack.c.bf16 %v2073_v33, %v2073_v33  ;;  %v2158_v1 = vpack.c.bf16 %v2156_v44, %v2156_v44 }
 0x2bb   : > { %15629 = vst [vmem:[#allocation36_spill] sm:$0xff] %v13793_v2  ;;  %15630 = vst [vmem:[#allocation37_spill] sm:$0xff] %v13796_v49  ;;  %v2322_v49 = vld [vmem:[#allocation8 + $0x4c] sm:$0x1]  ;;  %v2405_v2 = vld [vmem:[#allocation8 + $0x4d] sm:$0x1]  ;;  %v13823_v52 = vrot.slane %v5895_v48, %v13216_v18  ;;  %v2241_v4 = vpack.c.bf16 %v2239_v35, %v2239_v35  ;;  %v2490_v7 = vpack.c.bf16 %v2488_v41, %v2488_v41 }
 0x2bc   : > { %15631 = vst [vmem:[#allocation38_spill] sm:$0xff] %v13801_v19  ;;  %15632 = vst [vmem:[#allocation39_spill] sm:$0xff] %v13818_v38  ;;  %v1992_v19 = vpack.c.bf16 %v1990_v32, %v1990_v32  ;;  %v2324_v36 = vpack.c.bf16 %v2322_v49, %v2322_v49  ;;  %v2407_v47 = vpack.c.bf16 %v2405_v2, %v2405_v2 }
 0x2bd   : > { %15633 = vst [vmem:[#allocation40_spill] sm:$0xff] %v13823_v52  ;;  %v2098_v42 = vrot.slane %v2075_v57, %v13216_v18  ;;  %v2181_v63 = vrot.slane %v2158_v1, %v13216_v18  ;;  %v2264_v8 = vrot.slane %v2241_v4, %v13216_v18  ;;  %v2573_v44 = vpack.c.bf16 %v2571_v3, %v2571_v3 }
 0x2be   : > { %v2015_v61 = vrot.slane %v1992_v19, %v13216_v18  ;;  %v2347_v32 = vrot.slane %v2324_v36, %v13216_v18  ;;  %v2430_v33 = vrot.slane %v2407_v47, %v13216_v18  ;;  %v2513_v19 = vrot.slane %v2490_v7, %v13216_v18 }
 0x2bf   : > { %v2105_v49 = vrot.slane %v2098_v42, %v13216_v18  ;;  %v2188_v2 = vrot.slane %v2181_v63, %v13216_v18  ;;  %v2271_v57 = vrot.slane %v2264_v8, %v13216_v18  ;;  %v2596_v4 = vrot.slane %v2573_v44, %v13216_v18 }
 0x2c0   : > { %v2022_v48 = vrot.slane %v2015_v61, %v13216_v18  ;;  %v2354_v1 = vrot.slane %v2347_v32, %v13216_v18  ;;  %v2437_v35 = vrot.slane %v2430_v33, %v13216_v18  ;;  %v2520_v47 = vrot.slane %v2513_v19, %v13216_v18 }
 0x2c1   : > { %v2126_v3 = vrot.slane %v2105_v49, %v13396_v6  ;;  %v2209_v61 = vrot.slane %v2188_v2, %v13396_v6  ;;  %v2292_v42 = vrot.slane %v2271_v57, %v13396_v6  ;;  %v2603_v8 = vrot.slane %v2596_v4, %v13216_v18 }
 0x2c2   : > { %v2043_v36 = vrot.slane %v2022_v48, %v13396_v6  ;;  %v2375_v7 = vrot.slane %v2354_v1, %v13396_v6  ;;  %v2458_v41 = vrot.slane %v2437_v35, %v13396_v6  ;;  %v2541_v44 = vrot.slane %v2520_v47, %v13396_v6 }
 0x2c3   : > { %v2133_v32 = vrot.slane %v2126_v3, %v13396_v6  ;;  %v2216_v33 = vrot.slane %v2209_v61, %v13396_v6  ;;  %v2299_v48 = vrot.slane %v2292_v42, %v13396_v6  ;;  %v2624_v19 = vrot.slane %v2603_v8, %v13396_v6 }
 0x2c4   : > { %v2050_v63 = vrot.slane %v2043_v36, %v13396_v6  ;;  %v2382_v49 = vrot.slane %v2375_v7, %v13396_v6  ;;  %v2465_v2 = vrot.slane %v2458_v41, %v13396_v6  ;;  %v2548_v4 = vrot.slane %v2541_v44, %v13396_v6 }
 0x2c5   : > { %v2135_v1 = vunpack.c.l.b16 %v2133_v32  ;;  %v2218_v35 = vunpack.c.l.b16 %v2216_v33  ;;  %v2301_v36 = vunpack.c.l.b16 %v2299_v48  ;;  %v2631_v61 = vrot.slane %v2624_v19, %v13396_v6 }
 0x2c6   : > { %v2052_v57 = vunpack.c.l.b16 %v2050_v63  ;;  %v2384_v30 = vunpack.c.l.b16 %v2382_v49  ;;  %v2467_v3 = vunpack.c.l.b16 %v2465_v2  ;;  %v2550_v42 = vunpack.c.l.b16 %v2548_v4 }
 0x2c7   : > { %v2136_v47 = vrot.slane %v2135_v1, 7  ;;  %v2219_v25 = vrot.slane %v2218_v35, 7  ;;  %v2302_v38 = vrot.slane %v2301_v36, 7  ;;  %v2633_v41 = vunpack.c.l.b16 %v2631_v61 }
 0x2c8   : > { %v2053_v52 = vrot.slane %v2052_v57, 7  ;;  %v2385_v7 = vrot.slane %v2384_v30, 7  ;;  %v2468_v50 = vrot.slane %v2467_v3, 7  ;;  %v2551_v33 = vrot.slane %v2550_v42, 7  ;;  %v1409_v57 = vld [vmem:[#allocation8 + $0x41] sm:$0x1] }
 0x2c9   : > { %v2137_v63 = vsel %vm1389_vm10, %v2136_v47, %v13450_v15  ;;  %v2220_v32 = vsel %vm1389_vm10, %v2219_v25, %v13452_v16  ;;  %v2303_v2 = vsel %vm1389_vm10, %v2302_v38, %v13455_v20  ;;  %v1492_v16 = vld [vmem:[#allocation8 + $0x42] sm:$0x1]  ;;  %v1575_v38 = vld [vmem:[#allocation8 + $0x43] sm:$0x1]  ;;  %v2634_v3 = vrot.slane %v2633_v41, 7 }
 0x2ca   : > { %v2054_v8 = vsel %vm1389_vm10, %v2053_v52, %v13448_v12  ;;  %v2138_v48 = vpack.c.b16 %v2137_v63, %v2137_v63  ;;  %v2221_v49 = vpack.c.b16 %v2220_v32, %v2220_v32  ;;  %v2304_v19 = vpack.c.b16 %v2303_v2, %v2303_v2  ;;  %v1325_v52 = vld [vmem:[#allocation8 + $0x40] sm:$0x1]  ;;  %v1658_v47 = vld [vmem:[#allocation8 + $0x44] sm:$0x1]  ;;  %v1741_v42 = vld [vmem:[#allocation8 + $0x45] sm:$0x1] }
 0x2cb   : > { %v2055_v44 = vpack.c.b16 %v2054_v8, %v2054_v8  ;;  %v2386_v30 = vsel %vm1389_vm10, %v2385_v7, %v13457_v22  ;;  %v2469_v12 = vsel %vm1389_vm10, %v2468_v50, %v13461_v28  ;;  %v2552_v15 = vsel %vm1389_vm10, %v2551_v33, %v13471_v46  ;;  %v1824_v7 = vld [vmem:[#allocation8 + $0x46] sm:$0x1] }
 0x2cc   : > { %v2145_v1 = vrot.slane %v2138_v48, %v13216_v18  ;;  %v2228_v35 = vrot.slane %v2221_v49, %v13216_v18  ;;  %v2387_v20 = vpack.c.b16 %v2386_v30, %v2386_v30  ;;  %v2311_v4 = vrot.slane %v2304_v19, %v13216_v18 }
 0x2cd   : > { %v2062_v25 = vrot.slane %v2055_v44, %v13216_v18  ;;  %v2470_v22 = vpack.c.b16 %v2469_v12, %v2469_v12  ;;  %v2553_v36 = vpack.c.b16 %v2552_v15, %v2552_v15  ;;  %v1327_v46 = vpack.c.bf16 %v1325_v52, %v1325_v52  ;;  %v1907_v15 = vld [vmem:[#allocation8 + $0x47] sm:$0x1] }
 0x2ce   : > { %11356 = vst.sshfl [vmem:[#allocation3 + $0x9] sm:$0x1 pattern:$0x73625140] %v2145_v1  ;;  %v2394_v28 = vrot.slane %v2387_v20, %v13216_v18  ;;  %v1411_v50 = vpack.c.bf16 %v1409_v57, %v1409_v57  ;;  %v1494_v61 = vpack.c.bf16 %v1492_v16, %v1492_v16  ;;  %v2635_v32 = vsel %vm1389_vm10, %v2634_v3, %v13474_v37 }
 0x2cf   : > { %11355 = vst.sshfl [vmem:[#allocation3 + $0x8] sm:$0x1 pattern:$0x73625140] %v2062_v25  ;;  %v2477_v8 = vrot.slane %v2470_v22, %v13216_v18  ;;  %v2560_v63 = vrot.slane %v2553_v36, %v13216_v18  ;;  %v1577_v41 = vpack.c.bf16 %v1575_v38, %v1575_v38  ;;  %v2636_v33 = vpack.c.b16 %v2635_v32, %v2635_v32 }
 0x2d0   : > { %11357 = vst.sshfl [vmem:[#allocation3 + $0xa] sm:$0x1 pattern:$0x73625140] %v2228_v35  ;;  %v1350_v44 = vrot.slane %v1327_v46, %v13216_v18  ;;  %v1434_v48 = vrot.slane %v1411_v50, %v13216_v18  ;;  %v1517_v49 = vrot.slane %v1494_v61, %v13216_v18  ;;  %v1660_v19 = vpack.c.bf16 %v1658_v47, %v1658_v47 }
 0x2d1   : > { %11358 = vst.sshfl [vmem:[#allocation3 + $0xb] sm:$0x1 pattern:$0x73625140] %v2311_v4  ;;  %v1600_v2 = vrot.slane %v1577_v41, %v13216_v18  ;;  %v1743_v30 = vpack.c.bf16 %v1741_v42, %v1741_v42  ;;  %v1826_v12 = vpack.c.bf16 %v1824_v7, %v1824_v7  ;;  %v2643_v52 = vrot.slane %v2636_v33, %v13216_v18 }
 0x2d2   : > { %11359 = vst.sshfl [vmem:[#allocation3 + $0xc] sm:$0x1 pattern:$0x73625140] %v2394_v28  ;;  %v1357_v37 = vrot.slane %v1350_v44, %v13216_v18  ;;  %v1441_v57 = vrot.slane %v1434_v48, %v13216_v18  ;;  %v1524_v16 = vrot.slane %v1517_v49, %v13216_v18  ;;  %v1683_v1 = vrot.slane %v1660_v19, %v13216_v18 }
 0x2d3   : > { %11360 = vst.sshfl [vmem:[#allocation3 + $0xd] sm:$0x1 pattern:$0x73625140] %v2477_v8  ;;  %v1607_v25 = vrot.slane %v1600_v2, %v13216_v18  ;;  %v1766_v35 = vrot.slane %v1743_v30, %v13216_v18  ;;  %v1849_v20 = vrot.slane %v1826_v12, %v13216_v18  ;;  %v1909_v36 = vpack.c.bf16 %v1907_v15, %v1907_v15 }
 0x2d4   : > { %11361 = vst.sshfl [vmem:[#allocation3 + $0xe] sm:$0x1 pattern:$0x73625140] %v2560_v63  ;;  %v1378_v38 = vrot.slane %v1357_v37, %v13396_v6  ;;  %v1462_v4 = vrot.slane %v1441_v57, %v13396_v6  ;;  %v1545_v22 = vrot.slane %v1524_v16, %v13396_v6  ;;  %v1690_v28 = vrot.slane %v1683_v1, %v13216_v18 }
 0x2d5   : > { %11362 = vst.sshfl [vmem:[#allocation3 + $0xf] sm:$0x1 pattern:$0x73625140] %v2643_v52  ;;  %v1628_v3 = vrot.slane %v1607_v25, %v13396_v6  ;;  %v1773_v46 = vrot.slane %v1766_v35, %v13216_v18  ;;  %v1856_v50 = vrot.slane %v1849_v20, %v13216_v18  ;;  %v1932_v7 = vrot.slane %v1909_v36, %v13216_v18 }
 0x2d6   : > { %v1385_v61 = vrot.slane %v1378_v38, %v13396_v6  ;;  %v1469_v47 = vrot.slane %v1462_v4, %v13396_v6  ;;  %v1552_v42 = vrot.slane %v1545_v22, %v13396_v6  ;;  %v1711_v63 = vrot.slane %v1690_v28, %v13396_v6 }
 0x2d7   : > { %v1635_v8 = vrot.slane %v1628_v3, %v13396_v6  ;;  %v1794_v32 = vrot.slane %v1773_v46, %v13396_v6  ;;  %v1877_v41 = vrot.slane %v1856_v50, %v13396_v6  ;;  %v1939_v49 = vrot.slane %v1932_v7, %v13216_v18  ;;  %v3319_v7 = vld [vmem:[#allocation8 + $0x58] sm:$0x1] }
 0x2d8   : > { %v1387_v33 = vunpack.c.l.b16 %v1385_v61  ;;  %v1471_v44 = vunpack.c.l.b16 %v1469_v47  ;;  %v1554_v48 = vunpack.c.l.b16 %v1552_v42  ;;  %v1718_v19 = vrot.slane %v1711_v63, %v13396_v6  ;;  %v3402_v63 = vld [vmem:[#allocation8 + $0x59] sm:$0x1] }
 0x2d9   : > { %v1637_v2 = vunpack.c.l.b16 %v1635_v8  ;;  %v1801_v30 = vrot.slane %v1794_v32, %v13396_v6  ;;  %v1884_v12 = vrot.slane %v1877_v41, %v13396_v6  ;;  %v1960_v57 = vrot.slane %v1939_v49, %v13396_v6  ;;  %v3485_v32 = vld [vmem:[#allocation8 + $0x5a] sm:$0x1]  ;;  %v3568_v41 = vld [vmem:[#allocation8 + $0x5b] sm:$0x1] }
 0x2da   : > { %v1388_v15 = vrot.slane %v1387_v33, 7  ;;  %v1472_v52 = vrot.slane %v1471_v44, 7  ;;  %v1555_v37 = vrot.slane %v1554_v48, 7  ;;  %v1720_v25 = vunpack.c.l.b16 %v1718_v19 }
 0x2db   : > { %v1638_v16 = vrot.slane %v1637_v2, 7  ;;  %v1803_v1 = vunpack.c.l.b16 %v1801_v30  ;;  %v1886_v35 = vunpack.c.l.b16 %v1884_v12  ;;  %v1967_v22 = vrot.slane %v1960_v57, %v13396_v6  ;;  %v3651_v57 = vld [vmem:[#allocation8 + $0x5c] sm:$0x1] }
 0x2dc   : > { %v1390_v20 = vsel %vm1389_vm10, %v1388_v15, %v13478_v54  ;;  %v1473_v38 = vsel %vm1389_vm10, %v1472_v52, %v13480_v55  ;;  %v1556_v4 = vsel %vm1389_vm10, %v1555_v37, %v13486_v60  ;;  %v1721_v61 = vrot.slane %v1720_v25, 7 }
 0x2dd   : > { %v1391_v36 = vpack.c.b16 %v1390_v20, %v1390_v20  ;;  %v1474_v3 = vpack.c.b16 %v1473_v38, %v1473_v38  ;;  %v1557_v28 = vpack.c.b16 %v1556_v4, %v1556_v4  ;;  %v1639_v46 = vsel %vm1389_vm10, %v1638_v16, %v13496_v23  ;;  %v3817_v16 = vld [vmem:[#allocation8 + $0x5e] sm:$0x1] }
 0x2de   : > { %v1640_v50 = vpack.c.b16 %v1639_v46, %v1639_v46  ;;  %v1804_v47 = vrot.slane %v1803_v1, 7  ;;  %v1887_v42 = vrot.slane %v1886_v35, 7  ;;  %v1969_v60 = vunpack.c.l.b16 %v1967_v22  ;;  %v3900_v46 = vld [vmem:[#allocation8 + $0x5f] sm:$0x1] }
 0x2df   : > { %v1398_v54 = vrot.slane %v1391_v36, %v13216_v18  ;;  %v1481_v55 = vrot.slane %v1474_v3, %v13216_v18  ;;  %v1564_v8 = vrot.slane %v1557_v28, %v13216_v18  ;;  %v1722_v23 = vsel %vm1389_vm10, %v1721_v61, %v13498_v17  ;;  %v3734_v17 = vld [vmem:[#allocation8 + $0x5d] sm:$0x1] }
 0x2e0   : > { %v1647_v33 = vrot.slane %v1640_v50, %v13216_v18  ;;  %v1805_v44 = vsel %vm1389_vm10, %v1804_v47, %v13501_v27  ;;  %v1888_v48 = vsel %vm1389_vm10, %v1887_v42, %v13509_v43  ;;  %v1723_v49 = vpack.c.b16 %v1722_v23, %v1722_v23 }
 0x2e1   : > { %11347 = vst.sshfl [vmem:[#allocation3] sm:$0x1 pattern:$0x73625140] %v1398_v54  ;;  %v1806_v2 = vpack.c.b16 %v1805_v44, %v1805_v44  ;;  %v1889_v19 = vpack.c.b16 %v1888_v48, %v1888_v48  ;;  %v1970_v30 = vrot.slane %v1969_v60, 7  ;;  %v3321_v12 = vpack.c.bf16 %v3319_v7, %v3319_v7 }
 0x2e2   : > { %11348 = vst.sshfl [vmem:[#allocation3 + $0x1] sm:$0x1 pattern:$0x73625140] %v1481_v55  ;;  %v3404_v15 = vpack.c.bf16 %v3402_v63, %v3402_v63  ;;  %v3487_v52 = vpack.c.bf16 %v3485_v32, %v3485_v32  ;;  %v3570_v37 = vpack.c.bf16 %v3568_v41, %v3568_v41  ;;  %v1730_v27 = vrot.slane %v1723_v49, %v13216_v18 }
 0x2e3   : > { %11349 = vst.sshfl [vmem:[#allocation3 + $0x2] sm:$0x1 pattern:$0x73625140] %v1564_v8  ;;  %v1813_v25 = vrot.slane %v1806_v2, %v13216_v18  ;;  %v1896_v43 = vrot.slane %v1889_v19, %v13216_v18  ;;  %v1971_v1 = vsel %vm1389_vm10, %v1970_v30, %v13518_v56  ;;  %v3344_v20 = vrot.slane %v3321_v12, %v13216_v18 }
 0x2e4   : > { %11350 = vst.sshfl [vmem:[#allocation3 + $0x3] sm:$0x1 pattern:$0x73625140] %v1647_v33  ;;  %v1972_v35 = vpack.c.b16 %v1971_v1, %v1971_v1  ;;  %v3427_v38 = vrot.slane %v3404_v15, %v13216_v18  ;;  %v3510_v4 = vrot.slane %v3487_v52, %v13216_v18  ;;  %v3593_v22 = vrot.slane %v3570_v37, %v13216_v18 }
 0x2e5   : > { %11351 = vst.sshfl [vmem:[#allocation3 + $0x4] sm:$0x1 pattern:$0x73625140] %v1730_v27  ;;  %v3653_v36 = vpack.c.bf16 %v3651_v57, %v3651_v57  ;;  %v3736_v3 = vpack.c.bf16 %v3734_v17, %v3734_v17  ;;  %v3819_v28 = vpack.c.bf16 %v3817_v16, %v3817_v16  ;;  %v3351_v56 = vrot.slane %v3344_v20, %v13216_v18 }
 0x2e6   : > { %11352 = vst.sshfl [vmem:[#allocation3 + $0x5] sm:$0x1 pattern:$0x73625140] %v1813_v25  ;;  %v1979_v50 = vrot.slane %v1972_v35, %v13216_v18  ;;  %v3434_v61 = vrot.slane %v3427_v38, %v13216_v18  ;;  %v3517_v47 = vrot.slane %v3510_v4, %v13216_v18  ;;  %v3600_v42 = vrot.slane %v3593_v22, %v13216_v18 }
 0x2e7   : > { %11353 = vst.sshfl [vmem:[#allocation3 + $0x6] sm:$0x1 pattern:$0x73625140] %v1896_v43  ;;  %v3676_v7 = vrot.slane %v3653_v36, %v13216_v18  ;;  %v3759_v54 = vrot.slane %v3736_v3, %v13216_v18  ;;  %v3842_v55 = vrot.slane %v3819_v28, %v13216_v18  ;;  %v3372_v8 = vrot.slane %v3351_v56, %v13396_v6 }
 0x2e8   : > { %11354 = vst.sshfl [vmem:[#allocation3 + $0x7] sm:$0x1 pattern:$0x73625140] %v1979_v50  ;;  %v3455_v60 = vrot.slane %v3434_v61, %v13396_v6  ;;  %v3538_v63 = vrot.slane %v3517_v47, %v13396_v6  ;;  %v3902_v32 = vpack.c.bf16 %v3900_v46, %v3900_v46  ;;  %v3621_v41 = vrot.slane %v3600_v42, %v13396_v6 }
 0x2e9   : > { %v3683_v33 = vrot.slane %v3676_v7, %v13216_v18  ;;  %v3766_v23 = vrot.slane %v3759_v54, %v13216_v18  ;;  %v3849_v44 = vrot.slane %v3842_v55, %v13216_v18  ;;  %v3379_v48 = vrot.slane %v3372_v8, %v13396_v6 }
 0x2ea   : > { %v3462_v49 = vrot.slane %v3455_v60, %v13396_v6  ;;  %v3545_v2 = vrot.slane %v3538_v63, %v13396_v6  ;;  %v3925_v19 = vrot.slane %v3902_v32, %v13216_v18  ;;  %v3628_v30 = vrot.slane %v3621_v41, %v13396_v6  ;;  %v2654_v32 = vld [vmem:[#allocation8 + $0x50] sm:$0x1] }
 0x2eb   : > { %v3704_v12 = vrot.slane %v3683_v33, %v13396_v6  ;;  %v3787_v15 = vrot.slane %v3766_v23, %v13396_v6  ;;  %v3870_v52 = vrot.slane %v3849_v44, %v13396_v6  ;;  %v3381_v37 = vunpack.c.l.b16 %v3379_v48  ;;  %v2738_v33 = vld [vmem:[#allocation8 + $0x51] sm:$0x1]  ;;  %v2821_v23 = vld [vmem:[#allocation8 + $0x52] sm:$0x1]  ;;  %v2904_v44 = vld [vmem:[#allocation8 + $0x53] sm:$0x1] }
 0x2ec   : > { %v3464_v57 = vunpack.c.l.b16 %v3462_v49  ;;  %v3547_v17 = vunpack.c.l.b16 %v3545_v2  ;;  %v3932_v16 = vrot.slane %v3925_v19, %v13216_v18  ;;  %v3630_v27 = vunpack.c.l.b16 %v3628_v30  ;;  %v15634_v49 = vld [vmem:[#allocation13_spill] sm:$0xff]  ;;  %v15635_v2 = vld [vmem:[#allocation14_spill] sm:$0xff] }
 0x2ed   : > { %v3711_v25 = vrot.slane %v3704_v12, %v13396_v6  ;;  %v3794_v43 = vrot.slane %v3787_v15, %v13396_v6  ;;  %v3877_v1 = vrot.slane %v3870_v52, %v13396_v6  ;;  %v3382_v35 = vrot.slane %v3381_v37, 7 }
 0x2ee   : > { %v3465_v20 = vrot.slane %v3464_v57, 7  ;;  %v3548_v38 = vrot.slane %v3547_v17, 7  ;;  %v3953_v4 = vrot.slane %v3932_v16, %v13396_v6  ;;  %v3631_v22 = vrot.slane %v3630_v27, 7 }
 0x2ef   : > { %v3713_v36 = vunpack.c.l.b16 %v3711_v25  ;;  %v3796_v3 = vunpack.c.l.b16 %v3794_v43  ;;  %v3879_v28 = vunpack.c.l.b16 %v3877_v1  ;;  %v3383_v46 = vsel %vm1389_vm10, %v3382_v35, %v13562_v9  ;;  %v2987_v25 = vld [vmem:[#allocation8 + $0x54] sm:$0x1]  ;;  %v3070_v43 = vld [vmem:[#allocation8 + $0x55] sm:$0x1]  ;;  %v3153_v1 = vld [vmem:[#allocation8 + $0x56] sm:$0x1] }
 0x2f0   : > { %v3466_v50 = vsel %vm1389_vm10, %v3465_v20, %v13564_v11  ;;  %v3549_v56 = vsel %vm1389_vm10, %v3548_v38, %v13566_v24  ;;  %v3960_v61 = vrot.slane %v3953_v4, %v13396_v6  ;;  %v3384_v47 = vpack.c.b16 %v3383_v46, %v3383_v46 }
 0x2f1   : > { %v3467_v42 = vpack.c.b16 %v3466_v50, %v3466_v50  ;;  %v3550_v7 = vpack.c.b16 %v3549_v56, %v3549_v56  ;;  %v3632_v54 = vsel %vm1389_vm10, %v3631_v22, %v13571_v31  ;;  %v3714_v8 = vrot.slane %v3713_v36, 7 }
 0x2f2   : > { %v3633_v55 = vpack.c.b16 %v3632_v54, %v3632_v54  ;;  %v3797_v60 = vrot.slane %v3796_v3, 7  ;;  %v3880_v63 = vrot.slane %v3879_v28, 7  ;;  %v3391_v9 = vrot.slane %v3384_v47, %v13216_v18 }
 0x2f3   : > { %v3474_v11 = vrot.slane %v3467_v42, %v13216_v18  ;;  %v3557_v41 = vrot.slane %v3550_v7, %v13216_v18  ;;  %v3962_v24 = vunpack.c.l.b16 %v3960_v61  ;;  %v3715_v31 = vsel %vm1389_vm10, %v3714_v8, %v15634_v49  ;;  %v3236_v61 = vld [vmem:[#allocation8 + $0x57] sm:$0x1] }
 0x2f4   : > { %v3640_v48 = vrot.slane %v3633_v55, %v13216_v18  ;;  %v3798_v19 = vsel %vm1389_vm10, %v3797_v60, %v15635_v2  ;;  %v3881_v30 = vsel %vm1389_vm10, %v3880_v63, %v13623_v14  ;;  %11371 = vst.sshfl [vmem:[#allocation3 + $0x18] sm:$0x1 pattern:$0x73625140] %v3391_v9  ;;  %v3716_v12 = vpack.c.b16 %v3715_v31, %v3715_v31 }
 0x2f5   : > { %11372 = vst.sshfl [vmem:[#allocation3 + $0x19] sm:$0x1 pattern:$0x73625140] %v3474_v11  ;;  %v3799_v15 = vpack.c.b16 %v3798_v19, %v3798_v19  ;;  %v3882_v52 = vpack.c.b16 %v3881_v30, %v3881_v30  ;;  %v3963_v37 = vrot.slane %v3962_v24, 7  ;;  %v2656_v57 = vpack.c.bf16 %v2654_v32, %v2654_v32 }
 0x2f6   : > { %11373 = vst.sshfl [vmem:[#allocation3 + $0x1a] sm:$0x1 pattern:$0x73625140] %v3557_v41  ;;  %v2740_v17 = vpack.c.bf16 %v2738_v33, %v2738_v33  ;;  %v2823_v16 = vpack.c.bf16 %v2821_v23, %v2821_v23  ;;  %v2906_v27 = vpack.c.bf16 %v2904_v44, %v2904_v44  ;;  %v3723_v35 = vrot.slane %v3716_v12, %v13216_v18 }
 0x2f7   : > { %11374 = vst.sshfl [vmem:[#allocation3 + $0x1b] sm:$0x1 pattern:$0x73625140] %v3640_v48  ;;  %v3806_v20 = vrot.slane %v3799_v15, %v13216_v18  ;;  %v3889_v14 = vrot.slane %v3882_v52, %v13216_v18  ;;  %v3964_v38 = vsel %vm1389_vm10, %v3963_v37, %v13629_v21  ;;  %v2679_v22 = vrot.slane %v2656_v57, %v13216_v18 }
 0x2f8   : > { %v3965_v4 = vpack.c.b16 %v3964_v38, %v3964_v38  ;;  %v2763_v36 = vrot.slane %v2740_v17, %v13216_v18  ;;  %v2846_v3 = vrot.slane %v2823_v16, %v13216_v18  ;;  %11375 = vst.sshfl [vmem:[#allocation3 + $0x1c] sm:$0x1 pattern:$0x73625140] %v3723_v35  ;;  %v2929_v28 = vrot.slane %v2906_v27, %v13216_v18 }
 0x2f9   : > { %11376 = vst.sshfl [vmem:[#allocation3 + $0x1d] sm:$0x1 pattern:$0x73625140] %v3806_v20  ;;  %v2989_v46 = vpack.c.bf16 %v2987_v25, %v2987_v25  ;;  %v3072_v50 = vpack.c.bf16 %v3070_v43, %v3070_v43  ;;  %v3155_v56 = vpack.c.bf16 %v3153_v1, %v3153_v1  ;;  %v2686_v21 = vrot.slane %v2679_v22, %v13216_v18 }
 0x2fa   : > { %11377 = vst.sshfl [vmem:[#allocation3 + $0x1e] sm:$0x1 pattern:$0x73625140] %v3889_v14  ;;  %v3972_v47 = vrot.slane %v3965_v4, %v13216_v18  ;;  %v2770_v42 = vrot.slane %v2763_v36, %v13216_v18  ;;  %v2853_v7 = vrot.slane %v2846_v3, %v13216_v18  ;;  %v2936_v54 = vrot.slane %v2929_v28, %v13216_v18 }
 0x2fb   : > { %v3012_v55 = vrot.slane %v2989_v46, %v13216_v18  ;;  %v3095_v8 = vrot.slane %v3072_v50, %v13216_v18  ;;  %v3178_v60 = vrot.slane %v3155_v56, %v13216_v18  ;;  %v2707_v63 = vrot.slane %v2686_v21, %v13396_v6 }
 0x2fc   : > { %11378 = vst.sshfl [vmem:[#allocation3 + $0x1f] sm:$0x1 pattern:$0x73625140] %v3972_v47  ;;  %v2791_v32 = vrot.slane %v2770_v42, %v13396_v6  ;;  %v2874_v9 = vrot.slane %v2853_v7, %v13396_v6  ;;  %v3238_v11 = vpack.c.bf16 %v3236_v61, %v3236_v61  ;;  %v2957_v41 = vrot.slane %v2936_v54, %v13396_v6 }
 0x2fd   : > { %v3019_v24 = vrot.slane %v3012_v55, %v13216_v18  ;;  %v3102_v33 = vrot.slane %v3095_v8, %v13216_v18  ;;  %v3185_v23 = vrot.slane %v3178_v60, %v13216_v18  ;;  %v2714_v44 = vrot.slane %v2707_v63, %v13396_v6  ;;  %v4648_v55 = vld [vmem:[#allocation8 + $0x68] sm:$0x1]  ;;  %v4731_v60 = vld [vmem:[#allocation8 + $0x69] sm:$0x1]  ;;  %v4814_v63 = vld [vmem:[#allocation8 + $0x6a] sm:$0x1] }
 0x2fe   : > { %v2798_v48 = vrot.slane %v2791_v32, %v13396_v6  ;;  %v2881_v49 = vrot.slane %v2874_v9, %v13396_v6  ;;  %v3261_v31 = vrot.slane %v3238_v11, %v13216_v18  ;;  %v2964_v2 = vrot.slane %v2957_v41, %v13396_v6  ;;  %v4897_v32 = vld [vmem:[#allocation8 + $0x6b] sm:$0x1] }
 0x2ff   : > { %v3040_v19 = vrot.slane %v3019_v24, %v13396_v6  ;;  %v3123_v30 = vrot.slane %v3102_v33, %v13396_v6  ;;  %v3206_v12 = vrot.slane %v3185_v23, %v13396_v6  ;;  %v2716_v15 = vunpack.c.l.b16 %v2714_v44 }
 0x300   : > { %v2800_v52 = vunpack.c.l.b16 %v2798_v48  ;;  %v2883_v37 = vunpack.c.l.b16 %v2881_v49  ;;  %v3268_v57 = vrot.slane %v3261_v31, %v13216_v18  ;;  %v2966_v17 = vunpack.c.l.b16 %v2964_v2 }
 0x301   : > { %v3047_v16 = vrot.slane %v3040_v19, %v13396_v6  ;;  %v3130_v27 = vrot.slane %v3123_v30, %v13396_v6  ;;  %v3213_v25 = vrot.slane %v3206_v12, %v13396_v6  ;;  %v2717_v43 = vrot.slane %v2716_v15, 7  ;;  %v4980_v19 = vld [vmem:[#allocation8 + $0x6c] sm:$0x1]  ;;  %v5146_v30 = vld [vmem:[#allocation8 + $0x6e] sm:$0x1] }
 0x302   : > { %v2801_v1 = vrot.slane %v2800_v52, 7  ;;  %v2884_v35 = vrot.slane %v2883_v37, 7  ;;  %v3289_v20 = vrot.slane %v3268_v57, %v13396_v6  ;;  %v2967_v14 = vrot.slane %v2966_v17, 7 }
 0x303   : > { %v3049_v38 = vunpack.c.l.b16 %v3047_v16  ;;  %v3132_v4 = vunpack.c.l.b16 %v3130_v27  ;;  %v3215_v22 = vunpack.c.l.b16 %v3213_v25  ;;  %v2718_v36 = vsel %vm1389_vm10, %v2717_v43, %v13638_v39 }
 0x304   : > { %v2802_v3 = vsel %vm1389_vm10, %v2801_v1, %v13640_v51  ;;  %v2885_v28 = vsel %vm1389_vm10, %v2884_v35, %v13642_v40  ;;  %v3296_v46 = vrot.slane %v3289_v20, %v13396_v6  ;;  %v2719_v50 = vpack.c.b16 %v2718_v36, %v2718_v36  ;;  %v5229_v1 = vld [vmem:[#allocation8 + $0x6f] sm:$0x1] }
 0x305   : > { %v2803_v56 = vpack.c.b16 %v2802_v3, %v2802_v3  ;;  %v2886_v61 = vpack.c.b16 %v2885_v28, %v2885_v28  ;;  %v2968_v47 = vsel %vm1389_vm10, %v2967_v14, %v13646_v13  ;;  %v3050_v42 = vrot.slane %v3049_v38, 7 }
 0x306   : > { %v2969_v21 = vpack.c.b16 %v2968_v47, %v2968_v47  ;;  %v3133_v7 = vrot.slane %v3132_v4, 7  ;;  %v3216_v54 = vrot.slane %v3215_v22, 7  ;;  %v2726_v39 = vrot.slane %v2719_v50, %v13216_v18 }
 0x307   : > { %v2810_v51 = vrot.slane %v2803_v56, %v13216_v18  ;;  %v2893_v8 = vrot.slane %v2886_v61, %v13216_v18  ;;  %v3298_v40 = vunpack.c.l.b16 %v3296_v46  ;;  %v3051_v13 = vsel %vm1389_vm10, %v3050_v42, %v13654_v62  ;;  %v5063_v62 = vld [vmem:[#allocation8 + $0x6d] sm:$0x1] }
 0x308   : > { %v2976_v9 = vrot.slane %v2969_v21, %v13216_v18  ;;  %v3134_v11 = vsel %vm1389_vm10, %v3133_v7, %v13656_v45  ;;  %v3217_v41 = vsel %vm1389_vm10, %v3216_v54, %v13659_v58  ;;  %11363 = vst.sshfl [vmem:[#allocation3 + $0x10] sm:$0x1 pattern:$0x73625140] %v2726_v39  ;;  %v3052_v24 = vpack.c.b16 %v3051_v13, %v3051_v13 }
 0x309   : > { %11364 = vst.sshfl [vmem:[#allocation3 + $0x11] sm:$0x1 pattern:$0x73625140] %v2810_v51  ;;  %v3135_v33 = vpack.c.b16 %v3134_v11, %v3134_v11  ;;  %v3218_v23 = vpack.c.b16 %v3217_v41, %v3217_v41  ;;  %v3299_v44 = vrot.slane %v3298_v40, 7  ;;  %v4650_v48 = vpack.c.bf16 %v4648_v55, %v4648_v55 }
 0x30a   : > { %11365 = vst.sshfl [vmem:[#allocation3 + $0x12] sm:$0x1 pattern:$0x73625140] %v2893_v8  ;;  %v4733_v49 = vpack.c.bf16 %v4731_v60, %v4731_v60  ;;  %v4816_v31 = vpack.c.bf16 %v4814_v63, %v4814_v63  ;;  %v4899_v2 = vpack.c.bf16 %v4897_v32, %v4897_v32  ;;  %v3059_v45 = vrot.slane %v3052_v24, %v13216_v18 }
 0x30b   : > { %11366 = vst.sshfl [vmem:[#allocation3 + $0x13] sm:$0x1 pattern:$0x73625140] %v2976_v9  ;;  %v3142_v12 = vrot.slane %v3135_v33, %v13216_v18  ;;  %v3225_v58 = vrot.slane %v3218_v23, %v13216_v18  ;;  %v3300_v15 = vsel %vm1389_vm10, %v3299_v44, %v13664_v10  ;;  %v4673_v37 = vrot.slane %v4650_v48, %v13216_v18 }
 0x30c   : > { %v3301_v52 = vpack.c.b16 %v3300_v15, %v3300_v15  ;;  %v4756_v57 = vrot.slane %v4733_v49, %v13216_v18  ;;  %v4839_v17 = vrot.slane %v4816_v31, %v13216_v18  ;;  %11367 = vst.sshfl [vmem:[#allocation3 + $0x14] sm:$0x1 pattern:$0x73625140] %v3059_v45  ;;  %v4922_v16 = vrot.slane %v4899_v2, %v13216_v18  ;;  %v15636_v45 = vld [vmem:[#allocation16_spill] sm:$0xff] }
 0x30d   : > { %11368 = vst.sshfl [vmem:[#allocation3 + $0x15] sm:$0x1 pattern:$0x73625140] %v3142_v12  ;;  %v4982_v27 = vpack.c.bf16 %v4980_v19, %v4980_v19  ;;  %v5065_v25 = vpack.c.bf16 %v5063_v62, %v5063_v62  ;;  %v5148_v43 = vpack.c.bf16 %v5146_v30, %v5146_v30  ;;  %v4680_v10 = vrot.slane %v4673_v37, %v13216_v18 }
 0x30e   : > { %11369 = vst.sshfl [vmem:[#allocation3 + $0x16] sm:$0x1 pattern:$0x73625140] %v3225_v58  ;;  %v3308_v35 = vrot.slane %v3301_v52, %v13216_v18  ;;  %v4763_v20 = vrot.slane %v4756_v57, %v13216_v18  ;;  %v4846_v14 = vrot.slane %v4839_v17, %v13216_v18  ;;  %v4929_v38 = vrot.slane %v4922_v16, %v13216_v18  ;;  %v15637_v57 = vld [vmem:[#allocation17_spill] sm:$0xff] }
 0x30f   : > { %v5005_v4 = vrot.slane %v4982_v27, %v13216_v18  ;;  %v5088_v22 = vrot.slane %v5065_v25, %v13216_v18  ;;  %v5171_v36 = vrot.slane %v5148_v43, %v13216_v18  ;;  %v4701_v3 = vrot.slane %v4680_v10, %v13396_v6 }
 0x310   : > { %11370 = vst.sshfl [vmem:[#allocation3 + $0x17] sm:$0x1 pattern:$0x73625140] %v3308_v35  ;;  %v4784_v28 = vrot.slane %v4763_v20, %v13396_v6  ;;  %v4867_v46 = vrot.slane %v4846_v14, %v13396_v6  ;;  %v5231_v50 = vpack.c.bf16 %v5229_v1, %v5229_v1  ;;  %v4950_v56 = vrot.slane %v4929_v38, %v13396_v6  ;;  %v3983_v1 = vld [vmem:[#allocation8 + $0x60] sm:$0x1] }
 0x311   : > { %v5012_v61 = vrot.slane %v5005_v4, %v13216_v18  ;;  %v5095_v47 = vrot.slane %v5088_v22, %v13216_v18  ;;  %v5178_v21 = vrot.slane %v5171_v36, %v13216_v18  ;;  %v4708_v42 = vrot.slane %v4701_v3, %v13396_v6  ;;  %v4067_v20 = vld [vmem:[#allocation8 + $0x61] sm:$0x1]  ;;  %v4150_v14 = vld [vmem:[#allocation8 + $0x62] sm:$0x1]  ;;  %v4233_v38 = vld [vmem:[#allocation8 + $0x63] sm:$0x1] }
 0x312   : > { %v4791_v7 = vrot.slane %v4784_v28, %v13396_v6  ;;  %v4874_v54 = vrot.slane %v4867_v46, %v13396_v6  ;;  %v5254_v55 = vrot.slane %v5231_v50, %v13216_v18  ;;  %v4957_v39 = vrot.slane %v4950_v56, %v13396_v6  ;;  %v15638_v22 = vld [vmem:[#allocation18_spill] sm:$0xff]  ;;  %v15639_v3 = vld [vmem:[#allocation19_spill] sm:$0xff] }
 0x313   : > { %v5033_v51 = vrot.slane %v5012_v61, %v13396_v6  ;;  %v5116_v8 = vrot.slane %v5095_v47, %v13396_v6  ;;  %v5199_v40 = vrot.slane %v5178_v21, %v13396_v6  ;;  %v4710_v60 = vunpack.c.l.b16 %v4708_v42 }
 0x314   : > { %v4793_v63 = vunpack.c.l.b16 %v4791_v7  ;;  %v4876_v32 = vunpack.c.l.b16 %v4874_v54  ;;  %v5261_v9 = vrot.slane %v5254_v55, %v13216_v18  ;;  %v4959_v13 = vunpack.c.l.b16 %v4957_v39  ;;  %v4316_v55 = vld [vmem:[#allocation8 + $0x64] sm:$0x1]  ;;  %v4399_v39 = vld [vmem:[#allocation8 + $0x65] sm:$0x1] }
 0x315   : > { %v5040_v11 = vrot.slane %v5033_v51, %v13396_v6  ;;  %v5123_v41 = vrot.slane %v5116_v8, %v13396_v6  ;;  %v5206_v24 = vrot.slane %v5199_v40, %v13396_v6  ;;  %v4711_v33 = vrot.slane %v4710_v60, 7  ;;  %v4482_v51 = vld [vmem:[#allocation8 + $0x66] sm:$0x1] }
 0x316   : > { %v4794_v23 = vrot.slane %v4793_v63, 7  ;;  %v4877_v44 = vrot.slane %v4876_v32, 7  ;;  %v5282_v48 = vrot.slane %v5261_v9, %v13396_v6  ;;  %v4960_v49 = vrot.slane %v4959_v13, 7  ;;  %v15640_v60 = vld [vmem:[#allocation20_spill] sm:$0xff] }
 0x317   : > { %v5042_v31 = vunpack.c.l.b16 %v5040_v11  ;;  %v5125_v2 = vunpack.c.l.b16 %v5123_v41  ;;  %v5208_v19 = vunpack.c.l.b16 %v5206_v24  ;;  %v4712_v62 = vsel %vm1389_vm10, %v4711_v33, %v13705_v34 }
 0x318   : > { %v4795_v30 = vsel %vm1389_vm10, %v4794_v23, %v13707_v59  ;;  %v4878_v12 = vsel %vm1389_vm10, %v4877_v44, %v15636_v45  ;;  %v5289_v58 = vrot.slane %v5282_v48, %v13396_v6  ;;  %v4713_v15 = vpack.c.b16 %v4712_v62, %v4712_v62  ;;  %v4565_v44 = vld [vmem:[#allocation8 + $0x67] sm:$0x1] }
 0x319   : > { %v4796_v52 = vpack.c.b16 %v4795_v30, %v4795_v30  ;;  %v4879_v37 = vpack.c.b16 %v4878_v12, %v4878_v12  ;;  %v4961_v17 = vsel %vm1389_vm10, %v4960_v49, %v15637_v57  ;;  %v5043_v27 = vrot.slane %v5042_v31, 7 }
 0x31a   : > { %v4962_v16 = vpack.c.b16 %v4961_v17, %v4961_v17  ;;  %v5126_v25 = vrot.slane %v5125_v2, 7  ;;  %v5209_v43 = vrot.slane %v5208_v19, 7  ;;  %v4720_v34 = vrot.slane %v4713_v15, %v13216_v18 }
 0x31b   : > { %v4803_v59 = vrot.slane %v4796_v52, %v13216_v18  ;;  %v4886_v35 = vrot.slane %v4879_v37, %v13216_v18  ;;  %v5291_v10 = vunpack.c.l.b16 %v5289_v58  ;;  %v5044_v36 = vsel %vm1389_vm10, %v5043_v27, %v15638_v22 }
 0x31c   : > { %v4969_v4 = vrot.slane %v4962_v16, %v13216_v18  ;;  %v5127_v28 = vsel %vm1389_vm10, %v5126_v25, %v15639_v3  ;;  %v5210_v46 = vsel %vm1389_vm10, %v5209_v43, %v13728_v53  ;;  %11387 = vst.sshfl [vmem:[#allocation3 + $0x28] sm:$0x1 pattern:$0x73625140] %v4720_v34  ;;  %v5045_v50 = vpack.c.b16 %v5044_v36, %v5044_v36 }
 0x31d   : > { %11388 = vst.sshfl [vmem:[#allocation3 + $0x29] sm:$0x1 pattern:$0x73625140] %v4803_v59  ;;  %v5128_v56 = vpack.c.b16 %v5127_v28, %v5127_v28  ;;  %v5211_v61 = vpack.c.b16 %v5210_v46, %v5210_v46  ;;  %v5292_v47 = vrot.slane %v5291_v10, 7  ;;  %v3985_v21 = vpack.c.bf16 %v3983_v1, %v3983_v1 }
 0x31e   : > { %11389 = vst.sshfl [vmem:[#allocation3 + $0x2a] sm:$0x1 pattern:$0x73625140] %v4886_v35  ;;  %v4069_v42 = vpack.c.bf16 %v4067_v20, %v4067_v20  ;;  %v4152_v7 = vpack.c.bf16 %v4150_v14, %v4150_v14  ;;  %v4235_v54 = vpack.c.bf16 %v4233_v38, %v4233_v38  ;;  %v5052_v8 = vrot.slane %v5045_v50, %v13216_v18 }
 0x31f   : > { %11390 = vst.sshfl [vmem:[#allocation3 + $0x2b] sm:$0x1 pattern:$0x73625140] %v4969_v4  ;;  %v5135_v40 = vrot.slane %v5128_v56, %v13216_v18  ;;  %v5218_v53 = vrot.slane %v5211_v61, %v13216_v18  ;;  %v5293_v63 = vsel %vm1389_vm10, %v5292_v47, %v15640_v60  ;;  %v4008_v9 = vrot.slane %v3985_v21, %v13216_v18 }
 0x320   : > { %v5294_v32 = vpack.c.b16 %v5293_v63, %v5293_v63  ;;  %v4092_v13 = vrot.slane %v4069_v42, %v13216_v18  ;;  %v4175_v11 = vrot.slane %v4152_v7, %v13216_v18  ;;  %11391 = vst.sshfl [vmem:[#allocation3 + $0x2c] sm:$0x1 pattern:$0x73625140] %v5052_v8  ;;  %v4258_v41 = vrot.slane %v4235_v54, %v13216_v18  ;;  %v12087_v54 = vpop.f32.mrf.mxu0 }
 0x321   : > { %11392 = vst.sshfl [vmem:[#allocation3 + $0x2d] sm:$0x1 pattern:$0x73625140] %v5135_v40  ;;  %v4318_v24 = vpack.c.bf16 %v4316_v55, %v4316_v55  ;;  %v4401_v33 = vpack.c.bf16 %v4399_v39, %v4399_v39  ;;  %v4484_v23 = vpack.c.bf16 %v4482_v51, %v4482_v51  ;;  %v4015_v49 = vrot.slane %v4008_v9, %v13216_v18  ;;  %v15641_v55 = vld [vmem:[#allocation21_spill] sm:$0xff]  ;;  %v15642_v51 = vld [vmem:[#allocation22_spill] sm:$0xff] }
 0x322   : > { %11393 = vst.sshfl [vmem:[#allocation3 + $0x2e] sm:$0x1 pattern:$0x73625140] %v5218_v53  ;;  %v5301_v48 = vrot.slane %v5294_v32, %v13216_v18  ;;  %v4099_v31 = vrot.slane %v4092_v13, %v13216_v18  ;;  %v4182_v2 = vrot.slane %v4175_v11, %v13216_v18  ;;  %v4265_v19 = vrot.slane %v4258_v41, %v13216_v18  ;;  %v15643_v40 = vld [vmem:[#allocation23_spill] sm:$0xff]  ;;  %v15644_v13 = vld [vmem:[#allocation24_spill] sm:$0xff]  ;;  %v12107_v41 = vpop.f32.mrf.mxu1 }
 0x323   : > { %v4341_v62 = vrot.slane %v4318_v24, %v13216_v18  ;;  %v4424_v30 = vrot.slane %v4401_v33, %v13216_v18  ;;  %v4507_v45 = vrot.slane %v4484_v23, %v13216_v18  ;;  %v4036_v12 = vrot.slane %v4015_v49, %v13396_v6 }
 0x324   : > { %11394 = vst.sshfl [vmem:[#allocation3 + $0x2f] sm:$0x1 pattern:$0x73625140] %v5301_v48  ;;  %v4120_v58 = vrot.slane %v4099_v31, %v13396_v6  ;;  %v4203_v15 = vrot.slane %v4182_v2, %v13396_v6  ;;  %v4567_v52 = vpack.c.bf16 %v4565_v44, %v4565_v44  ;;  %v4286_v37 = vrot.slane %v4265_v19, %v13396_v6  ;;  %v1185_v19 = vpop.f32.mrf.mxu0 }
 0x325   : > { %v4348_v57 = vrot.slane %v4341_v62, %v13216_v18  ;;  %v4431_v17 = vrot.slane %v4424_v30, %v13216_v18  ;;  %v4514_v16 = vrot.slane %v4507_v45, %v13216_v18  ;;  %v4043_v27 = vrot.slane %v4036_v12, %v13396_v6  ;;  %v15645_v30 = vld [vmem:[#allocation25_spill] sm:$0xff] }
 0x326   : > { %v4127_v25 = vrot.slane %v4120_v58, %v13396_v6  ;;  %v4210_v43 = vrot.slane %v4203_v15, %v13396_v6  ;;  %v4590_v1 = vrot.slane %v4567_v52, %v13216_v18  ;;  %v4293_v34 = vrot.slane %v4286_v37, %v13396_v6 }
 0x327   : > { %v4369_v59 = vrot.slane %v4348_v57, %v13396_v6  ;;  %v4452_v35 = vrot.slane %v4431_v17, %v13396_v6  ;;  %v4535_v10 = vrot.slane %v4514_v16, %v13396_v6  ;;  %v4045_v20 = vunpack.c.l.b16 %v4043_v27  ;;  %v1290_v17 = vpop.f32.mrf.mxu1 }
 0x328   : > { %v4129_v14 = vunpack.c.l.b16 %v4127_v25  ;;  %v4212_v38 = vunpack.c.l.b16 %v4210_v43  ;;  %v4597_v4 = vrot.slane %v4590_v1, %v13216_v18  ;;  %v4295_v22 = vunpack.c.l.b16 %v4293_v34  ;;  %v15646_v34 = vld [vmem:[#allocation26_spill] sm:$0xff] }
 0x329   : > { %v4376_v36 = vrot.slane %v4369_v59, %v13396_v6  ;;  %v4459_v3 = vrot.slane %v4452_v35, %v13396_v6  ;;  %v4542_v28 = vrot.slane %v4535_v10, %v13396_v6  ;;  %v4046_v46 = vrot.slane %v4045_v20, 7  ;;  %v15647_v35 = vld [vmem:[#allocation39_spill] sm:$0xff] }
 0x32a   : > { %v4130_v50 = vrot.slane %v4129_v14, 7  ;;  %v4213_v56 = vrot.slane %v4212_v38, 7  ;;  %v4618_v61 = vrot.slane %v4597_v4, %v13396_v6  ;;  %v4296_v47 = vrot.slane %v4295_v22, 7  ;;  %v15649_v38 = vld [vmem:[#allocation15_spill] sm:$0xff] }
 0x32b   : > { %v4378_v21 = vunpack.c.l.b16 %v4376_v36  ;;  %v4461_v42 = vunpack.c.l.b16 %v4459_v3  ;;  %v4544_v7 = vunpack.c.l.b16 %v4542_v28  ;;  %v4047_v39 = vsel %vm1389_vm10, %v4046_v46, %v15641_v55  ;;  %v15650_v4 = vld [vmem:[#allocation27_spill] sm:$0xff]  ;;  %v15652_v3 = vld [vmem:[#allocation28_spill] sm:$0xff] }
 0x32c   : > { %v4131_v8 = vsel %vm1389_vm10, %v4130_v50, %v15642_v51  ;;  %v4214_v53 = vsel %vm1389_vm10, %v4213_v56, %v15643_v40  ;;  %v4625_v60 = vrot.slane %v4618_v61, %v13396_v6  ;;  %v4048_v63 = vpack.c.b16 %v4047_v39, %v4047_v39  ;;  %v15654_v50 = vld [vmem:[#allocation29_spill] sm:$0xff] }
 0x32d   : > { %v4132_v32 = vpack.c.b16 %v4131_v8, %v4131_v8  ;;  %v4215_v9 = vpack.c.b16 %v4214_v53, %v4214_v53  ;;  %v4297_v11 = vsel %vm1389_vm10, %v4296_v47, %v15644_v13  ;;  %v4379_v33 = vrot.slane %v4378_v21, 7  ;;  %v15656_v47 = vld [vmem:[#allocation40_spill] sm:$0xff]  ;;  %v15659_v8 = vld [vmem:[#allocation31_spill] sm:$0xff] }
 0x32e   : > { %v4298_v24 = vpack.c.b16 %v4297_v11, %v4297_v11  ;;  %v4462_v23 = vrot.slane %v4461_v42, 7  ;;  %v4545_v44 = vrot.slane %v4544_v7, 7  ;;  %v4055_v48 = vrot.slane %v4048_v63, %v13216_v18  ;;  %v15657_v42 = vld [vmem:[#allocation30_spill] sm:$0xff]  ;;  %v15663_v11 = vld [vmem:[#allocation32_spill] sm:$0xff] }
 0x32f   : > { %v4139_v49 = vrot.slane %v4132_v32, %v13216_v18  ;;  %v4222_v31 = vrot.slane %v4215_v9, %v13216_v18  ;;  %v4627_v2 = vunpack.c.l.b16 %v4625_v60  ;;  %v4380_v45 = vsel %vm1389_vm10, %v4379_v33, %v15645_v30  ;;  %v15661_v60 = vld [vmem:[#allocation35_spill] sm:$0xff] }
 0x330   : > { %v4305_v62 = vrot.slane %v4298_v24, %v13216_v18  ;;  %v4463_v12 = vsel %vm1389_vm10, %v4462_v23, %v13752_v5  ;;  %v4546_v58 = vsel %vm1389_vm10, %v4545_v44, %v13755_v0  ;;  %11379 = vst.sshfl [vmem:[#allocation3 + $0x20] sm:$0x1 pattern:$0x73625140] %v4055_v48  ;;  %v4381_v15 = vpack.c.b16 %v4380_v45, %v4380_v45  ;;  %v15664_v24 = vld [vmem:[#allocation33_spill] sm:$0xff]  ;;  %v15665_v23 = vld [vmem:[#allocation34_spill] sm:$0xff] }
 0x331   : > { %11380 = vst.sshfl [vmem:[#allocation3 + $0x21] sm:$0x1 pattern:$0x73625140] %v4139_v49  ;;  %v4464_v52 = vpack.c.b16 %v4463_v12, %v4463_v12  ;;  %v4547_v37 = vpack.c.b16 %v4546_v58, %v4546_v58  ;;  %v4628_v57 = vrot.slane %v4627_v2, 7  ;;  %v5663_v16 = vrot.slane %v13806_v29, %v13216_v18  ;;  %v15648_v29 = vld [vmem:[#allocation12_spill] sm:$0xff] }
 0x332   : > { %11381 = vst.sshfl [vmem:[#allocation3 + $0x22] sm:$0x1 pattern:$0x73625140] %v4222_v31  ;;  %v5746_v27 = vrot.slane %v13809_v26, %v13216_v18  ;;  %v1296_v25 = vadd.f32 %v12107_v41, %v12087_v54  ;;  %v1291_v5 = vadd.f32 %v1290_v17, %v1185_v19  ;;  %v4388_v43 = vrot.slane %v4381_v15, %v13216_v18  ;;  %v15666_v49 = vld [vmem:[#allocation36_spill] sm:$0xff]  ;;  %v15667_v2 = vld [vmem:[#allocation37_spill] sm:$0xff] }
 0x333   : > { %11382 = vst.sshfl [vmem:[#allocation3 + $0x23] sm:$0x1 pattern:$0x73625140] %v4305_v62  ;;  %v4471_v0 = vrot.slane %v4464_v52, %v13216_v18  ;;  %v4554_v1 = vrot.slane %v4547_v37, %v13216_v18  ;;  %v4629_v59 = vsel %vm1389_vm10, %v4628_v57, %v15646_v34  ;;  %v5829_v10 = vrot.slane %v15647_v35, %v13216_v18  ;;  %v15668_v62 = vld [vmem:[#allocation38_spill] sm:$0xff] }
 0x334   : > { %v4630_v20 = vpack.c.b16 %v4629_v59, %v4629_v59  ;;  %v1306_v14 = vadd.f32 %v1296_v25, %v15648_v29  ;;  %v1305_v26 = vadd.f32 %v1291_v5, %v15649_v38  ;;  %v15651_v22 = vrot.slane %v15650_v4, %v13216_v18  ;;  %11383 = vst.sshfl [vmem:[#allocation3 + $0x24] sm:$0x1 pattern:$0x73625140] %v4388_v43 }
 0x335   : > { %v15653_v28 = vrot.slane %v15652_v3, %v13216_v18  ;;  %v15655_v56 = vrot.slane %v15654_v50, %v13216_v18  ;;  %v5912_v21 = vrot.slane %v15656_v47, %v13216_v18  ;;  %11384 = vst.sshfl [vmem:[#allocation3 + $0x25] sm:$0x1 pattern:$0x73625140] %v4471_v0  ;;  %v15658_v7 = vrot.slane %v15657_v42, %v13216_v18 }
 0x336   : > { %v6514_v36 = vrot.slane %v15651_v22, %v13396_v6  ;;  %11385 = vst.sshfl [vmem:[#allocation3 + $0x26] sm:$0x1 pattern:$0x73625140] %v4554_v1  ;;  %v4637_v55 = vrot.slane %v4630_v20, %v13216_v18  ;;  %v1314_v39 = vmax.f32 %v1306_v14, 0.0  ;;  %v1313_v51 = vmax.f32 %v1305_v26, 0.0 }
 0x337   : > { %v6597_v46 = vrot.slane %v15653_v28, %v13396_v6  ;;  %v5351_v61 = vrot.slane %v15655_v56, %v13396_v6  ;;  %v5435_v54 = vrot.slane %v15658_v7, %v13396_v6  ;;  %v15660_v40 = vrot.slane %v15659_v8, %v13216_v18 }
 0x338   : > { %v15662_v63 = vrot.slane %v15661_v60, %v13216_v18  ;;  %v5684_v9 = vrot.slane %v5663_v16, %v13396_v6  ;;  %v5767_v13 = vrot.slane %v5746_v27, %v13396_v6  ;;  %v6023_v41 = vrot.slane %v15663_v11, %v13396_v6  ;;  %11386 = vst.sshfl [vmem:[#allocation3 + $0x27] sm:$0x1 pattern:$0x73625140] %v4637_v55 }
 0x339   : > { %v5518_v53 = vrot.slane %v15660_v40, %v13396_v6  ;;  %v6106_v33 = vrot.slane %v15664_v24, %v13396_v6  ;;  %v6189_v44 = vrot.slane %v15665_v23, %v13396_v6  ;;  %v5850_v48 = vrot.slane %v5829_v10, %v13396_v6  ;;  %1323 = vst.msk [vmem:[#allocation8 + $0x78] sm:$0xff] %vm1059_vm9, %v1314_v39 }
 0x33a   : > { %v5601_v32 = vrot.slane %v15662_v63, %v13396_v6  ;;  %1322 = vst.msk [vmem:[#allocation8 + $0x70] sm:$0xff] %vm1059_vm9, %v1313_v51  ;;  %v6272_v31 = vrot.slane %v15666_v49, %v13396_v6  ;;  %v6355_v19 = vrot.slane %v15667_v2, %v13396_v6  ;;  %v6438_v30 = vrot.slane %v15668_v62, %v13396_v6 }
 0x33b   : > { %v5933_v45 = vrot.slane %v5912_v21, %v13396_v6  ;;  %v6521_v12 = vrot.slane %v6514_v36, %v13396_v6  ;;  %v6604_v58 = vrot.slane %v6597_v46, %v13396_v6  ;;  %v5358_v15 = vrot.slane %v5351_v61, %v13396_v6 }
 0x33c   : > { %v5442_v52 = vrot.slane %v5435_v54, %v13396_v6  ;;  %v5525_v37 = vrot.slane %v5518_v53, %v13396_v6  ;;  %v5608_v57 = vrot.slane %v5601_v32, %v13396_v6  ;;  %v5691_v17 = vrot.slane %v5684_v9, %v13396_v6 }
 0x33d   : > { %v5774_v16 = vrot.slane %v5767_v13, %v13396_v6  ;;  %v14221_v27 = vunpack.c.l.b16 %v6023_v41  ;;  %v14223_v25 = vunpack.c.l.b16 %v6106_v33  ;;  %v14225_v5 = vunpack.c.l.b16 %v6189_v44 }
 0x33e   : > { %v5857_v43 = vrot.slane %v5850_v48, %v13396_v6  ;;  %v14228_v0 = vunpack.c.l.b16 %v6272_v31  ;;  %v14230_v1 = vunpack.c.l.b16 %v6355_v19  ;;  %v14232_v34 = vunpack.c.l.b16 %v6438_v30 }
 0x33f   : > { %v5940_v59 = vrot.slane %v5933_v45, %v13396_v6  ;;  %v14235_v35 = vunpack.c.l.b16 %v6521_v12  ;;  %v14237_v10 = vunpack.c.l.b16 %v6604_v58  ;;  %v14239_v20 = vunpack.c.l.b16 %v5358_v15 }
 0x340   : > { %v14241_v29 = vunpack.c.l.b16 %v5442_v52  ;;  %v14243_v14 = vunpack.c.l.b16 %v5525_v37  ;;  %v14245_v38 = vunpack.c.l.b16 %v5608_v57  ;;  %v14247_v26 = vunpack.c.l.b16 %v5691_v17  ;;  %v5977_v22 = vld [vmem:[#allocation8 + $0x78] sm:$0x1]  ;;  %v6060_v36 = vld [vmem:[#allocation8 + $0x79] sm:$0x1]  ;;  %v6143_v3 = vld [vmem:[#allocation8 + $0x7a] sm:$0x1] }
 0x341   : > { %v14249_v4 = vunpack.c.l.b16 %v5774_v16  ;;  %v14251_v28 = vunpack.c.l.b16 %v5857_v43  ;;  %v5979_v46 = vpack.c.bf16 %v5977_v22, %v5977_v22  ;;  %v6062_v50 = vpack.c.bf16 %v6060_v36, %v6060_v36  ;;  %v6226_v61 = vld [vmem:[#allocation8 + $0x7b] sm:$0x1]  ;;  %v6309_v47 = vld [vmem:[#allocation8 + $0x7c] sm:$0x1]  ;;  %v6392_v21 = vld [vmem:[#allocation8 + $0x7d] sm:$0x1] }
 0x342   : > { %v6145_v56 = vpack.c.bf16 %v6143_v3, %v6143_v3  ;;  %v14253_v42 = vunpack.c.l.b16 %v5940_v59  ;;  %v6228_v7 = vpack.c.bf16 %v6226_v61, %v6226_v61  ;;  %v6311_v54 = vpack.c.bf16 %v6309_v47, %v6309_v47  ;;  %v6475_v39 = vld [vmem:[#allocation8 + $0x7e] sm:$0x1]  ;;  %v6558_v51 = vld [vmem:[#allocation8 + $0x7f] sm:$0x1] }
 0x343   : > { %v6394_v55 = vpack.c.bf16 %v6392_v21, %v6392_v21  ;;  %v6002_v8 = vrot.slane %v5979_v46, %v13216_v18  ;;  %v6085_v40 = vrot.slane %v6062_v50, %v13216_v18  ;;  %v6477_v60 = vpack.c.bf16 %v6475_v39, %v6475_v39 }
 0x344   : > { %v6168_v53 = vrot.slane %v6145_v56, %v13216_v18  ;;  %v6251_v63 = vrot.slane %v6228_v7, %v13216_v18  ;;  %v6334_v32 = vrot.slane %v6311_v54, %v13216_v18  ;;  %v6560_v13 = vpack.c.bf16 %v6558_v51, %v6558_v51 }
 0x345   : > { %v6417_v9 = vrot.slane %v6394_v55, %v13216_v18  ;;  %v6009_v11 = vrot.slane %v6002_v8, %v13216_v18  ;;  %v6092_v41 = vrot.slane %v6085_v40, %v13216_v18  ;;  %v6500_v33 = vrot.slane %v6477_v60, %v13216_v18 }
 0x346   : > { %v6175_v24 = vrot.slane %v6168_v53, %v13216_v18  ;;  %v6258_v23 = vrot.slane %v6251_v63, %v13216_v18  ;;  %v6341_v44 = vrot.slane %v6334_v32, %v13216_v18  ;;  %v6583_v49 = vrot.slane %v6560_v13, %v13216_v18 }
 0x347   : > { %v6424_v48 = vrot.slane %v6417_v9, %v13216_v18  ;;  %v6030_v31 = vrot.slane %v6009_v11, %v13396_v6  ;;  %v6113_v2 = vrot.slane %v6092_v41, %v13396_v6  ;;  %v6507_v62 = vrot.slane %v6500_v33, %v13216_v18 }
 0x348   : > { %v6196_v19 = vrot.slane %v6175_v24, %v13396_v6  ;;  %v6279_v30 = vrot.slane %v6258_v23, %v13396_v6  ;;  %v6362_v45 = vrot.slane %v6341_v44, %v13396_v6  ;;  %v6590_v58 = vrot.slane %v6583_v49, %v13216_v18  ;;  %v5312_v23 = vld [vmem:[#allocation8 + $0x70] sm:$0x1]  ;;  %v5396_v44 = vld [vmem:[#allocation8 + $0x71] sm:$0x1] }
 0x349   : > { %v6445_v12 = vrot.slane %v6424_v48, %v13396_v6  ;;  %v6037_v15 = vrot.slane %v6030_v31, %v13396_v6  ;;  %v6120_v52 = vrot.slane %v6113_v2, %v13396_v6  ;;  %v6528_v57 = vrot.slane %v6507_v62, %v13396_v6  ;;  %v5562_v2 = vld [vmem:[#allocation8 + $0x73] sm:$0x1] }
 0x34a   : > { %v6203_v37 = vrot.slane %v6196_v19, %v13396_v6  ;;  %v6286_v17 = vrot.slane %v6279_v30, %v13396_v6  ;;  %v6369_v16 = vrot.slane %v6362_v45, %v13396_v6  ;;  %v6611_v59 = vrot.slane %v6590_v58, %v13396_v6  ;;  %v5645_v58 = vld [vmem:[#allocation8 + $0x74] sm:$0x1] }
 0x34b   : > { %v6452_v43 = vrot.slane %v6445_v12, %v13396_v6  ;;  %v6039_v22 = vunpack.c.l.b16 %v6037_v15  ;;  %v6122_v36 = vunpack.c.l.b16 %v6120_v52  ;;  %v6535_v46 = vrot.slane %v6528_v57, %v13396_v6  ;;  %v5728_v15 = vld [vmem:[#allocation8 + $0x75] sm:$0x1]  ;;  %v5811_v52 = vld [vmem:[#allocation8 + $0x76] sm:$0x1] }
 0x34c   : > { %v6205_v3 = vunpack.c.l.b16 %v6203_v37  ;;  %v6288_v50 = vunpack.c.l.b16 %v6286_v17  ;;  %v6371_v56 = vunpack.c.l.b16 %v6369_v16  ;;  %v6618_v47 = vrot.slane %v6611_v59, %v13396_v6 }
 0x34d   : > { %v6454_v61 = vunpack.c.l.b16 %v6452_v43  ;;  %v6040_v21 = vrot.slane %v6039_v22, 7  ;;  %v6123_v7 = vrot.slane %v6122_v36, 7  ;;  %v6537_v55 = vunpack.c.l.b16 %v6535_v46 }
 0x34e   : > { %v6206_v54 = vrot.slane %v6205_v3, 7  ;;  %v6289_v39 = vrot.slane %v6288_v50, 7  ;;  %v6372_v51 = vrot.slane %v6371_v56, 7  ;;  %v6620_v40 = vunpack.c.l.b16 %v6618_v47 }
 0x34f   : > { %v6455_v8 = vrot.slane %v6454_v61, 7  ;;  %v6041_v53 = vsel %vm1389_vm10, %v6040_v21, %v14221_v27  ;;  %v6124_v60 = vsel %vm1389_vm10, %v6123_v7, %v14223_v25  ;;  %v6538_v32 = vrot.slane %v6537_v55, 7  ;;  %v5894_v61 = vld [vmem:[#allocation8 + $0x77] sm:$0x1] }
 0x350   : > { %v6207_v63 = vsel %vm1389_vm10, %v6206_v54, %v14225_v5  ;;  %v6042_v9 = vpack.c.b16 %v6041_v53, %v6041_v53  ;;  %v6125_v13 = vpack.c.b16 %v6124_v60, %v6124_v60  ;;  %v6290_v41 = vsel %vm1389_vm10, %v6289_v39, %v14228_v0  ;;  %v5479_v5 = vld [vmem:[#allocation8 + $0x72] sm:$0x1] }
 0x351   : > { %v6208_v11 = vpack.c.b16 %v6207_v63, %v6207_v63  ;;  %v6291_v24 = vpack.c.b16 %v6290_v41, %v6290_v41  ;;  %v6373_v33 = vsel %vm1389_vm10, %v6372_v51, %v14230_v1  ;;  %v6456_v27 = vsel %vm1389_vm10, %v6455_v8, %v14232_v34 }
 0x352   : > { %v6539_v25 = vsel %vm1389_vm10, %v6538_v32, %v14235_v35  ;;  %v6049_v48 = vrot.slane %v6042_v9, %v13216_v18  ;;  %v6132_v49 = vrot.slane %v6125_v13, %v13216_v18  ;;  %v6374_v0 = vpack.c.b16 %v6373_v33, %v6373_v33 }
 0x353   : > { %v6215_v31 = vrot.slane %v6208_v11, %v13216_v18  ;;  %v6298_v19 = vrot.slane %v6291_v24, %v13216_v18  ;;  %v6457_v1 = vpack.c.b16 %v6456_v27, %v6456_v27  ;;  %v6540_v62 = vpack.c.b16 %v6539_v25, %v6539_v25 }
 0x354   : > { %v6621_v30 = vrot.slane %v6620_v40, 7  ;;  %11403 = vst.sshfl [vmem:[#allocation3 + $0x38] sm:$0x1 pattern:$0x73625140] %v6049_v48  ;;  %v6381_v34 = vrot.slane %v6374_v0, %v13216_v18  ;;  %v5314_v35 = vpack.c.bf16 %v5312_v23, %v5312_v23  ;;  %v5398_v45 = vpack.c.bf16 %v5396_v44, %v5396_v44 }
 0x355   : > { %11404 = vst.sshfl [vmem:[#allocation3 + $0x39] sm:$0x1 pattern:$0x73625140] %v6132_v49  ;;  %v5481_v12 = vpack.c.bf16 %v5479_v5, %v5479_v5  ;;  %v6464_v37 = vrot.slane %v6457_v1, %v13216_v18  ;;  %v6547_v57 = vrot.slane %v6540_v62, %v13216_v18  ;;  %v5564_v16 = vpack.c.bf16 %v5562_v2, %v5562_v2 }
 0x356   : > { %11405 = vst.sshfl [vmem:[#allocation3 + $0x3a] sm:$0x1 pattern:$0x73625140] %v6215_v31  ;;  %v6622_v17 = vsel %vm1389_vm10, %v6621_v30, %v14237_v10  ;;  %v5337_v59 = vrot.slane %v5314_v35, %v13216_v18  ;;  %v5421_v22 = vrot.slane %v5398_v45, %v13216_v18  ;;  %v5647_v46 = vpack.c.bf16 %v5645_v58, %v5645_v58 }
 0x357   : > { %11406 = vst.sshfl [vmem:[#allocation3 + $0x3b] sm:$0x1 pattern:$0x73625140] %v6298_v19  ;;  %v6623_v43 = vpack.c.b16 %v6622_v17, %v6622_v17  ;;  %v5504_v36 = vrot.slane %v5481_v12, %v13216_v18  ;;  %v5587_v3 = vrot.slane %v5564_v16, %v13216_v18  ;;  %v5730_v50 = vpack.c.bf16 %v5728_v15, %v5728_v15 }
 0x358   : > { %11407 = vst.sshfl [vmem:[#allocation3 + $0x3c] sm:$0x1 pattern:$0x73625140] %v6381_v34  ;;  %v5813_v56 = vpack.c.bf16 %v5811_v52, %v5811_v52  ;;  %v5344_v10 = vrot.slane %v5337_v59, %v13216_v18  ;;  %v5428_v21 = vrot.slane %v5421_v22, %v13216_v18  ;;  %v5670_v55 = vrot.slane %v5647_v46, %v13216_v18 }
 0x359   : > { %11408 = vst.sshfl [vmem:[#allocation3 + $0x3d] sm:$0x1 pattern:$0x73625140] %v6464_v37  ;;  %v6630_v47 = vrot.slane %v6623_v43, %v13216_v18  ;;  %v5511_v7 = vrot.slane %v5504_v36, %v13216_v18  ;;  %v5594_v54 = vrot.slane %v5587_v3, %v13216_v18  ;;  %v5753_v39 = vrot.slane %v5730_v50, %v13216_v18 }
 0x35a   : > { %11409 = vst.sshfl [vmem:[#allocation3 + $0x3e] sm:$0x1 pattern:$0x73625140] %v6547_v57  ;;  %v5836_v51 = vrot.slane %v5813_v56, %v13216_v18  ;;  %v5365_v8 = vrot.slane %v5344_v10, %v13396_v6  ;;  %v5449_v40 = vrot.slane %v5428_v21, %v13396_v6  ;;  %v5896_v60 = vpack.c.bf16 %v5894_v61, %v5894_v61 }
 0x35b   : > { %11410 = vst.sshfl [vmem:[#allocation3 + $0x3f] sm:$0x1 pattern:$0x73625140] %v6630_v47  ;;  %v5532_v53 = vrot.slane %v5511_v7, %v13396_v6  ;;  %v5615_v63 = vrot.slane %v5594_v54, %v13396_v6  ;;  %v5677_v32 = vrot.slane %v5670_v55, %v13216_v18  ;;  %v5760_v9 = vrot.slane %v5753_v39, %v13216_v18 }
 0x35c   : > { %v5843_v13 = vrot.slane %v5836_v51, %v13216_v18  ;;  %v5372_v11 = vrot.slane %v5365_v8, %v13396_v6  ;;  %v5456_v41 = vrot.slane %v5449_v40, %v13396_v6  ;;  %v5919_v33 = vrot.slane %v5896_v60, %v13216_v18 }
 0x35d   : > { %v5539_v24 = vrot.slane %v5532_v53, %v13396_v6  ;;  %v5622_v27 = vrot.slane %v5615_v63, %v13396_v6  ;;  %v5698_v25 = vrot.slane %v5677_v32, %v13396_v6  ;;  %v5781_v23 = vrot.slane %v5760_v9, %v13396_v6 }
 0x35e   : > { %v5864_v44 = vrot.slane %v5843_v13, %v13396_v6  ;;  %v5374_v5 = vunpack.c.l.b16 %v5372_v11  ;;  %v5458_v48 = vunpack.c.l.b16 %v5456_v41  ;;  %v5926_v31 = vrot.slane %v5919_v33, %v13216_v18 }
 0x35f   : > { %v5541_v49 = vunpack.c.l.b16 %v5539_v24  ;;  %v5624_v0 = vunpack.c.l.b16 %v5622_v27  ;;  %v5705_v2 = vrot.slane %v5698_v25, %v13396_v6  ;;  %v5788_v19 = vrot.slane %v5781_v23, %v13396_v6 }
 0x360   : > { %v5871_v1 = vrot.slane %v5864_v44, %v13396_v6  ;;  %v5375_v62 = vrot.slane %v5374_v5, 7  ;;  %v5459_v30 = vrot.slane %v5458_v48, 7  ;;  %v5947_v35 = vrot.slane %v5926_v31, %v13396_v6 }
 0x361   : > { %v5542_v34 = vrot.slane %v5541_v49, 7  ;;  %v5625_v45 = vrot.slane %v5624_v0, 7  ;;  %v5707_v12 = vunpack.c.l.b16 %v5705_v2  ;;  %v5790_v58 = vunpack.c.l.b16 %v5788_v19 }
 0x362   : > { %v5873_v15 = vunpack.c.l.b16 %v5871_v1  ;;  %v5376_v52 = vsel %vm1389_vm10, %v5375_v62, %v14239_v20  ;;  %v5460_v37 = vsel %vm1389_vm10, %v5459_v30, %v14241_v29  ;;  %v5954_v17 = vrot.slane %v5947_v35, %v13396_v6 }
 0x363   : > { %v5543_v57 = vsel %vm1389_vm10, %v5542_v34, %v14243_v14  ;;  %v5377_v16 = vpack.c.b16 %v5376_v52, %v5376_v52  ;;  %v5461_v43 = vpack.c.b16 %v5460_v37, %v5460_v37  ;;  %v5626_v22 = vsel %vm1389_vm10, %v5625_v45, %v14245_v38 }
 0x364   : > { %v5544_v59 = vpack.c.b16 %v5543_v57, %v5543_v57  ;;  %v5627_v36 = vpack.c.b16 %v5626_v22, %v5626_v22  ;;  %v5708_v3 = vrot.slane %v5707_v12, 7  ;;  %v5791_v46 = vrot.slane %v5790_v58, 7 }
 0x365   : > { %v5874_v50 = vrot.slane %v5873_v15, 7  ;;  %v5384_v20 = vrot.slane %v5377_v16, %v13216_v18  ;;  %v5468_v56 = vrot.slane %v5461_v43, %v13216_v18  ;;  %v5956_v61 = vunpack.c.l.b16 %v5954_v17 }
 0x366   : > { %v5551_v29 = vrot.slane %v5544_v59, %v13216_v18  ;;  %v5634_v14 = vrot.slane %v5627_v36, %v13216_v18  ;;  %v5709_v6 = vsel %vm1389_vm10, %v5708_v3, %v14247_v26  ;;  %v5792_v47 = vsel %vm1389_vm10, %v5791_v46, %v14249_v4 }
 0x367   : > { %v5875_v38 = vsel %vm1389_vm10, %v5874_v50, %v14251_v28  ;;  %11395 = vst.sshfl [vmem:[#allocation3 + $0x30] sm:$0x1 pattern:$0x73625140] %v5384_v20  ;;  %v5710_v10 = vpack.c.b16 %v5709_v6, %v5709_v6  ;;  %v5793_v21 = vpack.c.b16 %v5792_v47, %v5792_v47  ;;  %v5957_v54 = vrot.slane %v5956_v61, 7 }
 0x368   : > { %11396 = vst.sshfl [vmem:[#allocation3 + $0x31] sm:$0x1 pattern:$0x73625140] %v5468_v56  ;;  %v5876_v7 = vpack.c.b16 %v5875_v38, %v5875_v38 }
 0x369   : > { %11397 = vst.sshfl [vmem:[#allocation3 + $0x32] sm:$0x1 pattern:$0x73625140] %v5551_v29  ;;  %v5717_v55 = vrot.slane %v5710_v10, %v13216_v18  ;;  %v5800_v39 = vrot.slane %v5793_v21, %v13216_v18  ;;  %v5958_v4 = vsel %vm1389_vm10, %v5957_v54, %v14253_v42 }
 0x36a   : > { %11398 = vst.sshfl [vmem:[#allocation3 + $0x33] sm:$0x1 pattern:$0x73625140] %v5634_v14  ;;  %v5883_v26 = vrot.slane %v5876_v7, %v13216_v18  ;;  %v5959_v51 = vpack.c.b16 %v5958_v4, %v5958_v4 }
 0x36b   : > { %11399 = vst.sshfl [vmem:[#allocation3 + $0x34] sm:$0x1 pattern:$0x73625140] %v5717_v55 }
 0x36c   : > { %11400 = vst.sshfl [vmem:[#allocation3 + $0x35] sm:$0x1 pattern:$0x73625140] %v5800_v39  ;;  %v5966_v28 = vrot.slane %v5959_v51, %v13216_v18 }
 0x36d   : > { %11401 = vst.sshfl [vmem:[#allocation3 + $0x36] sm:$0x1 pattern:$0x73625140] %v5883_v26 }
 0x36e   : > { %11402 = vst.sshfl [vmem:[#allocation3 + $0x37] sm:$0x1 pattern:$0x73625140] %v5966_v28 }
 0x36f PF: > { %v12205_v8 = vld [vmem:[%s13174_s24 + $0xe4] ss:$16 sps:$4 sm:$0xff]   ;;  %v12209_v40 = vld [vmem:[%s13174_s24 + $0xe0] ss:$16 sps:$4 sm:$0xff]   ;;  %v13068_v57 = vmov 1966171168   ;;  %v7163_v16 = vlaneseq }
 0x370   : > { %v12207_v42 = vld [vmem:[%s13174_s24 + $0x2e4] ss:$16 sps:$4 sm:$0xff]   ;;  %9833 = vmatprep.subr.bf16.mxu0 %v12205_v8  ;;  %v12210_v53 = vld [vmem:[%s13174_s24 + $0x2e0] ss:$16 sps:$4 sm:$0xff]   ;;  %v7161_v17 = vunpack.c.l.s4 %v13068_v57  ;;  %s11411_s29 = sshll.u32 %s13166_s19, 4  ;;  %vm10512_vm11 = vcmask 1041408  }
 0x371   : > { %9874 = vmatprep.subr.bf16.mxu1 %v12207_v42  ;;  %v12211_v18 = vld [vmem:[%s13174_s24 + $0xc4] ss:$16 sps:$4 sm:$0xff]   ;;  %9834 = vmatpush1.bf16.msra.mxu0 %v12209_v40  ;;  %v12215_v63 = vld [vmem:[%s13174_s24 + $0xc0] ss:$16 sps:$4 sm:$0xff]   ;;  %v14406_v3 = vshrl.u32 %v7163_v16, 7  ;;  %s14419_s30 = scalar_lea.vmem [#allocation3], %s11411_s29 }
 0x372   : > { %9875 = vmatpush1.bf16.msra.mxu1 %v12210_v53  ;;  %v12213_v60 = vld [vmem:[%s13174_s24 + $0x2c4] ss:$16 sps:$4 sm:$0xff]   ;;  %9835 = vmatprep.subr.bf16.mxu0 %v12211_v18  ;;  %v12216_v32 = vld [vmem:[%s13174_s24 + $0x2c0] ss:$16 sps:$4 sm:$0xff]   ;;  %v7162_v36 = vunpack.c.0.s8 %v7161_v17  ;;  %vm10513_vm12 = vcmask 1043458   ;;  %vm10515_vm14 = vcmask 1045508  }
 0x373   : > { %9876 = vmatprep.subr.bf16.mxu1 %v12213_v60  ;;  %v12217_v9 = vld [vmem:[%s13174_s24 + $0xa4] ss:$16 sps:$4 sm:$0xff]   ;;  %v12221_v11 = vld [vmem:[%s13174_s24 + $0xa0] ss:$16 sps:$4 sm:$0xff]   ;;  %vm10514_vm13 = vmor %vm10513_vm12, %vm10512_vm11  ;;  %vm10517_vm0 = vcmask 130054   ;;  %p11924_p5 = scmp.ne.s32.totalorder %s13166_s19, 3 }
 0x374   : > { %v12219_v13 = vld [vmem:[%s13174_s24 + $0x2a4] ss:$16 sps:$4 sm:$0xff]   ;;  %v12222_v41 = vld [vmem:[%s13174_s24 + $0x2a0] ss:$16 sps:$4 sm:$0xff]   ;;  %v14415_v61 = vsub.s32 %v7162_v36, %v14406_v3  ;;  %vm10516_vm15 = vmor %vm10515_vm14, %vm10514_vm13  ;;  %s13071_s17 = smov (!%p11924_p5), 84   ;;  %s13072_s20 = smov (!%p11924_p5), 56  }
 0x375   : > { %9836 = vmatpush1.bf16.msra.mxu0 %v12215_v63  ;;  %v12223_v24 = vld [vmem:[%s13174_s24 + $0x84] ss:$16 sps:$4 sm:$0xff]   ;;  %v12227_v27 = vld [vmem:[%s13174_s24 + $0x80] ss:$16 sps:$4 sm:$0xff]   ;;  %vm10518_vm1 = vmor %vm10517_vm0, %vm10516_vm15  ;;  %s13073_s27 = smov (!%p11924_p5), 100   ;;  %s13074_s21 = smov (!%p11924_p5), 28  }
 0x376   : > { %9877 = vmatpush1.bf16.msra.mxu1 %v12216_v32  ;;  %9837 = vmatprep.subr.bf16.mxu0 %v12217_v9  ;;  %v12225_v33 = vld [vmem:[%s13174_s24 + $0x284] ss:$16 sps:$4 sm:$0xff]   ;;  %v12228_v25 = vld [vmem:[%s13174_s24 + $0x280] ss:$16 sps:$4 sm:$0xff]  }
 0x377   : > { %9878 = vmatprep.subr.bf16.mxu1 %v12219_v13  ;;  %v12229_v23 = vld [vmem:[%s13174_s24 + $0x64] ss:$16 sps:$4 sm:$0xff]   ;;  %v12233_v5 = vld [vmem:[%s13174_s24 + $0x60] ss:$16 sps:$4 sm:$0xff]  }
 0x378   : > { %v12231_v44 = vld [vmem:[%s13174_s24 + $0x264] ss:$16 sps:$4 sm:$0xff]   ;;  %v12234_v48 = vld [vmem:[%s13174_s24 + $0x260] ss:$16 sps:$4 sm:$0xff]  }
 0x379   : > { %9838 = vmatpush1.bf16.msra.mxu0 %v12221_v11  ;;  %v12235_v49 = vld [vmem:[%s13174_s24 + $0x44] ss:$16 sps:$4 sm:$0xff]   ;;  %v12239_v0 = vld [vmem:[%s13174_s24 + $0x40] ss:$16 sps:$4 sm:$0xff]  }
 0x37a   : > { %9879 = vmatpush1.bf16.msra.mxu1 %v12222_v41  ;;  %9839 = vmatprep.subr.bf16.mxu0 %v12223_v24  ;;  %v12237_v31 = vld [vmem:[%s13174_s24 + $0x244] ss:$16 sps:$4 sm:$0xff]   ;;  %v12240_v2 = vld [vmem:[%s13174_s24 + $0x240] ss:$16 sps:$4 sm:$0xff]  }
 0x37b   : > { %9880 = vmatprep.subr.bf16.mxu1 %v12225_v33  ;;  %v12241_v19 = vld [vmem:[%s13174_s24 + $0x24] ss:$16 sps:$4 sm:$0xff]   ;;  %v12245_v62 = vld [vmem:[%s13174_s24 + $0x20] ss:$16 sps:$4 sm:$0xff]  }
 0x37c   : > { %v12243_v1 = vld [vmem:[%s13174_s24 + $0x224] ss:$16 sps:$4 sm:$0xff]   ;;  %v12246_v30 = vld [vmem:[%s13174_s24 + $0x220] ss:$16 sps:$4 sm:$0xff]  }
 0x37d   : > { %9840 = vmatpush1.bf16.msra.mxu0 %v12227_v27  ;;  %v12247_v34 = vld [vmem:[%s13174_s24 + $0x4] ss:$16 sps:$4 sm:$0xff]   ;;  %v12251_v45 = vld [vmem:[%s13174_s24] ss:$16 sps:$4 sm:$0xff]  }
 0x37e   : > { %9881 = vmatpush1.bf16.msra.mxu1 %v12228_v25  ;;  %9841 = vmatprep.subr.bf16.mxu0 %v12229_v23  ;;  %v12249_v35 = vld [vmem:[%s13174_s24 + $0x204] ss:$16 sps:$4 sm:$0xff]   ;;  %v12252_v12 = vld [vmem:[%s13174_s24 + $0x200] ss:$16 sps:$4 sm:$0xff]  }
 0x37f   : > { %9882 = vmatprep.subr.bf16.mxu1 %v12231_v44  ;;  %v12253_v58 = vld [vmem:[%s13174_s24 + $0x1e4] ss:$16 sps:$4 sm:$0xff]   ;;  %v12257_v52 = vld [vmem:[%s13174_s24 + $0x1e0] ss:$16 sps:$4 sm:$0xff]  }
 0x380   : > { %v12255_v15 = vld [vmem:[%s13174_s24 + $0x3e4] ss:$16 sps:$4 sm:$0xff]   ;;  %v12258_v37 = vld [vmem:[%s13174_s24 + $0x3e0] ss:$16 sps:$4 sm:$0xff]  }
 0x381   : > { %9842 = vmatpush1.bf16.msra.mxu0 %v12233_v5  ;;  %v12259_v43 = vld [vmem:[%s13174_s24 + $0x1c4] ss:$16 sps:$4 sm:$0xff]   ;;  %v12263_v22 = vld [vmem:[%s13174_s24 + $0x1c0] ss:$16 sps:$4 sm:$0xff]  }
 0x382   : > { %9883 = vmatpush1.bf16.msra.mxu1 %v12234_v48  ;;  %9843 = vmatprep.subr.bf16.mxu0 %v12235_v49  ;;  %v12261_v59 = vld [vmem:[%s13174_s24 + $0x3c4] ss:$16 sps:$4 sm:$0xff]   ;;  %v12264_v46 = vld [vmem:[%s13174_s24 + $0x3c0] ss:$16 sps:$4 sm:$0xff]  }
 0x383   : > { %9884 = vmatprep.subr.bf16.mxu1 %v12237_v31  ;;  %v12265_v50 = vld [vmem:[%s13174_s24 + $0x1a4] ss:$16 sps:$4 sm:$0xff]   ;;  %v12269_v56 = vld [vmem:[%s13174_s24 + $0x1a0] ss:$16 sps:$4 sm:$0xff]  }
 0x384   : > { %v12267_v20 = vld [vmem:[%s13174_s24 + $0x3a4] ss:$16 sps:$4 sm:$0xff]   ;;  %v12270_v29 = vld [vmem:[%s13174_s24 + $0x3a0] ss:$16 sps:$4 sm:$0xff]  }
 0x385   : > { %9844 = vmatpush1.bf16.msra.mxu0 %v12239_v0  ;;  %v12271_v14 = vld [vmem:[%s13174_s24 + $0x184] ss:$16 sps:$4 sm:$0xff]   ;;  %v12275_v38 = vld [vmem:[%s13174_s24 + $0x180] ss:$16 sps:$4 sm:$0xff]  }
 0x386   : > { %9885 = vmatpush1.bf16.msra.mxu1 %v12240_v2  ;;  %9845 = vmatprep.subr.bf16.mxu0 %v12241_v19  ;;  %v12273_v6 = vld [vmem:[%s13174_s24 + $0x384] ss:$16 sps:$4 sm:$0xff]   ;;  %v12276_v21 = vld [vmem:[%s13174_s24 + $0x380] ss:$16 sps:$4 sm:$0xff]  }
 0x387   : > { %9886 = vmatprep.subr.bf16.mxu1 %v12243_v1  ;;  %v6643_v47 = vld [vmem:[%s14419_s30] sm:$0xff] }
 0x388   : > { %v7166_v10 = vrot.slane %v6643_v47, %v14415_v61  ;;  %v12277_v7 = vld [vmem:[%s13174_s24 + $0x164] ss:$16 sps:$4 sm:$0xff]   ;;  %v12281_v39 = vld [vmem:[%s13174_s24 + $0x160] ss:$16 sps:$4 sm:$0xff]   ;;  %v7159_v42 = vcombine.high %v6643_v47, %v6643_v47 }
 0x389   : > { %9846 = vmatpush1.bf16.msra.mxu0 %v12245_v62  ;;  %v12279_v54 = vld [vmem:[%s13174_s24 + $0x364] ss:$16 sps:$4 sm:$0xff]   ;;  %v12282_v4 = vld [vmem:[%s13174_s24 + $0x360] ss:$16 sps:$4 sm:$0xff]  }
 0x38a   : > { %9887 = vmatpush1.bf16.msra.mxu1 %v12246_v30  ;;  %9847 = vmatprep.subr.bf16.mxu0 %v12247_v34  ;;  %v7174_v55 = vcombine.high %v7166_v10, %v7166_v10  ;;  %v12283_v51 = vld [vmem:[%s13174_s24 + $0x144] ss:$16 sps:$4 sm:$0xff]   ;;  %v12287_v40 = vld [vmem:[%s13174_s24 + $0x140] ss:$16 sps:$4 sm:$0xff]   ;;  %v14445_v63 = vrot.slane %v7159_v42, %v14415_v61  ;;  %v14455_v33 = vrot.slane %v7166_v10, %v14415_v61 }
 0x38b   : > { %9888 = vmatprep.subr.bf16.mxu1 %v12249_v35  ;;  %v12285_v28 = vld [vmem:[%s13174_s24 + $0x344] ss:$16 sps:$4 sm:$0xff]   ;;  %v12288_v53 = vld [vmem:[%s13174_s24 + $0x340] ss:$16 sps:$4 sm:$0xff]  }
 0x38c   : > { %v14429_v26 = vrot.slane %v7174_v55, %v14415_v61  ;;  %v12289_v18 = vld [vmem:[%s13174_s24 + $0x124] ss:$16 sps:$4 sm:$0xff]   ;;  %v12293_v32 = vld [vmem:[%s13174_s24 + $0x120] ss:$16 sps:$4 sm:$0xff]   ;;  %v7175_v41 = vcombine.high %v14445_v63, %v14445_v63  ;;  %v14465_v5 = vcombine.high %v14455_v33, %v14455_v33 }
 0x38d   : > { %9848 = vmatpush1.bf16.msra.mxu0 %v12251_v45  ;;  %v12291_v60 = vld [vmem:[%s13174_s24 + $0x324] ss:$16 sps:$4 sm:$0xff]   ;;  %v12294_v9 = vld [vmem:[%s13174_s24 + $0x320] ss:$16 sps:$4 sm:$0xff]  }
 0x38e   : > { %9889 = vmatpush1.bf16.msra.mxu1 %v12252_v12  ;;  %9849 = vmatprep.subr.bf16.mxu0 %v12253_v58  ;;  %v14436_v8 = vcombine.high %v14429_v26, %v14429_v26  ;;  %v12295_v13 = vld [vmem:[%s13174_s24 + $0x104] ss:$16 sps:$4 sm:$0xff]   ;;  %v12299_v24 = vld [vmem:[%s13174_s24 + $0x100] ss:$16 sps:$4 sm:$0xff]   ;;  %v14461_v44 = vrot.slane %v7175_v41, %v14415_v61 }
 0x38f   : > { %9890 = vmatprep.subr.bf16.mxu1 %v12255_v15  ;;  %9865 = vmatprep.mubr.bf16.mxu0 %v14429_v26  ;;  %v12297_v11 = vld [vmem:[%s13174_s24 + $0x304] ss:$16 sps:$4 sm:$0xff]   ;;  %v12300_v27 = vld [vmem:[%s13174_s24 + $0x300] ss:$16 sps:$4 sm:$0xff]  }
 0x390   : > { %9906 = vmatprep.mubr.bf16.mxu1 %v14436_v8  ;;  %v12303_v25 = vld [vmem:[%s13174_s24 + $0x4e4] ss:$16 sps:$4 sm:$0xff]   ;;  %v12301_v48 = vld [vmem:[%s13174_s24 + $0x4e0] ss:$16 sps:$4 sm:$0xff]   ;;  %v14473_v2 = vcombine.high %v14461_v44, %v14461_v44 }
 0x391   : > { %9850 = vmatpush2.bf16.msra.mxu0 %v12257_v52  ;;  %v12306_v23 = vld [vmem:[%s13174_s24 + $0x6e4] ss:$16 sps:$4 sm:$0xff]   ;;  %v12304_v49 = vld [vmem:[%s13174_s24 + $0x6e0] ss:$16 sps:$4 sm:$0xff]  }
 0x392   : > { %9891 = vmatpush2.bf16.msra.mxu1 %v12258_v37  ;;  %9851 = vmatprep.subr.bf16.mxu0 %v12259_v43  ;;  %v12309_v31 = vld [vmem:[%s13174_s24 + $0x4c4] ss:$16 sps:$4 sm:$0xff]   ;;  %v12307_v19 = vld [vmem:[%s13174_s24 + $0x4c0] ss:$16 sps:$4 sm:$0xff]  }
 0x393   : > { %9892 = vmatprep.subr.bf16.mxu1 %v12261_v59  ;;  %v12312_v0 = vld [vmem:[%s13174_s24 + $0x6c4] ss:$16 sps:$4 sm:$0xff]   ;;  %v12310_v1 = vld [vmem:[%s13174_s24 + $0x6c0] ss:$16 sps:$4 sm:$0xff]  }
 0x394   : > { %v12315_v62 = vld [vmem:[%s13174_s24 + $0x4a4] ss:$16 sps:$4 sm:$0xff]   ;;  %v12313_v34 = vld [vmem:[%s13174_s24 + $0x4a0] ss:$16 sps:$4 sm:$0xff]  }
 0x395   : > { %9852 = vmatpush2.bf16.msra.mxu0 %v12263_v22  ;;  %v12318_v30 = vld [vmem:[%s13174_s24 + $0x6a4] ss:$16 sps:$4 sm:$0xff]   ;;  %v12316_v35 = vld [vmem:[%s13174_s24 + $0x6a0] ss:$16 sps:$4 sm:$0xff]  }
 0x396   : > { %9893 = vmatpush2.bf16.msra.mxu1 %v12264_v46  ;;  %9853 = vmatprep.subr.bf16.mxu0 %v12265_v50  ;;  %v12321_v45 = vld [vmem:[%s13174_s24 + $0x484] ss:$16 sps:$4 sm:$0xff]   ;;  %v12319_v58 = vld [vmem:[%s13174_s24 + $0x480] ss:$16 sps:$4 sm:$0xff]  }
 0x397   : > { %9894 = vmatprep.subr.bf16.mxu1 %v12267_v20  ;;  %v12324_v12 = vld [vmem:[%s13174_s24 + $0x684] ss:$16 sps:$4 sm:$0xff]   ;;  %v12322_v15 = vld [vmem:[%s13174_s24 + $0x680] ss:$16 sps:$4 sm:$0xff]  }
 0x398   : > { %v12327_v52 = vld [vmem:[%s13174_s24 + $0x464] ss:$16 sps:$4 sm:$0xff]   ;;  %v12325_v57 = vld [vmem:[%s13174_s24 + $0x460] ss:$16 sps:$4 sm:$0xff]  }
 0x399   : > { %9854 = vmatpush2.bf16.msra.mxu0 %v12269_v56  ;;  %v12330_v37 = vld [vmem:[%s13174_s24 + $0x664] ss:$16 sps:$4 sm:$0xff]   ;;  %v12328_v17 = vld [vmem:[%s13174_s24 + $0x660] ss:$16 sps:$4 sm:$0xff]  }
 0x39a   : > { %9895 = vmatpush2.bf16.msra.mxu1 %v12270_v29  ;;  %9855 = vmatprep.subr.bf16.mxu0 %v12271_v14  ;;  %v12333_v16 = vld [vmem:[%s13174_s24 + $0x444] ss:$16 sps:$4 sm:$0xff]   ;;  %v12331_v59 = vld [vmem:[%s13174_s24 + $0x440] ss:$16 sps:$4 sm:$0xff]  }
 0x39b   : > { %9896 = vmatprep.subr.bf16.mxu1 %v12273_v6  ;;  %v12336_v43 = vld [vmem:[%s13174_s24 + $0x644] ss:$16 sps:$4 sm:$0xff]   ;;  %v12334_v22 = vld [vmem:[%s13174_s24 + $0x640] ss:$16 sps:$4 sm:$0xff]  }
 0x39c   : > { %v12339_v36 = vld [vmem:[%s13174_s24 + $0x424] ss:$16 sps:$4 sm:$0xff]   ;;  %v12337_v50 = vld [vmem:[%s13174_s24 + $0x420] ss:$16 sps:$4 sm:$0xff]  }
 0x39d   : > { %9856 = vmatpush2.bf16.msra.mxu0 %v12275_v38  ;;  %v12342_v46 = vld [vmem:[%s13174_s24 + $0x624] ss:$16 sps:$4 sm:$0xff]   ;;  %v12340_v20 = vld [vmem:[%s13174_s24 + $0x620] ss:$16 sps:$4 sm:$0xff]  }
 0x39e   : > { %9897 = vmatpush2.bf16.msra.mxu1 %v12276_v21  ;;  %9857 = vmatprep.subr.bf16.mxu0 %v12277_v7  ;;  %v12345_v56 = vld [vmem:[%s13174_s24 + $0x404] ss:$16 sps:$4 sm:$0xff]   ;;  %v12343_v14 = vld [vmem:[%s13174_s24 + $0x400] ss:$16 sps:$4 sm:$0xff]  }
 0x39f   : > { %9898 = vmatprep.subr.bf16.mxu1 %v12279_v54  ;;  %v12348_v29 = vld [vmem:[%s13174_s24 + $0x604] ss:$16 sps:$4 sm:$0xff]   ;;  %v12346_v6 = vld [vmem:[%s13174_s24 + $0x600] ss:$16 sps:$4 sm:$0xff]  }
 0x3a0   : > { %v12351_v47 = vld [vmem:[%s13174_s24 + $0x5e4] ss:$16 sps:$4 sm:$0xff]   ;;  %v12349_v10 = vld [vmem:[%s13174_s24 + $0x5e0] ss:$16 sps:$4 sm:$0xff]  }
 0x3a1   : > { %9858 = vmatpush2.bf16.msra.mxu0 %v12281_v39  ;;  %v12354_v38 = vld [vmem:[%s13174_s24 + $0x7e4] ss:$16 sps:$4 sm:$0xff]   ;;  %v12352_v21 = vld [vmem:[%s13174_s24 + $0x7e0] ss:$16 sps:$4 sm:$0xff]  }
 0x3a2   : > { %9899 = vmatpush2.bf16.msra.mxu1 %v12282_v4  ;;  %9859 = vmatprep.subr.bf16.mxu0 %v12283_v51  ;;  %v12357_v7 = vld [vmem:[%s13174_s24 + $0x5c4] ss:$16 sps:$4 sm:$0xff]   ;;  %v12355_v55 = vld [vmem:[%s13174_s24 + $0x5c0] ss:$16 sps:$4 sm:$0xff]  }
 0x3a3   : > { %9900 = vmatprep.subr.bf16.mxu1 %v12285_v28  ;;  %v12360_v54 = vld [vmem:[%s13174_s24 + $0x7c4] ss:$16 sps:$4 sm:$0xff]   ;;  %v12358_v39 = vld [vmem:[%s13174_s24 + $0x7c0] ss:$16 sps:$4 sm:$0xff]  }
 0x3a4   : > { %v12363_v4 = vld [vmem:[%s13174_s24 + $0x5a4] ss:$16 sps:$4 sm:$0xff]   ;;  %v12361_v28 = vld [vmem:[%s13174_s24 + $0x5a0] ss:$16 sps:$4 sm:$0xff]  }
 0x3a5   : > { %9860 = vmatpush2.bf16.msra.mxu0 %v12287_v40  ;;  %v12366_v51 = vld [vmem:[%s13174_s24 + $0x7a4] ss:$16 sps:$4 sm:$0xff]   ;;  %v12364_v42 = vld [vmem:[%s13174_s24 + $0x7a0] ss:$16 sps:$4 sm:$0xff]  }
 0x3a6   : > { %9901 = vmatpush2.bf16.msra.mxu1 %v12288_v53  ;;  %9861 = vmatprep.subr.bf16.mxu0 %v12289_v18  ;;  %v12369_v40 = vld [vmem:[%s13174_s24 + $0x584] ss:$16 sps:$4 sm:$0xff]   ;;  %v12367_v18 = vld [vmem:[%s13174_s24 + $0x580] ss:$16 sps:$4 sm:$0xff]  }
 0x3a7   : > { %9902 = vmatprep.subr.bf16.mxu1 %v12291_v60  ;;  %v12372_v53 = vld [vmem:[%s13174_s24 + $0x784] ss:$16 sps:$4 sm:$0xff]   ;;  %v12370_v60 = vld [vmem:[%s13174_s24 + $0x780] ss:$16 sps:$4 sm:$0xff]  }
 0x3a8   : > { %v12381_v41 = vld [vmem:[%s13174_s24 + $0x544] ss:$16 sps:$4 sm:$0xff]  }
 0x3a9   : > { %9862 = vmatpush2.bf16.msra.mxu0 %v12293_v32  ;;  %v12375_v32 = vld [vmem:[%s13174_s24 + $0x564] ss:$16 sps:$4 sm:$0xff]  }
 0x3aa   : > { %9903 = vmatpush2.bf16.msra.mxu1 %v12294_v9  ;;  %9863 = vmatprep.subr.bf16.mxu0 %v12295_v13  ;;  %v12378_v9 = vld [vmem:[%s13174_s24 + $0x764] ss:$16 sps:$4 sm:$0xff]   ;;  %v12373_v13 = vld [vmem:[%s13174_s24 + $0x560] ss:$16 sps:$4 sm:$0xff]  }
 0x3ab   : > { %9904 = vmatprep.subr.bf16.mxu1 %v12297_v11  ;;  %v12376_v11 = vld [vmem:[%s13174_s24 + $0x760] ss:$16 sps:$4 sm:$0xff]  }
 0x3ad   : > { %9864 = vmatpush2.bf16.msra.mxu0 %v12299_v24  ;;  %v12384_v24 = vld [vmem:[%s13174_s24 + $0x744] ss:$16 sps:$4 sm:$0xff]  }
 0x3ae   : > { %9905 = vmatpush2.bf16.msra.mxu1 %v12300_v27  ;;  %9915 = vmatprep.subr.bf16.mxu0 %v12303_v25  ;;  %v12379_v27 = vld [vmem:[%s13174_s24 + $0x540] ss:$16 sps:$4 sm:$0xff]  }
 0x3af   : > { %9956 = vmatprep.subr.bf16.mxu1 %v12306_v23  ;;  %v12382_v25 = vld [vmem:[%s13174_s24 + $0x740] ss:$16 sps:$4 sm:$0xff]   ;;  %v12387_v23 = vld [vmem:[%s13174_s24 + $0x524] ss:$16 sps:$4 sm:$0xff]  }
 0x3b0   : > { %9866 = vmatmul.mubr.bf16.vlgmr.msra.gmra.mxu0 %v14455_v33 }
 0x3b1   : > { %9907 = vmatmul.mubr.bf16.vlgmr.msra.gmra.mxu1 %v14465_v5  ;;  %9916 = vmatpush1.bf16.msra.mxu0 %v12301_v48  ;;  %v12390_v48 = vld [vmem:[%s13174_s24 + $0x724] ss:$16 sps:$4 sm:$0xff]  }
 0x3b2   : > { %9957 = vmatpush1.bf16.msra.mxu1 %v12304_v49  ;;  %9917 = vmatprep.subr.bf16.mxu0 %v12309_v31  ;;  %v12385_v49 = vld [vmem:[%s13174_s24 + $0x520] ss:$16 sps:$4 sm:$0xff]  }
 0x3b3   : > { %9958 = vmatprep.subr.bf16.mxu1 %v12312_v0  ;;  %9947 = vmatprep.mubr.bf16.mxu0 %v14461_v44  ;;  %v12388_v31 = vld [vmem:[%s13174_s24 + $0x720] ss:$16 sps:$4 sm:$0xff]   ;;  %v12393_v0 = vld [vmem:[%s13174_s24 + $0x504] ss:$16 sps:$4 sm:$0xff]  }
 0x3b4   : > { %9988 = vmatprep.mubr.bf16.mxu1 %v14473_v2 }
 0x3b5   : > { %9918 = vmatpush1.bf16.msra.mxu0 %v12307_v19  ;;  %v12396_v19 = vld [vmem:[%s13174_s24 + $0x704] ss:$16 sps:$4 sm:$0xff]  }
 0x3b6   : > { %9959 = vmatpush1.bf16.msra.mxu1 %v12310_v1  ;;  %9919 = vmatprep.subr.bf16.mxu0 %v12315_v62  ;;  %v12391_v1 = vld [vmem:[%s13174_s24 + $0x500] ss:$16 sps:$4 sm:$0xff]   ;;  %v14538_v62 = vrot.slane %v14445_v63, %v14415_v61 }
 0x3b7   : > { %9960 = vmatprep.subr.bf16.mxu1 %v12318_v30  ;;  %v12394_v30 = vld [vmem:[%s13174_s24 + $0x700] ss:$16 sps:$4 sm:$0xff]  }
 0x3b8   : > { %v12401_v63 = vld [vmem:[%s13174_s24 + $0xae0] ss:$16 sps:$4 sm:$0xff]  }
 0x3b9   : > { %9920 = vmatpush1.bf16.msra.mxu0 %v12313_v34  ;;  %v12400_v34 = vld [vmem:[%s13174_s24 + $0x8e4] ss:$16 sps:$4 sm:$0xff]  }
 0x3ba   : > { %9961 = vmatpush1.bf16.msra.mxu1 %v12316_v35  ;;  %9921 = vmatprep.subr.bf16.mxu0 %v12321_v45  ;;  %v12403_v35 = vld [vmem:[%s13174_s24 + $0xae4] ss:$16 sps:$4 sm:$0xff]   ;;  %v14545_v45 = vcombine.high %v14538_v62, %v14538_v62 }
 0x3bb   : > { %9962 = vmatprep.subr.bf16.mxu1 %v12324_v12  ;;  %v12398_v12 = vld [vmem:[%s13174_s24 + $0x8e0] ss:$16 sps:$4 sm:$0xff]  }
 0x3bd   : > { %9922 = vmatpush1.bf16.msra.mxu0 %v12319_v58  ;;  %v14550_v58 = vld [vmem:[%s14419_s30 + $0x8] sm:$0xff] }
 0x3be   : > { %9963 = vmatpush1.bf16.msra.mxu1 %v12322_v15  ;;  %9923 = vmatprep.subr.bf16.mxu0 %v12327_v52  ;;  %v12406_v15 = vld [vmem:[%s13174_s24 + $0x8c4] ss:$16 sps:$4 sm:$0xff]  }
 0x3bf   : > { %9964 = vmatprep.subr.bf16.mxu1 %v12330_v37  ;;  %v12409_v52 = vld [vmem:[%s13174_s24 + $0xac4] ss:$16 sps:$4 sm:$0xff]   ;;  %v14556_v37 = vrot.slane %v14550_v58, %v14415_v61 }
 0x3c1   : > { %9924 = vmatpush1.bf16.msra.mxu0 %v12325_v57  ;;  %v7223_v57 = vcombine.high %v14556_v37, %v14556_v37 }
 0x3c2   : > { %9965 = vmatpush1.bf16.msra.mxu1 %v12328_v17  ;;  %9925 = vmatprep.subr.bf16.mxu0 %v12333_v16  ;;  %v12404_v17 = vld [vmem:[%s13174_s24 + $0x8c0] ss:$16 sps:$4 sm:$0xff]  }
 0x3c3   : > { %9966 = vmatprep.subr.bf16.mxu1 %v12336_v43  ;;  %v12407_v16 = vld [vmem:[%s13174_s24 + $0xac0] ss:$16 sps:$4 sm:$0xff]   ;;  %v12412_v43 = vld [vmem:[%s13174_s24 + $0x8a4] ss:$16 sps:$4 sm:$0xff]  }
 0x3c5   : > { %9926 = vmatpush1.bf16.msra.mxu0 %v12331_v59  ;;  %v12415_v59 = vld [vmem:[%s13174_s24 + $0xaa4] ss:$16 sps:$4 sm:$0xff]  }
 0x3c6   : > { %9967 = vmatpush1.bf16.msra.mxu1 %v12334_v22  ;;  %9927 = vmatprep.subr.bf16.mxu0 %v12339_v36  ;;  %v14567_v22 = vrot.slane %v7223_v57, %v14415_v61  ;;  %v12476_v57 = vld [vmem:[%s13174_s24 + $0x940] ss:$16 sps:$4 sm:$0xff]  }
 0x3c7   : > { %9968 = vmatprep.subr.bf16.mxu1 %v12342_v46  ;;  %v12410_v46 = vld [vmem:[%s13174_s24 + $0x8a0] ss:$16 sps:$4 sm:$0xff]  }
 0x3c8   : > { %v14572_v36 = vcombine.high %v14567_v22, %v14567_v22 }
 0x3c9   : > { %9928 = vmatpush1.bf16.msra.mxu0 %v12337_v50  ;;  %v12413_v50 = vld [vmem:[%s13174_s24 + $0xaa0] ss:$16 sps:$4 sm:$0xff]  }
 0x3ca   : > { %9969 = vmatpush1.bf16.msra.mxu1 %v12340_v20  ;;  %9929 = vmatprep.subr.bf16.mxu0 %v12345_v56  ;;  %v12418_v20 = vld [vmem:[%s13174_s24 + $0x884] ss:$16 sps:$4 sm:$0xff]  }
 0x3cb   : > { %9970 = vmatprep.subr.bf16.mxu1 %v12348_v29  ;;  %v12421_v56 = vld [vmem:[%s13174_s24 + $0xa84] ss:$16 sps:$4 sm:$0xff]   ;;  %v12416_v29 = vld [vmem:[%s13174_s24 + $0x880] ss:$16 sps:$4 sm:$0xff]  }
 0x3cd   : > { %9930 = vmatpush1.bf16.msra.mxu0 %v12343_v14  ;;  %v12419_v14 = vld [vmem:[%s13174_s24 + $0xa80] ss:$16 sps:$4 sm:$0xff]  }
 0x3ce   : > { %9971 = vmatpush1.bf16.msra.mxu1 %v12346_v6  ;;  %9931 = vmatprep.subr.bf16.mxu0 %v12351_v47  ;;  %v12424_v6 = vld [vmem:[%s13174_s24 + $0x864] ss:$16 sps:$4 sm:$0xff]  }
 0x3cf   : > { %9972 = vmatprep.subr.bf16.mxu1 %v12354_v38  ;;  %v12427_v47 = vld [vmem:[%s13174_s24 + $0xa64] ss:$16 sps:$4 sm:$0xff]   ;;  %v12422_v38 = vld [vmem:[%s13174_s24 + $0x860] ss:$16 sps:$4 sm:$0xff]  }
 0x3d1   : > { %9932 = vmatpush2.bf16.msra.mxu0 %v12349_v10  ;;  %v12425_v10 = vld [vmem:[%s13174_s24 + $0xa60] ss:$16 sps:$4 sm:$0xff]  }
 0x3d2   : > { %9973 = vmatpush2.bf16.msra.mxu1 %v12352_v21  ;;  %9933 = vmatprep.subr.bf16.mxu0 %v12357_v7  ;;  %v12430_v21 = vld [vmem:[%s13174_s24 + $0x844] ss:$16 sps:$4 sm:$0xff]  }
 0x3d3   : > { %9974 = vmatprep.subr.bf16.mxu1 %v12360_v54  ;;  %v12433_v7 = vld [vmem:[%s13174_s24 + $0xa44] ss:$16 sps:$4 sm:$0xff]   ;;  %v12428_v54 = vld [vmem:[%s13174_s24 + $0x840] ss:$16 sps:$4 sm:$0xff]  }
 0x3d5   : > { %9934 = vmatpush2.bf16.msra.mxu0 %v12355_v55  ;;  %v12431_v55 = vld [vmem:[%s13174_s24 + $0xa40] ss:$16 sps:$4 sm:$0xff]  }
 0x3d6   : > { %9975 = vmatpush2.bf16.msra.mxu1 %v12358_v39  ;;  %9935 = vmatprep.subr.bf16.mxu0 %v12363_v4  ;;  %v12436_v39 = vld [vmem:[%s13174_s24 + $0x824] ss:$16 sps:$4 sm:$0xff]  }
 0x3d7   : > { %9976 = vmatprep.subr.bf16.mxu1 %v12366_v51  ;;  %v12439_v4 = vld [vmem:[%s13174_s24 + $0xa24] ss:$16 sps:$4 sm:$0xff]   ;;  %v12434_v51 = vld [vmem:[%s13174_s24 + $0x820] ss:$16 sps:$4 sm:$0xff]  }
 0x3d9   : > { %9936 = vmatpush2.bf16.msra.mxu0 %v12361_v28  ;;  %v12437_v28 = vld [vmem:[%s13174_s24 + $0xa20] ss:$16 sps:$4 sm:$0xff]  }
 0x3da   : > { %9977 = vmatpush2.bf16.msra.mxu1 %v12364_v42  ;;  %9937 = vmatprep.subr.bf16.mxu0 %v12369_v40  ;;  %v12442_v42 = vld [vmem:[%s13174_s24 + $0x804] ss:$16 sps:$4 sm:$0xff]  }
 0x3db   : > { %9978 = vmatprep.subr.bf16.mxu1 %v12372_v53  ;;  %v12445_v40 = vld [vmem:[%s13174_s24 + $0xa04] ss:$16 sps:$4 sm:$0xff]   ;;  %v12440_v53 = vld [vmem:[%s13174_s24 + $0x800] ss:$16 sps:$4 sm:$0xff]  }
 0x3dd   : > { %9938 = vmatpush2.bf16.msra.mxu0 %v12367_v18  ;;  %v12443_v18 = vld [vmem:[%s13174_s24 + $0xa00] ss:$16 sps:$4 sm:$0xff]  }
 0x3de   : > { %9979 = vmatpush2.bf16.msra.mxu1 %v12370_v60  ;;  %9939 = vmatprep.subr.bf16.mxu0 %v12375_v32  ;;  %v12448_v60 = vld [vmem:[%s13174_s24 + $0x9e4] ss:$16 sps:$4 sm:$0xff]  }
 0x3df   : > { %9980 = vmatprep.subr.bf16.mxu1 %v12378_v9  ;;  %v12451_v32 = vld [vmem:[%s13174_s24 + $0xbe4] ss:$16 sps:$4 sm:$0xff]   ;;  %v12446_v9 = vld [vmem:[%s13174_s24 + $0x9e0] ss:$16 sps:$4 sm:$0xff]  }
 0x3e1   : > { %9940 = vmatpush2.bf16.msra.mxu0 %v12373_v13  ;;  %v12449_v13 = vld [vmem:[%s13174_s24 + $0xbe0] ss:$16 sps:$4 sm:$0xff]  }
 0x3e2   : > { %9981 = vmatpush2.bf16.msra.mxu1 %v12376_v11  ;;  %9941 = vmatprep.subr.bf16.mxu0 %v12381_v41  ;;  %v12454_v11 = vld [vmem:[%s13174_s24 + $0x9c4] ss:$16 sps:$4 sm:$0xff]  }
 0x3e3   : > { %9982 = vmatprep.subr.bf16.mxu1 %v12384_v24  ;;  %v12457_v41 = vld [vmem:[%s13174_s24 + $0xbc4] ss:$16 sps:$4 sm:$0xff]   ;;  %v12452_v24 = vld [vmem:[%s13174_s24 + $0x9c0] ss:$16 sps:$4 sm:$0xff]  }
 0x3e5   : > { %9942 = vmatpush2.bf16.msra.mxu0 %v12379_v27  ;;  %v12455_v27 = vld [vmem:[%s13174_s24 + $0xbc0] ss:$16 sps:$4 sm:$0xff]  }
 0x3e6   : > { %9983 = vmatpush2.bf16.msra.mxu1 %v12382_v25  ;;  %9943 = vmatprep.subr.bf16.mxu0 %v12387_v23  ;;  %v12460_v25 = vld [vmem:[%s13174_s24 + $0x9a4] ss:$16 sps:$4 sm:$0xff]  }
 0x3e7   : > { %9984 = vmatprep.subr.bf16.mxu1 %v12390_v48  ;;  %v12463_v23 = vld [vmem:[%s13174_s24 + $0xba4] ss:$16 sps:$4 sm:$0xff]   ;;  %v12458_v48 = vld [vmem:[%s13174_s24 + $0x9a0] ss:$16 sps:$4 sm:$0xff]  }
 0x3e9   : > { %9944 = vmatpush2.bf16.msra.mxu0 %v12385_v49  ;;  %v12461_v49 = vld [vmem:[%s13174_s24 + $0xba0] ss:$16 sps:$4 sm:$0xff]  }
 0x3ea   : > { %9985 = vmatpush2.bf16.msra.mxu1 %v12388_v31  ;;  %9945 = vmatprep.subr.bf16.mxu0 %v12393_v0  ;;  %v12466_v31 = vld [vmem:[%s13174_s24 + $0x984] ss:$16 sps:$4 sm:$0xff]  }
 0x3eb   : > { %9986 = vmatprep.subr.bf16.mxu1 %v12396_v19  ;;  %v12469_v0 = vld [vmem:[%s13174_s24 + $0xb84] ss:$16 sps:$4 sm:$0xff]   ;;  %v12464_v19 = vld [vmem:[%s13174_s24 + $0x980] ss:$16 sps:$4 sm:$0xff]  }
 0x3ed   : > { %9946 = vmatpush2.bf16.msra.mxu0 %v12391_v1  ;;  %v12467_v1 = vld [vmem:[%s13174_s24 + $0xb80] ss:$16 sps:$4 sm:$0xff]  }
 0x3ee   : > { %9987 = vmatpush2.bf16.msra.mxu1 %v12394_v30  ;;  %9997 = vmatprep.subr.bf16.mxu0 %v12400_v34  ;;  %v12472_v30 = vld [vmem:[%s13174_s24 + $0x964] ss:$16 sps:$4 sm:$0xff]  }
 0x3ef   : > { %10038 = vmatprep.subr.bf16.mxu1 %v12403_v35  ;;  %v12475_v34 = vld [vmem:[%s13174_s24 + $0xb64] ss:$16 sps:$4 sm:$0xff]   ;;  %v12470_v35 = vld [vmem:[%s13174_s24 + $0x960] ss:$16 sps:$4 sm:$0xff]  }
 0x3f0   : > { %9948 = vmatmul.mubr.bf16.vlgmr.msra.gmra.mxu0 %v14538_v62 }
 0x3f1   : > { %9989 = vmatmul.mubr.bf16.vlgmr.msra.gmra.mxu1 %v14545_v45  ;;  %9998 = vmatpush1.bf16.msra.mxu0 %v12398_v12  ;;  %v12473_v12 = vld [vmem:[%s13174_s24 + $0xb60] ss:$16 sps:$4 sm:$0xff]  }
 0x3f2   : > { %10039 = vmatpush1.bf16.msra.mxu1 %v12401_v63  ;;  %9999 = vmatprep.subr.bf16.mxu0 %v12406_v15  ;;  %v12478_v63 = vld [vmem:[%s13174_s24 + $0x944] ss:$16 sps:$4 sm:$0xff]  }
 0x3f3   : > { %10040 = vmatprep.subr.bf16.mxu1 %v12409_v52  ;;  %10029 = vmatprep.mubr.bf16.mxu0 %v14567_v22  ;;  %v12481_v15 = vld [vmem:[%s13174_s24 + $0xb44] ss:$16 sps:$4 sm:$0xff]   ;;  %v7208_v52 = vcombine.high %v14550_v58, %v14550_v58  ;;  %v12482_v58 = vld [vmem:[%s13174_s24 + $0x920] ss:$16 sps:$4 sm:$0xff]  }
 0x3f4   : > { %10070 = vmatprep.mubr.bf16.mxu1 %v14572_v36 }
 0x3f5   : > { %10000 = vmatpush1.bf16.msra.mxu0 %v12404_v17  ;;  %v12479_v17 = vld [vmem:[%s13174_s24 + $0xb40] ss:$16 sps:$4 sm:$0xff]  }
 0x3f6   : > { %10041 = vmatpush1.bf16.msra.mxu1 %v12407_v16  ;;  %10001 = vmatprep.subr.bf16.mxu0 %v12412_v43  ;;  %v12484_v16 = vld [vmem:[%s13174_s24 + $0x924] ss:$16 sps:$4 sm:$0xff]  }
 0x3f7   : > { %10042 = vmatprep.subr.bf16.mxu1 %v12415_v59  ;;  %v12487_v43 = vld [vmem:[%s13174_s24 + $0xb24] ss:$16 sps:$4 sm:$0xff]   ;;  %v14626_v59 = vrot.slane %v7208_v52, %v14415_v61  ;;  %v12545_v52 = vld [vmem:[%s13174_s24 + $0xfe0] ss:$16 sps:$4 sm:$0xff]  }
 0x3f9   : > { %10002 = vmatpush1.bf16.msra.mxu0 %v12410_v46  ;;  %v12485_v46 = vld [vmem:[%s13174_s24 + $0xb20] ss:$16 sps:$4 sm:$0xff]  }
 0x3fa   : > { %10043 = vmatpush1.bf16.msra.mxu1 %v12413_v50  ;;  %10003 = vmatprep.subr.bf16.mxu0 %v12418_v20  ;;  %v12490_v50 = vld [vmem:[%s13174_s24 + $0x904] ss:$16 sps:$4 sm:$0xff]  }
 0x3fb   : > { %10044 = vmatprep.subr.bf16.mxu1 %v12421_v56  ;;  %v12493_v20 = vld [vmem:[%s13174_s24 + $0xb04] ss:$16 sps:$4 sm:$0xff]   ;;  %v7224_v56 = vcombine.high %v14626_v59, %v14626_v59 }
 0x3fd   : > { %10004 = vmatpush1.bf16.msra.mxu0 %v12416_v29  ;;  %v14636_v29 = vrot.slane %v14556_v37, %v14415_v61  ;;  %v12494_v37 = vld [vmem:[%s13174_s24 + $0xce0] ss:$16 sps:$4 sm:$0xff]  }
 0x3fe   : > { %10045 = vmatpush1.bf16.msra.mxu1 %v12419_v14  ;;  %10005 = vmatprep.subr.bf16.mxu0 %v12424_v6  ;;  %v12488_v14 = vld [vmem:[%s13174_s24 + $0x900] ss:$16 sps:$4 sm:$0xff]  }
 0x3ff   : > { %10046 = vmatprep.subr.bf16.mxu1 %v12427_v47  ;;  %v12491_v6 = vld [vmem:[%s13174_s24 + $0xb00] ss:$16 sps:$4 sm:$0xff]   ;;  %v12496_v47 = vld [vmem:[%s13174_s24 + $0xce4] ss:$16 sps:$4 sm:$0xff]  }
 0x401   : > { %10006 = vmatpush1.bf16.msra.mxu0 %v12422_v38  ;;  %v12499_v38 = vld [vmem:[%s13174_s24 + $0xee4] ss:$16 sps:$4 sm:$0xff]  }
 0x402   : > { %10047 = vmatpush1.bf16.msra.mxu1 %v12425_v10  ;;  %10007 = vmatprep.subr.bf16.mxu0 %v12430_v21  ;;  %v14643_v10 = vrot.slane %v7224_v56, %v14415_v61  ;;  %v14647_v21 = vcombine.high %v14636_v29, %v14636_v29  ;;  %v12562_v56 = vld [vmem:[%s13174_s24 + $0xd84] ss:$16 sps:$4 sm:$0xff]  }
 0x403   : > { %10048 = vmatprep.subr.bf16.mxu1 %v12433_v7  ;;  %v12497_v7 = vld [vmem:[%s13174_s24 + $0xee0] ss:$16 sps:$4 sm:$0xff]  }
 0x405   : > { %10008 = vmatpush1.bf16.msra.mxu0 %v12428_v54  ;;  %v12502_v54 = vld [vmem:[%s13174_s24 + $0xcc4] ss:$16 sps:$4 sm:$0xff]  }
 0x406   : > { %10049 = vmatpush1.bf16.msra.mxu1 %v12431_v55  ;;  %10009 = vmatprep.subr.bf16.mxu0 %v12436_v39  ;;  %v12505_v55 = vld [vmem:[%s13174_s24 + $0xec4] ss:$16 sps:$4 sm:$0xff]   ;;  %v14655_v39 = vcombine.high %v14643_v10, %v14643_v10 }
 0x407   : > { %10050 = vmatprep.subr.bf16.mxu1 %v12439_v4  ;;  %v12500_v4 = vld [vmem:[%s13174_s24 + $0xcc0] ss:$16 sps:$4 sm:$0xff]  }
 0x409   : > { %10010 = vmatpush1.bf16.msra.mxu0 %v12434_v51  ;;  %v12503_v51 = vld [vmem:[%s13174_s24 + $0xec0] ss:$16 sps:$4 sm:$0xff]  }
 0x40a   : > { %10051 = vmatpush1.bf16.msra.mxu1 %v12437_v28  ;;  %10011 = vmatprep.subr.bf16.mxu0 %v12442_v42  ;;  %v12508_v28 = vld [vmem:[%s13174_s24 + $0xca4] ss:$16 sps:$4 sm:$0xff]  }
 0x40b   : > { %10052 = vmatprep.subr.bf16.mxu1 %v12445_v40  ;;  %v12511_v42 = vld [vmem:[%s13174_s24 + $0xea4] ss:$16 sps:$4 sm:$0xff]   ;;  %v12506_v40 = vld [vmem:[%s13174_s24 + $0xca0] ss:$16 sps:$4 sm:$0xff]  }
 0x40d   : > { %10012 = vmatpush1.bf16.msra.mxu0 %v12440_v53  ;;  %v12509_v53 = vld [vmem:[%s13174_s24 + $0xea0] ss:$16 sps:$4 sm:$0xff]  }
 0x40e   : > { %10053 = vmatpush1.bf16.msra.mxu1 %v12443_v18  ;;  %10013 = vmatprep.subr.bf16.mxu0 %v12448_v60  ;;  %v12514_v18 = vld [vmem:[%s13174_s24 + $0xc84] ss:$16 sps:$4 sm:$0xff]  }
 0x40f   : > { %10054 = vmatprep.subr.bf16.mxu1 %v12451_v32  ;;  %v12517_v60 = vld [vmem:[%s13174_s24 + $0xe84] ss:$16 sps:$4 sm:$0xff]   ;;  %v12512_v32 = vld [vmem:[%s13174_s24 + $0xc80] ss:$16 sps:$4 sm:$0xff]  }
 0x411   : > { %10014 = vmatpush2.bf16.msra.mxu0 %v12446_v9  ;;  %v12515_v9 = vld [vmem:[%s13174_s24 + $0xe80] ss:$16 sps:$4 sm:$0xff]  }
 0x412   : > { %10055 = vmatpush2.bf16.msra.mxu1 %v12449_v13  ;;  %10015 = vmatprep.subr.bf16.mxu0 %v12454_v11  ;;  %v12520_v13 = vld [vmem:[%s13174_s24 + $0xc64] ss:$16 sps:$4 sm:$0xff]  }
 0x413   : > { %10056 = vmatprep.subr.bf16.mxu1 %v12457_v41  ;;  %v12523_v11 = vld [vmem:[%s13174_s24 + $0xe64] ss:$16 sps:$4 sm:$0xff]   ;;  %v12518_v41 = vld [vmem:[%s13174_s24 + $0xc60] ss:$16 sps:$4 sm:$0xff]  }
 0x415   : > { %10016 = vmatpush2.bf16.msra.mxu0 %v12452_v24  ;;  %v12521_v24 = vld [vmem:[%s13174_s24 + $0xe60] ss:$16 sps:$4 sm:$0xff]  }
 0x416   : > { %10057 = vmatpush2.bf16.msra.mxu1 %v12455_v27  ;;  %10017 = vmatprep.subr.bf16.mxu0 %v12460_v25  ;;  %v12526_v27 = vld [vmem:[%s13174_s24 + $0xc44] ss:$16 sps:$4 sm:$0xff]  }
 0x417   : > { %10058 = vmatprep.subr.bf16.mxu1 %v12463_v23  ;;  %v12529_v25 = vld [vmem:[%s13174_s24 + $0xe44] ss:$16 sps:$4 sm:$0xff]   ;;  %v12524_v23 = vld [vmem:[%s13174_s24 + $0xc40] ss:$16 sps:$4 sm:$0xff]  }
 0x419   : > { %10018 = vmatpush2.bf16.msra.mxu0 %v12458_v48  ;;  %v12527_v48 = vld [vmem:[%s13174_s24 + $0xe40] ss:$16 sps:$4 sm:$0xff]  }
 0x41a   : > { %10059 = vmatpush2.bf16.msra.mxu1 %v12461_v49  ;;  %10019 = vmatprep.subr.bf16.mxu0 %v12466_v31  ;;  %v12532_v49 = vld [vmem:[%s13174_s24 + $0xc24] ss:$16 sps:$4 sm:$0xff]  }
 0x41b   : > { %10060 = vmatprep.subr.bf16.mxu1 %v12469_v0  ;;  %v12535_v31 = vld [vmem:[%s13174_s24 + $0xe24] ss:$16 sps:$4 sm:$0xff]   ;;  %v12530_v0 = vld [vmem:[%s13174_s24 + $0xc20] ss:$16 sps:$4 sm:$0xff]  }
 0x41d   : > { %10020 = vmatpush2.bf16.msra.mxu0 %v12464_v19  ;;  %v12533_v19 = vld [vmem:[%s13174_s24 + $0xe20] ss:$16 sps:$4 sm:$0xff]  }
 0x41e   : > { %10061 = vmatpush2.bf16.msra.mxu1 %v12467_v1  ;;  %10021 = vmatprep.subr.bf16.mxu0 %v12472_v30  ;;  %v12538_v1 = vld [vmem:[%s13174_s24 + $0xc04] ss:$16 sps:$4 sm:$0xff]  }
 0x41f   : > { %10062 = vmatprep.subr.bf16.mxu1 %v12475_v34  ;;  %v12541_v30 = vld [vmem:[%s13174_s24 + $0xe04] ss:$16 sps:$4 sm:$0xff]   ;;  %v12536_v34 = vld [vmem:[%s13174_s24 + $0xc00] ss:$16 sps:$4 sm:$0xff]  }
 0x421   : > { %10022 = vmatpush2.bf16.msra.mxu0 %v12470_v35  ;;  %v12539_v35 = vld [vmem:[%s13174_s24 + $0xe00] ss:$16 sps:$4 sm:$0xff]  }
 0x422   : > { %10063 = vmatpush2.bf16.msra.mxu1 %v12473_v12  ;;  %10023 = vmatprep.subr.bf16.mxu0 %v12478_v63  ;;  %v12544_v12 = vld [vmem:[%s13174_s24 + $0xde4] ss:$16 sps:$4 sm:$0xff]  }
 0x423   : > { %10064 = vmatprep.subr.bf16.mxu1 %v12481_v15  ;;  %v12547_v63 = vld [vmem:[%s13174_s24 + $0xfe4] ss:$16 sps:$4 sm:$0xff]   ;;  %v12542_v15 = vld [vmem:[%s13174_s24 + $0xde0] ss:$16 sps:$4 sm:$0xff]  }
 0x425   : > { %10024 = vmatpush2.bf16.msra.mxu0 %v12476_v57  ;;  %v12550_v57 = vld [vmem:[%s13174_s24 + $0xdc4] ss:$16 sps:$4 sm:$0xff]  }
 0x426   : > { %10065 = vmatpush2.bf16.msra.mxu1 %v12479_v17  ;;  %10025 = vmatprep.subr.bf16.mxu0 %v12484_v16  ;;  %v12553_v17 = vld [vmem:[%s13174_s24 + $0xfc4] ss:$16 sps:$4 sm:$0xff]   ;;  %v12548_v16 = vld [vmem:[%s13174_s24 + $0xdc0] ss:$16 sps:$4 sm:$0xff]  }
 0x427   : > { %10066 = vmatprep.subr.bf16.mxu1 %v12487_v43  ;;  %v12551_v43 = vld [vmem:[%s13174_s24 + $0xfc0] ss:$16 sps:$4 sm:$0xff]  }
 0x429   : > { %10026 = vmatpush2.bf16.msra.mxu0 %v12482_v58  ;;  %v12556_v58 = vld [vmem:[%s13174_s24 + $0xda4] ss:$16 sps:$4 sm:$0xff]  }
 0x42a   : > { %10067 = vmatpush2.bf16.msra.mxu1 %v12485_v46  ;;  %10027 = vmatprep.subr.bf16.mxu0 %v12490_v50  ;;  %v12559_v46 = vld [vmem:[%s13174_s24 + $0xfa4] ss:$16 sps:$4 sm:$0xff]   ;;  %v12554_v50 = vld [vmem:[%s13174_s24 + $0xda0] ss:$16 sps:$4 sm:$0xff]  }
 0x42b   : > { %10068 = vmatprep.subr.bf16.mxu1 %v12493_v20  ;;  %v12557_v20 = vld [vmem:[%s13174_s24 + $0xfa0] ss:$16 sps:$4 sm:$0xff]  }
 0x42d   : > { %10028 = vmatpush2.bf16.msra.mxu0 %v12488_v14  ;;  %v12565_v14 = vld [vmem:[%s13174_s24 + $0xf84] ss:$16 sps:$4 sm:$0xff]  }
 0x42e   : > { %10069 = vmatpush2.bf16.msra.mxu1 %v12491_v6  ;;  %10079 = vmatprep.subr.bf16.mxu0 %v12496_v47  ;;  %v12560_v6 = vld [vmem:[%s13174_s24 + $0xd80] ss:$16 sps:$4 sm:$0xff]  }
 0x42f   : > { %10120 = vmatprep.subr.bf16.mxu1 %v12499_v38  ;;  %v12563_v47 = vld [vmem:[%s13174_s24 + $0xf80] ss:$16 sps:$4 sm:$0xff]   ;;  %v12568_v38 = vld [vmem:[%s13174_s24 + $0xd64] ss:$16 sps:$4 sm:$0xff]  }
 0x430   : > { %10030 = vmatmul.mubr.bf16.vlgmr.msra.gmra.mxu0 %v14636_v29 }
 0x431   : > { %10071 = vmatmul.mubr.bf16.vlgmr.msra.gmra.mxu1 %v14647_v21  ;;  %10080 = vmatpush1.bf16.msra.mxu0 %v12494_v37  ;;  %v12571_v37 = vld [vmem:[%s13174_s24 + $0xf64] ss:$16 sps:$4 sm:$0xff]  }
 0x432   : > { %10121 = vmatpush1.bf16.msra.mxu1 %v12497_v7  ;;  %10081 = vmatprep.subr.bf16.mxu0 %v12502_v54  ;;  %v12566_v7 = vld [vmem:[%s13174_s24 + $0xd60] ss:$16 sps:$4 sm:$0xff]  }
 0x433   : > { %10122 = vmatprep.subr.bf16.mxu1 %v12505_v55  ;;  %10111 = vmatprep.mubr.bf16.mxu0 %v14643_v10  ;;  %v12569_v54 = vld [vmem:[%s13174_s24 + $0xf60] ss:$16 sps:$4 sm:$0xff]   ;;  %v12574_v55 = vld [vmem:[%s13174_s24 + $0xd44] ss:$16 sps:$4 sm:$0xff]  }
 0x434   : > { %10152 = vmatprep.mubr.bf16.mxu1 %v14655_v39 }
 0x435   : > { %10082 = vmatpush1.bf16.msra.mxu0 %v12500_v4  ;;  %v12577_v4 = vld [vmem:[%s13174_s24 + $0xf44] ss:$16 sps:$4 sm:$0xff]  }
 0x436   : > { %10123 = vmatpush1.bf16.msra.mxu1 %v12503_v51  ;;  %10083 = vmatprep.subr.bf16.mxu0 %v12508_v28  ;;  %v12572_v51 = vld [vmem:[%s13174_s24 + $0xd40] ss:$16 sps:$4 sm:$0xff]  }
 0x437   : > { %10124 = vmatprep.subr.bf16.mxu1 %v12511_v42  ;;  %v12575_v28 = vld [vmem:[%s13174_s24 + $0xf40] ss:$16 sps:$4 sm:$0xff]   ;;  %v12580_v42 = vld [vmem:[%s13174_s24 + $0xd24] ss:$16 sps:$4 sm:$0xff]  }
 0x439   : > { %10084 = vmatpush1.bf16.msra.mxu0 %v12506_v40  ;;  %v12583_v40 = vld [vmem:[%s13174_s24 + $0xf24] ss:$16 sps:$4 sm:$0xff]  }
 0x43a   : > { %10125 = vmatpush1.bf16.msra.mxu1 %v12509_v53  ;;  %10085 = vmatprep.subr.bf16.mxu0 %v12514_v18  ;;  %v12578_v53 = vld [vmem:[%s13174_s24 + $0xd20] ss:$16 sps:$4 sm:$0xff]  }
 0x43b   : > { %10126 = vmatprep.subr.bf16.mxu1 %v12517_v60  ;;  %v12581_v18 = vld [vmem:[%s13174_s24 + $0xf20] ss:$16 sps:$4 sm:$0xff]   ;;  %v12586_v60 = vld [vmem:[%s13174_s24 + $0xd04] ss:$16 sps:$4 sm:$0xff]  }
 0x43d   : > { %10086 = vmatpush1.bf16.msra.mxu0 %v12512_v32  ;;  %v12589_v32 = vld [vmem:[%s13174_s24 + $0xf04] ss:$16 sps:$4 sm:$0xff]  }
 0x43e   : > { %10127 = vmatpush1.bf16.msra.mxu1 %v12515_v9  ;;  %10087 = vmatprep.subr.bf16.mxu0 %v12520_v13  ;;  %v14719_v9 = vrot.slane %v14626_v59, %v14415_v61  ;;  %v12584_v13 = vld [vmem:[%s13174_s24 + $0xd00] ss:$16 sps:$4 sm:$0xff]   ;;  %v12594_v59 = vld [vmem:[%s13174_s24 + $0x2e8] ss:$16 sps:$4 sm:$0xff]  }
 0x43f   : > { %10128 = vmatprep.subr.bf16.mxu1 %v12523_v11  ;;  %v12587_v11 = vld [vmem:[%s13174_s24 + $0xf00] ss:$16 sps:$4 sm:$0xff]  }
 0x441   : > { %10088 = vmatpush1.bf16.msra.mxu0 %v12518_v41  ;;  %v12593_v41 = vld [vmem:[%s13174_s24 + $0xec] ss:$16 sps:$4 sm:$0xff]  }
 0x442   : > { %10129 = vmatpush1.bf16.msra.mxu1 %v12521_v24  ;;  %10089 = vmatprep.subr.bf16.mxu0 %v12526_v27  ;;  %v12596_v24 = vld [vmem:[%s13174_s24 + $0x2ec] ss:$16 sps:$4 sm:$0xff]   ;;  %v14727_v27 = vcombine.high %v14719_v9, %v14719_v9 }
 0x443   : > { %10130 = vmatprep.subr.bf16.mxu1 %v12529_v25  ;;  %v12591_v25 = vld [vmem:[%s13174_s24 + $0xe8] ss:$16 sps:$4 sm:$0xff]  }
 0x445   : > { %10090 = vmatpush1.bf16.msra.mxu0 %v12524_v23  ;;  %v12599_v23 = vld [vmem:[%s13174_s24 + $0xcc] ss:$16 sps:$4 sm:$0xff]  }
 0x446   : > { %10131 = vmatpush1.bf16.msra.mxu1 %v12527_v48  ;;  %10091 = vmatprep.subr.bf16.mxu0 %v12532_v49  ;;  %v12602_v48 = vld [vmem:[%s13174_s24 + $0x2cc] ss:$16 sps:$4 sm:$0xff]   ;;  %v12597_v49 = vld [vmem:[%s13174_s24 + $0xc8] ss:$16 sps:$4 sm:$0xff]  }
 0x447   : > { %10132 = vmatprep.subr.bf16.mxu1 %v12535_v31 }
 0x449   : > { %10092 = vmatpush1.bf16.msra.mxu0 %v12530_v0 }
 0x44a   : > { %10133 = vmatpush1.bf16.msra.mxu1 %v12533_v19  ;;  %10093 = vmatprep.subr.bf16.mxu0 %v12538_v1  ;;  %v12600_v19 = vld [vmem:[%s13174_s24 + $0x2c8] ss:$16 sps:$4 sm:$0xff]  }
 0x44b   : > { %10134 = vmatprep.subr.bf16.mxu1 %v12541_v30 }
 0x44d   : > { %10094 = vmatpush1.bf16.msra.mxu0 %v12536_v34 }
 0x44e   : > { %10135 = vmatpush1.bf16.msra.mxu1 %v12539_v35  ;;  %10095 = vmatprep.subr.bf16.mxu0 %v12544_v12  ;;  %v12605_v35 = vld [vmem:[%s13174_s24 + $0xac] ss:$16 sps:$4 sm:$0xff]  }
 0x44f   : > { %10136 = vmatprep.subr.bf16.mxu1 %v12547_v63  ;;  %v12608_v12 = vld [vmem:[%s13174_s24 + $0x2ac] ss:$16 sps:$4 sm:$0xff]  }
 0x451   : > { %10096 = vmatpush2.bf16.msra.mxu0 %v12542_v15  ;;  %v12603_v15 = vld [vmem:[%s13174_s24 + $0xa8] ss:$16 sps:$4 sm:$0xff]  }
 0x452   : > { %10137 = vmatpush2.bf16.msra.mxu1 %v12545_v52  ;;  %10097 = vmatprep.subr.bf16.mxu0 %v12550_v57  ;;  %v12606_v52 = vld [vmem:[%s13174_s24 + $0x2a8] ss:$16 sps:$4 sm:$0xff]  }
 0x453   : > { %10138 = vmatprep.subr.bf16.mxu1 %v12553_v17 }
 0x455   : > { %10098 = vmatpush2.bf16.msra.mxu0 %v12548_v16 }
 0x456   : > { %10139 = vmatpush2.bf16.msra.mxu1 %v12551_v43  ;;  %10099 = vmatprep.subr.bf16.mxu0 %v12556_v58  ;;  %v12611_v58 = vld [vmem:[%s13174_s24 + $0x8c] ss:$16 sps:$4 sm:$0xff]  }
 0x457   : > { %10140 = vmatprep.subr.bf16.mxu1 %v12559_v46  ;;  %v12614_v46 = vld [vmem:[%s13174_s24 + $0x28c] ss:$16 sps:$4 sm:$0xff]  }
 0x459   : > { %10100 = vmatpush2.bf16.msra.mxu0 %v12554_v50  ;;  %v12617_v50 = vld [vmem:[%s13174_s24 + $0x6c] ss:$16 sps:$4 sm:$0xff]  }
 0x45a   : > { %10141 = vmatpush2.bf16.msra.mxu1 %v12557_v20  ;;  %10101 = vmatprep.subr.bf16.mxu0 %v12562_v56  ;;  %v12620_v20 = vld [vmem:[%s13174_s24 + $0x26c] ss:$16 sps:$4 sm:$0xff]   ;;  %v12615_v56 = vld [vmem:[%s13174_s24 + $0x68] ss:$16 sps:$4 sm:$0xff]  }
 0x45b   : > { %10142 = vmatprep.subr.bf16.mxu1 %v12565_v14  ;;  %v12618_v14 = vld [vmem:[%s13174_s24 + $0x268] ss:$16 sps:$4 sm:$0xff]  }
 0x45d   : > { %10102 = vmatpush2.bf16.msra.mxu0 %v12560_v6  ;;  %v12623_v6 = vld [vmem:[%s13174_s24 + $0x4c] ss:$16 sps:$4 sm:$0xff]  }
 0x45e   : > { %10143 = vmatpush2.bf16.msra.mxu1 %v12563_v47  ;;  %10103 = vmatprep.subr.bf16.mxu0 %v12568_v38  ;;  %v12626_v47 = vld [vmem:[%s13174_s24 + $0x24c] ss:$16 sps:$4 sm:$0xff]   ;;  %v12621_v38 = vld [vmem:[%s13174_s24 + $0x48] ss:$16 sps:$4 sm:$0xff]  }
 0x45f   : > { %10144 = vmatprep.subr.bf16.mxu1 %v12571_v37  ;;  %v12624_v37 = vld [vmem:[%s13174_s24 + $0x248] ss:$16 sps:$4 sm:$0xff]  }
 0x461   : > { %10104 = vmatpush2.bf16.msra.mxu0 %v12566_v7  ;;  %v12629_v7 = vld [vmem:[%s13174_s24 + $0x2c] ss:$16 sps:$4 sm:$0xff]  }
 0x462   : > { %10145 = vmatpush2.bf16.msra.mxu1 %v12569_v54  ;;  %10105 = vmatprep.subr.bf16.mxu0 %v12574_v55  ;;  %v12632_v54 = vld [vmem:[%s13174_s24 + $0x22c] ss:$16 sps:$4 sm:$0xff]   ;;  %v12627_v55 = vld [vmem:[%s13174_s24 + $0x28] ss:$16 sps:$4 sm:$0xff]  }
 0x463   : > { %10146 = vmatprep.subr.bf16.mxu1 %v12577_v4  ;;  %v12630_v4 = vld [vmem:[%s13174_s24 + $0x228] ss:$16 sps:$4 sm:$0xff]  }
 0x465   : > { %10106 = vmatpush2.bf16.msra.mxu0 %v12572_v51  ;;  %v12635_v51 = vld [vmem:[%s13174_s24 + $0xc] ss:$16 sps:$4 sm:$0xff]  }
 0x466   : > { %10147 = vmatpush2.bf16.msra.mxu1 %v12575_v28  ;;  %10107 = vmatprep.subr.bf16.mxu0 %v12580_v42  ;;  %v12638_v28 = vld [vmem:[%s13174_s24 + $0x20c] ss:$16 sps:$4 sm:$0xff]   ;;  %v12633_v42 = vld [vmem:[%s13174_s24 + $0x8] ss:$16 sps:$4 sm:$0xff]  }
 0x467   : > { %10148 = vmatprep.subr.bf16.mxu1 %v12583_v40  ;;  %v12636_v40 = vld [vmem:[%s13174_s24 + $0x208] ss:$16 sps:$4 sm:$0xff]  }
 0x469   : > { %10108 = vmatpush2.bf16.msra.mxu0 %v12578_v53  ;;  %v12641_v53 = vld [vmem:[%s13174_s24 + $0x1ec] ss:$16 sps:$4 sm:$0xff]  }
 0x46a   : > { %10149 = vmatpush2.bf16.msra.mxu1 %v12581_v18  ;;  %10109 = vmatprep.subr.bf16.mxu0 %v12586_v60  ;;  %v12644_v18 = vld [vmem:[%s13174_s24 + $0x3ec] ss:$16 sps:$4 sm:$0xff]   ;;  %v12639_v60 = vld [vmem:[%s13174_s24 + $0x1e8] ss:$16 sps:$4 sm:$0xff]  }
 0x46b   : > { %10150 = vmatprep.subr.bf16.mxu1 %v12589_v32  ;;  %v12642_v32 = vld [vmem:[%s13174_s24 + $0x3e8] ss:$16 sps:$4 sm:$0xff]  }
 0x46d   : > { %10110 = vmatpush2.bf16.msra.mxu0 %v12584_v13  ;;  %v12647_v13 = vld [vmem:[%s13174_s24 + $0x1cc] ss:$16 sps:$4 sm:$0xff]  }
 0x46e   : > { %10151 = vmatpush2.bf16.msra.mxu1 %v12587_v11  ;;  %10161 = vmatprep.subr.bf16.mxu0 %v12593_v41  ;;  %v12650_v11 = vld [vmem:[%s13174_s24 + $0x3cc] ss:$16 sps:$4 sm:$0xff]   ;;  %v12645_v41 = vld [vmem:[%s13174_s24 + $0x1c8] ss:$16 sps:$4 sm:$0xff]  }
 0x46f   : > { %10202 = vmatprep.subr.bf16.mxu1 %v12596_v24  ;;  %v12648_v24 = vld [vmem:[%s13174_s24 + $0x3c8] ss:$16 sps:$4 sm:$0xff]  }
 0x470   : > { %v9867_v31 = vpop.f32.mrf.mxu0  ;;  %10112 = vmatmul.mubr.bf16.vlgmr.msra.gmra.mxu0 %v14719_v9 }
 0x471   : > { %v9908_v0 = vpop.f32.mrf.mxu1  ;;  %10153 = vmatmul.mubr.bf16.vlgmr.msra.gmra.mxu1 %v14727_v27  ;;  %10162 = vmatpush1.bf16.msra.mxu0 %v12591_v25  ;;  %v12653_v25 = vld [vmem:[%s13174_s24 + $0x1ac] ss:$16 sps:$4 sm:$0xff]  }
 0x472   : > { %v14737_v1 = vadd.f32 %v9908_v0, %v9867_v31  ;;  %10203 = vmatpush1.bf16.msra.mxu1 %v12594_v59  ;;  %v9869_v30 = vpop.f32.mrf.mxu0  ;;  %10163 = vmatprep.subr.bf16.mxu0 %v12599_v23  ;;  %v12656_v59 = vld [vmem:[%s13174_s24 + $0x3ac] ss:$16 sps:$4 sm:$0xff]   ;;  %v12651_v23 = vld [vmem:[%s13174_s24 + $0x1a8] ss:$16 sps:$4 sm:$0xff]  }
 0x473   : > { %v9910_v34 = vpop.f32.mrf.mxu1  ;;  %10204 = vmatprep.subr.bf16.mxu1 %v12602_v48  ;;  %10193 = vmatprep.mubr.bf16.mxu0 %v14429_v26  ;;  %v12609_v26 = vld [vmem:[%s13174_s24 + $0x88] ss:$16 sps:$4 sm:$0xff]   ;;  %v12662_v31 = vld [vmem:[%s13174_s24 + $0x38c] ss:$16 sps:$4 sm:$0xff]  }
 0x474   : > { %v14741_v63 = vadd.f32 %v9910_v34, %v9869_v30  ;;  %10234 = vmatprep.mubr.bf16.mxu1 %v14436_v8  ;;  %v9871_v57 = vpop.f32.mrf.mxu0  ;;  %v12612_v8 = vld [vmem:[%s13174_s24 + $0x288] ss:$16 sps:$4 sm:$0xff]   ;;  %v12665_v30 = vld [vmem:[%s13174_s24 + $0x16c] ss:$16 sps:$4 sm:$0xff]  }
 0x475   : > { %v9912_v17 = vpop.f32.mrf.mxu1  ;;  %10164 = vmatpush1.bf16.msra.mxu0 %v12597_v49  ;;  %v12654_v48 = vld [vmem:[%s13174_s24 + $0x3a8] ss:$16 sps:$4 sm:$0xff]   ;;  %v12659_v49 = vld [vmem:[%s13174_s24 + $0x18c] ss:$16 sps:$4 sm:$0xff]  }
 0x476   : > { %10205 = vmatpush1.bf16.msra.mxu1 %v12600_v19  ;;  %v9872_v16 = vpop.f32.mrf.mxu0  ;;  %10165 = vmatprep.subr.bf16.mxu0 %v12605_v35  ;;  %v12657_v0 = vld [vmem:[%s13174_s24 + $0x188] ss:$16 sps:$4 sm:$0xff]   ;;  %v12668_v34 = vld [vmem:[%s13174_s24 + $0x36c] ss:$16 sps:$4 sm:$0xff]  }
 0x477   : > { %v9913_v43 = vpop.f32.mrf.mxu1  ;;  %10206 = vmatprep.subr.bf16.mxu1 %v12608_v12  ;;  %v12660_v19 = vld [vmem:[%s13174_s24 + $0x388] ss:$16 sps:$4 sm:$0xff]   ;;  %v12677_v16 = vld [vmem:[%s13174_s24 + $0x12c] ss:$16 sps:$4 sm:$0xff]  }
 0x478   : > { %v12663_v35 = vld [vmem:[%s13174_s24 + $0x168] ss:$16 sps:$4 sm:$0xff]   ;;  %v12680_v43 = vld [vmem:[%s13174_s24 + $0x32c] ss:$16 sps:$4 sm:$0xff]  }
 0x479   : > { %10166 = vmatpush1.bf16.msra.mxu0 %v12603_v15  ;;  %v12666_v12 = vld [vmem:[%s13174_s24 + $0x368] ss:$16 sps:$4 sm:$0xff]   ;;  %v12671_v15 = vld [vmem:[%s13174_s24 + $0x14c] ss:$16 sps:$4 sm:$0xff]  }
 0x47a   : > { %10207 = vmatpush1.bf16.msra.mxu1 %v12606_v52  ;;  %10167 = vmatprep.subr.bf16.mxu0 %v12611_v58  ;;  %v12674_v52 = vld [vmem:[%s13174_s24 + $0x34c] ss:$16 sps:$4 sm:$0xff]   ;;  %v12669_v57 = vld [vmem:[%s13174_s24 + $0x148] ss:$16 sps:$4 sm:$0xff]  }
 0x47b   : > { %10208 = vmatprep.subr.bf16.mxu1 %v12614_v46  ;;  %v12672_v17 = vld [vmem:[%s13174_s24 + $0x348] ss:$16 sps:$4 sm:$0xff]  }
 0x47c   : > { %v12675_v58 = vld [vmem:[%s13174_s24 + $0x128] ss:$16 sps:$4 sm:$0xff]  }
 0x47d   : > { %10168 = vmatpush1.bf16.msra.mxu0 %v12609_v26  ;;  %v12678_v46 = vld [vmem:[%s13174_s24 + $0x328] ss:$16 sps:$4 sm:$0xff]   ;;  %v12683_v26 = vld [vmem:[%s13174_s24 + $0x10c] ss:$16 sps:$4 sm:$0xff]  }
 0x47e   : > { %10209 = vmatpush1.bf16.msra.mxu1 %v12612_v8  ;;  %10169 = vmatprep.subr.bf16.mxu0 %v12617_v50  ;;  %v12686_v8 = vld [vmem:[%s13174_s24 + $0x30c] ss:$16 sps:$4 sm:$0xff]   ;;  %v12681_v50 = vld [vmem:[%s13174_s24 + $0x108] ss:$16 sps:$4 sm:$0xff]  }
 0x47f   : > { %10210 = vmatprep.subr.bf16.mxu1 %v12620_v20  ;;  %v12684_v20 = vld [vmem:[%s13174_s24 + $0x308] ss:$16 sps:$4 sm:$0xff]  }
 0x481   : > { %10170 = vmatpush1.bf16.msra.mxu0 %v12615_v56  ;;  %v12689_v56 = vld [vmem:[%s13174_s24 + $0x4ec] ss:$16 sps:$4 sm:$0xff]  }
 0x482   : > { %10211 = vmatpush1.bf16.msra.mxu1 %v12618_v14  ;;  %10171 = vmatprep.subr.bf16.mxu0 %v12623_v6  ;;  %v12692_v14 = vld [vmem:[%s13174_s24 + $0x6ec] ss:$16 sps:$4 sm:$0xff]   ;;  %v12687_v6 = vld [vmem:[%s13174_s24 + $0x4e8] ss:$16 sps:$4 sm:$0xff]  }
 0x483   : > { %10212 = vmatprep.subr.bf16.mxu1 %v12626_v47  ;;  %v12690_v47 = vld [vmem:[%s13174_s24 + $0x6e8] ss:$16 sps:$4 sm:$0xff]  }
 0x485   : > { %10172 = vmatpush1.bf16.msra.mxu0 %v12621_v38  ;;  %v12695_v38 = vld [vmem:[%s13174_s24 + $0x4cc] ss:$16 sps:$4 sm:$0xff]  }
 0x486   : > { %10213 = vmatpush1.bf16.msra.mxu1 %v12624_v37  ;;  %10173 = vmatprep.subr.bf16.mxu0 %v12629_v7  ;;  %v12698_v37 = vld [vmem:[%s13174_s24 + $0x6cc] ss:$16 sps:$4 sm:$0xff]  }
 0x487   : > { %10214 = vmatprep.subr.bf16.mxu1 %v12632_v54 }
 0x489   : > { %10174 = vmatpush1.bf16.msra.mxu0 %v12627_v55 }
 0x48a   : > { %10215 = vmatpush1.bf16.msra.mxu1 %v12630_v4  ;;  %10175 = vmatprep.subr.bf16.mxu0 %v12635_v51  ;;  %v12693_v4 = vld [vmem:[%s13174_s24 + $0x4c8] ss:$16 sps:$4 sm:$0xff]  }
 0x48b   : > { %10216 = vmatprep.subr.bf16.mxu1 %v12638_v28  ;;  %v12696_v51 = vld [vmem:[%s13174_s24 + $0x6c8] ss:$16 sps:$4 sm:$0xff]  }
 0x48d   : > { %10176 = vmatpush1.bf16.msra.mxu0 %v12633_v42 }
 0x48e   : > { %10217 = vmatpush1.bf16.msra.mxu1 %v12636_v40  ;;  %10177 = vmatprep.subr.bf16.mxu0 %v12641_v53  ;;  %v12701_v40 = vld [vmem:[%s13174_s24 + $0x4ac] ss:$16 sps:$4 sm:$0xff]  }
 0x48f   : > { %10218 = vmatprep.subr.bf16.mxu1 %v12644_v18  ;;  %v12704_v53 = vld [vmem:[%s13174_s24 + $0x6ac] ss:$16 sps:$4 sm:$0xff]  }
 0x491   : > { %10178 = vmatpush2.bf16.msra.mxu0 %v12639_v60 }
 0x492   : > { %10219 = vmatpush2.bf16.msra.mxu1 %v12642_v32  ;;  %10179 = vmatprep.subr.bf16.mxu0 %v12647_v13  ;;  %v12699_v32 = vld [vmem:[%s13174_s24 + $0x4a8] ss:$16 sps:$4 sm:$0xff]  }
 0x493   : > { %10220 = vmatprep.subr.bf16.mxu1 %v12650_v11  ;;  %v12702_v13 = vld [vmem:[%s13174_s24 + $0x6a8] ss:$16 sps:$4 sm:$0xff]  }
 0x495   : > { %10180 = vmatpush2.bf16.msra.mxu0 %v12645_v41 }
 0x496   : > { %10221 = vmatpush2.bf16.msra.mxu1 %v12648_v24  ;;  %10181 = vmatprep.subr.bf16.mxu0 %v12653_v25  ;;  %v12708_v24 = vld [vmem:[%s13174_s24 + $0x688] ss:$16 sps:$4 sm:$0xff]   ;;  %v12713_v25 = vld [vmem:[%s13174_s24 + $0x46c] ss:$16 sps:$4 sm:$0xff]  }
 0x497   : > { %10222 = vmatprep.subr.bf16.mxu1 %v12656_v59  ;;  %v12716_v59 = vld [vmem:[%s13174_s24 + $0x66c] ss:$16 sps:$4 sm:$0xff]  }
 0x499   : > { %10182 = vmatpush2.bf16.msra.mxu0 %v12651_v23  ;;  %v12711_v23 = vld [vmem:[%s13174_s24 + $0x468] ss:$16 sps:$4 sm:$0xff]  }
 0x49a   : > { %10223 = vmatpush2.bf16.msra.mxu1 %v12654_v48  ;;  %10183 = vmatprep.subr.bf16.mxu0 %v12659_v49  ;;  %v12714_v48 = vld [vmem:[%s13174_s24 + $0x668] ss:$16 sps:$4 sm:$0xff]   ;;  %v12719_v49 = vld [vmem:[%s13174_s24 + $0x44c] ss:$16 sps:$4 sm:$0xff]  }
 0x49b   : > { %10224 = vmatprep.subr.bf16.mxu1 %v12662_v31  ;;  %v12722_v31 = vld [vmem:[%s13174_s24 + $0x64c] ss:$16 sps:$4 sm:$0xff]  }
 0x49d   : > { %10184 = vmatpush2.bf16.msra.mxu0 %v12657_v0  ;;  %v12717_v0 = vld [vmem:[%s13174_s24 + $0x448] ss:$16 sps:$4 sm:$0xff]  }
 0x49e   : > { %10225 = vmatpush2.bf16.msra.mxu1 %v12660_v19  ;;  %10185 = vmatprep.subr.bf16.mxu0 %v12665_v30  ;;  %v12720_v19 = vld [vmem:[%s13174_s24 + $0x648] ss:$16 sps:$4 sm:$0xff]   ;;  %v12725_v30 = vld [vmem:[%s13174_s24 + $0x42c] ss:$16 sps:$4 sm:$0xff]  }
 0x49f   : > { %10226 = vmatprep.subr.bf16.mxu1 %v12668_v34  ;;  %v12728_v34 = vld [vmem:[%s13174_s24 + $0x62c] ss:$16 sps:$4 sm:$0xff]  }
 0x4a1   : > { %10186 = vmatpush2.bf16.msra.mxu0 %v12663_v35  ;;  %v12723_v35 = vld [vmem:[%s13174_s24 + $0x428] ss:$16 sps:$4 sm:$0xff]  }
 0x4a2   : > { %10227 = vmatpush2.bf16.msra.mxu1 %v12666_v12  ;;  %10187 = vmatprep.subr.bf16.mxu0 %v12671_v15  ;;  %v12726_v12 = vld [vmem:[%s13174_s24 + $0x628] ss:$16 sps:$4 sm:$0xff]   ;;  %v12731_v15 = vld [vmem:[%s13174_s24 + $0x40c] ss:$16 sps:$4 sm:$0xff]  }
 0x4a3   : > { %10228 = vmatprep.subr.bf16.mxu1 %v12674_v52  ;;  %v12734_v52 = vld [vmem:[%s13174_s24 + $0x60c] ss:$16 sps:$4 sm:$0xff]  }
 0x4a5   : > { %10188 = vmatpush2.bf16.msra.mxu0 %v12669_v57  ;;  %v12729_v57 = vld [vmem:[%s13174_s24 + $0x408] ss:$16 sps:$4 sm:$0xff]  }
 0x4a6   : > { %10229 = vmatpush2.bf16.msra.mxu1 %v12672_v17  ;;  %10189 = vmatprep.subr.bf16.mxu0 %v12677_v16  ;;  %v12732_v17 = vld [vmem:[%s13174_s24 + $0x608] ss:$16 sps:$4 sm:$0xff]   ;;  %v12737_v16 = vld [vmem:[%s13174_s24 + $0x5ec] ss:$16 sps:$4 sm:$0xff]  }
 0x4a7   : > { %10230 = vmatprep.subr.bf16.mxu1 %v12680_v43  ;;  %v12740_v43 = vld [vmem:[%s13174_s24 + $0x7ec] ss:$16 sps:$4 sm:$0xff]  }
 0x4a9   : > { %10190 = vmatpush2.bf16.msra.mxu0 %v12675_v58  ;;  %v12735_v58 = vld [vmem:[%s13174_s24 + $0x5e8] ss:$16 sps:$4 sm:$0xff]  }
 0x4aa   : > { %10231 = vmatpush2.bf16.msra.mxu1 %v12678_v46  ;;  %10191 = vmatprep.subr.bf16.mxu0 %v12683_v26  ;;  %v12738_v46 = vld [vmem:[%s13174_s24 + $0x7e8] ss:$16 sps:$4 sm:$0xff]   ;;  %v12743_v26 = vld [vmem:[%s13174_s24 + $0x5cc] ss:$16 sps:$4 sm:$0xff]  }
 0x4ab   : > { %10232 = vmatprep.subr.bf16.mxu1 %v12686_v8  ;;  %v12746_v8 = vld [vmem:[%s13174_s24 + $0x7cc] ss:$16 sps:$4 sm:$0xff]  }
 0x4ad   : > { %10192 = vmatpush2.bf16.msra.mxu0 %v12681_v50  ;;  %v12741_v50 = vld [vmem:[%s13174_s24 + $0x5c8] ss:$16 sps:$4 sm:$0xff]  }
 0x4ae   : > { %10233 = vmatpush2.bf16.msra.mxu1 %v12684_v20  ;;  %10243 = vmatprep.subr.bf16.mxu0 %v12689_v56  ;;  %v12744_v20 = vld [vmem:[%s13174_s24 + $0x7c8] ss:$16 sps:$4 sm:$0xff]   ;;  %v12749_v56 = vld [vmem:[%s13174_s24 + $0x5ac] ss:$16 sps:$4 sm:$0xff]  }
 0x4af   : > { %10284 = vmatprep.subr.bf16.mxu1 %v12692_v14  ;;  %v12752_v14 = vld [vmem:[%s13174_s24 + $0x7ac] ss:$16 sps:$4 sm:$0xff]  }
 0x4b0   : > { %v9949_v7 = vpop.f32.mrf.mxu0  ;;  %10194 = vmatmul.mubr.bf16.vlgmr.msra.gmra.mxu0 %v14455_v33 }
 0x4b1   : > { %v9990_v54 = vpop.f32.mrf.mxu1  ;;  %10235 = vmatmul.mubr.bf16.vlgmr.msra.gmra.mxu1 %v14465_v5  ;;  %v9950_v55 = vadd.f32 %v9949_v7, %v14737_v1  ;;  %10244 = vmatpush1.bf16.msra.mxu0 %v12687_v6  ;;  %v12747_v6 = vld [vmem:[%s13174_s24 + $0x5a8] ss:$16 sps:$4 sm:$0xff]  }
 0x4b2   : > { %10285 = vmatpush1.bf16.msra.mxu1 %v12690_v47  ;;  %v9951_v28 = vpop.f32.mrf.mxu0  ;;  %10245 = vmatprep.subr.bf16.mxu0 %v12695_v38  ;;  %v12750_v47 = vld [vmem:[%s13174_s24 + $0x7a8] ss:$16 sps:$4 sm:$0xff]   ;;  %v12755_v38 = vld [vmem:[%s13174_s24 + $0x58c] ss:$16 sps:$4 sm:$0xff]  }
 0x4b3   : > { %v9992_v42 = vpop.f32.mrf.mxu1  ;;  %10286 = vmatprep.subr.bf16.mxu1 %v12698_v37  ;;  %v14812_v18 = vadd.f32 %v9990_v54, %v9950_v55  ;;  %v9952_v33 = vadd.f32 %v9951_v28, %v14741_v63  ;;  %10275 = vmatprep.mubr.bf16.mxu0 %v14461_v44  ;;  %v12707_v44 = vld [vmem:[%s13174_s24 + $0x48c] ss:$16 sps:$4 sm:$0xff]   ;;  %v12705_v63 = vld [vmem:[%s13174_s24 + $0x488] ss:$16 sps:$4 sm:$0xff]  }
 0x4b4   : > { %10316 = vmatprep.mubr.bf16.mxu1 %v14473_v2  ;;  %v9953_v5 = vpop.f32.mrf.mxu0  ;;  %v12710_v2 = vld [vmem:[%s13174_s24 + $0x68c] ss:$16 sps:$4 sm:$0xff]   ;;  %v12753_v7 = vld [vmem:[%s13174_s24 + $0x588] ss:$16 sps:$4 sm:$0xff]  }
 0x4b5   : > { %v9994_v1 = vpop.f32.mrf.mxu1  ;;  %v14817_v60 = vadd.f32 %v9992_v42, %v9952_v33  ;;  %10246 = vmatpush1.bf16.msra.mxu0 %v12693_v4  ;;  %v12758_v37 = vld [vmem:[%s13174_s24 + $0x78c] ss:$16 sps:$4 sm:$0xff]   ;;  %v12756_v54 = vld [vmem:[%s13174_s24 + $0x788] ss:$16 sps:$4 sm:$0xff]  }
 0x4b6   : > { %10287 = vmatpush1.bf16.msra.mxu1 %v12696_v51  ;;  %v9954_v11 = vpop.f32.mrf.mxu0  ;;  %10247 = vmatprep.subr.bf16.mxu0 %v12701_v40  ;;  %v12761_v55 = vld [vmem:[%s13174_s24 + $0x56c] ss:$16 sps:$4 sm:$0xff]   ;;  %v12759_v51 = vld [vmem:[%s13174_s24 + $0x568] ss:$16 sps:$4 sm:$0xff]  }
 0x4b7   : > { %v9995_v41 = vpop.f32.mrf.mxu1  ;;  %10288 = vmatprep.subr.bf16.mxu1 %v12704_v53  ;;  %v12764_v4 = vld [vmem:[%s13174_s24 + $0x76c] ss:$16 sps:$4 sm:$0xff]   ;;  %v12762_v28 = vld [vmem:[%s13174_s24 + $0x768] ss:$16 sps:$4 sm:$0xff]  }
 0x4b8   : > { %v12767_v42 = vld [vmem:[%s13174_s24 + $0x54c] ss:$16 sps:$4 sm:$0xff]   ;;  %v12765_v53 = vld [vmem:[%s13174_s24 + $0x548] ss:$16 sps:$4 sm:$0xff]  }
 0x4b9   : > { %10248 = vmatpush1.bf16.msra.mxu0 %v12699_v32  ;;  %v12770_v40 = vld [vmem:[%s13174_s24 + $0x74c] ss:$16 sps:$4 sm:$0xff]   ;;  %v12768_v33 = vld [vmem:[%s13174_s24 + $0x748] ss:$16 sps:$4 sm:$0xff]  }
 0x4ba   : > { %10289 = vmatpush1.bf16.msra.mxu1 %v12702_v13  ;;  %10249 = vmatprep.subr.bf16.mxu0 %v12707_v44  ;;  %v12773_v5 = vld [vmem:[%s13174_s24 + $0x52c] ss:$16 sps:$4 sm:$0xff]   ;;  %v12771_v32 = vld [vmem:[%s13174_s24 + $0x528] ss:$16 sps:$4 sm:$0xff]  }
 0x4bb   : > { %10290 = vmatprep.subr.bf16.mxu1 %v12710_v2  ;;  %v12776_v1 = vld [vmem:[%s13174_s24 + $0x72c] ss:$16 sps:$4 sm:$0xff]   ;;  %v12774_v13 = vld [vmem:[%s13174_s24 + $0x728] ss:$16 sps:$4 sm:$0xff]  }
 0x4bc   : > { %v12779_v11 = vld [vmem:[%s13174_s24 + $0x50c] ss:$16 sps:$4 sm:$0xff]   ;;  %v12777_v44 = vld [vmem:[%s13174_s24 + $0x508] ss:$16 sps:$4 sm:$0xff]  }
 0x4bd   : > { %10250 = vmatpush1.bf16.msra.mxu0 %v12705_v63  ;;  %v12782_v41 = vld [vmem:[%s13174_s24 + $0x70c] ss:$16 sps:$4 sm:$0xff]   ;;  %v12780_v2 = vld [vmem:[%s13174_s24 + $0x708] ss:$16 sps:$4 sm:$0xff]  }
 0x4be   : > { %10291 = vmatpush1.bf16.msra.mxu1 %v12708_v24  ;;  %10251 = vmatprep.subr.bf16.mxu0 %v12713_v25  ;;  %v12785_v63 = vld [vmem:[%s13174_s24 + $0x8ec] ss:$16 sps:$4 sm:$0xff]   ;;  %v12783_v25 = vld [vmem:[%s13174_s24 + $0x8e8] ss:$16 sps:$4 sm:$0xff]  }
 0x4bf   : > { %10292 = vmatprep.subr.bf16.mxu1 %v12716_v59  ;;  %v12788_v24 = vld [vmem:[%s13174_s24 + $0xaec] ss:$16 sps:$4 sm:$0xff]   ;;  %v12786_v59 = vld [vmem:[%s13174_s24 + $0xae8] ss:$16 sps:$4 sm:$0xff]  }
 0x4c1   : > { %10252 = vmatpush1.bf16.msra.mxu0 %v12711_v23  ;;  %v12791_v23 = vld [vmem:[%s13174_s24 + $0x8cc] ss:$16 sps:$4 sm:$0xff]  }
 0x4c2   : > { %10293 = vmatpush1.bf16.msra.mxu1 %v12714_v48  ;;  %10253 = vmatprep.subr.bf16.mxu0 %v12719_v49  ;;  %v12794_v48 = vld [vmem:[%s13174_s24 + $0xacc] ss:$16 sps:$4 sm:$0xff]  }
 0x4c3   : > { %10294 = vmatprep.subr.bf16.mxu1 %v12722_v31 }
 0x4c5   : > { %10254 = vmatpush1.bf16.msra.mxu0 %v12717_v0 }
 0x4c6   : > { %10295 = vmatpush1.bf16.msra.mxu1 %v12720_v19  ;;  %10255 = vmatprep.subr.bf16.mxu0 %v12725_v30  ;;  %v12789_v19 = vld [vmem:[%s13174_s24 + $0x8c8] ss:$16 sps:$4 sm:$0xff]  }
 0x4c7   : > { %10296 = vmatprep.subr.bf16.mxu1 %v12728_v34  ;;  %v12792_v30 = vld [vmem:[%s13174_s24 + $0xac8] ss:$16 sps:$4 sm:$0xff]  }
 0x4c9   : > { %10256 = vmatpush1.bf16.msra.mxu0 %v12723_v35 }
 0x4ca   : > { %10297 = vmatpush1.bf16.msra.mxu1 %v12726_v12  ;;  %10257 = vmatprep.subr.bf16.mxu0 %v12731_v15  ;;  %v12797_v12 = vld [vmem:[%s13174_s24 + $0x8ac] ss:$16 sps:$4 sm:$0xff]  }
 0x4cb   : > { %10298 = vmatprep.subr.bf16.mxu1 %v12734_v52  ;;  %v12800_v15 = vld [vmem:[%s13174_s24 + $0xaac] ss:$16 sps:$4 sm:$0xff]  }
 0x4cd   : > { %10258 = vmatpush1.bf16.msra.mxu0 %v12729_v57 }
 0x4ce   : > { %10299 = vmatpush1.bf16.msra.mxu1 %v12732_v17  ;;  %10259 = vmatprep.subr.bf16.mxu0 %v12737_v16  ;;  %v12795_v17 = vld [vmem:[%s13174_s24 + $0x8a8] ss:$16 sps:$4 sm:$0xff]  }
 0x4cf   : > { %10300 = vmatprep.subr.bf16.mxu1 %v12740_v43  ;;  %v12798_v16 = vld [vmem:[%s13174_s24 + $0xaa8] ss:$16 sps:$4 sm:$0xff]  }
 0x4d1   : > { %10260 = vmatpush2.bf16.msra.mxu0 %v12735_v58 }
 0x4d2   : > { %10301 = vmatpush2.bf16.msra.mxu1 %v12738_v46  ;;  %10261 = vmatprep.subr.bf16.mxu0 %v12743_v26  ;;  %v12804_v46 = vld [vmem:[%s13174_s24 + $0xa88] ss:$16 sps:$4 sm:$0xff]   ;;  %v12809_v26 = vld [vmem:[%s13174_s24 + $0x86c] ss:$16 sps:$4 sm:$0xff]  }
 0x4d3   : > { %10302 = vmatprep.subr.bf16.mxu1 %v12746_v8  ;;  %v12812_v8 = vld [vmem:[%s13174_s24 + $0xa6c] ss:$16 sps:$4 sm:$0xff]  }
 0x4d5   : > { %10262 = vmatpush2.bf16.msra.mxu0 %v12741_v50  ;;  %v12807_v50 = vld [vmem:[%s13174_s24 + $0x868] ss:$16 sps:$4 sm:$0xff]  }
 0x4d6   : > { %10303 = vmatpush2.bf16.msra.mxu1 %v12744_v20  ;;  %10263 = vmatprep.subr.bf16.mxu0 %v12749_v56  ;;  %v12810_v20 = vld [vmem:[%s13174_s24 + $0xa68] ss:$16 sps:$4 sm:$0xff]   ;;  %v12815_v56 = vld [vmem:[%s13174_s24 + $0x84c] ss:$16 sps:$4 sm:$0xff]  }
 0x4d7   : > { %10304 = vmatprep.subr.bf16.mxu1 %v12752_v14  ;;  %v12818_v14 = vld [vmem:[%s13174_s24 + $0xa4c] ss:$16 sps:$4 sm:$0xff]  }
 0x4d9   : > { %10264 = vmatpush2.bf16.msra.mxu0 %v12747_v6  ;;  %v12813_v6 = vld [vmem:[%s13174_s24 + $0x848] ss:$16 sps:$4 sm:$0xff]  }
 0x4da   : > { %10305 = vmatpush2.bf16.msra.mxu1 %v12750_v47  ;;  %10265 = vmatprep.subr.bf16.mxu0 %v12755_v38  ;;  %v12816_v47 = vld [vmem:[%s13174_s24 + $0xa48] ss:$16 sps:$4 sm:$0xff]   ;;  %v12821_v38 = vld [vmem:[%s13174_s24 + $0x82c] ss:$16 sps:$4 sm:$0xff]  }
 0x4db   : > { %10306 = vmatprep.subr.bf16.mxu1 %v12758_v37  ;;  %v12824_v37 = vld [vmem:[%s13174_s24 + $0xa2c] ss:$16 sps:$4 sm:$0xff]  }
 0x4dd   : > { %10266 = vmatpush2.bf16.msra.mxu0 %v12753_v7  ;;  %v12819_v7 = vld [vmem:[%s13174_s24 + $0x828] ss:$16 sps:$4 sm:$0xff]  }
 0x4de   : > { %10307 = vmatpush2.bf16.msra.mxu1 %v12756_v54  ;;  %10267 = vmatprep.subr.bf16.mxu0 %v12761_v55  ;;  %v12822_v54 = vld [vmem:[%s13174_s24 + $0xa28] ss:$16 sps:$4 sm:$0xff]   ;;  %v12827_v55 = vld [vmem:[%s13174_s24 + $0x80c] ss:$16 sps:$4 sm:$0xff]  }
 0x4df   : > { %10308 = vmatprep.subr.bf16.mxu1 %v12764_v4  ;;  %v12830_v4 = vld [vmem:[%s13174_s24 + $0xa0c] ss:$16 sps:$4 sm:$0xff]  }
 0x4e1   : > { %10268 = vmatpush2.bf16.msra.mxu0 %v12759_v51  ;;  %v12825_v51 = vld [vmem:[%s13174_s24 + $0x808] ss:$16 sps:$4 sm:$0xff]  }
 0x4e2   : > { %10309 = vmatpush2.bf16.msra.mxu1 %v12762_v28  ;;  %10269 = vmatprep.subr.bf16.mxu0 %v12767_v42  ;;  %v12828_v28 = vld [vmem:[%s13174_s24 + $0xa08] ss:$16 sps:$4 sm:$0xff]   ;;  %v12833_v42 = vld [vmem:[%s13174_s24 + $0x9ec] ss:$16 sps:$4 sm:$0xff]  }
 0x4e3   : > { %10310 = vmatprep.subr.bf16.mxu1 %v12770_v40  ;;  %v12836_v40 = vld [vmem:[%s13174_s24 + $0xbec] ss:$16 sps:$4 sm:$0xff]  }
 0x4e5   : > { %10270 = vmatpush2.bf16.msra.mxu0 %v12765_v53  ;;  %v12831_v53 = vld [vmem:[%s13174_s24 + $0x9e8] ss:$16 sps:$4 sm:$0xff]  }
 0x4e6   : > { %10311 = vmatpush2.bf16.msra.mxu1 %v12768_v33  ;;  %10271 = vmatprep.subr.bf16.mxu0 %v12773_v5  ;;  %v12834_v33 = vld [vmem:[%s13174_s24 + $0xbe8] ss:$16 sps:$4 sm:$0xff]   ;;  %v12839_v5 = vld [vmem:[%s13174_s24 + $0x9cc] ss:$16 sps:$4 sm:$0xff]  }
 0x4e7   : > { %10312 = vmatprep.subr.bf16.mxu1 %v12776_v1  ;;  %v12842_v1 = vld [vmem:[%s13174_s24 + $0xbcc] ss:$16 sps:$4 sm:$0xff]  }
 0x4e9   : > { %10272 = vmatpush2.bf16.msra.mxu0 %v12771_v32  ;;  %v12837_v32 = vld [vmem:[%s13174_s24 + $0x9c8] ss:$16 sps:$4 sm:$0xff]  }
 0x4ea   : > { %10313 = vmatpush2.bf16.msra.mxu1 %v12774_v13  ;;  %10273 = vmatprep.subr.bf16.mxu0 %v12779_v11  ;;  %v12840_v13 = vld [vmem:[%s13174_s24 + $0xbc8] ss:$16 sps:$4 sm:$0xff]   ;;  %v12845_v11 = vld [vmem:[%s13174_s24 + $0x9ac] ss:$16 sps:$4 sm:$0xff]  }
 0x4eb   : > { %10314 = vmatprep.subr.bf16.mxu1 %v12782_v41  ;;  %v12848_v41 = vld [vmem:[%s13174_s24 + $0xbac] ss:$16 sps:$4 sm:$0xff]  }
 0x4ed   : > { %10274 = vmatpush2.bf16.msra.mxu0 %v12777_v44  ;;  %v12843_v44 = vld [vmem:[%s13174_s24 + $0x9a8] ss:$16 sps:$4 sm:$0xff]  }
 0x4ee   : > { %10315 = vmatpush2.bf16.msra.mxu1 %v12780_v2  ;;  %10325 = vmatprep.subr.bf16.mxu0 %v12785_v63  ;;  %v12846_v2 = vld [vmem:[%s13174_s24 + $0xba8] ss:$16 sps:$4 sm:$0xff]   ;;  %v12851_v63 = vld [vmem:[%s13174_s24 + $0x98c] ss:$16 sps:$4 sm:$0xff]  }
 0x4ef   : > { %10366 = vmatprep.subr.bf16.mxu1 %v12788_v24  ;;  %v12854_v24 = vld [vmem:[%s13174_s24 + $0xb8c] ss:$16 sps:$4 sm:$0xff]  }
 0x4f0   : > { %v10031_v49 = vpop.f32.mrf.mxu0  ;;  %10276 = vmatmul.mubr.bf16.vlgmr.msra.gmra.mxu0 %v14538_v62 }
 0x4f1   : > { %v10072_v31 = vpop.f32.mrf.mxu1  ;;  %10317 = vmatmul.mubr.bf16.vlgmr.msra.gmra.mxu1 %v14545_v45  ;;  %v10032_v0 = vadd.f32 %v10031_v49, %v14812_v18  ;;  %10326 = vmatpush1.bf16.msra.mxu0 %v12783_v25  ;;  %v12849_v25 = vld [vmem:[%s13174_s24 + $0x988] ss:$16 sps:$4 sm:$0xff]  }
 0x4f2   : > { %10367 = vmatpush1.bf16.msra.mxu1 %v12786_v59  ;;  %v10033_v34 = vpop.f32.mrf.mxu0  ;;  %10327 = vmatprep.subr.bf16.mxu0 %v12791_v23  ;;  %v12852_v59 = vld [vmem:[%s13174_s24 + $0xb88] ss:$16 sps:$4 sm:$0xff]   ;;  %v12857_v23 = vld [vmem:[%s13174_s24 + $0x96c] ss:$16 sps:$4 sm:$0xff]  }
 0x4f3   : > { %v10074_v35 = vpop.f32.mrf.mxu1  ;;  %10368 = vmatprep.subr.bf16.mxu1 %v12794_v48  ;;  %v14886_v52 = vadd.f32 %v10072_v31, %v10032_v0  ;;  %v10034_v62 = vadd.f32 %v10033_v34, %v14817_v60  ;;  %10357 = vmatprep.mubr.bf16.mxu0 %v14567_v22  ;;  %v12803_v22 = vld [vmem:[%s13174_s24 + $0x88c] ss:$16 sps:$4 sm:$0xff]   ;;  %v12801_v60 = vld [vmem:[%s13174_s24 + $0x888] ss:$16 sps:$4 sm:$0xff]  }
 0x4f4   : > { %10398 = vmatprep.mubr.bf16.mxu1 %v14572_v36  ;;  %v10035_v45 = vpop.f32.mrf.mxu0  ;;  %v12806_v36 = vld [vmem:[%s13174_s24 + $0xa8c] ss:$16 sps:$4 sm:$0xff]   ;;  %v12855_v49 = vld [vmem:[%s13174_s24 + $0x968] ss:$16 sps:$4 sm:$0xff]  }
 0x4f5   : > { %v10076_v18 = vpop.f32.mrf.mxu1  ;;  %v14891_v57 = vadd.f32 %v10074_v35, %v10034_v62  ;;  %10328 = vmatpush1.bf16.msra.mxu0 %v12789_v19  ;;  %v12860_v48 = vld [vmem:[%s13174_s24 + $0xb6c] ss:$16 sps:$4 sm:$0xff]   ;;  %v12858_v31 = vld [vmem:[%s13174_s24 + $0xb68] ss:$16 sps:$4 sm:$0xff]  }
 0x4f6   : > { %10369 = vmatpush1.bf16.msra.mxu1 %v12792_v30  ;;  %v10036_v43 = vpop.f32.mrf.mxu0  ;;  %10329 = vmatprep.subr.bf16.mxu0 %v12797_v12  ;;  %v12863_v0 = vld [vmem:[%s13174_s24 + $0x94c] ss:$16 sps:$4 sm:$0xff]   ;;  %v12861_v30 = vld [vmem:[%s13174_s24 + $0x948] ss:$16 sps:$4 sm:$0xff]  }
 0x4f7   : > { %v10077_v58 = vpop.f32.mrf.mxu1  ;;  %10370 = vmatprep.subr.bf16.mxu1 %v12800_v15  ;;  %v12866_v19 = vld [vmem:[%s13174_s24 + $0xb4c] ss:$16 sps:$4 sm:$0xff]   ;;  %v12864_v34 = vld [vmem:[%s13174_s24 + $0xb48] ss:$16 sps:$4 sm:$0xff]  }
 0x4f8   : > { %v12869_v35 = vld [vmem:[%s13174_s24 + $0x92c] ss:$16 sps:$4 sm:$0xff]   ;;  %v12867_v15 = vld [vmem:[%s13174_s24 + $0x928] ss:$16 sps:$4 sm:$0xff]  }
 0x4f9   : > { %10330 = vmatpush1.bf16.msra.mxu0 %v12795_v17  ;;  %v12872_v12 = vld [vmem:[%s13174_s24 + $0xb2c] ss:$16 sps:$4 sm:$0xff]   ;;  %v12870_v62 = vld [vmem:[%s13174_s24 + $0xb28] ss:$16 sps:$4 sm:$0xff]  }
 0x4fa   : > { %10371 = vmatpush1.bf16.msra.mxu1 %v12798_v16  ;;  %10331 = vmatprep.subr.bf16.mxu0 %v12803_v22  ;;  %v12875_v45 = vld [vmem:[%s13174_s24 + $0x90c] ss:$16 sps:$4 sm:$0xff]   ;;  %v12873_v17 = vld [vmem:[%s13174_s24 + $0x908] ss:$16 sps:$4 sm:$0xff]  }
 0x4fb   : > { %10372 = vmatprep.subr.bf16.mxu1 %v12806_v36  ;;  %v12878_v18 = vld [vmem:[%s13174_s24 + $0xb0c] ss:$16 sps:$4 sm:$0xff]   ;;  %v12876_v16 = vld [vmem:[%s13174_s24 + $0xb08] ss:$16 sps:$4 sm:$0xff]  }
 0x4fc   : > { %v12881_v43 = vld [vmem:[%s13174_s24 + $0xcec] ss:$16 sps:$4 sm:$0xff]   ;;  %v12879_v22 = vld [vmem:[%s13174_s24 + $0xce8] ss:$16 sps:$4 sm:$0xff]  }
 0x4fd   : > { %10332 = vmatpush1.bf16.msra.mxu0 %v12801_v60  ;;  %v12884_v58 = vld [vmem:[%s13174_s24 + $0xeec] ss:$16 sps:$4 sm:$0xff]   ;;  %v12882_v36 = vld [vmem:[%s13174_s24 + $0xee8] ss:$16 sps:$4 sm:$0xff]  }
 0x4fe   : > { %10373 = vmatpush1.bf16.msra.mxu1 %v12804_v46  ;;  %10333 = vmatprep.subr.bf16.mxu0 %v12809_v26  ;;  %v12887_v60 = vld [vmem:[%s13174_s24 + $0xccc] ss:$16 sps:$4 sm:$0xff]  }
 0x4ff   : > { %10374 = vmatprep.subr.bf16.mxu1 %v12812_v8  ;;  %v12890_v46 = vld [vmem:[%s13174_s24 + $0xecc] ss:$16 sps:$4 sm:$0xff]  }
 0x501   : > { %10334 = vmatpush1.bf16.msra.mxu0 %v12807_v50 }
 0x502   : > { %10375 = vmatpush1.bf16.msra.mxu1 %v12810_v20  ;;  %10335 = vmatprep.subr.bf16.mxu0 %v12815_v56  ;;  %v12885_v20 = vld [vmem:[%s13174_s24 + $0xcc8] ss:$16 sps:$4 sm:$0xff]  }
 0x503   : > { %10376 = vmatprep.subr.bf16.mxu1 %v12818_v14  ;;  %v12888_v56 = vld [vmem:[%s13174_s24 + $0xec8] ss:$16 sps:$4 sm:$0xff]  }
 0x505   : > { %10336 = vmatpush1.bf16.msra.mxu0 %v12813_v6 }
 0x506   : > { %10377 = vmatpush1.bf16.msra.mxu1 %v12816_v47  ;;  %10337 = vmatprep.subr.bf16.mxu0 %v12821_v38  ;;  %v12893_v47 = vld [vmem:[%s13174_s24 + $0xcac] ss:$16 sps:$4 sm:$0xff]  }
 0x507   : > { %10378 = vmatprep.subr.bf16.mxu1 %v12824_v37  ;;  %v12896_v38 = vld [vmem:[%s13174_s24 + $0xeac] ss:$16 sps:$4 sm:$0xff]  }
 0x509   : > { %10338 = vmatpush1.bf16.msra.mxu0 %v12819_v7 }
 0x50a   : > { %10379 = vmatpush1.bf16.msra.mxu1 %v12822_v54  ;;  %10339 = vmatprep.subr.bf16.mxu0 %v12827_v55  ;;  %v12891_v54 = vld [vmem:[%s13174_s24 + $0xca8] ss:$16 sps:$4 sm:$0xff]  }
 0x50b   : > { %10380 = vmatprep.subr.bf16.mxu1 %v12830_v4  ;;  %v12894_v55 = vld [vmem:[%s13174_s24 + $0xea8] ss:$16 sps:$4 sm:$0xff]  }
 0x50d   : > { %10340 = vmatpush1.bf16.msra.mxu0 %v12825_v51 }
 0x50e   : > { %10381 = vmatpush1.bf16.msra.mxu1 %v12828_v28  ;;  %10341 = vmatprep.subr.bf16.mxu0 %v12833_v42  ;;  %v12897_v28 = vld [vmem:[%s13174_s24 + $0xc88] ss:$16 sps:$4 sm:$0xff]  }
 0x50f   : > { %10382 = vmatprep.subr.bf16.mxu1 %v12836_v40  ;;  %v12900_v42 = vld [vmem:[%s13174_s24 + $0xe88] ss:$16 sps:$4 sm:$0xff]   ;;  %v12905_v40 = vld [vmem:[%s13174_s24 + $0xc6c] ss:$16 sps:$4 sm:$0xff]  }
 0x511   : > { %10342 = vmatpush2.bf16.msra.mxu0 %v12831_v53  ;;  %v12908_v53 = vld [vmem:[%s13174_s24 + $0xe6c] ss:$16 sps:$4 sm:$0xff]  }
 0x512   : > { %10383 = vmatpush2.bf16.msra.mxu1 %v12834_v33  ;;  %10343 = vmatprep.subr.bf16.mxu0 %v12839_v5  ;;  %v12903_v33 = vld [vmem:[%s13174_s24 + $0xc68] ss:$16 sps:$4 sm:$0xff]  }
 0x513   : > { %10384 = vmatprep.subr.bf16.mxu1 %v12842_v1  ;;  %v12906_v5 = vld [vmem:[%s13174_s24 + $0xe68] ss:$16 sps:$4 sm:$0xff]   ;;  %v12911_v1 = vld [vmem:[%s13174_s24 + $0xc4c] ss:$16 sps:$4 sm:$0xff]  }
 0x515   : > { %10344 = vmatpush2.bf16.msra.mxu0 %v12837_v32  ;;  %v12914_v32 = vld [vmem:[%s13174_s24 + $0xe4c] ss:$16 sps:$4 sm:$0xff]  }
 0x516   : > { %10385 = vmatpush2.bf16.msra.mxu1 %v12840_v13  ;;  %10345 = vmatprep.subr.bf16.mxu0 %v12845_v11  ;;  %v12909_v13 = vld [vmem:[%s13174_s24 + $0xc48] ss:$16 sps:$4 sm:$0xff]  }
 0x517   : > { %10386 = vmatprep.subr.bf16.mxu1 %v12848_v41  ;;  %v12912_v11 = vld [vmem:[%s13174_s24 + $0xe48] ss:$16 sps:$4 sm:$0xff]   ;;  %v12917_v41 = vld [vmem:[%s13174_s24 + $0xc2c] ss:$16 sps:$4 sm:$0xff]  }
 0x519   : > { %10346 = vmatpush2.bf16.msra.mxu0 %v12843_v44  ;;  %v12920_v44 = vld [vmem:[%s13174_s24 + $0xe2c] ss:$16 sps:$4 sm:$0xff]  }
 0x51a   : > { %10387 = vmatpush2.bf16.msra.mxu1 %v12846_v2  ;;  %10347 = vmatprep.subr.bf16.mxu0 %v12851_v63  ;;  %v12915_v2 = vld [vmem:[%s13174_s24 + $0xc28] ss:$16 sps:$4 sm:$0xff]  }
 0x51b   : > { %10388 = vmatprep.subr.bf16.mxu1 %v12854_v24  ;;  %v12918_v63 = vld [vmem:[%s13174_s24 + $0xe28] ss:$16 sps:$4 sm:$0xff]   ;;  %v12923_v24 = vld [vmem:[%s13174_s24 + $0xc0c] ss:$16 sps:$4 sm:$0xff]  }
 0x51d   : > { %10348 = vmatpush2.bf16.msra.mxu0 %v12849_v25  ;;  %v12926_v25 = vld [vmem:[%s13174_s24 + $0xe0c] ss:$16 sps:$4 sm:$0xff]  }
 0x51e   : > { %10389 = vmatpush2.bf16.msra.mxu1 %v12852_v59  ;;  %10349 = vmatprep.subr.bf16.mxu0 %v12857_v23  ;;  %v12921_v59 = vld [vmem:[%s13174_s24 + $0xc08] ss:$16 sps:$4 sm:$0xff]  }
 0x51f   : > { %10390 = vmatprep.subr.bf16.mxu1 %v12860_v48  ;;  %v12924_v23 = vld [vmem:[%s13174_s24 + $0xe08] ss:$16 sps:$4 sm:$0xff]   ;;  %v12929_v48 = vld [vmem:[%s13174_s24 + $0xdec] ss:$16 sps:$4 sm:$0xff]  }
 0x521   : > { %10350 = vmatpush2.bf16.msra.mxu0 %v12855_v49  ;;  %v12932_v49 = vld [vmem:[%s13174_s24 + $0xfec] ss:$16 sps:$4 sm:$0xff]  }
 0x522   : > { %10391 = vmatpush2.bf16.msra.mxu1 %v12858_v31  ;;  %10351 = vmatprep.subr.bf16.mxu0 %v12863_v0  ;;  %v12927_v31 = vld [vmem:[%s13174_s24 + $0xde8] ss:$16 sps:$4 sm:$0xff]  }
 0x523   : > { %10392 = vmatprep.subr.bf16.mxu1 %v12866_v19  ;;  %v12930_v0 = vld [vmem:[%s13174_s24 + $0xfe8] ss:$16 sps:$4 sm:$0xff]   ;;  %v12935_v19 = vld [vmem:[%s13174_s24 + $0xdcc] ss:$16 sps:$4 sm:$0xff]  }
 0x525   : > { %10352 = vmatpush2.bf16.msra.mxu0 %v12861_v30  ;;  %v12938_v30 = vld [vmem:[%s13174_s24 + $0xfcc] ss:$16 sps:$4 sm:$0xff]  }
 0x526   : > { %10393 = vmatpush2.bf16.msra.mxu1 %v12864_v34  ;;  %10353 = vmatprep.subr.bf16.mxu0 %v12869_v35  ;;  %v12933_v34 = vld [vmem:[%s13174_s24 + $0xdc8] ss:$16 sps:$4 sm:$0xff]  }
 0x527   : > { %10394 = vmatprep.subr.bf16.mxu1 %v12872_v12  ;;  %v12936_v35 = vld [vmem:[%s13174_s24 + $0xfc8] ss:$16 sps:$4 sm:$0xff]   ;;  %v12941_v12 = vld [vmem:[%s13174_s24 + $0xdac] ss:$16 sps:$4 sm:$0xff]  }
 0x529   : > { %10354 = vmatpush2.bf16.msra.mxu0 %v12867_v15  ;;  %v12944_v15 = vld [vmem:[%s13174_s24 + $0xfac] ss:$16 sps:$4 sm:$0xff]  }
 0x52a   : > { %10395 = vmatpush2.bf16.msra.mxu1 %v12870_v62  ;;  %10355 = vmatprep.subr.bf16.mxu0 %v12875_v45  ;;  %v12939_v62 = vld [vmem:[%s13174_s24 + $0xda8] ss:$16 sps:$4 sm:$0xff]  }
 0x52b   : > { %10396 = vmatprep.subr.bf16.mxu1 %v12878_v18  ;;  %v12942_v45 = vld [vmem:[%s13174_s24 + $0xfa8] ss:$16 sps:$4 sm:$0xff]   ;;  %v12947_v18 = vld [vmem:[%s13174_s24 + $0xd8c] ss:$16 sps:$4 sm:$0xff]  }
 0x52d   : > { %10356 = vmatpush2.bf16.msra.mxu0 %v12873_v17  ;;  %v12950_v17 = vld [vmem:[%s13174_s24 + $0xf8c] ss:$16 sps:$4 sm:$0xff]  }
 0x52e   : > { %10397 = vmatpush2.bf16.msra.mxu1 %v12876_v16  ;;  %10407 = vmatprep.subr.bf16.mxu0 %v12881_v43  ;;  %v12945_v16 = vld [vmem:[%s13174_s24 + $0xd88] ss:$16 sps:$4 sm:$0xff]  }
 0x52f   : > { %10448 = vmatprep.subr.bf16.mxu1 %v12884_v58  ;;  %v12948_v43 = vld [vmem:[%s13174_s24 + $0xf88] ss:$16 sps:$4 sm:$0xff]   ;;  %v12953_v58 = vld [vmem:[%s13174_s24 + $0xd6c] ss:$16 sps:$4 sm:$0xff]  }
 0x530   : > { %v10113_v26 = vpop.f32.mrf.mxu0  ;;  %10358 = vmatmul.mubr.bf16.vlgmr.msra.gmra.mxu0 %v14636_v29 }
 0x531   : > { %v10154_v8 = vpop.f32.mrf.mxu1  ;;  %10399 = vmatmul.mubr.bf16.vlgmr.msra.gmra.mxu1 %v14647_v21  ;;  %v10114_v50 = vadd.f32 %v10113_v26, %v14886_v52  ;;  %10408 = vmatpush1.bf16.msra.mxu0 %v12879_v22  ;;  %v12956_v22 = vld [vmem:[%s13174_s24 + $0xf6c] ss:$16 sps:$4 sm:$0xff]  }
 0x532   : > { %10449 = vmatpush1.bf16.msra.mxu1 %v12882_v36  ;;  %v10115_v14 = vpop.f32.mrf.mxu0  ;;  %10409 = vmatprep.subr.bf16.mxu0 %v12887_v60  ;;  %v12951_v36 = vld [vmem:[%s13174_s24 + $0xd68] ss:$16 sps:$4 sm:$0xff]   ;;  %v12962_v26 = vld [vmem:[%s13174_s24 + $0xf4c] ss:$16 sps:$4 sm:$0xff]  }
 0x533   : > { %v10156_v6 = vpop.f32.mrf.mxu1  ;;  %10450 = vmatprep.subr.bf16.mxu1 %v12890_v46  ;;  %v14960_v37 = vadd.f32 %v10154_v8, %v10114_v50  ;;  %v10116_v29 = vadd.f32 %v10115_v14, %v14891_v57  ;;  %10439 = vmatprep.mubr.bf16.mxu0 %v14643_v10  ;;  %v12899_v10 = vld [vmem:[%s13174_s24 + $0xc8c] ss:$16 sps:$4 sm:$0xff]   ;;  %v12954_v60 = vld [vmem:[%s13174_s24 + $0xf68] ss:$16 sps:$4 sm:$0xff]  }
 0x534   : > { %10480 = vmatprep.mubr.bf16.mxu1 %v14655_v39  ;;  %v10117_v21 = vpop.f32.mrf.mxu0  ;;  %v12902_v39 = vld [vmem:[%s13174_s24 + $0xe8c] ss:$16 sps:$4 sm:$0xff]   ;;  %v12957_v8 = vld [vmem:[%s13174_s24 + $0xd48] ss:$16 sps:$4 sm:$0xff]  }
 0x535   : > { %v10158_v52 = vpop.f32.mrf.mxu1  ;;  %v14965_v7 = vadd.f32 %v10156_v6, %v10116_v29  ;;  %10410 = vmatpush1.bf16.msra.mxu0 %v12885_v20  ;;  %v12959_v46 = vld [vmem:[%s13174_s24 + $0xd4c] ss:$16 sps:$4 sm:$0xff]   ;;  %v12960_v50 = vld [vmem:[%s13174_s24 + $0xf48] ss:$16 sps:$4 sm:$0xff]  }
 0x536   : > { %10451 = vmatpush1.bf16.msra.mxu1 %v12888_v56  ;;  %v10118_v4 = vpop.f32.mrf.mxu0  ;;  %10411 = vmatprep.subr.bf16.mxu0 %v12893_v47  ;;  %v12965_v20 = vld [vmem:[%s13174_s24 + $0xd2c] ss:$16 sps:$4 sm:$0xff]   ;;  %v12963_v14 = vld [vmem:[%s13174_s24 + $0xd28] ss:$16 sps:$4 sm:$0xff]  }
 0x537   : > { %v10159_v51 = vpop.f32.mrf.mxu1  ;;  %10452 = vmatprep.subr.bf16.mxu1 %v12896_v38  ;;  %v10493_v57 = vcombine.low %v14960_v37, %v14965_v7  ;;  %v12968_v56 = vld [vmem:[%s13174_s24 + $0xf2c] ss:$16 sps:$4 sm:$0xff]   ;;  %v12966_v6 = vld [vmem:[%s13174_s24 + $0xf28] ss:$16 sps:$4 sm:$0xff]  }
 0x538   : > { %v12971_v47 = vld [vmem:[%s13174_s24 + $0xd0c] ss:$16 sps:$4 sm:$0xff]   ;;  %v12969_v29 = vld [vmem:[%s13174_s24 + $0xd08] ss:$16 sps:$4 sm:$0xff]  }
 0x539   : > { %10412 = vmatpush1.bf16.msra.mxu0 %v12891_v54  ;;  %v12974_v38 = vld [vmem:[%s13174_s24 + $0xf0c] ss:$16 sps:$4 sm:$0xff]   ;;  %v12972_v21 = vld [vmem:[%s13174_s24 + $0xf08] ss:$16 sps:$4 sm:$0xff]  }
 0x53a   : > { %10453 = vmatpush1.bf16.msra.mxu1 %v12894_v55  ;;  %10413 = vmatprep.subr.bf16.mxu0 %v12899_v10 }
 0x53b   : > { %10454 = vmatprep.subr.bf16.mxu1 %v12902_v39 }
 0x53d   : > { %10414 = vmatpush1.bf16.msra.mxu0 %v12897_v28 }
 0x53e   : > { %10455 = vmatpush1.bf16.msra.mxu1 %v12900_v42  ;;  %10415 = vmatprep.subr.bf16.mxu0 %v12905_v40 }
 0x53f   : > { %10456 = vmatprep.subr.bf16.mxu1 %v12908_v53 }
 0x541   : > { %10416 = vmatpush1.bf16.msra.mxu0 %v12903_v33 }
 0x542   : > { %10457 = vmatpush1.bf16.msra.mxu1 %v12906_v5  ;;  %10417 = vmatprep.subr.bf16.mxu0 %v12911_v1 }
 0x543   : > { %10458 = vmatprep.subr.bf16.mxu1 %v12914_v32 }
 0x545   : > { %10418 = vmatpush1.bf16.msra.mxu0 %v12909_v13 }
 0x546   : > { %10459 = vmatpush1.bf16.msra.mxu1 %v12912_v11  ;;  %10419 = vmatprep.subr.bf16.mxu0 %v12917_v41 }
 0x547   : > { %10460 = vmatprep.subr.bf16.mxu1 %v12920_v44 }
 0x549   : > { %10420 = vmatpush1.bf16.msra.mxu0 %v12915_v2 }
 0x54a   : > { %10461 = vmatpush1.bf16.msra.mxu1 %v12918_v63  ;;  %10421 = vmatprep.subr.bf16.mxu0 %v12923_v24 }
 0x54b   : > { %10462 = vmatprep.subr.bf16.mxu1 %v12926_v25 }
 0x54d   : > { %10422 = vmatpush1.bf16.msra.mxu0 %v12921_v59 }
 0x54e   : > { %10463 = vmatpush1.bf16.msra.mxu1 %v12924_v23  ;;  %10423 = vmatprep.subr.bf16.mxu0 %v12929_v48 }
 0x54f   : > { %10464 = vmatprep.subr.bf16.mxu1 %v12932_v49 }
 0x551   : > { %10424 = vmatpush2.bf16.msra.mxu0 %v12927_v31 }
 0x552   : > { %10465 = vmatpush2.bf16.msra.mxu1 %v12930_v0  ;;  %10425 = vmatprep.subr.bf16.mxu0 %v12935_v19 }
 0x553   : > { %10466 = vmatprep.subr.bf16.mxu1 %v12938_v30  ;;  %v13069_v30 = vmov 1983009808  }
 0x555   : > { %10426 = vmatpush2.bf16.msra.mxu0 %v12933_v34  ;;  %v10496_v34 = vunpack.c.l.s4 %v13069_v30 }
 0x556   : > { %10467 = vmatpush2.bf16.msra.mxu1 %v12936_v35  ;;  %10427 = vmatprep.subr.bf16.mxu0 %v12941_v12 }
 0x557   : > { %10468 = vmatprep.subr.bf16.mxu1 %v12944_v15 }
 0x559   : > { %10428 = vmatpush2.bf16.msra.mxu0 %v12939_v62  ;;  %v10497_v62 = vunpack.c.0.s8 %v10496_v34 }
 0x55a   : > { %10469 = vmatpush2.bf16.msra.mxu1 %v12942_v45  ;;  %10429 = vmatprep.subr.bf16.mxu0 %v12947_v18 }
 0x55b   : > { %10470 = vmatprep.subr.bf16.mxu1 %v12950_v17 }
 0x55d   : > { %10430 = vmatpush2.bf16.msra.mxu0 %v12945_v16 }
 0x55e   : > { %10471 = vmatpush2.bf16.msra.mxu1 %v12948_v43  ;;  %10431 = vmatprep.subr.bf16.mxu0 %v12953_v58 }
 0x55f   : > { %10472 = vmatprep.subr.bf16.mxu1 %v12956_v22 }
 0x561   : > { %10432 = vmatpush2.bf16.msra.mxu0 %v12951_v36  ;;  %v10500_v36 = vsub.s32 %v10497_v62, %v14406_v3 }
 0x562   : > { %10473 = vmatpush2.bf16.msra.mxu1 %v12954_v60  ;;  %10433 = vmatprep.subr.bf16.mxu0 %v12959_v46 }
 0x563   : > { %10474 = vmatprep.subr.bf16.mxu1 %v12962_v26 }
 0x565   : > { %10434 = vmatpush2.bf16.msra.mxu0 %v12957_v8 }
 0x566   : > { %10475 = vmatpush2.bf16.msra.mxu1 %v12960_v50  ;;  %10435 = vmatprep.subr.bf16.mxu0 %v12965_v20  ;;  %v10501_v20 = vrot.slane %v10493_v57, %v10500_v36 }
 0x567   : > { %10476 = vmatprep.subr.bf16.mxu1 %v12968_v56 }
 0x569   : > { %10436 = vmatpush2.bf16.msra.mxu0 %v12963_v14  ;;  %v6640_v14 = vld [vmem:[#allocation4] sm:$0xff] }
 0x56a   : > { %10477 = vmatpush2.bf16.msra.mxu1 %v12966_v6  ;;  %10437 = vmatprep.subr.bf16.mxu0 %v12971_v47 }
 0x56b   : > { %10478 = vmatprep.subr.bf16.mxu1 %v12974_v38 }
 0x56d   : > { %10438 = vmatpush2.bf16.msra.mxu0 %v12969_v29 }
 0x56e   : > { %10479 = vmatpush2.bf16.msra.mxu1 %v12972_v21 }
 0x570   : > { %v10195_v52 = vpop.f32.mrf.mxu0  ;;  %10440 = vmatmul.mubr.bf16.vlgmr.msra.gmra.mxu0 %v14719_v9 }
 0x571   : > { %v10236_v54 = vpop.f32.mrf.mxu1  ;;  %10481 = vmatmul.mubr.bf16.vlgmr.msra.gmra.mxu1 %v14727_v27 }
 0x572   : > { %v10237_v55 = vadd.f32 %v10236_v54, %v10195_v52  ;;  %v10197_v4 = vpop.f32.mrf.mxu0 }
 0x573   : > { %v10238_v51 = vpop.f32.mrf.mxu1 }
 0x574   : > { %v10239_v10 = vadd.f32 %v10238_v51, %v10197_v4  ;;  %v10199_v39 = vpop.f32.mrf.mxu0 }
 0x575   : > { %v10240_v28 = vpop.f32.mrf.mxu1 }
 0x576   : > { %v10200_v42 = vpop.f32.mrf.mxu0 }
 0x577   : > { %v10241_v40 = vpop.f32.mrf.mxu1 }
 0x5b0   : > { %v10277_v53 = vpop.f32.mrf.mxu0 }
 0x5b1   : > { %v10318_v33 = vpop.f32.mrf.mxu1  ;;  %v10278_v5 = vadd.f32 %v10277_v53, %v10237_v55 }
 0x5b2   : > { %v10279_v1 = vpop.f32.mrf.mxu0 }
 0x5b3   : > { %v10320_v32 = vpop.f32.mrf.mxu1  ;;  %v10319_v13 = vadd.f32 %v10318_v33, %v10278_v5  ;;  %v10280_v11 = vadd.f32 %v10279_v1, %v10239_v10 }
 0x5b4   : > { %v10281_v41 = vpop.f32.mrf.mxu0 }
 0x5b5   : > { %v10322_v44 = vpop.f32.mrf.mxu1  ;;  %v10321_v9 = vadd.f32 %v10320_v32, %v10280_v11 }
 0x5b6   : > { %v10282_v2 = vpop.f32.mrf.mxu0 }
 0x5b7   : > { %v10323_v27 = vpop.f32.mrf.mxu1 }
 0x5f0   : > { %v10359_v63 = vpop.f32.mrf.mxu0 }
 0x5f1   : > { %v10400_v24 = vpop.f32.mrf.mxu1  ;;  %v10360_v25 = vadd.f32 %v10359_v63, %v10319_v13 }
 0x5f2   : > { %v10361_v59 = vpop.f32.mrf.mxu0 }
 0x5f3   : > { %v10402_v23 = vpop.f32.mrf.mxu1  ;;  %v10401_v48 = vadd.f32 %v10400_v24, %v10360_v25  ;;  %v10362_v35 = vadd.f32 %v10361_v59, %v10321_v9 }
 0x5f4   : > { %v10363_v49 = vpop.f32.mrf.mxu0 }
 0x5f5   : > { %v10404_v31 = vpop.f32.mrf.mxu1  ;;  %v10403_v45 = vadd.f32 %v10402_v23, %v10362_v35 }
 0x5f6   : > { %v10364_v0 = vpop.f32.mrf.mxu0 }
 0x5f7   : > { %v10405_v19 = vpop.f32.mrf.mxu1 }
 0x630   : > { %v10441_v12 = vpop.f32.mrf.mxu0 }
 0x631   : > { %v10482_v15 = vpop.f32.mrf.mxu1  ;;  %v10442_v18 = vadd.f32 %v10441_v12, %v10401_v48 }
 0x632   : > { %v10443_v17 = vpop.f32.mrf.mxu0 }
 0x633   : > { %v10484_v16 = vpop.f32.mrf.mxu1  ;;  %v10444_v43 = vadd.f32 %v10443_v17, %v10403_v45  ;;  %v10483_v60 = vadd.f32 %v10482_v15, %v10442_v18 }
 0x634   : > { %v10445_v58 = vpop.f32.mrf.mxu0 }
 0x635   : > { %v10486_v22 = vpop.f32.mrf.mxu1  ;;  %v10485_v46 = vadd.f32 %v10484_v16, %v10444_v43 }
 0x636   : > { %v10446_v26 = vpop.f32.mrf.mxu0 }
 0x637   : > { %v10487_v8 = vpop.f32.mrf.mxu1  ;;  %v10494_v50 = vcombine.low %v10483_v60, %v10485_v46 }
 0x639   : > { %v10508_v56 = vrot.slane %v10494_v50, %v10500_v36 }
 0x63b   : > { %v10509_v6 = vcombine.low %v10501_v20, %v10508_v56  ;;  %10523 = sbr.rel (%p11924_p5) target bundleno = 3215 (0xc8f), region = 84 }
 0x63d   : > { %v10511_v47 = vadd.f32 %v10509_v6, %v6640_v14 }
 0x63f   : > { %10519 = vst.msk [vmem:[#allocation4] sm:$0xff] %vm10518_vm1, %v10511_v47 }
 0x640   : > { %v15033_v3 = vld [vmem:[%s15587_s8 + $0x188] sm:$0xf]  ;;  %vm10583_vm2 = vcmask 1043456   ;;  %v15038_v37 = vld [vmem:[%s15587_s8 + $0x198] sm:$0xf]  ;;  %v15071_v21 = vld [vmem:[%s15587_s8 + $0x160] sm:$0xff] }
 0x641   : > { %v15043_v7 = vld [vmem:[%s15587_s8 + $0x168] sm:$0xff]  ;;  %11925 = vmatprep.subr.msk.mxu0 %vm10583_vm2, %v15033_v3  ;;  %11927 = vmatprep.subr.msk.mxu1 %vm10583_vm2, %v15038_v37  ;;  %v15052_v57 = vld [vmem:[%s15587_s8 + $0x180] sm:$0xf]  ;;  %v15057_v38 = vld [vmem:[%s15587_s8 + $0x190] sm:$0xf]  ;;  %v13070_v36 = vmov 0.0  }
 0x642   : > { %v15062_v29 = vld [vmem:[%s15587_s8 + $0x178] sm:$0xff]  ;;  %11926 = vmatpush1.msk.msra.mxu0 %vm10583_vm2, %v15052_v57  ;;  %11928 = vmatpush1.msk.msra.mxu1 %vm10583_vm2, %v15057_v38  ;;  %v15076_v52 = vld [vmem:[%s15587_s8 + $0x170] sm:$0xff]  ;;  %v15081_v54 = vld [vmem:[%s15587_s8 + $0x148] sm:$0xff]  ;;  %vm10779_vm3 = vcmask 457728   ;;  %vm10579_vm4 = vcmask 818176   ;;  %vm10787_vm5 = vcmask 687104  }
 0x643   : > { %10604 = vmatprep.subr.mxu0 %v15043_v7  ;;  %10675 = vmatprep.subr.mxu1 %v15062_v29  ;;  %v15088_v55 = vld [vmem:[%s15587_s8 + $0x158] sm:$0xff]  ;;  %v15093_v4 = vld [vmem:[%s15587_s8 + $0x140] sm:$0xff]  ;;  %v15098_v51 = vld [vmem:[%s15587_s8 + $0x150] sm:$0xff]  ;;  %vm10810_vm6 = vcmask 228352   ;;  %vm10814_vm7 = vcmask 811008   ;;  %vm13075_vm8 = vmmov 0  }
 0x644   : > { %10605 = vmatpush1.msra.mxu0 %v15071_v21  ;;  %10676 = vmatpush1.msra.mxu1 %v15076_v52  ;;  %v15105_v10 = vld [vmem:[%s15587_s8 + $0x128] sm:$0xff]  ;;  %v15110_v39 = vld [vmem:[%s15587_s8 + $0x138] sm:$0xff]  ;;  %v15117_v28 = vld [vmem:[%s15587_s8 + $0x120] sm:$0xff]  ;;  %vm11232_vm9 = vcmask 17408  }
 0x645   : > { %10606 = vmatprep.subr.mxu0 %v15081_v54  ;;  %10677 = vmatprep.subr.mxu1 %v15088_v55  ;;  %v15122_v42 = vld [vmem:[%s15587_s8 + $0x130] sm:$0xff]  ;;  %v15129_v40 = vld [vmem:[%s15587_s8 + $0x108] sm:$0xff]  ;;  %v15134_v53 = vld [vmem:[%s15587_s8 + $0x118] sm:$0xff] }
 0x646   : > { %10607 = vmatpush1.msra.mxu0 %v15093_v4  ;;  %10678 = vmatpush1.msra.mxu1 %v15098_v51  ;;  %v15141_v33 = vld [vmem:[%s15587_s8 + $0x100] sm:$0xff]  ;;  %v15146_v5 = vld [vmem:[%s15587_s8 + $0x110] sm:$0xff]  ;;  %v15153_v1 = vld [vmem:[%s15587_s8 + $0xe8] sm:$0xff] }
 0x647   : > { %10608 = vmatprep.subr.mxu0 %v15105_v10  ;;  %10679 = vmatprep.subr.mxu1 %v15110_v39  ;;  %v15158_v32 = vld [vmem:[%s15587_s8 + $0xf8] sm:$0xff]  ;;  %v15165_v13 = vld [vmem:[%s15587_s8 + $0xe0] sm:$0xff]  ;;  %v15170_v11 = vld [vmem:[%s15587_s8 + $0xf0] sm:$0xff] }
 0x648   : > { %10609 = vmatpush1.msra.mxu0 %v15117_v28  ;;  %10680 = vmatpush1.msra.mxu1 %v15122_v42  ;;  %v15177_v41 = vld [vmem:[%s15587_s8 + $0xc8] sm:$0xff]  ;;  %v15182_v44 = vld [vmem:[%s15587_s8 + $0xd8] sm:$0xff]  ;;  %v15189_v9 = vld [vmem:[%s15587_s8 + $0xc0] sm:$0xff] }
 0x649   : > { %10610 = vmatprep.subr.mxu0 %v15129_v40  ;;  %10681 = vmatprep.subr.mxu1 %v15134_v53  ;;  %v15194_v2 = vld [vmem:[%s15587_s8 + $0xd0] sm:$0xff]  ;;  %v15201_v27 = vld [vmem:[%s15587_s8 + $0xa8] sm:$0xff]  ;;  %v15206_v63 = vld [vmem:[%s15587_s8 + $0xb8] sm:$0xff] }
 0x64a   : > { %10611 = vmatpush1.msra.mxu0 %v15141_v33  ;;  %10682 = vmatpush1.msra.mxu1 %v15146_v5  ;;  %v15213_v24 = vld [vmem:[%s15587_s8 + $0xa0] sm:$0xff]  ;;  %v15218_v25 = vld [vmem:[%s15587_s8 + $0xb0] sm:$0xff]  ;;  %v15225_v59 = vld [vmem:[%s15587_s8 + $0x88] sm:$0xff] }
 0x64b   : > { %10612 = vmatprep.subr.mxu0 %v15153_v1  ;;  %10683 = vmatprep.subr.mxu1 %v15158_v32  ;;  %v15230_v23 = vld [vmem:[%s15587_s8 + $0x98] sm:$0xff]  ;;  %v15237_v48 = vld [vmem:[%s15587_s8 + $0x80] sm:$0xff]  ;;  %v15242_v49 = vld [vmem:[%s15587_s8 + $0x90] sm:$0xff] }
 0x64c   : > { %10613 = vmatpush1.msra.mxu0 %v15165_v13  ;;  %10684 = vmatpush1.msra.mxu1 %v15170_v11  ;;  %v15249_v31 = vld [vmem:[%s15587_s8 + $0x68] sm:$0xff]  ;;  %v15254_v0 = vld [vmem:[%s15587_s8 + $0x78] sm:$0xff]  ;;  %v15261_v19 = vld [vmem:[%s15587_s8 + $0x60] sm:$0xff] }
 0x64d   : > { %10614 = vmatprep.subr.mxu0 %v15177_v41  ;;  %10685 = vmatprep.subr.mxu1 %v15182_v44  ;;  %v15266_v30 = vld [vmem:[%s15587_s8 + $0x70] sm:$0xff]  ;;  %v15273_v34 = vld [vmem:[%s15587_s8 + $0x48] sm:$0xff]  ;;  %v15278_v35 = vld [vmem:[%s15587_s8 + $0x58] sm:$0xff] }
 0x64e   : > { %10615 = vmatpush1.msra.mxu0 %v15189_v9  ;;  %10686 = vmatpush1.msra.mxu1 %v15194_v2  ;;  %v15285_v12 = vld [vmem:[%s15587_s8 + $0x40] sm:$0xff]  ;;  %v15290_v15 = vld [vmem:[%s15587_s8 + $0x50] sm:$0xff]  ;;  %v15297_v62 = vld [vmem:[%s15587_s8 + $0x28] sm:$0xff] }
 0x64f   : > { %10616 = vmatprep.subr.mxu0 %v15201_v27  ;;  %10687 = vmatprep.subr.mxu1 %v15206_v63  ;;  %v15302_v45 = vld [vmem:[%s15587_s8 + $0x38] sm:$0xff]  ;;  %v15309_v18 = vld [vmem:[%s15587_s8 + $0x20] sm:$0xff]  ;;  %v15314_v17 = vld [vmem:[%s15587_s8 + $0x30] sm:$0xff] }
 0x650   : > { %10617 = vmatpush1.msra.mxu0 %v15213_v24  ;;  %10688 = vmatpush1.msra.mxu1 %v15218_v25  ;;  %v15321_v16 = vld [vmem:[%s15587_s8 + $0x8] sm:$0xff]  ;;  %v15326_v43 = vld [vmem:[%s15587_s8 + $0x18] sm:$0xff]  ;;  %v10524_v58 = vld [vmem:[%s15587_s8] sm:$0xff] }
 0x651   : > { %10618 = vmatprep.subr.mxu0 %v15225_v59  ;;  %10689 = vmatprep.subr.mxu1 %v15230_v23  ;;  %v10526_v22 = vld [vmem:[%s15587_s8 + $0x10] sm:$0xff]  ;;  %v15405_v56 = vld [vmem:[%s15588_s9] sm:$0xf] }
 0x652   : > { %10619 = vmatpush1.msra.mxu0 %v15237_v48  ;;  %10690 = vmatpush1.msra.mxu1 %v15242_v49  ;;  %v10577_v14 = vld [vmem:[#allocation4] ss:$2 sm:$0xf] }
 0x653   : > { %10620 = vmatprep.subr.mxu0 %v15249_v31  ;;  %10691 = vmatprep.subr.mxu1 %v15254_v0 }
 0x654   : > { %10621 = vmatpush1.msra.mxu0 %v15261_v19  ;;  %10692 = vmatpush1.msra.mxu1 %v15266_v30 }
 0x655   : > { %10622 = vmatprep.subr.mxu0 %v15273_v34  ;;  %10693 = vmatprep.subr.mxu1 %v15278_v35 }
 0x656   : > { %10623 = vmatpush1.msra.mxu0 %v15285_v12  ;;  %10694 = vmatpush1.msra.mxu1 %v15290_v15 }
 0x657   : > { %10624 = vmatprep.subr.mxu0 %v15297_v62  ;;  %10695 = vmatprep.subr.mxu1 %v15302_v45 }
 0x658   : > { %10625 = vmatpush1.msra.mxu0 %v15309_v18  ;;  %10696 = vmatpush1.msra.mxu1 %v15314_v17 }
 0x659   : > { %10626 = vmatprep.subr.mxu0 %v15321_v16  ;;  %10697 = vmatprep.subr.mxu1 %v15326_v43 }
 0x65a   : > { %10627 = vmatpush1.msra.mxu0 %v10524_v58  ;;  %10660 = vmatprep.mubr.f32.mxu0 %v13070_v36 }
 0x65b   : > { %10698 = vmatpush1.msra.mxu1 %v10526_v22  ;;  %10731 = vmatprep.mubr.f32.mxu1 %v13070_v36 }
 0x65c   : > { %10661 = vmatmul.mubr.f32.vlgmr.msra.gmra.mxu0 %v13070_v36  ;;  %10732 = vmatmul.mubr.f32.vlgmr.msra.gmra.mxu1 %v13070_v36 }
 0x65d   : > { %11931 = vmatprep.subr.msk.mxu0 %vm10583_vm2, %v15033_v3  ;;  %11934 = vmatprep.subr.msk.mxu1 %vm10583_vm2, %v15038_v37  ;;  %v10578_v37 = vadd.f32 %v10577_v14, %v15405_v56  ;;  %v11046_v14 = vld [vmem:[%s15589_s10 + $0x38] sm:$0xff] }
 0x65e   : > { %11932 = vmatpush1.msk.msra.mxu0 %vm10583_vm2, %v15052_v57  ;;  %11935 = vmatpush1.msk.msra.mxu1 %vm10583_vm2, %v15057_v38 }
 0x65f   : > { %10830 = vmatprep.subr.mxu0 %v15043_v7  ;;  %10901 = vmatprep.subr.mxu1 %v15062_v29 }
 0x660   : > { %10831 = vmatpush1.msra.mxu0 %v15071_v21  ;;  %10902 = vmatpush1.msra.mxu1 %v15076_v52 }
 0x661   : > { %10832 = vmatprep.subr.mxu0 %v15081_v54  ;;  %10903 = vmatprep.subr.mxu1 %v15088_v55 }
 0x662   : > { %10833 = vmatpush1.msra.mxu0 %v15093_v4  ;;  %10904 = vmatpush1.msra.mxu1 %v15098_v51 }
 0x663   : > { %10834 = vmatprep.subr.mxu0 %v15105_v10  ;;  %10905 = vmatprep.subr.mxu1 %v15110_v39 }
 0x664   : > { %10835 = vmatpush1.msra.mxu0 %v15117_v28  ;;  %10906 = vmatpush1.msra.mxu1 %v15122_v42 }
 0x665   : > { %10836 = vmatprep.subr.mxu0 %v15129_v40  ;;  %10907 = vmatprep.subr.mxu1 %v15134_v53 }
 0x666   : > { %10837 = vmatpush1.msra.mxu0 %v15141_v33  ;;  %10908 = vmatpush1.msra.mxu1 %v15146_v5 }
 0x667   : > { %10838 = vmatprep.subr.mxu0 %v15153_v1  ;;  %10909 = vmatprep.subr.mxu1 %v15158_v32 }
 0x668   : > { %10839 = vmatpush1.msra.mxu0 %v15165_v13  ;;  %10910 = vmatpush1.msra.mxu1 %v15170_v11 }
 0x669   : > { %10840 = vmatprep.subr.mxu0 %v15177_v41  ;;  %10911 = vmatprep.subr.mxu1 %v15182_v44 }
 0x66a   : > { %10841 = vmatpush1.msra.mxu0 %v15189_v9  ;;  %10912 = vmatpush1.msra.mxu1 %v15194_v2 }
 0x66b   : > { %10842 = vmatprep.subr.mxu0 %v15201_v27  ;;  %10913 = vmatprep.subr.mxu1 %v15206_v63 }
 0x66c   : > { %10843 = vmatpush1.msra.mxu0 %v15213_v24  ;;  %10914 = vmatpush1.msra.mxu1 %v15218_v25 }
 0x66d   : > { %10844 = vmatprep.subr.mxu0 %v15225_v59  ;;  %10915 = vmatprep.subr.mxu1 %v15230_v23 }
 0x66e   : > { %10845 = vmatpush1.msra.mxu0 %v15237_v48  ;;  %10916 = vmatpush1.msra.mxu1 %v15242_v49 }
 0x66f   : > { %10846 = vmatprep.subr.mxu0 %v15249_v31  ;;  %10917 = vmatprep.subr.mxu1 %v15254_v0 }
 0x670   : > { %10847 = vmatpush1.msra.mxu0 %v15261_v19  ;;  %10918 = vmatpush1.msra.mxu1 %v15266_v30  ;;  %v10817_v19 = vld [vmem:[#allocation4 + $0x1] ss:$2 sm:$0xf] }
 0x671   : > { %10848 = vmatprep.subr.mxu0 %v15273_v34  ;;  %10919 = vmatprep.subr.mxu1 %v15278_v35 }
 0x672   : > { %10849 = vmatpush1.msra.mxu0 %v15285_v12  ;;  %10920 = vmatpush1.msra.mxu1 %v15290_v15  ;;  %v10818_v12 = vadd.f32 %v10817_v19, %v15405_v56  ;;  %v11047_v56 = vld [vmem:[%s15589_s10 + $0x40] sm:$0xff] }
 0x673   : > { %10850 = vmatprep.subr.mxu0 %v15297_v62  ;;  %10921 = vmatprep.subr.mxu1 %v15302_v45 }
 0x674   : > { %10851 = vmatpush1.msra.mxu0 %v15309_v18  ;;  %10922 = vmatpush1.msra.mxu1 %v15314_v17 }
 0x675   : > { %10852 = vmatprep.subr.mxu0 %v15321_v16  ;;  %10923 = vmatprep.subr.mxu1 %v15326_v43 }
 0x676   : > { %10853 = vmatpush1.msra.mxu0 %v10524_v58  ;;  %10886 = vmatprep.mubr.f32.mxu0 %v13070_v36 }
 0x677   : > { %10924 = vmatpush1.msra.mxu1 %v10526_v22  ;;  %10957 = vmatprep.mubr.f32.mxu1 %v13070_v36 }
 0x678   : > { %12108 = vmatprep.subr.mxu0 %v13070_v36  ;;  %12137 = vmatprep.subr.mxu1 %v13070_v36 }
 0x71c   : > { %v10662_v60 = vpop.f32.mrf.mxu0  ;;  %v10733_v46 = vpop.f32.mrf.mxu1 }
 0x71e   : > { %v10664_v26 = vpop.f32.mrf.mxu0  ;;  %v10735_v8 = vpop.f32.mrf.mxu1 }
 0x71f   : > { %v10742_v50 = vcombine.low %v10662_v60, %v10664_v26  ;;  %v10743_v20 = vcombine.low %v10733_v46, %v10735_v8  ;;  %v11050_v8 = vld [vmem:[%s15589_s10 + $0x58] sm:$0xff] }
 0x721   : > { %v10750_v6 = vrot.slane %v10742_v50, %v14415_v61  ;;  %v10757_v47 = vrot.slane %v10743_v20, %v14415_v61  ;;  %v11049_v50 = vld [vmem:[%s15589_s10 + $0x50] sm:$0xff]  ;;  %v11048_v20 = vld [vmem:[%s15589_s10 + $0x48] sm:$0xff] }
 0x723   : > { %v10758_v3 = vcombine.low %v10750_v6, %v10757_v47 }
 0x725   : > { %v10765_v7 = vrot.slane %v10758_v3, %v14415_v61 }
 0x727   : > { %v10767_v57 = vadd.f32 %v10765_v7, %v10578_v37 }
 0x729   : > { %10783 = vrot.lane.b32.xlu1 %v10767_v57, %s13071_s17  ;;  %10775 = vrot.lane.b32.xlu0 %v10767_v57, %s13072_s20  ;;  %v11929_v38 = vmul.f32 -1.442695, %v10767_v57  ;;  %v11045_v57 = vld [vmem:[%s15589_s10 + $0x30] sm:$0xff] }
 0x72b   : > { %12975 = vpow2.f32 %v11929_v38  ;;  %v11044_v38 = vld [vmem:[%s15589_s10 + $0x28] sm:$0xff] }
 0x738   : > { %v12976_v29 = vpop.eup %12975 }
 0x739   : > { %v10771_v21 = vadd.f32 1.0, %v12976_v29  ;;  %v11043_v29 = vld [vmem:[%s15589_s10 + $0x20] sm:$0xff] }
 0x73b   : > { %12977 = vrcp.f32 %v10771_v21  ;;  %v11042_v21 = vld [vmem:[%s15589_s10 + $0x18] sm:$0xff] }
 0x748   : > { %v12978_v51 = vpop.eup %12977 }
 0x749   : > { %v10796_v40 = vmul.f32 0.0, %v12978_v51 }
 0x79b   : > { %v10776_v52 = vpop.permute.xlu0 %10775  ;;  %v10784_v1 = vpop.permute.xlu1 %10783 }
 0x79c   : > { %v10777_v54 = vrot.slane %v10776_v52, 1  ;;  %v10778_v55 = vrot.slane %v10776_v52, 2  ;;  %v10785_v32 = vrot.slane %v10784_v1, 2  ;;  %v10786_v13 = vrot.slane %v10784_v1, 3  ;;  %v11041_v52 = vld [vmem:[%s15589_s10 + $0x10] sm:$0xff]  ;;  %v11139_v1 = vld [vmem:[%s15591_s12 + $0x18] sm:$0xff] }
 0x79e   : > { %v10780_v4 = vsel %vm10779_vm3, %v10777_v54, %v10778_v55  ;;  %v10788_v11 = vsel %vm10787_vm5, %v10785_v32, %v10786_v13  ;;  %v11040_v54 = vld [vmem:[%s15589_s10 + $0x8] sm:$0xff]  ;;  %v11039_v55 = vld [vmem:[%s15589_s10] sm:$0xff] }
 0x79f   : > { %12979 = vtanh.f32 %v10780_v4  ;;  %v11930_v41 = vmul.f32 -1.442695, %v10788_v11 }
 0x7ac   : > { %v12980_v10 = vpop.eup %12979 }
 0x7ad   : > { %v10797_v39 = vmul.f32 %v12980_v10, %v12978_v51  ;;  %v11148_v51 = vld [vmem:[%s15591_s12 + $0x60] sm:$0xf]  ;;  %v11147_v10 = vld [vmem:[%s15591_s12 + $0x58] sm:$0xff] }
 0x7af   : > { %10799 = vrot.lane.b32.xlu0 %v10797_v39, %s13073_s27  ;;  %v11146_v39 = vld [vmem:[%s15591_s12 + $0x50] sm:$0xff] }
 0x821   : > { %v10800_v28 = vpop.permute.xlu0 %10799 }
 0x822   : > { %v10801_v42 = vrot.slane %v10800_v28, 7 }
 0x824   : > { %v10802_v53 = vsel %vm10579_vm4, %v10801_v42, %v10800_v28  ;;  %v11145_v28 = vld [vmem:[%s15591_s12 + $0x48] sm:$0xff]  ;;  %v11144_v42 = vld [vmem:[%s15591_s12 + $0x40] sm:$0xff] }
 0x825   : > { %v15416_v33 = vadd.f32 %v10802_v53, %v10796_v40  ;;  %v11143_v40 = vld [vmem:[%s15591_s12 + $0x38] sm:$0xff]  ;;  %v11142_v53 = vld [vmem:[%s15591_s12 + $0x30] sm:$0xff] }
 0x827   : > { %12981 = vtanh.f32 %v15416_v33 }
 0x828   : > { %12983 = vpow2.f32 %v11930_v41 }
 0x834   : > { %v12982_v5 = vpop.eup %12981 }
 0x835   : > { %10807 = vrot.lane.b32.xlu1 %v12982_v5, %s13074_s21  ;;  %v12984_v44 = vpop.eup %12983  ;;  %v11140_v5 = vld [vmem:[%s15591_s12 + $0x20] sm:$0xff] }
 0x836   : > { %v10793_v9 = vadd.f32 1.0, %v12984_v44 }
 0x838   : > { %12985 = vrcp.f32 %v10793_v9 }
 0x845   : > { %v12986_v63 = vpop.eup %12985 }
 0x8a7   : > { %v10808_v2 = vpop.permute.xlu1 %10807 }
 0x8a8   : > { %v10809_v27 = vrot.slane %v10808_v2, 1 }
 0x8aa   : > { %v10811_v24 = vsel %vm10810_vm6, %v10808_v2, %v10809_v27 }
 0x8ab   : > { %v10813_v25 = vmul.f32 %v12986_v63, %v10811_v24 }
 0x8ad   : > { %11933 = vmatmul.mubr.msk.f32.vlgmr.msra.gmra.mxu0 %vm10579_vm4, %v10813_v25  ;;  %11936 = vmatmul.mubr.msk.f32.vlgmr.msra.gmra.mxu1 %vm10579_vm4, %v10813_v25  ;;  %10815 = vst.msk [vmem:[#allocation5] sm:$0x1] %vm10814_vm7, %v10813_v25 }
 0x8ae   : > { %12134 = vmatprep.mubr.msk.f32.mxu0 %vm13075_vm8, %v13070_v36  ;;  %12163 = vmatprep.mubr.msk.f32.mxu1 %vm13075_vm8, %v13070_v36 }
 0x8af   : > { %12138 = vmatpush3.msk.msra.mxu1 %vm10583_vm2, %v11148_v51 }
 0x8b0   : > { %12139 = vmatprep.subr.mxu1 %v13070_v36 }
 0x8b1   : > { %12140 = vmatpush3.msra.mxu1 %v11147_v10 }
 0x8b2   : > { %12141 = vmatprep.subr.mxu1 %v13070_v36 }
 0x8b3   : > { %12142 = vmatpush3.msra.mxu1 %v11146_v39 }
 0x8b4   : > { %12143 = vmatprep.subr.mxu1 %v13070_v36 }
 0x8b5   : > { %12144 = vmatpush3.msra.mxu1 %v11145_v28 }
 0x8b6   : > { %12145 = vmatprep.subr.mxu1 %v13070_v36 }
 0x8b7   : > { %12146 = vmatpush3.msra.mxu1 %v11144_v42 }
 0x8b8   : > { %12147 = vmatprep.subr.mxu1 %v13070_v36 }
 0x8b9   : > { %12148 = vmatpush3.msra.mxu1 %v11143_v40 }
 0x8ba   : > { %12149 = vmatprep.subr.mxu1 %v13070_v36 }
 0x8bb   : > { %12150 = vmatpush3.msra.mxu1 %v11142_v53 }
 0x8bc   : > { %12151 = vmatprep.subr.mxu1 %v13070_v36 }
 0x96d   : > { %v10888_v59 = vpop.f32.mrf.mxu0  ;;  %v10959_v23 = vpop.f32.mrf.mxu1 }
 0x96f   : > { %v10890_v48 = vpop.f32.mrf.mxu0  ;;  %v10961_v49 = vpop.f32.mrf.mxu1 }
 0x970   : > { %v10968_v31 = vcombine.low %v10888_v59, %v10890_v48  ;;  %v10969_v0 = vcombine.low %v10959_v23, %v10961_v49  ;;  %v11138_v48 = vld [vmem:[%s15591_s12 + $0x10] sm:$0xff]  ;;  %v11137_v49 = vld [vmem:[%s15591_s12 + $0x8] sm:$0xff] }
 0x972   : > { %v10976_v30 = vrot.slane %v10968_v31, %v14415_v61  ;;  %v10983_v34 = vrot.slane %v10969_v0, %v14415_v61  ;;  %v11136_v31 = vld [vmem:[%s15591_s12] sm:$0xff] }
 0x973   : > { %v11939_v0 = vld [vmem:[%s15590_s11] ss:$0 sm:$0xff] }
 0x974   : > { %v10984_v35 = vcombine.low %v10976_v30, %v10983_v34 }
 0x976   : > { %v10991_v15 = vrot.slane %v10984_v35, %v14415_v61  ;;  %v11051_v61 = vld [vmem:[%s15589_s10 + $0x60] sm:$0xf] }
 0x977   : > { %12109 = vmatpush3.msk.msra.mxu0 %vm10583_vm2, %v11051_v61 }
 0x978   : > { %v10993_v62 = vadd.f32 %v10991_v15, %v10818_v12  ;;  %12110 = vmatprep.subr.mxu0 %v13070_v36  ;;  %v11942_v12 = vld [vmem:[%s15592_s13] ss:$0 sm:$0xff] }
 0x979   : > { %12111 = vmatpush3.msra.mxu0 %v11050_v8 }
 0x97a   : > { %11001 = vrot.lane.b32.xlu0 %v10993_v62, %s13072_s20  ;;  %v11937_v45 = vmul.f32 -1.442695, %v10993_v62  ;;  %12112 = vmatprep.subr.mxu0 %v13070_v36 }
 0x97b   : > { %12113 = vmatpush3.msra.mxu0 %v11049_v50 }
 0x97c   : > { %12987 = vpow2.f32 %v11937_v45  ;;  %12114 = vmatprep.subr.mxu0 %v13070_v36 }
 0x97d   : > { %12115 = vmatpush3.msra.mxu0 %v11048_v20 }
 0x97e   : > { %11008 = vrot.lane.b32.xlu0 %v10993_v62, %s13071_s17  ;;  %12116 = vmatprep.subr.mxu0 %v13070_v36 }
 0x97f   : > { %12117 = vmatpush3.msra.mxu0 %v11047_v56 }
 0x980   : > { %12118 = vmatprep.subr.mxu0 %v13070_v36 }
 0x981   : > { %12119 = vmatpush3.msra.mxu0 %v11046_v14 }
 0x982   : > { %12120 = vmatprep.subr.mxu0 %v13070_v36 }
 0x983   : > { %12121 = vmatpush3.msra.mxu0 %v11045_v57 }
 0x984   : > { %12122 = vmatprep.subr.mxu0 %v13070_v36 }
 0x985   : > { %12123 = vmatpush3.msra.mxu0 %v11044_v38 }
 0x986   : > { %12124 = vmatprep.subr.mxu0 %v13070_v36 }
 0x987   : > { %12125 = vmatpush3.msra.mxu0 %v11043_v29 }
 0x988   : > { %12126 = vmatprep.subr.mxu0 %v13070_v36 }
 0x989   : > { %v12988_v18 = vpop.eup %12987  ;;  %12127 = vmatpush3.msra.mxu0 %v11042_v21 }
 0x98a   : > { %v10997_v17 = vadd.f32 1.0, %v12988_v18  ;;  %12128 = vmatprep.subr.mxu0 %v13070_v36 }
 0x98b   : > { %12129 = vmatpush3.msra.mxu0 %v11041_v52 }
 0x98c   : > { %12989 = vrcp.f32 %v10997_v17  ;;  %12130 = vmatprep.subr.mxu0 %v13070_v36 }
 0x98d   : > { %12131 = vmatpush3.msra.mxu0 %v11040_v54 }
 0x98e   : > { %12132 = vmatprep.subr.mxu0 %v13070_v36 }
 0x98f   : > { %12133 = vmatpush3.msra.mxu0 %v11039_v55 }
 0x999   : > { %v12990_v60 = vpop.eup %12989 }
 0x99a   : > { %v11020_v3 = vmul.f32 %v12990_v60, %v15416_v33  ;;  %v11141_v33 = vld [vmem:[%s15591_s12 + $0x28] sm:$0xff] }
 0x99b   : > { %12152 = vmatpush3.msra.mxu1 %v11141_v33 }
 0x99c   : > { %12153 = vmatprep.subr.mxu1 %v13070_v36 }
 0x99d   : > { %12154 = vmatpush3.msra.mxu1 %v11140_v5 }
 0x99e   : > { %12155 = vmatprep.subr.mxu1 %v13070_v36 }
 0x99f   : > { %12156 = vmatpush3.msra.mxu1 %v11139_v1 }
 0x9a0   : > { %12157 = vmatprep.subr.mxu1 %v13070_v36 }
 0x9a1   : > { %12158 = vmatpush3.msra.mxu1 %v11138_v48 }
 0x9a2   : > { %12159 = vmatprep.subr.mxu1 %v13070_v36 }
 0x9a3   : > { %12160 = vmatpush3.msra.mxu1 %v11137_v49 }
 0x9a4   : > { %12161 = vmatprep.subr.mxu1 %v13070_v36 }
 0x9a5   : > { %12162 = vmatpush3.msra.mxu1 %v11136_v31 }
 0x9ec   : > { %v11002_v16 = vpop.permute.xlu0 %11001 }
 0x9ed   : > { %v11003_v43 = vrot.slane %v11002_v16, 1  ;;  %v11004_v58 = vrot.slane %v11002_v16, 2 }
 0x9ef   : > { %v11005_v22 = vsel %vm10779_vm3, %v11003_v43, %v11004_v58 }
 0x9f0   : > { %12991 = vtanh.f32 %v11005_v22  ;;  %v11009_v32 = vpop.permute.xlu0 %11008 }
 0x9f1   : > { %v11010_v13 = vrot.slane %v11009_v32, 2  ;;  %v11011_v11 = vrot.slane %v11009_v32, 3 }
 0x9f3   : > { %v11012_v41 = vsel %vm10787_vm5, %v11010_v13, %v11011_v11 }
 0x9f4   : > { %v11938_v44 = vmul.f32 -1.442695, %v11012_v41 }
 0x9fd   : > { %v12992_v46 = vpop.eup %12991 }
 0x9fe   : > { %v11021_v26 = vmul.f32 %v12992_v46, %v12990_v60 }
 0xa00   : > { %11023 = vrot.lane.b32.xlu1 %v11021_v26, %s13073_s27 }
 0xa72   : > { %v11024_v6 = vpop.permute.xlu1 %11023 }
 0xa73   : > { %v11025_v47 = vrot.slane %v11024_v6, 7 }
 0xa75   : > { %v11026_v37 = vsel %vm10579_vm4, %v11025_v47, %v11024_v6 }
 0xa76   : > { %v11028_v7 = vadd.f32 %v11026_v37, %v11020_v3 }
 0xa78   : > { %12993 = vtanh.f32 %v11028_v7 }
 0xa79   : > { %12995 = vpow2.f32 %v11938_v44 }
 0xa85   : > { %v12994_v4 = vpop.eup %12993 }
 0xa86   : > { %11031 = vrot.lane.b32.xlu1 %v12994_v4, %s13074_s21  ;;  %v12996_v9 = vpop.eup %12995 }
 0xa87   : > { %v11017_v2 = vadd.f32 1.0, %v12996_v9 }
 0xa89   : > { %12997 = vrcp.f32 %v11017_v2 }
 0xa96   : > { %v12998_v24 = vpop.eup %12997 }
 0xaf8   : > { %v11032_v27 = vpop.permute.xlu1 %11031 }
 0xaf9   : > { %v11033_v63 = vrot.slane %v11032_v27, 1 }
 0xafb   : > { %v11034_v25 = vsel %vm10810_vm6, %v11032_v27, %v11033_v63 }
 0xafc   : > { %v11036_v59 = vmul.f32 %v12998_v24, %v11034_v25 }
 0xafe   : > { %11037 = vst.msk [vmem:[#allocation5 + $0x1] sm:$0x1] %vm10814_vm7, %v11036_v59 }
 0xb05   : > { %v11038_v23 = vld [vmem:[#allocation5] sm:$0x3] }
 0xb06   : > { %12135 = vmatmul.mubr.msk.f32.vlgmr.msra.gmra.mxu0 %vm10579_vm4, %v11038_v23 }
 0xbc6   : > { %v11131_v19 = vpop.f32.mrf.mxu0 }
 0xbc7   : > { %v11132_v30 = vadd.f32 %v11939_v0, %v11131_v19 }
 0xbc8   : > { %v12136_v34 = vpop.f32.mrf.mxu0 }
 0xbc9   : > { %v11135_v35 = vmax.f32 %v11132_v30, 0.0 }
 0xbcb   : > { %12164 = vmatmul.mubr.msk.f32.vlgmr.msra.gmra.mxu1 %vm10579_vm4, %v11135_v35 }
 0xc8b   : > { %v11228_v36 = vpop.f32.mrf.mxu1 }
 0xc8c   : > { %v11229_v15 = vadd.f32 %v11942_v12, %v11228_v36 }
 0xc8d   : > { %v12165_v62 = vpop.f32.mrf.mxu1 }
 0xc8e   : > { %11233 = vst.msk [vmem:[#allocation6] sm:$0x3] %vm11232_vm9, %v11229_v15 }
 0xc8f PF: > { %p12174_p6 = scmp.eq.s32.totalorder %s13166_s19, 3  ;;  %s13076_s30 = smov [#allocation6]  }
 0xc90   : > { %s11241_s24 = sshll.u32 %s13076_s30, 4  ;;  %s13077_s21 = smov [#allocation8]   ;;  %s11242_s24 = int_to_ptr.vmem [resolvable:$true] %s11241_s24 }
 0xc91   : > { %s11251_s16 = sshll.u32 %s13077_s21, 4  ;;  %s12999_s17 = scalar_lea.vmem %s11242_s24, 32  ;;  %s11252_s16 = int_to_ptr.vmem [resolvable:$true] %s11251_s16 }
 0xc92   : > { %p13000_p7 = scmp.ne.s32.totalorder %s11242_s24, %s12999_s17  ;;  %p13006_p10 = scmp.lt.s32.totalorder %s11242_s24, %s11242_s24 }
 0xc93   : > { %p13007_p11 = scmp.lt.s32.totalorder %s12999_s17, %s12999_s17 }
 0xc94   : > { %p13001_p8 = pnand %p13000_p7, %p12174_p6 }
 0xc95   : > { %p13008_p12 = por %p13007_p11, %p13006_p10 }
 0xc96   : > { %p13002_p9 = pneg %p13001_p8 }
 0xc98   : > { %p13009_p13 = pnand %p13008_p12, %p13002_p9 }
 0xc9a   : > { %13012 = shalt.err (!%p13009_p13)
}
 0xc9b   : > { %12167 = dma.vmem_to_hbm [thread:$0]  (%p12174_p6), %s11242_s24, 32, %s15593_s14, [#allocation7]  }
 0xc9c   : > { %s13023_s22 = scalar_lea.vmem %s11252_s16, 2048  ;;  %p13030_p3 = scmp.lt.s32.totalorder %s11252_s16, %s11252_s16 }
 0xc9d   : > { %p13024_p0 = scmp.ne.s32.totalorder %s11252_s16, %s13023_s22  ;;  %p13031_p4 = scmp.lt.s32.totalorder %s13023_s22, %s13023_s22 }
 0xc9f   : > { %p13025_p1 = pnand %p13024_p0, %p12174_p6  ;;  %p13032_p5 = por %p13031_p4, %p13030_p3 }
 0xca1   : > { %p13026_p2 = pneg %p13025_p1 }
 0xca3   : > { %p13033_p7 = pnand %p13032_p5, %p13026_p2 }
 0xca5   : > { %13036 = shalt.err (!%p13033_p7)
}
 0xca6   : > { %s13078_s23 = smov 128   ;;  %s13079_s25 = smov 8  }
 0xca7   : > { %12169 = dma.vmem_to_hbm [thread:$0]  (%p12174_p6), %s11252_s16, 2048, %s15594_s15, [#allocation9], %s13078_s23, %s13078_s23, %s13079_s25  }
 0xca8   : > { %13052 = dma.done.wait (%p12174_p6), [#allocation7], 32  }
 0xca9   : > { %13054 = vsyncadd (%p12174_p6), [#allocation7], 4294967264 }
 0xcaa   : > { %13056 = dma.done.wait (%p12174_p6), [#allocation9], 2048  }
 0xcab   : > { %13058 = vsyncadd (%p12174_p6), [#allocation9], 4294965248 }
 0xcac PF: > { %s28_s18 = sadd.s32 1, %s13061_s18  }
 0xcad   : > { %p25_p8 = scmp.ge.s32.totalorder %s28_s18, 6  }
 0xcaf   :  { %27 = sbr.rel (!%p25_p8) target bundleno = 2 (0x2), region = 126 }
 0xcb4   :  { %11271 = vsyncpa [#allocation7], 1 }
 0xcb5   :  { %11273 = vsyncpa [#allocation7 + $0x1], 1 }
 0xcb6   :  { %11274 = vsyncpa [#allocation9], 1 }

</bundles_post_ra>
